<compile_context>
chip_gen: v7x
topology: tpu7x:2x2x1
jax: 0.10.0
libtpu: 0.0.40
codegen_flags: <defaults>
</compile_context>

<pallas_src>
import jax
import jax.numpy as jnp
from jax.experimental import pallas as pl
from jax.experimental.pallas import tpu as pltpu

_BN_EPS = 1e-5
_CHANNELS = [1024, 512, 256, 128, 64, 32]   # stage i: Cin=_CHANNELS[i-1] -> Cout=_CHANNELS[i]
_NUM_STAGES = 5
# Row tiles for the in-kernel stage bodies: chosen so each f32 result tile
# (rows x 4*Cout) is <= 128 KB (32 vregs) -> stays in registers across the
# bias / ReLU / tap-store passes (perf-review items 6 & 7).
_ROW_TILE = {2: 32, 3: 64, 4: 128, 5: 256}


# ---------------------------------------------------------------------------
# In-kernel stage helpers (all operands already resident in VMEM)
# ---------------------------------------------------------------------------
def _tap_stage(x_ref, w_ref, b_ref, out_ref, cout, row_tile):
    """One convT(k=2,s=2) + folded-BN + ReLU stage.

    x_ref  : (P, Cin)            stage input (f32 or bf16 VMEM scratch)
    w_ref  : (Cin, 4*cout) bf16  tap-major weights, BN scale folded in
    b_ref  : (1, 4*cout)   f32   BN beta tiled over the 4 taps
    out_ref: (4*P, cout)         stage output; tap q -> contiguous row block
                                 (the 2x2 interleave as a pure pixel relabel).
    """
    p = x_ref.shape[0]
    rt = min(row_tile, p)
    w = w_ref[...]
    b = b_ref[...]
    for r0 in range(0, p, rt):
        xc = x_ref[r0:r0 + rt, :].astype(jnp.bfloat16)
        y = jnp.dot(xc, w, preferred_element_type=jnp.float32)
        y = jnp.maximum(y + b, 0.0)
        for q in range(4):                       # cast+store each tap as produced
            out_ref[q * p + r0:q * p + r0 + rt, :] = (
                y[:, q * cout:(q + 1) * cout].astype(out_ref.dtype))


def _last_stage(x_ref, w_ref, b_ref, wf_ref, out_ref, row_tile):
    """Stage 5 (64->32) with the folded final-1x1-conv weight multiply fused.

    Emits the lane-dense (P, 128) bf16 slab z = relu(x@w5 + b5) * wf; the
    4x32-lane reduce + final-BN beta + ReLU happen in the XLA wrapper
    (perf-review item 1, option (a): unmasked 128-lane stores).
    """
    p = x_ref.shape[0]
    rt = min(row_tile, p)
    w = w_ref[...]
    b = b_ref[...]
    wf = wf_ref[...]
    for r0 in range(0, p, rt):
        xc = x_ref[r0:r0 + rt, :]
        y = jnp.dot(xc, w, preferred_element_type=jnp.float32)
        y = jnp.maximum(y + b, 0.0)
        out_ref[r0:r0 + rt, :] = (y * wf).astype(out_ref.dtype)


# ---------------------------------------------------------------------------
# Fused Pallas kernel: grid=(4,) over stage-1 tap chunks (streams w1);
# stages 2..5 run on the last grid step from VMEM scratch.
# ---------------------------------------------------------------------------
def _fused_decoder_kernel(x_ref, w1, b1, w2, b2, w3, b3, w4, b4, w5, b5, wf,
                          o_ref, a1, a2, a3, a4):
    k = pl.program_id(0)
    m0 = x_ref.shape[0]

    # ---- stage 1, tap chunk k: only one (1024, 512) slice of w1 is resident
    #      per step, so w1's DMA streams instead of gating the whole body. ----
    y = jnp.dot(x_ref[...], w1[...], preferred_element_type=jnp.float32)
    y = jnp.maximum(y + b1[...], 0.0)
    r0 = pl.multiple_of(k * m0, m0)              # a1 is f32 -> 8-row aligned store
    a1[pl.ds(r0, m0), :] = y

    # ---- stages 2..5 once all of a1 has been produced (last grid step) ----
    @pl.when(k == pl.num_programs(0) - 1)
    def _():
        _tap_stage(a1, w2, b2, a2, _CHANNELS[2], _ROW_TILE[2])
        _tap_stage(a2, w3, b3, a3, _CHANNELS[3], _ROW_TILE[3])
        _tap_stage(a3, w4, b4, a4, _CHANNELS[4], _ROW_TILE[4])
        _last_stage(a4, w5, b5, wf, o_ref, _ROW_TILE[5])


def _fused_decoder_call(x2d, fp):
    """x2d: (M0, 1024) bf16 (batch folded into rows) -> (M4, 128) bf16 slab."""
    m0, c0 = x2d.shape
    assert m0 % 8 == 0, "batch*H0*W0 must be a multiple of 8"
    m4 = m0 * 4 ** (_NUM_STAGES - 1)
    cout1 = _CHANNELS[1]

    w1, b1 = fp["stages"][0]
    args = [x2d, w1, b1]
    in_specs = [
        pl.BlockSpec((m0, c0), lambda k: (0, 0)),            # input, fetched once
        pl.BlockSpec((_CHANNELS[0], cout1), lambda k: (0, k)),  # w1 streamed by tap
        pl.BlockSpec((1, cout1), lambda k: (0, k)),             # b1 chunk
    ]
    for w, b in fp["stages"][1:]:
        args += [w, b]
        in_specs += [pl.BlockSpec(w.shape, lambda k: (0, 0)),   # constant index ->
                     pl.BlockSpec(b.shape, lambda k: (0, 0))]   # fetched once
    args.append(fp["wf"])
    in_specs.append(pl.BlockSpec(fp["wf"].shape, lambda k: (0, 0)))

    # Per-stage activation scratch (tap-major row layout); a1 is f32 so the
    # dynamic 8-row chunk store is tile-aligned, later stages are bf16.
    scratch = [
        pltpu.VMEM((4 * m0, _CHANNELS[1]), jnp.float32),
        pltpu.VMEM((16 * m0, _CHANNELS[2]), jnp.bfloat16),
        pltpu.VMEM((64 * m0, _CHANNELS[3]), jnp.bfloat16),
        pltpu.VMEM((256 * m0, _CHANNELS[4]), jnp.bfloat16),
    ]

    # Advisory cost estimate (perf-review item 10).
    flops, m = 0, m0
    for i in range(_NUM_STAGES):
        flops += 2 * m * _CHANNELS[i] * 4 * _CHANNELS[i + 1]
        m *= 4
    bytes_w = sum(int(w.size) * 2 + int(b.size) * 4 for w, b in fp["stages"])
    bytes_w += int(fp["wf"].size) * 4
    bytes_io = int(x2d.size) * 2 + m4 * 4 * _CHANNELS[5] * 2
    cost = pl.CostEstimate(flops=flops, transcendentals=0,
                           bytes_accessed=bytes_w + bytes_io)

    return pl.pallas_call(
        _fused_decoder_kernel,
        out_shape=jax.ShapeDtypeStruct((m4, 4 * _CHANNELS[5]), jnp.bfloat16),
        grid_spec=pltpu.PrefetchScalarGridSpec(
            num_scalar_prefetch=0,
            grid=(4,),
            in_specs=in_specs,
            out_specs=pl.BlockSpec((m4, 4 * _CHANNELS[5]), lambda k: (0, 0)),
            scratch_shapes=scratch),
        compiler_params=pltpu.CompilerParams(
            # Steps are dependent (scratch carried, output written last) ->
            # "arbitrary".  On v7x a core-parallel batch split should be
            # benchmarked against the halved weight DMA of this fused form.
            dimension_semantics=("arbitrary",),
            vmem_limit_bytes=32 * 1024 * 1024),
        cost_estimate=cost,
    )(*args)


# ---------------------------------------------------------------------------
# JAX-side glue: weight folding (one-time), final reduce, pixel unscramble
# ---------------------------------------------------------------------------
def _deinterleave(o, n, h0, w0):
    """Undo the tap-major pixel relabel: (M4, 4) -> (N, 1, 32*H0, 32*W0).

    Row index r4 = q4*M3 + q3*M2 + q2*M1 + q1*M0 + n*P0 + h0*W0 + w0,
    column index = q5; each q = kh*2 + kw and h_new = 2*h + kh per stage.
    """
    s = _NUM_STAGES
    o = o.reshape((2, 2) * (s - 1) + (n, h0, w0, 2, 2))
    # axes: 0..7 = kh4,kw4,kh3,kw3,kh2,kw2,kh1,kw1 ; 8=n 9=h0 10=w0 ; 11,12=kh5,kw5
    o = jnp.transpose(o, (8, 9, 6, 4, 2, 0, 11, 10, 7, 5, 3, 1, 12))
    return o.reshape(n, 1, h0 * 2 ** s, w0 * 2 ** s)


def deconv_forward(x_nchw, fp):
    """NCHW input -> NCHW output for the fused decoder chain."""
    n, c0, h0, w0 = x_nchw.shape
    x2d = jnp.transpose(x_nchw, (0, 2, 3, 1)).reshape(n * h0 * w0, c0)
    z = _fused_decoder_call(x2d.astype(jnp.bfloat16), fp)        # (M4, 128) bf16
    # Final 1x1 conv's 32-lane reduce + folded-BN beta + ReLU (tiny, in XLA).
    zf = z.astype(jnp.float32).reshape(z.shape[0], 4, _CHANNELS[5])
    o = jnp.maximum(jnp.sum(zf, axis=-1) + fp["bf"], 0.0)        # (M4, 4)
    return _deinterleave(o, n, h0, w0)


def init_params(key):
    params = {"convt": [], "convf": None}
    keys = jax.random.split(key, 6 * 3)
    for i in range(_NUM_STAGES):
        cin, cout = _CHANNELS[i], _CHANNELS[i + 1]
        kw_, kg, kb = keys[3 * i], keys[3 * i + 1], keys[3 * i + 2]
        wt = jax.random.normal(kw_, (cin, cout, 2, 2), jnp.float32)
        wt = wt * (1.0 / jnp.sqrt(cin * 4.0))
        gamma = jax.random.uniform(kg, (cout,), jnp.float32, 0.5, 1.5)
        beta = jax.random.normal(kb, (cout,), jnp.float32) * 0.1
        params["convt"].append((wt, gamma, beta))
    kw_, kg, kb = keys[15], keys[16], keys[17]
    wf = jax.random.normal(kw_, (1, 32, 1, 1), jnp.float32) / jnp.sqrt(32.0)
    gf = jax.random.uniform(kg, (1,), jnp.float32, 0.5, 1.5)
    bf = jax.random.normal(kb, (1,), jnp.float32) * 0.1
    params["convf"] = (wf, gf, bf)
    return params


def fold_params(params):
    """One-time weight prep (outside the per-call jitted forward).

    Folds eval-mode BatchNorm scale into the matmul weights, lays columns out
    tap-major (kh, kw, cout) and casts the matmul weights to bf16.
    """
    fp = {"stages": [], "wf": None, "bf": None}
    for wt, gamma, beta in params["convt"]:
        cin, cout = wt.shape[0], wt.shape[1]
        scale = gamma / jnp.sqrt(1.0 + _BN_EPS)     # running_mean=0, var=1
        wcols = jnp.transpose(wt, (0, 2, 3, 1)).reshape(cin, 4 * cout)
        w = (wcols * jnp.tile(scale, 4)[None, :]).astype(jnp.bfloat16)
        b = jnp.tile(beta, 4).reshape(1, 4 * cout).astype(jnp.float32)
        fp["stages"].append((w, b))
    wf, gf, bf = params["convf"]
    sf = gf / jnp.sqrt(1.0 + _BN_EPS)
    wf_row = (wf.reshape(1, 32) * sf[:, None]).astype(jnp.float32)   # (1, 32)
    fp["wf"] = jnp.tile(wf_row, (1, 4))                              # (1, 128)
    fp["bf"] = bf.reshape(1, 1).astype(jnp.float32)
    return fp


# ---------------------------------------------------------------------------
# Pure-JAX f32 reference (standard per-stage interleave) for validation
# ---------------------------------------------------------------------------
def ref_forward(x_nchw, params):
    x = jnp.transpose(x_nchw, (0, 2, 3, 1)).astype(jnp.float32)
    for wt, gamma, beta in params["convt"]:
        n, h, w, _ = x.shape
        cout = wt.shape[1]
        y = jnp.einsum("nhwc,cokl->nhkwlo", x, wt).reshape(n, 2 * h, 2 * w, cout)
        scale = gamma / jnp.sqrt(1.0 + _BN_EPS)
        x = jnp.maximum(y * scale + beta, 0.0)
    wf, gf, bf = params["convf"]
    y = jnp.einsum("nhwc,oc->nhwo", x, wf.reshape(1, 32))
    y = jnp.maximum(y * (gf / jnp.sqrt(1.0 + _BN_EPS)) + bf, 0.0)
    return jnp.transpose(y, (0, 3, 1, 2))


if __name__ == "__main__":
    key = jax.random.PRNGKey(0)
    k_param, k_x = jax.random.split(key)
    params = init_params(k_param)
    fp = fold_params(params)      # weight prep done once, outside the forward

    # Module fixes Cin=1024; small spatial (2x2 -> 64x64 after 5 upsamples).
    x = jax.random.normal(k_x, (2, 1024, 2, 2), jnp.float32)

    fwd = jax.jit(deconv_forward)
    out = fwd(x, fp)
    jax.block_until_ready(out)
    assert out.shape == (2, 1, 64, 64), out.shape

    ref = ref_forward(x, params)
    max_err = float(jnp.max(jnp.abs(out - ref)))
    tol = 2e-2 + 3e-2 * float(jnp.max(jnp.abs(ref)))   # bf16-matmul tolerance
    rel_l2 = float(jnp.linalg.norm(out - ref) / (jnp.linalg.norm(ref) + 1e-12))
    assert max_err <= tol, f"numerical mismatch: max_err={max_err}, tol={tol}"
    assert rel_l2 <= 4e-2, f"relative-L2 mismatch: {rel_l2}"
    print("KERNEL_OK")
</pallas_src>

<mosaic_0001>
module attributes {stable_mosaic.version = 11 : i64} {
  func.func @_fused_decoder_kernel(%arg0: i32, %arg1: memref<8x1024xbf16, #tpu.memory_space<vmem>>, %arg2: memref<1024x512xbf16, #tpu.memory_space<vmem>>, %arg3: memref<1x512xf32, #tpu.memory_space<vmem>>, %arg4: memref<512x1024xbf16, #tpu.memory_space<vmem>>, %arg5: memref<1x1024xf32, #tpu.memory_space<vmem>>, %arg6: memref<256x512xbf16, #tpu.memory_space<vmem>>, %arg7: memref<1x512xf32, #tpu.memory_space<vmem>>, %arg8: memref<128x256xbf16, #tpu.memory_space<vmem>>, %arg9: memref<1x256xf32, #tpu.memory_space<vmem>>, %arg10: memref<64x128xbf16, #tpu.memory_space<vmem>>, %arg11: memref<1x128xf32, #tpu.memory_space<vmem>>, %arg12: memref<1x128xf32, #tpu.memory_space<vmem>>, %arg13: memref<2048x128xbf16, #tpu.memory_space<vmem>>, %arg14: memref<32x512xf32, #tpu.memory_space<vmem>>, %arg15: memref<128x256xbf16, #tpu.memory_space<vmem>>, %arg16: memref<512x128xbf16, #tpu.memory_space<vmem>>, %arg17: memref<2048x64xbf16, #tpu.memory_space<vmem>>) attributes {dimension_semantics = [#tpu.dimension_semantics<arbitrary>], iteration_bounds = array<i64: 4>, scalar_prefetch = 0 : i64, scratch_operands = 4 : i64, tpu.core_type = #tpu.core_type<tc>, window_params = [{pipeline_mode = #tpu.pipeline_mode<synchronous>, transform_indices = @transform_0, window_bounds = array<i64: 8, 1024>}, {transform_indices = @transform_1, window_bounds = array<i64: 1024, 512>}, {transform_indices = @transform_2, window_bounds = array<i64: 1, 512>}, {pipeline_mode = #tpu.pipeline_mode<synchronous>, transform_indices = @transform_3, window_bounds = array<i64: 512, 1024>}, {pipeline_mode = #tpu.pipeline_mode<synchronous>, transform_indices = @transform_4, window_bounds = array<i64: 1, 1024>}, {pipeline_mode = #tpu.pipeline_mode<synchronous>, transform_indices = @transform_5, window_bounds = array<i64: 256, 512>}, {pipeline_mode = #tpu.pipeline_mode<synchronous>, transform_indices = @transform_6, window_bounds = array<i64: 1, 512>}, {pipeline_mode = #tpu.pipeline_mode<synchronous>, transform_indices = @transform_7, window_bounds = array<i64: 128, 256>}, {pipeline_mode = #tpu.pipeline_mode<synchronous>, transform_indices = @transform_8, window_bounds = array<i64: 1, 256>}, {pipeline_mode = #tpu.pipeline_mode<synchronous>, transform_indices = @transform_9, window_bounds = array<i64: 64, 128>}, {pipeline_mode = #tpu.pipeline_mode<synchronous>, transform_indices = @transform_10, window_bounds = array<i64: 1, 128>}, {pipeline_mode = #tpu.pipeline_mode<synchronous>, transform_indices = @transform_11, window_bounds = array<i64: 1, 128>}, {pipeline_mode = #tpu.pipeline_mode<synchronous>, transform_indices = @transform_12, window_bounds = array<i64: 2048, 128>}]} {
    %c0 = arith.constant 0 : index
    %c0_0 = arith.constant 0 : index
    %0 = vector.load %arg1[%c0, %c0_0] : memref<8x1024xbf16, #tpu.memory_space<vmem>>, vector<8x1024xbf16>
    %c0_1 = arith.constant 0 : index
    %c0_2 = arith.constant 0 : index
    %1 = vector.load %arg2[%c0_1, %c0_2] : memref<1024x512xbf16, #tpu.memory_space<vmem>>, vector<1024x512xbf16>
    %cst = arith.constant dense<0.000000e+00> : vector<8x512xf32>
    %2 = tpu.matmul %0, %1, %cst {dimension_numbers = #tpu.dot_dimension_numbers<[1], [0], [0], [1], [0, 0, 1, 1], [], []>} : vector<8x1024xbf16>, vector<1024x512xbf16>, vector<8x512xf32> -> vector<8x512xf32>
    %c0_3 = arith.constant 0 : index
    %c0_4 = arith.constant 0 : index
    %3 = vector.load %arg3[%c0_3, %c0_4] : memref<1x512xf32, #tpu.memory_space<vmem>>, vector<1x512xf32>
    %4 = vector.broadcast %3 : vector<1x512xf32> to vector<8x512xf32>
    %5 = arith.addf %2, %4 : vector<8x512xf32>
    %cst_5 = arith.constant 0.000000e+00 : f32
    %6 = vector.broadcast %cst_5 : f32 to vector<8x512xf32>
    %7 = arith.maximumf %5, %6 : vector<8x512xf32>
    %c8_i32 = arith.constant 8 : i32
    %8 = arith.muli %arg0, %c8_i32 : i32
    %9 = tpu.assume_multiple %8, 8 : i32
    %10 = arith.index_cast %9 : i32 to index
    %c0_6 = arith.constant 0 : index
    %11 = vector.load %arg14[%10, %c0_6] : memref<32x512xf32, #tpu.memory_space<vmem>>, vector<8x512xf32>
    tpu.vector_store %arg14[%10, %c0_6], %7 {strides = array<i32>} : memref<32x512xf32, #tpu.memory_space<vmem>>, vector<8x512xf32>,
    %c3_i32 = arith.constant 3 : i32
    %12 = arith.cmpi eq, %arg0, %c3_i32 : i32
    %13 = arith.extui %12 : i1 to i32
    %c0_i32 = arith.constant 0 : i32
    %14 = arith.cmpi ne, %13, %c0_i32 : i32
    scf.if %14 {
      %c0_7 = arith.constant 0 : index
      %c0_8 = arith.constant 0 : index
      %15 = vector.load %arg4[%c0_7, %c0_8] : memref<512x1024xbf16, #tpu.memory_space<vmem>>, vector<512x1024xbf16>
      %c0_9 = arith.constant 0 : index
      %c0_10 = arith.constant 0 : index
      %16 = vector.load %arg5[%c0_9, %c0_10] : memref<1x1024xf32, #tpu.memory_space<vmem>>, vector<1x1024xf32>
      %c0_11 = arith.constant 0 : index
      %c0_12 = arith.constant 0 : index
      %17 = vector.load %arg14[%c0_11, %c0_12] : memref<32x512xf32, #tpu.memory_space<vmem>>, vector<32x512xf32>
      %18 = arith.truncf %17 : vector<32x512xf32> to vector<32x512xbf16>
      %cst_13 = arith.constant dense<0.000000e+00> : vector<32x1024xf32>
      %19 = tpu.matmul %18, %15, %cst_13 {dimension_numbers = #tpu.dot_dimension_numbers<[1], [0], [0], [1], [0, 0, 1, 1], [], []>} : vector<32x512xbf16>, vector<512x1024xbf16>, vector<32x1024xf32> -> vector<32x1024xf32>
      %20 = vector.broadcast %16 : vector<1x1024xf32> to vector<32x1024xf32>
      %21 = arith.addf %19, %20 : vector<32x1024xf32>
      %cst_14 = arith.constant 0.000000e+00 : f32
      %22 = vector.broadcast %cst_14 : f32 to vector<32x1024xf32>
      %23 = arith.maximumf %21, %22 : vector<32x1024xf32>
      %24 = vector.extract_strided_slice %23 {offsets = [0, 0], sizes = [32, 256], strides = [1, 1]} : vector<32x1024xf32> to vector<32x256xf32>
      %25 = arith.truncf %24 : vector<32x256xf32> to vector<32x256xbf16>
      %c0_15 = arith.constant 0 : index
      %c0_16 = arith.constant 0 : index
      %26 = vector.load %arg15[%c0_15, %c0_16] : memref<128x256xbf16, #tpu.memory_space<vmem>>, vector<32x256xbf16>
      tpu.vector_store %arg15[%c0_15, %c0_16], %25 {strides = array<i32>} : memref<128x256xbf16, #tpu.memory_space<vmem>>, vector<32x256xbf16>,
      %27 = vector.extract_strided_slice %23 {offsets = [0, 256], sizes = [32, 256], strides = [1, 1]} : vector<32x1024xf32> to vector<32x256xf32>
      %28 = arith.truncf %27 : vector<32x256xf32> to vector<32x256xbf16>
      %c32 = arith.constant 32 : index
      %c0_17 = arith.constant 0 : index
      %29 = vector.load %arg15[%c32, %c0_17] : memref<128x256xbf16, #tpu.memory_space<vmem>>, vector<32x256xbf16>
      tpu.vector_store %arg15[%c32, %c0_17], %28 {strides = array<i32>} : memref<128x256xbf16, #tpu.memory_space<vmem>>, vector<32x256xbf16>,
      %30 = vector.extract_strided_slice %23 {offsets = [0, 512], sizes = [32, 256], strides = [1, 1]} : vector<32x1024xf32> to vector<32x256xf32>
      %31 = arith.truncf %30 : vector<32x256xf32> to vector<32x256xbf16>
      %c64 = arith.constant 64 : index
      %c0_18 = arith.constant 0 : index
      %32 = vector.load %arg15[%c64, %c0_18] : memref<128x256xbf16, #tpu.memory_space<vmem>>, vector<32x256xbf16>
      tpu.vector_store %arg15[%c64, %c0_18], %31 {strides = array<i32>} : memref<128x256xbf16, #tpu.memory_space<vmem>>, vector<32x256xbf16>,
      %33 = vector.extract_strided_slice %23 {offsets = [0, 768], sizes = [32, 256], strides = [1, 1]} : vector<32x1024xf32> to vector<32x256xf32>
      %34 = arith.truncf %33 : vector<32x256xf32> to vector<32x256xbf16>
      %c96 = arith.constant 96 : index
      %c0_19 = arith.constant 0 : index
      %35 = vector.load %arg15[%c96, %c0_19] : memref<128x256xbf16, #tpu.memory_space<vmem>>, vector<32x256xbf16>
      tpu.vector_store %arg15[%c96, %c0_19], %34 {strides = array<i32>} : memref<128x256xbf16, #tpu.memory_space<vmem>>, vector<32x256xbf16>,
      %c0_20 = arith.constant 0 : index
      %c0_21 = arith.constant 0 : index
      %36 = vector.load %arg6[%c0_20, %c0_21] : memref<256x512xbf16, #tpu.memory_space<vmem>>, vector<256x512xbf16>
      %c0_22 = arith.constant 0 : index
      %c0_23 = arith.constant 0 : index
      %37 = vector.load %arg7[%c0_22, %c0_23] : memref<1x512xf32, #tpu.memory_space<vmem>>, vector<1x512xf32>
      %c0_24 = arith.constant 0 : index
      %c0_25 = arith.constant 0 : index
      %38 = vector.load %arg15[%c0_24, %c0_25] : memref<128x256xbf16, #tpu.memory_space<vmem>>, vector<64x256xbf16>
      %cst_26 = arith.constant dense<0.000000e+00> : vector<64x512xf32>
      %39 = tpu.matmul %38, %36, %cst_26 {dimension_numbers = #tpu.dot_dimension_numbers<[1], [0], [0], [1], [0, 0, 1, 1], [], []>} : vector<64x256xbf16>, vector<256x512xbf16>, vector<64x512xf32> -> vector<64x512xf32>
      %40 = vector.broadcast %37 : vector<1x512xf32> to vector<64x512xf32>
      %41 = arith.addf %39, %40 : vector<64x512xf32>
      %cst_27 = arith.constant 0.000000e+00 : f32
      %42 = vector.broadcast %cst_27 : f32 to vector<64x512xf32>
      %43 = arith.maximumf %41, %42 : vector<64x512xf32>
      %44 = vector.extract_strided_slice %43 {offsets = [0, 0], sizes = [64, 128], strides = [1, 1]} : vector<64x512xf32> to vector<64x128xf32>
      %45 = arith.truncf %44 : vector<64x128xf32> to vector<64x128xbf16>
      %c0_28 = arith.constant 0 : index
      %c0_29 = arith.constant 0 : index
      %46 = vector.load %arg16[%c0_28, %c0_29] : memref<512x128xbf16, #tpu.memory_space<vmem>>, vector<64x128xbf16>
      tpu.vector_store %arg16[%c0_28, %c0_29], %45 {strides = array<i32>} : memref<512x128xbf16, #tpu.memory_space<vmem>>, vector<64x128xbf16>,
      %47 = vector.extract_strided_slice %43 {offsets = [0, 128], sizes = [64, 128], strides = [1, 1]} : vector<64x512xf32> to vector<64x128xf32>
      %48 = arith.truncf %47 : vector<64x128xf32> to vector<64x128xbf16>
      %c128 = arith.constant 128 : index
      %c0_30 = arith.constant 0 : index
      %49 = vector.load %arg16[%c128, %c0_30] : memref<512x128xbf16, #tpu.memory_space<vmem>>, vector<64x128xbf16>
      tpu.vector_store %arg16[%c128, %c0_30], %48 {strides = array<i32>} : memref<512x128xbf16, #tpu.memory_space<vmem>>, vector<64x128xbf16>,
      %50 = vector.extract_strided_slice %43 {offsets = [0, 256], sizes = [64, 128], strides = [1, 1]} : vector<64x512xf32> to vector<64x128xf32>
      %51 = arith.truncf %50 : vector<64x128xf32> to vector<64x128xbf16>
      %c256 = arith.constant 256 : index
      %c0_31 = arith.constant 0 : index
      %52 = vector.load %arg16[%c256, %c0_31] : memref<512x128xbf16, #tpu.memory_space<vmem>>, vector<64x128xbf16>
      tpu.vector_store %arg16[%c256, %c0_31], %51 {strides = array<i32>} : memref<512x128xbf16, #tpu.memory_space<vmem>>, vector<64x128xbf16>,
      %53 = vector.extract_strided_slice %43 {offsets = [0, 384], sizes = [64, 128], strides = [1, 1]} : vector<64x512xf32> to vector<64x128xf32>
      %54 = arith.truncf %53 : vector<64x128xf32> to vector<64x128xbf16>
      %c384 = arith.constant 384 : index
      %c0_32 = arith.constant 0 : index
      %55 = vector.load %arg16[%c384, %c0_32] : memref<512x128xbf16, #tpu.memory_space<vmem>>, vector<64x128xbf16>
      tpu.vector_store %arg16[%c384, %c0_32], %54 {strides = array<i32>} : memref<512x128xbf16, #tpu.memory_space<vmem>>, vector<64x128xbf16>,
      %c64_33 = arith.constant 64 : index
      %c0_34 = arith.constant 0 : index
      %56 = vector.load %arg15[%c64_33, %c0_34] : memref<128x256xbf16, #tpu.memory_space<vmem>>, vector<64x256xbf16>
      %cst_35 = arith.constant dense<0.000000e+00> : vector<64x512xf32>
      %57 = tpu.matmul %56, %36, %cst_35 {dimension_numbers = #tpu.dot_dimension_numbers<[1], [0], [0], [1], [0, 0, 1, 1], [], []>} : vector<64x256xbf16>, vector<256x512xbf16>, vector<64x512xf32> -> vector<64x512xf32>
      %58 = vector.broadcast %37 : vector<1x512xf32> to vector<64x512xf32>
      %59 = arith.addf %57, %58 : vector<64x512xf32>
      %cst_36 = arith.constant 0.000000e+00 : f32
      %60 = vector.broadcast %cst_36 : f32 to vector<64x512xf32>
      %61 = arith.maximumf %59, %60 : vector<64x512xf32>
      %62 = vector.extract_strided_slice %61 {offsets = [0, 0], sizes = [64, 128], strides = [1, 1]} : vector<64x512xf32> to vector<64x128xf32>
      %63 = arith.truncf %62 : vector<64x128xf32> to vector<64x128xbf16>
      %c64_37 = arith.constant 64 : index
      %c0_38 = arith.constant 0 : index
      %64 = vector.load %arg16[%c64_37, %c0_38] : memref<512x128xbf16, #tpu.memory_space<vmem>>, vector<64x128xbf16>
      tpu.vector_store %arg16[%c64_37, %c0_38], %63 {strides = array<i32>} : memref<512x128xbf16, #tpu.memory_space<vmem>>, vector<64x128xbf16>,
      %65 = vector.extract_strided_slice %61 {offsets = [0, 128], sizes = [64, 128], strides = [1, 1]} : vector<64x512xf32> to vector<64x128xf32>
      %66 = arith.truncf %65 : vector<64x128xf32> to vector<64x128xbf16>
      %c192 = arith.constant 192 : index
      %c0_39 = arith.constant 0 : index
      %67 = vector.load %arg16[%c192, %c0_39] : memref<512x128xbf16, #tpu.memory_space<vmem>>, vector<64x128xbf16>
      tpu.vector_store %arg16[%c192, %c0_39], %66 {strides = array<i32>} : memref<512x128xbf16, #tpu.memory_space<vmem>>, vector<64x128xbf16>,
      %68 = vector.extract_strided_slice %61 {offsets = [0, 256], sizes = [64, 128], strides = [1, 1]} : vector<64x512xf32> to vector<64x128xf32>
      %69 = arith.truncf %68 : vector<64x128xf32> to vector<64x128xbf16>
      %c320 = arith.constant 320 : index
      %c0_40 = arith.constant 0 : index
      %70 = vector.load %arg16[%c320, %c0_40] : memref<512x128xbf16, #tpu.memory_space<vmem>>, vector<64x128xbf16>
      tpu.vector_store %arg16[%c320, %c0_40], %69 {strides = array<i32>} : memref<512x128xbf16, #tpu.memory_space<vmem>>, vector<64x128xbf16>,
      %71 = vector.extract_strided_slice %61 {offsets = [0, 384], sizes = [64, 128], strides = [1, 1]} : vector<64x512xf32> to vector<64x128xf32>
      %72 = arith.truncf %71 : vector<64x128xf32> to vector<64x128xbf16>
      %c448 = arith.constant 448 : index
      %c0_41 = arith.constant 0 : index
      %73 = vector.load %arg16[%c448, %c0_41] : memref<512x128xbf16, #tpu.memory_space<vmem>>, vector<64x128xbf16>
      tpu.vector_store %arg16[%c448, %c0_41], %72 {strides = array<i32>} : memref<512x128xbf16, #tpu.memory_space<vmem>>, vector<64x128xbf16>,
      %c0_42 = arith.constant 0 : index
      %c0_43 = arith.constant 0 : index
      %74 = vector.load %arg8[%c0_42, %c0_43] : memref<128x256xbf16, #tpu.memory_space<vmem>>, vector<128x256xbf16>
      %c0_44 = arith.constant 0 : index
      %c0_45 = arith.constant 0 : index
      %75 = vector.load %arg9[%c0_44, %c0_45] : memref<1x256xf32, #tpu.memory_space<vmem>>, vector<1x256xf32>
      %c0_46 = arith.constant 0 : index
      %c0_47 = arith.constant 0 : index
      %76 = vector.load %arg16[%c0_46, %c0_47] : memref<512x128xbf16, #tpu.memory_space<vmem>>, vector<128x128xbf16>
      %cst_48 = arith.constant dense<0.000000e+00> : vector<128x256xf32>
      %77 = tpu.matmul %76, %74, %cst_48 {dimension_numbers = #tpu.dot_dimension_numbers<[1], [0], [0], [1], [0, 0, 1, 1], [], []>} : vector<128x128xbf16>, vector<128x256xbf16>, vector<128x256xf32> -> vector<128x256xf32>
      %78 = vector.broadcast %75 : vector<1x256xf32> to vector<128x256xf32>
      %79 = arith.addf %77, %78 : vector<128x256xf32>
      %cst_49 = arith.constant 0.000000e+00 : f32
      %80 = vector.broadcast %cst_49 : f32 to vector<128x256xf32>
      %81 = arith.maximumf %79, %80 : vector<128x256xf32>
      %82 = vector.extract_strided_slice %81 {offsets = [0, 0], sizes = [128, 64], strides = [1, 1]} : vector<128x256xf32> to vector<128x64xf32>
      %83 = arith.truncf %82 : vector<128x64xf32> to vector<128x64xbf16>
      %c0_50 = arith.constant 0 : index
      %c0_51 = arith.constant 0 : index
      %84 = vector.load %arg17[%c0_50, %c0_51] : memref<2048x64xbf16, #tpu.memory_space<vmem>>, vector<128x64xbf16>
      tpu.vector_store %arg17[%c0_50, %c0_51], %83 {strides = array<i32>} : memref<2048x64xbf16, #tpu.memory_space<vmem>>, vector<128x64xbf16>,
      %85 = vector.extract_strided_slice %81 {offsets = [0, 64], sizes = [128, 64], strides = [1, 1]} : vector<128x256xf32> to vector<128x64xf32>
      %86 = arith.truncf %85 : vector<128x64xf32> to vector<128x64xbf16>
      %c512 = arith.constant 512 : index
      %c0_52 = arith.constant 0 : index
      %87 = vector.load %arg17[%c512, %c0_52] : memref<2048x64xbf16, #tpu.memory_space<vmem>>, vector<128x64xbf16>
      tpu.vector_store %arg17[%c512, %c0_52], %86 {strides = array<i32>} : memref<2048x64xbf16, #tpu.memory_space<vmem>>, vector<128x64xbf16>,
      %88 = vector.extract_strided_slice %81 {offsets = [0, 128], sizes = [128, 64], strides = [1, 1]} : vector<128x256xf32> to vector<128x64xf32>
      %89 = arith.truncf %88 : vector<128x64xf32> to vector<128x64xbf16>
      %c1024 = arith.constant 1024 : index
      %c0_53 = arith.constant 0 : index
      %90 = vector.load %arg17[%c1024, %c0_53] : memref<2048x64xbf16, #tpu.memory_space<vmem>>, vector<128x64xbf16>
      tpu.vector_store %arg17[%c1024, %c0_53], %89 {strides = array<i32>} : memref<2048x64xbf16, #tpu.memory_space<vmem>>, vector<128x64xbf16>,
      %91 = vector.extract_strided_slice %81 {offsets = [0, 192], sizes = [128, 64], strides = [1, 1]} : vector<128x256xf32> to vector<128x64xf32>
      %92 = arith.truncf %91 : vector<128x64xf32> to vector<128x64xbf16>
      %c1536 = arith.constant 1536 : index
      %c0_54 = arith.constant 0 : index
      %93 = vector.load %arg17[%c1536, %c0_54] : memref<2048x64xbf16, #tpu.memory_space<vmem>>, vector<128x64xbf16>
      tpu.vector_store %arg17[%c1536, %c0_54], %92 {strides = array<i32>} : memref<2048x64xbf16, #tpu.memory_space<vmem>>, vector<128x64xbf16>,
      %c128_55 = arith.constant 128 : index
      %c0_56 = arith.constant 0 : index
      %94 = vector.load %arg16[%c128_55, %c0_56] : memref<512x128xbf16, #tpu.memory_space<vmem>>, vector<128x128xbf16>
      %cst_57 = arith.constant dense<0.000000e+00> : vector<128x256xf32>
      %95 = tpu.matmul %94, %74, %cst_57 {dimension_numbers = #tpu.dot_dimension_numbers<[1], [0], [0], [1], [0, 0, 1, 1], [], []>} : vector<128x128xbf16>, vector<128x256xbf16>, vector<128x256xf32> -> vector<128x256xf32>
      %96 = vector.broadcast %75 : vector<1x256xf32> to vector<128x256xf32>
      %97 = arith.addf %95, %96 : vector<128x256xf32>
      %cst_58 = arith.constant 0.000000e+00 : f32
      %98 = vector.broadcast %cst_58 : f32 to vector<128x256xf32>
      %99 = arith.maximumf %97, %98 : vector<128x256xf32>
      %100 = vector.extract_strided_slice %99 {offsets = [0, 0], sizes = [128, 64], strides = [1, 1]} : vector<128x256xf32> to vector<128x64xf32>
      %101 = arith.truncf %100 : vector<128x64xf32> to vector<128x64xbf16>
      %c128_59 = arith.constant 128 : index
      %c0_60 = arith.constant 0 : index
      %102 = vector.load %arg17[%c128_59, %c0_60] : memref<2048x64xbf16, #tpu.memory_space<vmem>>, vector<128x64xbf16>
      tpu.vector_store %arg17[%c128_59, %c0_60], %101 {strides = array<i32>} : memref<2048x64xbf16, #tpu.memory_space<vmem>>, vector<128x64xbf16>,
      %103 = vector.extract_strided_slice %99 {offsets = [0, 64], sizes = [128, 64], strides = [1, 1]} : vector<128x256xf32> to vector<128x64xf32>
      %104 = arith.truncf %103 : vector<128x64xf32> to vector<128x64xbf16>
      %c640 = arith.constant 640 : index
      %c0_61 = arith.constant 0 : index
      %105 = vector.load %arg17[%c640, %c0_61] : memref<2048x64xbf16, #tpu.memory_space<vmem>>, vector<128x64xbf16>
      tpu.vector_store %arg17[%c640, %c0_61], %104 {strides = array<i32>} : memref<2048x64xbf16, #tpu.memory_space<vmem>>, vector<128x64xbf16>,
      %106 = vector.extract_strided_slice %99 {offsets = [0, 128], sizes = [128, 64], strides = [1, 1]} : vector<128x256xf32> to vector<128x64xf32>
      %107 = arith.truncf %106 : vector<128x64xf32> to vector<128x64xbf16>
      %c1152 = arith.constant 1152 : index
      %c0_62 = arith.constant 0 : index
      %108 = vector.load %arg17[%c1152, %c0_62] : memref<2048x64xbf16, #tpu.memory_space<vmem>>, vector<128x64xbf16>
      tpu.vector_store %arg17[%c1152, %c0_62], %107 {strides = array<i32>} : memref<2048x64xbf16, #tpu.memory_space<vmem>>, vector<128x64xbf16>,
      %109 = vector.extract_strided_slice %99 {offsets = [0, 192], sizes = [128, 64], strides = [1, 1]} : vector<128x256xf32> to vector<128x64xf32>
      %110 = arith.truncf %109 : vector<128x64xf32> to vector<128x64xbf16>
      %c1664 = arith.constant 1664 : index
      %c0_63 = arith.constant 0 : index
      %111 = vector.load %arg17[%c1664, %c0_63] : memref<2048x64xbf16, #tpu.memory_space<vmem>>, vector<128x64xbf16>
      tpu.vector_store %arg17[%c1664, %c0_63], %110 {strides = array<i32>} : memref<2048x64xbf16, #tpu.memory_space<vmem>>, vector<128x64xbf16>,
      %c256_64 = arith.constant 256 : index
      %c0_65 = arith.constant 0 : index
      %112 = vector.load %arg16[%c256_64, %c0_65] : memref<512x128xbf16, #tpu.memory_space<vmem>>, vector<128x128xbf16>
      %cst_66 = arith.constant dense<0.000000e+00> : vector<128x256xf32>
      %113 = tpu.matmul %112, %74, %cst_66 {dimension_numbers = #tpu.dot_dimension_numbers<[1], [0], [0], [1], [0, 0, 1, 1], [], []>} : vector<128x128xbf16>, vector<128x256xbf16>, vector<128x256xf32> -> vector<128x256xf32>
      %114 = vector.broadcast %75 : vector<1x256xf32> to vector<128x256xf32>
      %115 = arith.addf %113, %114 : vector<128x256xf32>
      %cst_67 = arith.constant 0.000000e+00 : f32
      %116 = vector.broadcast %cst_67 : f32 to vector<128x256xf32>
      %117 = arith.maximumf %115, %116 : vector<128x256xf32>
      %118 = vector.extract_strided_slice %117 {offsets = [0, 0], sizes = [128, 64], strides = [1, 1]} : vector<128x256xf32> to vector<128x64xf32>
      %119 = arith.truncf %118 : vector<128x64xf32> to vector<128x64xbf16>
      %c256_68 = arith.constant 256 : index
      %c0_69 = arith.constant 0 : index
      %120 = vector.load %arg17[%c256_68, %c0_69] : memref<2048x64xbf16, #tpu.memory_space<vmem>>, vector<128x64xbf16>
      tpu.vector_store %arg17[%c256_68, %c0_69], %119 {strides = array<i32>} : memref<2048x64xbf16, #tpu.memory_space<vmem>>, vector<128x64xbf16>,
      %121 = vector.extract_strided_slice %117 {offsets = [0, 64], sizes = [128, 64], strides = [1, 1]} : vector<128x256xf32> to vector<128x64xf32>
      %122 = arith.truncf %121 : vector<128x64xf32> to vector<128x64xbf16>
      %c768 = arith.constant 768 : index
      %c0_70 = arith.constant 0 : index
      %123 = vector.load %arg17[%c768, %c0_70] : memref<2048x64xbf16, #tpu.memory_space<vmem>>, vector<128x64xbf16>
      tpu.vector_store %arg17[%c768, %c0_70], %122 {strides = array<i32>} : memref<2048x64xbf16, #tpu.memory_space<vmem>>, vector<128x64xbf16>,
      %124 = vector.extract_strided_slice %117 {offsets = [0, 128], sizes = [128, 64], strides = [1, 1]} : vector<128x256xf32> to vector<128x64xf32>
      %125 = arith.truncf %124 : vector<128x64xf32> to vector<128x64xbf16>
      %c1280 = arith.constant 1280 : index
      %c0_71 = arith.constant 0 : index
      %126 = vector.load %arg17[%c1280, %c0_71] : memref<2048x64xbf16, #tpu.memory_space<vmem>>, vector<128x64xbf16>
      tpu.vector_store %arg17[%c1280, %c0_71], %125 {strides = array<i32>} : memref<2048x64xbf16, #tpu.memory_space<vmem>>, vector<128x64xbf16>,
      %127 = vector.extract_strided_slice %117 {offsets = [0, 192], sizes = [128, 64], strides = [1, 1]} : vector<128x256xf32> to vector<128x64xf32>
      %128 = arith.truncf %127 : vector<128x64xf32> to vector<128x64xbf16>
      %c1792 = arith.constant 1792 : index
      %c0_72 = arith.constant 0 : index
      %129 = vector.load %arg17[%c1792, %c0_72] : memref<2048x64xbf16, #tpu.memory_space<vmem>>, vector<128x64xbf16>
      tpu.vector_store %arg17[%c1792, %c0_72], %128 {strides = array<i32>} : memref<2048x64xbf16, #tpu.memory_space<vmem>>, vector<128x64xbf16>,
      %c384_73 = arith.constant 384 : index
      %c0_74 = arith.constant 0 : index
      %130 = vector.load %arg16[%c384_73, %c0_74] : memref<512x128xbf16, #tpu.memory_space<vmem>>, vector<128x128xbf16>
      %cst_75 = arith.constant dense<0.000000e+00> : vector<128x256xf32>
      %131 = tpu.matmul %130, %74, %cst_75 {dimension_numbers = #tpu.dot_dimension_numbers<[1], [0], [0], [1], [0, 0, 1, 1], [], []>} : vector<128x128xbf16>, vector<128x256xbf16>, vector<128x256xf32> -> vector<128x256xf32>
      %132 = vector.broadcast %75 : vector<1x256xf32> to vector<128x256xf32>
      %133 = arith.addf %131, %132 : vector<128x256xf32>
      %cst_76 = arith.constant 0.000000e+00 : f32
      %134 = vector.broadcast %cst_76 : f32 to vector<128x256xf32>
      %135 = arith.maximumf %133, %134 : vector<128x256xf32>
      %136 = vector.extract_strided_slice %135 {offsets = [0, 0], sizes = [128, 64], strides = [1, 1]} : vector<128x256xf32> to vector<128x64xf32>
      %137 = arith.truncf %136 : vector<128x64xf32> to vector<128x64xbf16>
      %c384_77 = arith.constant 384 : index
      %c0_78 = arith.constant 0 : index
      %138 = vector.load %arg17[%c384_77, %c0_78] : memref<2048x64xbf16, #tpu.memory_space<vmem>>, vector<128x64xbf16>
      tpu.vector_store %arg17[%c384_77, %c0_78], %137 {strides = array<i32>} : memref<2048x64xbf16, #tpu.memory_space<vmem>>, vector<128x64xbf16>,
      %139 = vector.extract_strided_slice %135 {offsets = [0, 64], sizes = [128, 64], strides = [1, 1]} : vector<128x256xf32> to vector<128x64xf32>
      %140 = arith.truncf %139 : vector<128x64xf32> to vector<128x64xbf16>
      %c896 = arith.constant 896 : index
      %c0_79 = arith.constant 0 : index
      %141 = vector.load %arg17[%c896, %c0_79] : memref<2048x64xbf16, #tpu.memory_space<vmem>>, vector<128x64xbf16>
      tpu.vector_store %arg17[%c896, %c0_79], %140 {strides = array<i32>} : memref<2048x64xbf16, #tpu.memory_space<vmem>>, vector<128x64xbf16>,
      %142 = vector.extract_strided_slice %135 {offsets = [0, 128], sizes = [128, 64], strides = [1, 1]} : vector<128x256xf32> to vector<128x64xf32>
      %143 = arith.truncf %142 : vector<128x64xf32> to vector<128x64xbf16>
      %c1408 = arith.constant 1408 : index
      %c0_80 = arith.constant 0 : index
      %144 = vector.load %arg17[%c1408, %c0_80] : memref<2048x64xbf16, #tpu.memory_space<vmem>>, vector<128x64xbf16>
      tpu.vector_store %arg17[%c1408, %c0_80], %143 {strides = array<i32>} : memref<2048x64xbf16, #tpu.memory_space<vmem>>, vector<128x64xbf16>,
      %145 = vector.extract_strided_slice %135 {offsets = [0, 192], sizes = [128, 64], strides = [1, 1]} : vector<128x256xf32> to vector<128x64xf32>
      %146 = arith.truncf %145 : vector<128x64xf32> to vector<128x64xbf16>
      %c1920 = arith.constant 1920 : index
      %c0_81 = arith.constant 0 : index
      %147 = vector.load %arg17[%c1920, %c0_81] : memref<2048x64xbf16, #tpu.memory_space<vmem>>, vector<128x64xbf16>
      tpu.vector_store %arg17[%c1920, %c0_81], %146 {strides = array<i32>} : memref<2048x64xbf16, #tpu.memory_space<vmem>>, vector<128x64xbf16>,
      %c0_82 = arith.constant 0 : index
      %c0_83 = arith.constant 0 : index
      %148 = vector.load %arg10[%c0_82, %c0_83] : memref<64x128xbf16, #tpu.memory_space<vmem>>, vector<64x128xbf16>
      %c0_84 = arith.constant 0 : index
      %c0_85 = arith.constant 0 : index
      %149 = vector.load %arg11[%c0_84, %c0_85] : memref<1x128xf32, #tpu.memory_space<vmem>>, vector<1x128xf32>
      %c0_86 = arith.constant 0 : index
      %c0_87 = arith.constant 0 : index
      %150 = vector.load %arg12[%c0_86, %c0_87] : memref<1x128xf32, #tpu.memory_space<vmem>>, vector<1x128xf32>
      %c0_88 = arith.constant 0 : index
      %c0_89 = arith.constant 0 : index
      %151 = vector.load %arg17[%c0_88, %c0_89] : memref<2048x64xbf16, #tpu.memory_space<vmem>>, vector<256x64xbf16>
      %cst_90 = arith.constant dense<0.000000e+00> : vector<256x128xf32>
      %152 = tpu.matmul %151, %148, %cst_90 {dimension_numbers = #tpu.dot_dimension_numbers<[1], [0], [0], [1], [0, 0, 1, 1], [], []>} : vector<256x64xbf16>, vector<64x128xbf16>, vector<256x128xf32> -> vector<256x128xf32>
      %153 = vector.broadcast %149 : vector<1x128xf32> to vector<256x128xf32>
      %154 = arith.addf %152, %153 : vector<256x128xf32>
      %cst_91 = arith.constant 0.000000e+00 : f32
      %155 = vector.broadcast %cst_91 : f32 to vector<256x128xf32>
      %156 = arith.maximumf %154, %155 : vector<256x128xf32>
      %157 = vector.broadcast %150 : vector<1x128xf32> to vector<256x128xf32>
      %158 = arith.mulf %156, %157 : vector<256x128xf32>
      %159 = arith.truncf %158 : vector<256x128xf32> to vector<256x128xbf16>
      %c0_92 = arith.constant 0 : index
      %c0_93 = arith.constant 0 : index
      %160 = vector.load %arg13[%c0_92, %c0_93] : memref<2048x128xbf16, #tpu.memory_space<vmem>>, vector<256x128xbf16>
      tpu.vector_store %arg13[%c0_92, %c0_93], %159 {strides = array<i32>} : memref<2048x128xbf16, #tpu.memory_space<vmem>>, vector<256x128xbf16>,
      %c256_94 = arith.constant 256 : index
      %c0_95 = arith.constant 0 : index
      %161 = vector.load %arg17[%c256_94, %c0_95] : memref<2048x64xbf16, #tpu.memory_space<vmem>>, vector<256x64xbf16>
      %cst_96 = arith.constant dense<0.000000e+00> : vector<256x128xf32>
      %162 = tpu.matmul %161, %148, %cst_96 {dimension_numbers = #tpu.dot_dimension_numbers<[1], [0], [0], [1], [0, 0, 1, 1], [], []>} : vector<256x64xbf16>, vector<64x128xbf16>, vector<256x128xf32> -> vector<256x128xf32>
      %163 = vector.broadcast %149 : vector<1x128xf32> to vector<256x128xf32>
      %164 = arith.addf %162, %163 : vector<256x128xf32>
      %cst_97 = arith.constant 0.000000e+00 : f32
      %165 = vector.broadcast %cst_97 : f32 to vector<256x128xf32>
      %166 = arith.maximumf %164, %165 : vector<256x128xf32>
      %167 = vector.broadcast %150 : vector<1x128xf32> to vector<256x128xf32>
      %168 = arith.mulf %166, %167 : vector<256x128xf32>
      %169 = arith.truncf %168 : vector<256x128xf32> to vector<256x128xbf16>
      %c256_98 = arith.constant 256 : index
      %c0_99 = arith.constant 0 : index
      %170 = vector.load %arg13[%c256_98, %c0_99] : memref<2048x128xbf16, #tpu.memory_space<vmem>>, vector<256x128xbf16>
      tpu.vector_store %arg13[%c256_98, %c0_99], %169 {strides = array<i32>} : memref<2048x128xbf16, #tpu.memory_space<vmem>>, vector<256x128xbf16>,
      %c512_100 = arith.constant 512 : index
      %c0_101 = arith.constant 0 : index
      %171 = vector.load %arg17[%c512_100, %c0_101] : memref<2048x64xbf16, #tpu.memory_space<vmem>>, vector<256x64xbf16>
      %cst_102 = arith.constant dense<0.000000e+00> : vector<256x128xf32>
      %172 = tpu.matmul %171, %148, %cst_102 {dimension_numbers = #tpu.dot_dimension_numbers<[1], [0], [0], [1], [0, 0, 1, 1], [], []>} : vector<256x64xbf16>, vector<64x128xbf16>, vector<256x128xf32> -> vector<256x128xf32>
      %173 = vector.broadcast %149 : vector<1x128xf32> to vector<256x128xf32>
      %174 = arith.addf %172, %173 : vector<256x128xf32>
      %cst_103 = arith.constant 0.000000e+00 : f32
      %175 = vector.broadcast %cst_103 : f32 to vector<256x128xf32>
      %176 = arith.maximumf %174, %175 : vector<256x128xf32>
      %177 = vector.broadcast %150 : vector<1x128xf32> to vector<256x128xf32>
      %178 = arith.mulf %176, %177 : vector<256x128xf32>
      %179 = arith.truncf %178 : vector<256x128xf32> to vector<256x128xbf16>
      %c512_104 = arith.constant 512 : index
      %c0_105 = arith.constant 0 : index
      %180 = vector.load %arg13[%c512_104, %c0_105] : memref<2048x128xbf16, #tpu.memory_space<vmem>>, vector<256x128xbf16>
      tpu.vector_store %arg13[%c512_104, %c0_105], %179 {strides = array<i32>} : memref<2048x128xbf16, #tpu.memory_space<vmem>>, vector<256x128xbf16>,
      %c768_106 = arith.constant 768 : index
      %c0_107 = arith.constant 0 : index
      %181 = vector.load %arg17[%c768_106, %c0_107] : memref<2048x64xbf16, #tpu.memory_space<vmem>>, vector<256x64xbf16>
      %cst_108 = arith.constant dense<0.000000e+00> : vector<256x128xf32>
      %182 = tpu.matmul %181, %148, %cst_108 {dimension_numbers = #tpu.dot_dimension_numbers<[1], [0], [0], [1], [0, 0, 1, 1], [], []>} : vector<256x64xbf16>, vector<64x128xbf16>, vector<256x128xf32> -> vector<256x128xf32>
      %183 = vector.broadcast %149 : vector<1x128xf32> to vector<256x128xf32>
      %184 = arith.addf %182, %183 : vector<256x128xf32>
      %cst_109 = arith.constant 0.000000e+00 : f32
      %185 = vector.broadcast %cst_109 : f32 to vector<256x128xf32>
      %186 = arith.maximumf %184, %185 : vector<256x128xf32>
      %187 = vector.broadcast %150 : vector<1x128xf32> to vector<256x128xf32>
      %188 = arith.mulf %186, %187 : vector<256x128xf32>
      %189 = arith.truncf %188 : vector<256x128xf32> to vector<256x128xbf16>
      %c768_110 = arith.constant 768 : index
      %c0_111 = arith.constant 0 : index
      %190 = vector.load %arg13[%c768_110, %c0_111] : memref<2048x128xbf16, #tpu.memory_space<vmem>>, vector<256x128xbf16>
      tpu.vector_store %arg13[%c768_110, %c0_111], %189 {strides = array<i32>} : memref<2048x128xbf16, #tpu.memory_space<vmem>>, vector<256x128xbf16>,
      %c1024_112 = arith.constant 1024 : index
      %c0_113 = arith.constant 0 : index
      %191 = vector.load %arg17[%c1024_112, %c0_113] : memref<2048x64xbf16, #tpu.memory_space<vmem>>, vector<256x64xbf16>
      %cst_114 = arith.constant dense<0.000000e+00> : vector<256x128xf32>
      %192 = tpu.matmul %191, %148, %cst_114 {dimension_numbers = #tpu.dot_dimension_numbers<[1], [0], [0], [1], [0, 0, 1, 1], [], []>} : vector<256x64xbf16>, vector<64x128xbf16>, vector<256x128xf32> -> vector<256x128xf32>
      %193 = vector.broadcast %149 : vector<1x128xf32> to vector<256x128xf32>
      %194 = arith.addf %192, %193 : vector<256x128xf32>
      %cst_115 = arith.constant 0.000000e+00 : f32
      %195 = vector.broadcast %cst_115 : f32 to vector<256x128xf32>
      %196 = arith.maximumf %194, %195 : vector<256x128xf32>
      %197 = vector.broadcast %150 : vector<1x128xf32> to vector<256x128xf32>
      %198 = arith.mulf %196, %197 : vector<256x128xf32>
      %199 = arith.truncf %198 : vector<256x128xf32> to vector<256x128xbf16>
      %c1024_116 = arith.constant 1024 : index
      %c0_117 = arith.constant 0 : index
      %200 = vector.load %arg13[%c1024_116, %c0_117] : memref<2048x128xbf16, #tpu.memory_space<vmem>>, vector<256x128xbf16>
      tpu.vector_store %arg13[%c1024_116, %c0_117], %199 {strides = array<i32>} : memref<2048x128xbf16, #tpu.memory_space<vmem>>, vector<256x128xbf16>,
      %c1280_118 = arith.constant 1280 : index
      %c0_119 = arith.constant 0 : index
      %201 = vector.load %arg17[%c1280_118, %c0_119] : memref<2048x64xbf16, #tpu.memory_space<vmem>>, vector<256x64xbf16>
      %cst_120 = arith.constant dense<0.000000e+00> : vector<256x128xf32>
      %202 = tpu.matmul %201, %148, %cst_120 {dimension_numbers = #tpu.dot_dimension_numbers<[1], [0], [0], [1], [0, 0, 1, 1], [], []>} : vector<256x64xbf16>, vector<64x128xbf16>, vector<256x128xf32> -> vector<256x128xf32>
      %203 = vector.broadcast %149 : vector<1x128xf32> to vector<256x128xf32>
      %204 = arith.addf %202, %203 : vector<256x128xf32>
      %cst_121 = arith.constant 0.000000e+00 : f32
      %205 = vector.broadcast %cst_121 : f32 to vector<256x128xf32>
      %206 = arith.maximumf %204, %205 : vector<256x128xf32>
      %207 = vector.broadcast %150 : vector<1x128xf32> to vector<256x128xf32>
      %208 = arith.mulf %206, %207 : vector<256x128xf32>
      %209 = arith.truncf %208 : vector<256x128xf32> to vector<256x128xbf16>
      %c1280_122 = arith.constant 1280 : index
      %c0_123 = arith.constant 0 : index
      %210 = vector.load %arg13[%c1280_122, %c0_123] : memref<2048x128xbf16, #tpu.memory_space<vmem>>, vector<256x128xbf16>
      tpu.vector_store %arg13[%c1280_122, %c0_123], %209 {strides = array<i32>} : memref<2048x128xbf16, #tpu.memory_space<vmem>>, vector<256x128xbf16>,
      %c1536_124 = arith.constant 1536 : index
      %c0_125 = arith.constant 0 : index
      %211 = vector.load %arg17[%c1536_124, %c0_125] : memref<2048x64xbf16, #tpu.memory_space<vmem>>, vector<256x64xbf16>
      %cst_126 = arith.constant dense<0.000000e+00> : vector<256x128xf32>
      %212 = tpu.matmul %211, %148, %cst_126 {dimension_numbers = #tpu.dot_dimension_numbers<[1], [0], [0], [1], [0, 0, 1, 1], [], []>} : vector<256x64xbf16>, vector<64x128xbf16>, vector<256x128xf32> -> vector<256x128xf32>
      %213 = vector.broadcast %149 : vector<1x128xf32> to vector<256x128xf32>
      %214 = arith.addf %212, %213 : vector<256x128xf32>
      %cst_127 = arith.constant 0.000000e+00 : f32
      %215 = vector.broadcast %cst_127 : f32 to vector<256x128xf32>
      %216 = arith.maximumf %214, %215 : vector<256x128xf32>
      %217 = vector.broadcast %150 : vector<1x128xf32> to vector<256x128xf32>
      %218 = arith.mulf %216, %217 : vector<256x128xf32>
      %219 = arith.truncf %218 : vector<256x128xf32> to vector<256x128xbf16>
      %c1536_128 = arith.constant 1536 : index
      %c0_129 = arith.constant 0 : index
      %220 = vector.load %arg13[%c1536_128, %c0_129] : memref<2048x128xbf16, #tpu.memory_space<vmem>>, vector<256x128xbf16>
      tpu.vector_store %arg13[%c1536_128, %c0_129], %219 {strides = array<i32>} : memref<2048x128xbf16, #tpu.memory_space<vmem>>, vector<256x128xbf16>,
      %c1792_130 = arith.constant 1792 : index
      %c0_131 = arith.constant 0 : index
      %221 = vector.load %arg17[%c1792_130, %c0_131] : memref<2048x64xbf16, #tpu.memory_space<vmem>>, vector<256x64xbf16>
      %cst_132 = arith.constant dense<0.000000e+00> : vector<256x128xf32>
      %222 = tpu.matmul %221, %148, %cst_132 {dimension_numbers = #tpu.dot_dimension_numbers<[1], [0], [0], [1], [0, 0, 1, 1], [], []>} : vector<256x64xbf16>, vector<64x128xbf16>, vector<256x128xf32> -> vector<256x128xf32>
      %223 = vector.broadcast %149 : vector<1x128xf32> to vector<256x128xf32>
      %224 = arith.addf %222, %223 : vector<256x128xf32>
      %cst_133 = arith.constant 0.000000e+00 : f32
      %225 = vector.broadcast %cst_133 : f32 to vector<256x128xf32>
      %226 = arith.maximumf %224, %225 : vector<256x128xf32>
      %227 = vector.broadcast %150 : vector<1x128xf32> to vector<256x128xf32>
      %228 = arith.mulf %226, %227 : vector<256x128xf32>
      %229 = arith.truncf %228 : vector<256x128xf32> to vector<256x128xbf16>
      %c1792_134 = arith.constant 1792 : index
      %c0_135 = arith.constant 0 : index
      %230 = vector.load %arg13[%c1792_134, %c0_135] : memref<2048x128xbf16, #tpu.memory_space<vmem>>, vector<256x128xbf16>
      tpu.vector_store %arg13[%c1792_134, %c0_135], %229 {strides = array<i32>} : memref<2048x128xbf16, #tpu.memory_space<vmem>>, vector<256x128xbf16>,
    } else {
    }
    return
  }
  func.func @transform_0(%arg0: i32) -> (i32, i32) {
    %c0_i32 = arith.constant 0 : i32
    %c0_i32_0 = arith.constant 0 : i32
    %c0_i32_1 = arith.constant 0 : i32
    return %c0_i32, %c0_i32_0 : i32, i32
  }
  func.func @transform_1(%arg0: i32) -> (i32, i32) {
    %c0_i32 = arith.constant 0 : i32
    %c0_i32_0 = arith.constant 0 : i32
    return %c0_i32, %arg0 : i32, i32
  }
  func.func @transform_2(%arg0: i32) -> (i32, i32) {
    %c0_i32 = arith.constant 0 : i32
    %c0_i32_0 = arith.constant 0 : i32
    return %c0_i32, %arg0 : i32, i32
  }
  func.func @transform_3(%arg0: i32) -> (i32, i32) {
    %c0_i32 = arith.constant 0 : i32
    %c0_i32_0 = arith.constant 0 : i32
    %c0_i32_1 = arith.constant 0 : i32
    return %c0_i32, %c0_i32_0 : i32, i32
  }
  func.func @transform_4(%arg0: i32) -> (i32, i32) {
    %c0_i32 = arith.constant 0 : i32
    %c0_i32_0 = arith.constant 0 : i32
    %c0_i32_1 = arith.constant 0 : i32
    return %c0_i32, %c0_i32_0 : i32, i32
  }
  func.func @transform_5(%arg0: i32) -> (i32, i32) {
    %c0_i32 = arith.constant 0 : i32
    %c0_i32_0 = arith.constant 0 : i32
    %c0_i32_1 = arith.constant 0 : i32
    return %c0_i32, %c0_i32_0 : i32, i32
  }
  func.func @transform_6(%arg0: i32) -> (i32, i32) {
    %c0_i32 = arith.constant 0 : i32
    %c0_i32_0 = arith.constant 0 : i32
    %c0_i32_1 = arith.constant 0 : i32
    return %c0_i32, %c0_i32_0 : i32, i32
  }
  func.func @transform_7(%arg0: i32) -> (i32, i32) {
    %c0_i32 = arith.constant 0 : i32
    %c0_i32_0 = arith.constant 0 : i32
    %c0_i32_1 = arith.constant 0 : i32
    return %c0_i32, %c0_i32_0 : i32, i32
  }
  func.func @transform_8(%arg0: i32) -> (i32, i32) {
    %c0_i32 = arith.constant 0 : i32
    %c0_i32_0 = arith.constant 0 : i32
    %c0_i32_1 = arith.constant 0 : i32
    return %c0_i32, %c0_i32_0 : i32, i32
  }
  func.func @transform_9(%arg0: i32) -> (i32, i32) {
    %c0_i32 = arith.constant 0 : i32
    %c0_i32_0 = arith.constant 0 : i32
    %c0_i32_1 = arith.constant 0 : i32
    return %c0_i32, %c0_i32_0 : i32, i32
  }
  func.func @transform_10(%arg0: i32) -> (i32, i32) {
    %c0_i32 = arith.constant 0 : i32
    %c0_i32_0 = arith.constant 0 : i32
    %c0_i32_1 = arith.constant 0 : i32
    return %c0_i32, %c0_i32_0 : i32, i32
  }
  func.func @transform_11(%arg0: i32) -> (i32, i32) {
    %c0_i32 = arith.constant 0 : i32
    %c0_i32_0 = arith.constant 0 : i32
    %c0_i32_1 = arith.constant 0 : i32
    return %c0_i32, %c0_i32_0 : i32, i32
  }
  func.func @transform_12(%arg0: i32) -> (i32, i32) {
    %c0_i32 = arith.constant 0 : i32
    %c0_i32_0 = arith.constant 0 : i32
    %c0_i32_1 = arith.constant 0 : i32
    return %c0_i32, %c0_i32_0 : i32, i32
  }
}

</mosaic_0001>

<bundles_post_ra>
// kernel: deconv_forward.1
= control target key start
LH: loop header
LB: loop body
LE: loop exit
PB: predicated region body
PF: predicated region fallthrough
CT: control target
= control target key end

     0   :  { %s17080_s0 = inlined_call_operand.vmem [shape: bf16[8,1024], index: 0, kind: input, shape index: {}]   ;;  %s17081_s1 = inlined_call_operand.hbm [shape: bf16[1024,2048], index: 1, kind: input, shape index: {}]   ;;  %s17082_s2 = inlined_call_operand.hbm [shape: f32[1,2048], index: 2, kind: input, shape index: {}]   ;;  %s17083_s3 = inlined_call_operand.hbm [shape: bf16[512,1024], index: 3, kind: input, shape index: {}]   ;;  %s17084_s4 = inlined_call_operand.hbm [shape: f32[1,1024], index: 4, kind: input, shape index: {}]   ;;  %s17085_s5 = inlined_call_operand.hbm [shape: bf16[256,512], index: 5, kind: input, shape index: {}]   ;;  %s17086_s6 = inlined_call_operand.hbm [shape: f32[1,512], index: 6, kind: input, shape index: {}]   ;;  %s17087_s7 = inlined_call_operand.hbm [shape: bf16[128,256], index: 7, kind: input, shape index: {}]   ;;  %s17088_s8 = inlined_call_operand.hbm [shape: f32[1,256], index: 8, kind: input, shape index: {}]   ;;  %s17089_s9 = inlined_call_operand.hbm [shape: bf16[64,128], index: 9, kind: input, shape index: {}]   ;;  %s17090_s10 = inlined_call_operand.hbm [shape: f32[1,128], index: 10, kind: input, shape index: {}]   ;;  %s17091_s11 = inlined_call_operand.hbm [shape: f32[1,128], index: 11, kind: input, shape index: {}]   ;;  %s17092_s12 = inlined_call_operand.vmem [shape: bf16[2048,128], index: 12, kind: output, shape index: {}]  }
   0x1   :  { %17143 = sst [smem:[#allocation67_spill]] %s17080_s0 }
   0x2   :  { %17144 = sst [smem:[#allocation68_spill]] %s17081_s1 }
   0x3   :  { %17145 = sst [smem:[#allocation69_spill]] %s17082_s2 }
   0x4   :  { %17146 = sst [smem:[#allocation70_spill]] %s17083_s3 }
   0x5   :  { %17147 = sst [smem:[#allocation71_spill]] %s17084_s4 }
   0x6   :  { %17148 = sst [smem:[#allocation72_spill]] %s17085_s5 }
   0x7   :  { %17149 = sst [smem:[#allocation73_spill]] %s17086_s6 }
   0x8   :  { %17150 = sst [smem:[#allocation74_spill]] %s17092_s12 }
   0x9   :  { %17 = vsyncpa [#allocation7], 0 }
   0xa   :  { %19 = vsyncpa [#allocation7 + $0x1], 0 }
   0xb   :  { %20 = vsyncpa [#allocation9], 0 }
   0xc   :  { %22 = vsyncpa [#allocation9 + $0x1], 0 }
   0xd   :  { %23 = vsyncpa [#allocation12], 0 }
   0xe   :  { %24 = vsyncpa [#allocation15], 0 }
   0xf   :  { %25 = vsyncpa [#allocation18], 0 }
  0x10   :  { %26 = vsyncpa [#allocation21], 0  ;;  %s14161_s21 = smov 0   ;;  %s14163_s22 = smov 0  }
  0x11   :  { %s14165_s23 = smov 0   ;;  %s14167_s24 = smov 0  }
  0x12 LB: > { %s14074_s25 = smov [#allocation10]   ;;  %s14182_s27 = sadd.s32 4294967295, %s14072_s24   ;;  %s14072_s24 = sphi %s14167_s24, %s17259_s24   ;;  %s14068_s23 = sphi %s14165_s23, %s17258_s23   ;;  %s14064_s22 = sphi %s14163_s22, %s17257_s22   ;;  %s14060_s21 = sphi %s14161_s21, %s17256_s21  }
  0x13   : > { %s335_s26 = sshll.u32 %s14074_s25, 4  ;;  %p10405_p0 = scmp.ge.s32.totalorder %s14072_s24, 1  ;;  %s14187_s26 = int_to_ptr.vmem [resolvable:$true] %s335_s26 }
  0x14   : > { %p17097_p1 = scmp.eq.s32.totalorder %s14182_s27, 0  ;;  %p320_p2 = scmp.lt.s32.totalorder %s14072_s24, 5 }
  0x15   : > { %s14075_s29 = smov [#allocation11]   ;;  %s14076_s14 = smov [#allocation14]  }
  0x16   : > { %p14189_p3 = pnand %p10405_p0, %p320_p2  ;;  %s349_s30 = sshll.u32 %s14075_s29, 4  ;;  %s14201_s30 = int_to_ptr.vmem [resolvable:$true] %s349_s30 }
  0x17   : > { %s373_s15 = sshll.u32 %s14076_s14, 4  ;;  %s17154_s3 = sld [smem:[#allocation70_spill]]  ;;  %s14203_s15 = int_to_ptr.vmem [resolvable:$true] %s373_s15 }
  0x18   : > { %s17151_s28 = scalar_select %p14189_p3, 1, 0 }
  0x19   : > { %p13068_p4 = pneg %p14189_p3 }
  0x1a   : > { %17152 = sst [smem:[#allocation30_spill]] %s17151_s28 }
  0x1b   : > { %p14197_p5 = pnand %p13068_p4, %p17097_p1 }
  0x1d   : > { %s13702_s18 = scalar_lea.hbm %s17154_s3, 32768  ;;  %p14213_p7 = pneg %p14197_p5 }
  0x1e   : > { %p13703_p6 = scmp.ne.s32.totalorder %s17154_s3, %s13702_s18  ;;  %p13709_p10 = scmp.lt.u32.totalorder %s13702_s18, %s17154_s3 }
  0x20   : > { %p13705_p8 = pnand %p14213_p7, %p13703_p6 }
  0x22   : > { %p13706_p9 = pneg %p13705_p8 }
  0x24   : > { %p13711_p11 = pnand %p13709_p10, %p13706_p9 }
  0x26   : > { %13714 = shalt.err (!%p13711_p11)
}
  0x27   : > { %s13715_s16 = scalar_lea.vmem %s14187_s26, 32768  ;;  %p13723_p2 = scmp.lt.s32.totalorder %s14187_s26, %s14187_s26 }
  0x28   : > { %p13716_p12 = scmp.ne.s32.totalorder %s14187_s26, %s13715_s16  ;;  %p13724_p4 = scmp.lt.s32.totalorder %s13715_s16, %s13715_s16 }
  0x2a   : > { %p13718_p13 = pnand %p13716_p12, %p14213_p7  ;;  %p13725_p6 = por %p13724_p4, %p13723_p2 }
  0x2c   : > { %p13719_p0 = pneg %p13718_p13 }
  0x2e   : > { %p13726_p8 = pnand %p13725_p6, %p13719_p0 }
  0x30   : > { %13729 = shalt.err (!%p13726_p8)
}
  0x31   : > { %s14077_s17 = smov 512   ;;  %s14078_s18 = smov 32  }
  0x32   : > { %13071 = dma.hbm_to_vmem [thread:$0]  (!%p14197_p5), %s17154_s3, 32768, %s14187_s26, [#allocation9], %s14077_s17, %s14077_s17, %s14078_s18  }
  0x33   : > { %s17156_s4 = sld [smem:[#allocation71_spill]] }
  0x39   : > { %s13730_s12 = scalar_lea.hbm %s17156_s4, 128 }
  0x3a   : > { %p13731_p9 = scmp.ne.s32.totalorder %s17156_s4, %s13730_s12  ;;  %p13737_p12 = scmp.lt.u32.totalorder %s13730_s12, %s17156_s4 }
  0x3c   : > { %p13733_p10 = pnand %p13731_p9, %p14213_p7 }
  0x3e   : > { %p13734_p11 = pneg %p13733_p10 }
  0x40   : > { %p13739_p13 = pnand %p13737_p12, %p13734_p11 }
  0x42   : > { %13742 = shalt.err (!%p13739_p13)
}
  0x43   : > { %s13743_s26 = scalar_lea.vmem %s14201_s30, 128  ;;  %p13751_p6 = scmp.lt.s32.totalorder %s14201_s30, %s14201_s30 }
  0x44   : > { %p13744_p0 = scmp.ne.s32.totalorder %s14201_s30, %s13743_s26  ;;  %p13752_p8 = scmp.lt.s32.totalorder %s13743_s26, %s13743_s26 }
  0x46   : > { %p13746_p2 = pnand %p13744_p0, %p14213_p7  ;;  %p13753_p9 = por %p13752_p8, %p13751_p6 }
  0x48   : > { %p13747_p4 = pneg %p13746_p2 }
  0x4a   : > { %p13754_p10 = pnand %p13753_p9, %p13747_p4 }
  0x4c   : > { %13757 = shalt.err (!%p13754_p10)
}
  0x4d   : > { %13074 = dma.hbm_to_vmem [thread:$0]  (!%p14197_p5), %s17156_s4, 128, %s14201_s30, [#allocation12]  }
  0x4e   : > { %s17157_s6 = sld [smem:[#allocation73_spill]] }
  0x54   : > { %s13758_s17 = scalar_lea.hbm %s17157_s6, 64 }
  0x55   : > { %p13759_p11 = scmp.ne.s32.totalorder %s17157_s6, %s13758_s17  ;;  %p13765_p0 = scmp.lt.u32.totalorder %s13758_s17, %s17157_s6 }
  0x57   : > { %p13761_p12 = pnand %p13759_p11, %p14213_p7 }
  0x59   : > { %p13762_p13 = pneg %p13761_p12 }
  0x5b   : > { %p13767_p2 = pnand %p13765_p0, %p13762_p13 }
  0x5d   : > { %13770 = shalt.err (!%p13767_p2)
}
  0x5e   : > { %s13771_s30 = scalar_lea.vmem %s14203_s15, 64  ;;  %p13779_p9 = scmp.lt.s32.totalorder %s14203_s15, %s14203_s15 }
  0x5f   : > { %p13772_p4 = scmp.ne.s32.totalorder %s14203_s15, %s13771_s30  ;;  %p13780_p10 = scmp.lt.s32.totalorder %s13771_s30, %s13771_s30 }
  0x61   : > { %p13774_p6 = pnand %p13772_p4, %p14213_p7  ;;  %p13781_p11 = por %p13780_p10, %p13779_p9 }
  0x63   : > { %p13775_p8 = pneg %p13774_p6 }
  0x65   : > { %p13782_p12 = pnand %p13781_p11, %p13775_p8 }
  0x67   : > { %13785 = shalt.err (!%p13782_p12)
}
  0x68   : > { %13080 = dma.hbm_to_vmem [thread:$0]  (!%p14197_p5), %s17157_s6, 64, %s14203_s15, [#allocation15]  }
  0x69   : > { %s14079_s26 = smov [#allocation17]   ;;  %s14080_s2 = smov [#allocation20]  }
  0x6a   : > { %s397_s0 = sshll.u32 %s14079_s26, 4  ;;  %s421_s12 = sshll.u32 %s14080_s2, 4  ;;  %s398_s0 = int_to_ptr.vmem [resolvable:$true] %s397_s0  ;;  %s422_s12 = int_to_ptr.vmem [resolvable:$true] %s421_s12 }
  0x6b   : > { %s13786_s18 = scalar_lea.hbm %s17088_s8, 32 }
  0x6c   : > { %p13787_p13 = scmp.ne.s32.totalorder %s17088_s8, %s13786_s18  ;;  %p13793_p4 = scmp.lt.u32.totalorder %s13786_s18, %s17088_s8 }
  0x6e   : > { %p13789_p0 = pnand %p13787_p13, %p14213_p7 }
  0x70   : > { %p13790_p2 = pneg %p13789_p0 }
  0x72   : > { %p13795_p6 = pnand %p13793_p4, %p13790_p2 }
  0x74   : > { %13798 = shalt.err (!%p13795_p6)
}
  0x75   : > { %s13799_s15 = scalar_lea.vmem %s398_s0, 32  ;;  %p13807_p11 = scmp.lt.s32.totalorder %s398_s0, %s398_s0 }
  0x76   : > { %p13800_p8 = scmp.ne.s32.totalorder %s398_s0, %s13799_s15  ;;  %p13808_p12 = scmp.lt.s32.totalorder %s13799_s15, %s13799_s15 }
  0x78   : > { %p13802_p9 = pnand %p13800_p8, %p14213_p7  ;;  %p13809_p1 = por %p13808_p12, %p13807_p11 }
  0x7a   : > { %p13803_p10 = pneg %p13802_p9 }
  0x7c   : > { %p13810_p3 = pnand %p13809_p1, %p13803_p10 }
  0x7e   : > { %13813 = shalt.err (!%p13810_p3)
}
  0x7f   : > { %13086 = dma.hbm_to_vmem [thread:$0]  (!%p14197_p5), %s17088_s8, 32, %s398_s0, [#allocation18]  }
  0x80   : > { %s13814_s28 = scalar_lea.hbm %s17090_s10, 16 }
  0x81   : > { %p13815_p13 = scmp.ne.s32.totalorder %s17090_s10, %s13814_s28  ;;  %p13821_p3 = scmp.lt.u32.totalorder %s13814_s28, %s17090_s10 }
  0x83   : > { %p13817_p0 = pnand %p13815_p13, %p14213_p7 }
  0x85   : > { %p13818_p1 = pneg %p13817_p0 }
  0x87   : > { %p13823_p2 = pnand %p13821_p3, %p13818_p1 }
  0x89   : > { %13826 = shalt.err (!%p13823_p2)
}
  0x8a   : > { %s13827_s29 = scalar_lea.vmem %s422_s12, 16  ;;  %s13834_s0 = scalar_lea.vmem %s422_s12, 32 }
  0x8b   : > { %p13828_p4 = scmp.ne.s32.totalorder %s422_s12, %s13827_s29  ;;  %p13835_p9 = scmp.lt.s32.totalorder %s422_s12, %s422_s12 }
  0x8c   : > { %p13836_p10 = scmp.lt.s32.totalorder %s13834_s0, %s13827_s29 }
  0x8d   : > { %p13830_p6 = pnand %p13828_p4, %p14213_p7 }
  0x8e   : > { %p13837_p11 = por %p13836_p10, %p13835_p9 }
  0x8f   : > { %p13831_p8 = pneg %p13830_p6 }
  0x91   : > { %p13838_p12 = pnand %p13837_p11, %p13831_p8 }
  0x93   : > { %13841 = shalt.err (!%p13838_p12)
}
  0x94   : > { %13092 = dma.hbm_to_vmem [thread:$0]  (!%p14197_p5), %s17090_s10, 16, %s422_s12, [#allocation21]  }
  0x95   : > { %s14081_s14 = smov [#allocation13]   ;;  %s17158_s5 = sld [smem:[#allocation72_spill]] }
  0x96   : > { %s359_s16 = sshll.u32 %s14081_s14, 4  ;;  %s360_s16 = int_to_ptr.vmem [resolvable:$true] %s359_s16 }
  0x9b   : > { %s13842_s28 = scalar_lea.hbm %s17158_s5, 8192 }
  0x9c   : > { %p13843_p13 = scmp.ne.s32.totalorder %s17158_s5, %s13842_s28  ;;  %p13849_p3 = scmp.lt.u32.totalorder %s13842_s28, %s17158_s5 }
  0x9e   : > { %p13845_p0 = pnand %p13843_p13, %p14213_p7 }
  0xa0   : > { %p13846_p1 = pneg %p13845_p0 }
  0xa2   : > { %p13851_p2 = pnand %p13849_p3, %p13846_p1 }
  0xa4   : > { %13854 = shalt.err (!%p13851_p2)
}
  0xa5   : > { %s13855_s12 = scalar_lea.vmem %s360_s16, 8192  ;;  %p13863_p9 = scmp.lt.s32.totalorder %s360_s16, %s360_s16 }
  0xa6   : > { %p13856_p4 = scmp.ne.s32.totalorder %s360_s16, %s13855_s12  ;;  %p13864_p10 = scmp.lt.s32.totalorder %s13855_s12, %s13855_s12 }
  0xa8   : > { %p13858_p6 = pnand %p13856_p4, %p14213_p7  ;;  %p13865_p11 = por %p13864_p10, %p13863_p9 }
  0xaa   : > { %p13859_p8 = pneg %p13858_p6 }
  0xac   : > { %p13866_p12 = pnand %p13865_p11, %p13859_p8 }
  0xae   : > { %13869 = shalt.err (!%p13866_p12)
}
  0xaf   : > { %s17099_s29 = smov 256   ;;  %s17100_s0 = smov 16  }
  0xb0   : > { %13077 = dma.hbm_to_vmem [thread:$0]  (!%p14197_p5), %s17158_s5, 8192, %s360_s16, [#allocation12], %s17099_s29, %s17099_s29, %s17100_s0  }
  0xb1   : > { %s14084_s14 = smov [#allocation16]   ;;  %s13870_s17 = scalar_lea.hbm %s17087_s7, 2048 }
  0xb2   : > { %s383_s26 = sshll.u32 %s14084_s14, 4  ;;  %p13871_p13 = scmp.ne.s32.totalorder %s17087_s7, %s13870_s17  ;;  %s384_s26 = int_to_ptr.vmem [resolvable:$true] %s383_s26 }
  0xb3   : > { %p13877_p3 = scmp.lt.u32.totalorder %s13870_s17, %s17087_s7 }
  0xb4   : > { %p13873_p0 = pnand %p13871_p13, %p14213_p7 }
  0xb6   : > { %p13874_p1 = pneg %p13873_p0 }
  0xb8   : > { %p13879_p2 = pnand %p13877_p3, %p13874_p1 }
  0xba   : > { %13882 = shalt.err (!%p13879_p2)
}
  0xbb   : > { %s13883_s16 = scalar_lea.vmem %s384_s26, 2048  ;;  %p13891_p9 = scmp.lt.s32.totalorder %s384_s26, %s384_s26 }
  0xbc   : > { %p13884_p4 = scmp.ne.s32.totalorder %s384_s26, %s13883_s16  ;;  %p13892_p10 = scmp.lt.s32.totalorder %s13883_s16, %s13883_s16 }
  0xbe   : > { %p13886_p6 = pnand %p13884_p4, %p14213_p7  ;;  %p13893_p11 = por %p13892_p10, %p13891_p9 }
  0xc0   : > { %p13887_p8 = pneg %p13886_p6 }
  0xc2   : > { %p13894_p12 = pnand %p13893_p11, %p13887_p8 }
  0xc4   : > { %13897 = shalt.err (!%p13894_p12)
}
  0xc5   : > { %s14085_s30 = smov 128   ;;  %s14086_s15 = smov 8  }
  0xc6   : > { %13083 = dma.hbm_to_vmem [thread:$0]  (!%p14197_p5), %s17087_s7, 2048, %s384_s26, [#allocation15], %s14085_s30, %s14085_s30, %s14086_s15  }
  0xc7   : > { %s14087_s28 = smov [#allocation19]   ;;  %s13898_s20 = scalar_lea.hbm %s17089_s9, 512 }
  0xc8   : > { %s407_s17 = sshll.u32 %s14087_s28, 4  ;;  %p13899_p13 = scmp.ne.s32.totalorder %s17089_s9, %s13898_s20  ;;  %s408_s17 = int_to_ptr.vmem [resolvable:$true] %s407_s17 }
  0xc9   : > { %p13905_p3 = scmp.lt.u32.totalorder %s13898_s20, %s17089_s9 }
  0xca   : > { %p13901_p0 = pnand %p13899_p13, %p14213_p7 }
  0xcc   : > { %p13902_p1 = pneg %p13901_p0 }
  0xce   : > { %p13907_p2 = pnand %p13905_p3, %p13902_p1 }
  0xd0   : > { %13910 = shalt.err (!%p13907_p2)
}
  0xd1   : > { %s13911_s26 = scalar_lea.vmem %s408_s17, 512  ;;  %p13919_p9 = scmp.lt.s32.totalorder %s408_s17, %s408_s17 }
  0xd2   : > { %p13912_p4 = scmp.ne.s32.totalorder %s408_s17, %s13911_s26  ;;  %p13920_p10 = scmp.lt.s32.totalorder %s13911_s26, %s13911_s26 }
  0xd4   : > { %p13914_p6 = pnand %p13912_p4, %p14213_p7  ;;  %p13921_p11 = por %p13920_p10, %p13919_p9 }
  0xd6   : > { %p13915_p8 = pneg %p13914_p6 }
  0xd8   : > { %p13922_p12 = pnand %p13921_p11, %p13915_p8 }
  0xda   : > { %13925 = shalt.err (!%p13922_p12)
}
  0xdb   : > { %s14088_s30 = smov 64   ;;  %s14089_s15 = smov 4  }
  0xdc   : > { %13089 = dma.hbm_to_vmem [thread:$0]  (!%p14197_p5), %s17089_s9, 512, %s408_s17, [#allocation18], %s14088_s30, %s14088_s30, %s14089_s15  }
  0xdd   : > { %s14090_s14 = smov [#allocation22]   ;;  %s13926_s19 = scalar_lea.hbm %s17091_s11, 16 }
  0xde   : > { %s432_s2 = sshll.u32 %s14090_s14, 4  ;;  %p13927_p13 = scmp.ne.s32.totalorder %s17091_s11, %s13926_s19  ;;  %s433_s2 = int_to_ptr.vmem [resolvable:$true] %s432_s2 }
  0xdf   : > { %p13933_p3 = scmp.lt.u32.totalorder %s13926_s19, %s17091_s11 }
  0xe0   : > { %p13929_p0 = pnand %p13927_p13, %p14213_p7 }
  0xe2   : > { %p13930_p1 = pneg %p13929_p0 }
  0xe4   : > { %p13935_p2 = pnand %p13933_p3, %p13930_p1 }
  0xe6   : > { %13938 = shalt.err (!%p13935_p2)
}
  0xe7   : > { %s13939_s17 = scalar_lea.vmem %s433_s2, 16  ;;  %s13946_s30 = scalar_lea.vmem %s433_s2, 32 }
  0xe8   : > { %p13940_p4 = scmp.ne.s32.totalorder %s433_s2, %s13939_s17  ;;  %p13947_p9 = scmp.lt.s32.totalorder %s433_s2, %s433_s2 }
  0xe9   : > { %p13948_p10 = scmp.lt.s32.totalorder %s13946_s30, %s13939_s17 }
  0xea   : > { %p13942_p6 = pnand %p13940_p4, %p14213_p7 }
  0xeb   : > { %p13949_p11 = por %p13948_p10, %p13947_p9 }
  0xec   : > { %p13943_p8 = pneg %p13942_p6 }
  0xee   : > { %p13950_p12 = pnand %p13949_p11, %p13943_p8 }
  0xf0   : > { %13953 = shalt.err (!%p13950_p12)
}
  0xf1   : > { %13095 = dma.hbm_to_vmem [thread:$0]  (!%p14197_p5), %s17091_s11, 16, %s433_s2, [#allocation21]  }
  0xf2   : > { %s14392_s25 = sadd.s32 1, %s14072_s24   ;;  %s60_s0 = sadd.s32 1, %s14068_s23 }
  0xf3   : > { %s57_s13 = ssub.s32 %s14072_s24, %s14392_s25  ;;  %p67_p13 = scmp.ne.s32.totalorder %s14068_s23, %s14064_s22 }
  0xf4   : > { %p58_p7 = scmp.eq.s32.totalorder %s57_s13, 0  ;;  %p68_p0 = scmp.eq.s32.totalorder %s14072_s24, 0 }
  0xf5   : > { %p73_p1 = scmp.ne.s32.totalorder %s14064_s22, %s14060_s21  ;;  %p17159_p2 = scmp.eq.s32.totalorder %s14182_s27, 0 }
  0xf6   : > { %s14403_s14 = scalar_select %p58_p7, %s14068_s23, %s60_s0  }
  0xf7   : > { %p69_p3 = por %p68_p0, %p67_p13  ;;  %p14407_p4 = por %p17159_p2, %p73_p1 }
  0xf8   : > { %p13112_p6 = scmp.lt.s32.totalorder %s14072_s24, 4  ;;  %s14413_s2 = sand.u32 1, %s14068_s23  }
  0xf9   : > { %s17160_s28 = scalar_select %p14407_p4, 1, 0 }
  0xfa   : > { %s10416_s18 = sshll.u32 %s14413_s2, 11  ;;  %s11430_s19 = sshll.u32 %s14072_s24, 8 }
  0xfb   : > { %s17161_s1 = sld [smem:[#allocation68_spill]]  ;;  %s447_s21 = scalar_lea.vmem [#allocation6], %s10416_s18 }
  0xfc   : > { %s454_s26 = sshll.u32 %s447_s21, 4  ;;  %p14424_p5 = pnand %p13112_p6, %p69_p3  ;;  %s14422_s26 = int_to_ptr.vmem [resolvable:$true] %s454_s26 }
  0xfd   : > { %s444_s15 = scalar_lea.sflag [#allocation7], %s14413_s2 }
  0xfe   : > { %p13956_p9 = pneg %p14424_p5 }
 0x101   : > { %s14420_s16 = scalar_lea.hbm %s17161_s1, %s11430_s19  ;;  %s13959_s18 = scalar_lea.hbm %s17161_s1, 131072 }
 0x102   : > { %s13954_s29 = scalar_lea.hbm %s14420_s16, 32768  ;;  %p13960_p12 = scmp.lt.u32.totalorder %s14420_s16, %s17161_s1 }
 0x103   : > { %p13955_p8 = scmp.ne.s32.totalorder %s14420_s16, %s13954_s29  ;;  %p13961_p7 = scmp.lt.u32.totalorder %s13959_s18, %s13954_s29 }
 0x104   : > { %p13963_p0 = scmp.lt.u32.totalorder %s13954_s29, %s14420_s16 }
 0x105   : > { %p13957_p10 = pnand %p13956_p9, %p13955_p8  ;;  %p13962_p13 = por %p13961_p7, %p13960_p12 }
 0x107   : > { %p13958_p11 = pneg %p13957_p10  ;;  %p13964_p1 = por %p13963_p0, %p13962_p13 }
 0x109   : > { %p13965_p3 = pnand %p13964_p1, %p13958_p11 }
 0x10b   : > { %13968 = shalt.err (!%p13965_p3)
}
 0x10c   : > { %s13969_s12 = scalar_lea.vmem %s14422_s26, 32768  ;;  %s14091_s21 = smov [#allocation6]  }
 0x10d   : > { %p13970_p2 = scmp.ne.s32.totalorder %s14422_s26, %s13969_s12  ;;  %s13974_s13 = sshll.u32 %s14091_s21, 4  ;;  %s13975_s13 = int_to_ptr.vmem [resolvable:$false] %s13974_s13 }
 0x10e   : > { %s13976_s0 = scalar_lea.vmem %s13975_s13, 65536  ;;  %p13977_p10 = scmp.lt.s32.totalorder %s14422_s26, %s13975_s13 }
 0x10f   : > { %p13972_p6 = pnand %p13970_p2, %p13956_p9  ;;  %p13978_p12 = scmp.lt.s32.totalorder %s13976_s0, %s13969_s12 }
 0x111   : > { %p13973_p8 = pneg %p13972_p6  ;;  %p13979_p7 = por %p13978_p12, %p13977_p10 }
 0x113   : > { %p13980_p13 = pnand %p13979_p7, %p13973_p8 }
 0x115   : > { %13983 = shalt.err (!%p13980_p13)
}
 0x116   : > { %s14092_s29 = smov 1024   ;;  %s17163_s18 = smov 16  }
 0x117   : > { %s17164_s19 = smov 256   ;;  %s10419_s20 = sshll.u32 %s14413_s2, 2 }
 0x118   : > { %13099 = dma.hbm_to_vmem [thread:$0]  (!%p14424_p5), %s14420_s16, 32768, %s14422_s26, %s444_s15, %s14092_s29, %s17164_s19, %s17163_s18  }
 0x119   : > { %s11431_s21 = sshll.u32 %s14072_s24, 6  ;;  %s17165_s0 = sld [smem:[#allocation69_spill]] }
 0x11a   : > { %s468_s1 = scalar_lea.vmem [#allocation8], %s10419_s20  ;;  %s17166_s4 = sand.u32 1, %s14072_s24  }
 0x11b   : > { %s476_s3 = sshll.u32 %s468_s1, 4  ;;  %s465_s5 = scalar_lea.sflag [#allocation9], %s17166_s4  ;;  %s477_s3 = int_to_ptr.vmem [resolvable:$true] %s476_s3 }
 0x11f   : > { %s14464_s30 = scalar_lea.hbm %s17165_s0, %s11431_s21  ;;  %s13989_s26 = scalar_lea.hbm %s17165_s0, 256 }
 0x120   : > { %s13984_s6 = scalar_lea.hbm %s14464_s30, 64  ;;  %p13990_p3 = scmp.lt.u32.totalorder %s14464_s30, %s17165_s0 }
 0x121   : > { %p13985_p11 = scmp.ne.s32.totalorder %s14464_s30, %s13984_s6  ;;  %p13991_p2 = scmp.lt.u32.totalorder %s13989_s26, %s13984_s6 }
 0x122   : > { %p13993_p8 = scmp.lt.u32.totalorder %s13984_s6, %s14464_s30 }
 0x123   : > { %p13987_p0 = pnand %p13985_p11, %p13956_p9  ;;  %p13992_p6 = por %p13991_p2, %p13990_p3 }
 0x125   : > { %p13988_p1 = pneg %p13987_p0  ;;  %p13994_p10 = por %p13993_p8, %p13992_p6 }
 0x127   : > { %p13995_p12 = pnand %p13994_p10, %p13988_p1 }
 0x129   : > { %13998 = shalt.err (!%p13995_p12)
}
 0x12a   : > { %s13999_s1 = scalar_lea.vmem %s477_s3, 64  ;;  %s14093_s4 = smov [#allocation8]  }
 0x12b   : > { %p14000_p7 = scmp.ne.s32.totalorder %s477_s3, %s13999_s1  ;;  %s14004_s24 = sshll.u32 %s14093_s4, 4  ;;  %s14005_s24 = int_to_ptr.vmem [resolvable:$false] %s14004_s24 }
 0x12c   : > { %s14006_s18 = scalar_lea.vmem %s14005_s24, 128  ;;  %p14007_p0 = scmp.lt.s32.totalorder %s477_s3, %s14005_s24 }
 0x12d   : > { %p14002_p13 = pnand %p14000_p7, %p13956_p9  ;;  %p14008_p4 = scmp.lt.s32.totalorder %s14006_s18, %s13999_s1 }
 0x12f   : > { %p14003_p11 = pneg %p14002_p13  ;;  %p14009_p2 = por %p14008_p4, %p14007_p0 }
 0x131   : > { %p14010_p3 = pnand %p14009_p2, %p14003_p11 }
 0x133   : > { %14013 = shalt.err (!%p14010_p3)
}
 0x134   : > { %13102 = dma.hbm_to_vmem [thread:$0]  (!%p14424_p5), %s14464_s30, 64, %s477_s3, %s465_s5  }
 0x135   : > { %s17167_s6 = sld [smem:[#allocation30_spill]] }
 0x13b   : > { %p17168_p1 = scmp.ne.s32.totalorder %s17167_s6, 0 }
 0x13d   : > { %485 = sbr.rel (%p17168_p1) target bundleno = 2338 (0x922), region = 68 }
 0x144   : > { %s487_s19 = sand.u32 1, %s14064_s22   ;;  %p17169_p9 = scmp.ne.s32.totalorder %s17160_s28, 0 }
 0x145   : > { %s10423_s20 = sshll.u32 %s487_s19, 11  ;;  %s488_s21 = scalar_lea.sflag [#allocation7], %s487_s19 }
 0x146   : > { %s14490_s12 = scalar_lea.vmem [#allocation6], %s10423_s20 }
 0x147   : > { %14031 = dma.done.wait (%p17169_p9), %s488_s21, 32768  }
 0x148   : > { %14033 = vsyncadd (%p17169_p9), %s488_s21, 4294934528  ;;  %s496_s17 = sand.u32 1, %s14182_s27   ;;  %s10424_s13 = sshll.u32 %s487_s19, 2 }
 0x149   : > { %s497_s3 = scalar_lea.sflag [#allocation9], %s496_s17  ;;  %s14497_s5 = scalar_lea.vmem [#allocation8], %s10424_s13 }
 0x14a   : > { %14035 = dma.done.wait (%p17169_p9), %s497_s3, 64  }
 0x14b   : > { %14037 = vsyncadd (%p17169_p9), %s497_s3, 4294967232  ;;  %p17170_p4 = scmp.eq.s32.totalorder %s14182_s27, 0 }
 0x14d   : > { %14039 = dma.done.wait (%p17170_p4), [#allocation9], 32768   ;;  %p17171_p5 = pmov %p17170_p4 }
 0x14e   : > { %p17172_p6 = pmov %p17170_p4 }
 0x14f   : > { %14041 = vsyncadd (%p17171_p5), [#allocation9], 4294934528 }
 0x150   : > { %14043 = dma.done.wait (%p17172_p6), [#allocation12], 8320   ;;  %p17173_p8 = pmov %p17170_p4 }
 0x151   : > { %p17174_p10 = pmov %p17170_p4 }
 0x152   : > { %14045 = vsyncadd (%p17173_p8), [#allocation12], 4294958976 }
 0x153   : > { %14047 = dma.done.wait (%p17174_p10), [#allocation15], 2112   ;;  %p17175_p12 = pmov %p17170_p4 }
 0x154   : > { %p17176_p7 = pmov %p17170_p4 }
 0x155   : > { %14049 = vsyncadd (%p17175_p12), [#allocation15], 4294965184 }
 0x156   : > { %14051 = dma.done.wait (%p17176_p7), [#allocation18], 544   ;;  %p17177_p13 = pmov %p17170_p4 }
 0x157   : > { %p17178_p11 = pmov %p17170_p4 }
 0x158   : > { %14053 = vsyncadd (%p17177_p13), [#allocation18], 4294966752 }
 0x159   : > { %14055 = dma.done.wait (%p17178_p11), [#allocation21], 32   ;;  %p17179_p0 = pmov %p17170_p4 }
 0x15a   : > { %v13174_v0 = vld [vmem:[%s14490_s12 + $0x4] ss:$16 sps:$4 sm:$0xff]   ;;  %v13176_v1 = vld [vmem:[%s14490_s12 + $0xc] ss:$16 sps:$4 sm:$0xff]   ;;  %v13178_v2 = vld [vmem:[%s14490_s12] ss:$16 sps:$4 sm:$0xff]  }
 0x15b   : > { %14057 = vsyncadd (%p17179_p0), [#allocation21], 4294967264  ;;  %2170 = vmatprep.subr.bf16.mxu0 %v13174_v0  ;;  %v13179_v3 = vld [vmem:[%s14490_s12 + $0x8] ss:$16 sps:$4 sm:$0xff]   ;;  %2334 = vmatprep.subr.bf16.mxu1 %v13176_v1  ;;  %v13180_v4 = vld [vmem:[%s14490_s12 + $0x24] ss:$16 sps:$4 sm:$0xff]  }
 0x15c   : > { %2171 = vmatpush1.bf16.msra.mxu0 %v13178_v2  ;;  %2335 = vmatpush1.bf16.msra.mxu1 %v13179_v3  ;;  %v13182_v5 = vld [vmem:[%s14490_s12 + $0x2c] ss:$16 sps:$4 sm:$0xff]   ;;  %v13184_v6 = vld [vmem:[%s14490_s12 + $0x20] ss:$16 sps:$4 sm:$0xff]   ;;  %v13185_v7 = vld [vmem:[%s14490_s12 + $0x28] ss:$16 sps:$4 sm:$0xff]  }
 0x15d   : > { %2172 = vmatprep.subr.bf16.mxu0 %v13180_v4  ;;  %2336 = vmatprep.subr.bf16.mxu1 %v13182_v5  ;;  %v13186_v8 = vld [vmem:[%s14490_s12 + $0x44] ss:$16 sps:$4 sm:$0xff]   ;;  %v13188_v9 = vld [vmem:[%s14490_s12 + $0x4c] ss:$16 sps:$4 sm:$0xff]   ;;  %v13190_v10 = vld [vmem:[%s14490_s12 + $0x40] ss:$16 sps:$4 sm:$0xff]  }
 0x15e   : > { %v13191_v11 = vld [vmem:[%s14490_s12 + $0x48] ss:$16 sps:$4 sm:$0xff]   ;;  %v13192_v12 = vld [vmem:[%s14490_s12 + $0x64] ss:$16 sps:$4 sm:$0xff]   ;;  %v13194_v13 = vld [vmem:[%s14490_s12 + $0x6c] ss:$16 sps:$4 sm:$0xff]  }
 0x15f   : > { %v13196_v14 = vld [vmem:[%s14490_s12 + $0x60] ss:$16 sps:$4 sm:$0xff]   ;;  %v13197_v15 = vld [vmem:[%s14490_s12 + $0x68] ss:$16 sps:$4 sm:$0xff]   ;;  %v13198_v16 = vld [vmem:[%s14490_s12 + $0x84] ss:$16 sps:$4 sm:$0xff]  }
 0x160   : > { %2173 = vmatpush1.bf16.msra.mxu0 %v13184_v6  ;;  %2337 = vmatpush1.bf16.msra.mxu1 %v13185_v7  ;;  %v13200_v17 = vld [vmem:[%s14490_s12 + $0x8c] ss:$16 sps:$4 sm:$0xff]   ;;  %v13202_v18 = vld [vmem:[%s14490_s12 + $0x80] ss:$16 sps:$4 sm:$0xff]   ;;  %v13203_v19 = vld [vmem:[%s14490_s12 + $0x88] ss:$16 sps:$4 sm:$0xff]  }
 0x161   : > { %2174 = vmatprep.subr.bf16.mxu0 %v13186_v8  ;;  %2338 = vmatprep.subr.bf16.mxu1 %v13188_v9  ;;  %v13204_v20 = vld [vmem:[%s14490_s12 + $0xa4] ss:$16 sps:$4 sm:$0xff]   ;;  %v13206_v21 = vld [vmem:[%s14490_s12 + $0xac] ss:$16 sps:$4 sm:$0xff]   ;;  %v13208_v22 = vld [vmem:[%s14490_s12 + $0xa0] ss:$16 sps:$4 sm:$0xff]  }
 0x162   : > { %v13209_v23 = vld [vmem:[%s14490_s12 + $0xa8] ss:$16 sps:$4 sm:$0xff]   ;;  %v13210_v24 = vld [vmem:[%s14490_s12 + $0xc4] ss:$16 sps:$4 sm:$0xff]   ;;  %v13212_v25 = vld [vmem:[%s14490_s12 + $0xcc] ss:$16 sps:$4 sm:$0xff]  }
 0x163   : > { %v13214_v26 = vld [vmem:[%s14490_s12 + $0xc0] ss:$16 sps:$4 sm:$0xff]   ;;  %v13215_v27 = vld [vmem:[%s14490_s12 + $0xc8] ss:$16 sps:$4 sm:$0xff]   ;;  %v13216_v28 = vld [vmem:[%s14490_s12 + $0xe4] ss:$16 sps:$4 sm:$0xff]  }
 0x164   : > { %2175 = vmatpush1.bf16.msra.mxu0 %v13190_v10  ;;  %2339 = vmatpush1.bf16.msra.mxu1 %v13191_v11  ;;  %v13218_v29 = vld [vmem:[%s14490_s12 + $0xec] ss:$16 sps:$4 sm:$0xff]   ;;  %v13220_v30 = vld [vmem:[%s14490_s12 + $0xe0] ss:$16 sps:$4 sm:$0xff]   ;;  %v13221_v31 = vld [vmem:[%s14490_s12 + $0xe8] ss:$16 sps:$4 sm:$0xff]  }
 0x165   : > { %2176 = vmatprep.subr.bf16.mxu0 %v13192_v12  ;;  %2340 = vmatprep.subr.bf16.mxu1 %v13194_v13  ;;  %v13222_v32 = vld [vmem:[%s14490_s12 + $0x104] ss:$16 sps:$4 sm:$0xff]   ;;  %v13224_v33 = vld [vmem:[%s14490_s12 + $0x10c] ss:$16 sps:$4 sm:$0xff]   ;;  %v13226_v34 = vld [vmem:[%s14490_s12 + $0x100] ss:$16 sps:$4 sm:$0xff]  }
 0x166   : > { %v13227_v35 = vld [vmem:[%s14490_s12 + $0x108] ss:$16 sps:$4 sm:$0xff]   ;;  %v13228_v36 = vld [vmem:[%s14490_s12 + $0x124] ss:$16 sps:$4 sm:$0xff]   ;;  %v13230_v37 = vld [vmem:[%s14490_s12 + $0x12c] ss:$16 sps:$4 sm:$0xff]  }
 0x167   : > { %v13232_v38 = vld [vmem:[%s14490_s12 + $0x120] ss:$16 sps:$4 sm:$0xff]   ;;  %v13233_v39 = vld [vmem:[%s14490_s12 + $0x128] ss:$16 sps:$4 sm:$0xff]   ;;  %v13234_v40 = vld [vmem:[%s14490_s12 + $0x144] ss:$16 sps:$4 sm:$0xff]  }
 0x168   : > { %2177 = vmatpush1.bf16.msra.mxu0 %v13196_v14  ;;  %2341 = vmatpush1.bf16.msra.mxu1 %v13197_v15  ;;  %v13236_v41 = vld [vmem:[%s14490_s12 + $0x14c] ss:$16 sps:$4 sm:$0xff]   ;;  %v13238_v42 = vld [vmem:[%s14490_s12 + $0x140] ss:$16 sps:$4 sm:$0xff]   ;;  %v13239_v43 = vld [vmem:[%s14490_s12 + $0x148] ss:$16 sps:$4 sm:$0xff]  }
 0x169   : > { %2178 = vmatprep.subr.bf16.mxu0 %v13198_v16  ;;  %2342 = vmatprep.subr.bf16.mxu1 %v13200_v17  ;;  %v13240_v44 = vld [vmem:[%s14490_s12 + $0x164] ss:$16 sps:$4 sm:$0xff]   ;;  %v13242_v45 = vld [vmem:[%s14490_s12 + $0x16c] ss:$16 sps:$4 sm:$0xff]   ;;  %s17180_s2 = sld [smem:[#allocation67_spill]]  ;;  %s10698_s24 = sshll.u32 %s14182_s27, 3 }
 0x16a   : > { %v13244_v47 = vld [vmem:[%s14490_s12 + $0x160] ss:$16 sps:$4 sm:$0xff]   ;;  %v13245_v49 = vld [vmem:[%s14490_s12 + $0x168] ss:$16 sps:$4 sm:$0xff]   ;;  %v13246_v50 = vld [vmem:[%s14490_s12 + $0x184] ss:$16 sps:$4 sm:$0xff]  }
 0x16b   : > { %v13248_v51 = vld [vmem:[%s14490_s12 + $0x18c] ss:$16 sps:$4 sm:$0xff]   ;;  %v13250_v52 = vld [vmem:[%s14490_s12 + $0x180] ss:$16 sps:$4 sm:$0xff]   ;;  %v13251_v53 = vld [vmem:[%s14490_s12 + $0x188] ss:$16 sps:$4 sm:$0xff]  }
 0x16c   : > { %2179 = vmatpush1.bf16.msra.mxu0 %v13202_v18  ;;  %2343 = vmatpush1.bf16.msra.mxu1 %v13203_v19  ;;  %v13252_v54 = vld [vmem:[%s14490_s12 + $0x1a4] ss:$16 sps:$4 sm:$0xff]   ;;  %v13254_v55 = vld [vmem:[%s14490_s12 + $0x1ac] ss:$16 sps:$4 sm:$0xff]   ;;  %v13256_v56 = vld [vmem:[%s14490_s12 + $0x1a0] ss:$16 sps:$4 sm:$0xff]  }
 0x16d   : > { %2180 = vmatprep.subr.bf16.mxu0 %v13204_v20  ;;  %2344 = vmatprep.subr.bf16.mxu1 %v13206_v21  ;;  %v13257_v57 = vld [vmem:[%s14490_s12 + $0x1a8] ss:$16 sps:$4 sm:$0xff]   ;;  %v13258_v58 = vld [vmem:[%s14490_s12 + $0x1c4] ss:$16 sps:$4 sm:$0xff]   ;;  %v13260_v59 = vld [vmem:[%s14490_s12 + $0x1cc] ss:$16 sps:$4 sm:$0xff]  }
 0x16e   : > { %v13262_v60 = vld [vmem:[%s14490_s12 + $0x1c0] ss:$16 sps:$4 sm:$0xff]   ;;  %v13263_v61 = vld [vmem:[%s14490_s12 + $0x1c8] ss:$16 sps:$4 sm:$0xff]   ;;  %v13264_v62 = vld [vmem:[%s14490_s12 + $0x1e4] ss:$16 sps:$4 sm:$0xff]  }
 0x16f   : > { %v580_v46 = vld [vmem:[%s17180_s2] sm:$0xff]  ;;  %v13266_v63 = vld [vmem:[%s14490_s12 + $0x1ec] ss:$16 sps:$4 sm:$0xff]   ;;  %v13269_v1 = vld [vmem:[%s14490_s12 + $0x1e8] ss:$16 sps:$4 sm:$0xff]   ;;  %s2503_s18 = sshra.s32 %s10698_s24, 3 }
 0x170   : > { %2181 = vmatpush1.bf16.msra.mxu0 %v13208_v22  ;;  %2345 = vmatpush1.bf16.msra.mxu1 %v13209_v23  ;;  %v10435_v48 = vcombine.high %v580_v46, %v580_v46  ;;  %v13268_v0 = vld [vmem:[%s14490_s12 + $0x1e0] ss:$16 sps:$4 sm:$0xff]   ;;  %v13274_v2 = vld [vmem:[%s14490_s12 + $0x204] ss:$16 sps:$4 sm:$0xff]   ;;  %v13277_v3 = vld [vmem:[%s14490_s12 + $0x20c] ss:$16 sps:$4 sm:$0xff]   ;;  %v10434_v4 = vcombine.low %v580_v46, %v580_v46 }
 0x171   : > { %2182 = vmatprep.subr.bf16.mxu0 %v13210_v24  ;;  %2346 = vmatprep.subr.bf16.mxu1 %v13212_v25  ;;  %v13272_v5 = vld [vmem:[%s14490_s12 + $0x200] ss:$16 sps:$4 sm:$0xff]   ;;  %v13275_v6 = vld [vmem:[%s14490_s12 + $0x208] ss:$16 sps:$4 sm:$0xff]   ;;  %v13280_v7 = vld [vmem:[%s14490_s12 + $0x224] ss:$16 sps:$4 sm:$0xff]  }
 0x172   : > { %2202 = vmatprep.mubr.bf16.mxu0 %v10435_v48  ;;  %2366 = vmatprep.mubr.bf16.mxu1 %v10435_v48  ;;  %v13283_v8 = vld [vmem:[%s14490_s12 + $0x22c] ss:$16 sps:$4 sm:$0xff]   ;;  %v13278_v9 = vld [vmem:[%s14490_s12 + $0x220] ss:$16 sps:$4 sm:$0xff]   ;;  %v13281_v10 = vld [vmem:[%s14490_s12 + $0x228] ss:$16 sps:$4 sm:$0xff]  }
 0x173   : > { %v13286_v11 = vld [vmem:[%s14490_s12 + $0x244] ss:$16 sps:$4 sm:$0xff]   ;;  %v13289_v12 = vld [vmem:[%s14490_s12 + $0x24c] ss:$16 sps:$4 sm:$0xff]   ;;  %v13284_v13 = vld [vmem:[%s14490_s12 + $0x240] ss:$16 sps:$4 sm:$0xff]  }
 0x174   : > { %2183 = vmatpush1.bf16.msra.mxu0 %v13214_v26  ;;  %2347 = vmatpush1.bf16.msra.mxu1 %v13215_v27  ;;  %v13287_v14 = vld [vmem:[%s14490_s12 + $0x248] ss:$16 sps:$4 sm:$0xff]   ;;  %v13292_v15 = vld [vmem:[%s14490_s12 + $0x264] ss:$16 sps:$4 sm:$0xff]   ;;  %v13295_v16 = vld [vmem:[%s14490_s12 + $0x26c] ss:$16 sps:$4 sm:$0xff]  }
 0x175   : > { %2184 = vmatprep.subr.bf16.mxu0 %v13216_v28  ;;  %2348 = vmatprep.subr.bf16.mxu1 %v13218_v29  ;;  %v13290_v17 = vld [vmem:[%s14490_s12 + $0x260] ss:$16 sps:$4 sm:$0xff]   ;;  %v13293_v18 = vld [vmem:[%s14490_s12 + $0x268] ss:$16 sps:$4 sm:$0xff]   ;;  %v13298_v19 = vld [vmem:[%s14490_s12 + $0x284] ss:$16 sps:$4 sm:$0xff]  }
 0x176   : > { %v13301_v20 = vld [vmem:[%s14490_s12 + $0x28c] ss:$16 sps:$4 sm:$0xff]   ;;  %v13296_v21 = vld [vmem:[%s14490_s12 + $0x280] ss:$16 sps:$4 sm:$0xff]   ;;  %v13299_v22 = vld [vmem:[%s14490_s12 + $0x288] ss:$16 sps:$4 sm:$0xff]  }
 0x177   : > { %v13304_v23 = vld [vmem:[%s14490_s12 + $0x2a4] ss:$16 sps:$4 sm:$0xff]   ;;  %v13307_v24 = vld [vmem:[%s14490_s12 + $0x2ac] ss:$16 sps:$4 sm:$0xff]   ;;  %v13302_v25 = vld [vmem:[%s14490_s12 + $0x2a0] ss:$16 sps:$4 sm:$0xff]  }
 0x178   : > { %2185 = vmatpush1.bf16.msra.mxu0 %v13220_v30  ;;  %2349 = vmatpush1.bf16.msra.mxu1 %v13221_v31  ;;  %v13305_v26 = vld [vmem:[%s14490_s12 + $0x2a8] ss:$16 sps:$4 sm:$0xff]   ;;  %v13310_v27 = vld [vmem:[%s14490_s12 + $0x2c4] ss:$16 sps:$4 sm:$0xff]   ;;  %v13313_v28 = vld [vmem:[%s14490_s12 + $0x2cc] ss:$16 sps:$4 sm:$0xff]  }
 0x179   : > { %2186 = vmatprep.subr.bf16.mxu0 %v13222_v32  ;;  %2350 = vmatprep.subr.bf16.mxu1 %v13224_v33  ;;  %v14619_v29 = vld [vmem:[%s17180_s2 + $0x8] sm:$0xff]  ;;  %v13308_v31 = vld [vmem:[%s14490_s12 + $0x2c0] ss:$16 sps:$4 sm:$0xff]   ;;  %v13316_v33 = vld [vmem:[%s14490_s12 + $0x2e4] ss:$16 sps:$4 sm:$0xff]   ;;  %s11432_s6 = sshll.u32 %s2503_s18, 5 }
 0x17a   : > { %v10437_v30 = vcombine.high %v14619_v29, %v14619_v29  ;;  %v13311_v32 = vld [vmem:[%s14490_s12 + $0x2c8] ss:$16 sps:$4 sm:$0xff]   ;;  %v13337_v46 = vld [vmem:[%s14490_s12 + $0x34c] ss:$16 sps:$4 sm:$0xff]   ;;  %s2507_s19 = scalar_lea.vmem [#allocation2], %s11432_s6  ;;  %p10701_p2 = scmp.ne.s32.totalorder %s14182_s27, 3 }
 0x17b   : > { %v13335_v48 = vld [vmem:[%s14490_s12 + $0x348] ss:$16 sps:$4 sm:$0xff]  }
 0x17c   : > { %2187 = vmatpush1.bf16.msra.mxu0 %v13226_v34  ;;  %2351 = vmatpush1.bf16.msra.mxu1 %v13227_v35  ;;  %v13319_v34 = vld [vmem:[%s14490_s12 + $0x2ec] ss:$16 sps:$4 sm:$0xff]   ;;  %v13314_v35 = vld [vmem:[%s14490_s12 + $0x2e0] ss:$16 sps:$4 sm:$0xff]  }
 0x17d   : > { %2188 = vmatprep.subr.bf16.mxu0 %v13228_v36  ;;  %2352 = vmatprep.subr.bf16.mxu1 %v13230_v37  ;;  %v13317_v36 = vld [vmem:[%s14490_s12 + $0x2e8] ss:$16 sps:$4 sm:$0xff]   ;;  %v13322_v37 = vld [vmem:[%s14490_s12 + $0x304] ss:$16 sps:$4 sm:$0xff]  }
 0x180   : > { %2189 = vmatpush1.bf16.msra.mxu0 %v13232_v38  ;;  %2353 = vmatpush1.bf16.msra.mxu1 %v13233_v39  ;;  %v13325_v38 = vld [vmem:[%s14490_s12 + $0x30c] ss:$16 sps:$4 sm:$0xff]   ;;  %v13320_v39 = vld [vmem:[%s14490_s12 + $0x300] ss:$16 sps:$4 sm:$0xff]  }
 0x181   : > { %2190 = vmatprep.subr.bf16.mxu0 %v13234_v40  ;;  %2354 = vmatprep.subr.bf16.mxu1 %v13236_v41  ;;  %v13323_v40 = vld [vmem:[%s14490_s12 + $0x308] ss:$16 sps:$4 sm:$0xff]   ;;  %v13328_v41 = vld [vmem:[%s14490_s12 + $0x324] ss:$16 sps:$4 sm:$0xff]  }
 0x184   : > { %2191 = vmatpush1.bf16.msra.mxu0 %v13238_v42  ;;  %2355 = vmatpush1.bf16.msra.mxu1 %v13239_v43  ;;  %v13331_v42 = vld [vmem:[%s14490_s12 + $0x32c] ss:$16 sps:$4 sm:$0xff]   ;;  %v13326_v43 = vld [vmem:[%s14490_s12 + $0x320] ss:$16 sps:$4 sm:$0xff]  }
 0x185   : > { %2192 = vmatprep.subr.bf16.mxu0 %v13240_v44  ;;  %2356 = vmatprep.subr.bf16.mxu1 %v13242_v45  ;;  %v13329_v44 = vld [vmem:[%s14490_s12 + $0x328] ss:$16 sps:$4 sm:$0xff]   ;;  %v13334_v45 = vld [vmem:[%s14490_s12 + $0x344] ss:$16 sps:$4 sm:$0xff]  }
 0x188   : > { %2193 = vmatpush1.bf16.msra.mxu0 %v13244_v47  ;;  %2357 = vmatpush1.bf16.msra.mxu1 %v13245_v49  ;;  %v13332_v47 = vld [vmem:[%s14490_s12 + $0x340] ss:$16 sps:$4 sm:$0xff]   ;;  %v13340_v49 = vld [vmem:[%s14490_s12 + $0x364] ss:$16 sps:$4 sm:$0xff]  }
 0x189   : > { %2194 = vmatprep.subr.bf16.mxu0 %v13246_v50  ;;  %2358 = vmatprep.subr.bf16.mxu1 %v13248_v51  ;;  %v13343_v50 = vld [vmem:[%s14490_s12 + $0x36c] ss:$16 sps:$4 sm:$0xff]   ;;  %v13338_v51 = vld [vmem:[%s14490_s12 + $0x360] ss:$16 sps:$4 sm:$0xff]  }
 0x18c   : > { %2195 = vmatpush1.bf16.msra.mxu0 %v13250_v52  ;;  %2359 = vmatpush1.bf16.msra.mxu1 %v13251_v53  ;;  %v13341_v52 = vld [vmem:[%s14490_s12 + $0x368] ss:$16 sps:$4 sm:$0xff]   ;;  %v13346_v53 = vld [vmem:[%s14490_s12 + $0x384] ss:$16 sps:$4 sm:$0xff]  }
 0x18d   : > { %2196 = vmatprep.subr.bf16.mxu0 %v13252_v54  ;;  %2360 = vmatprep.subr.bf16.mxu1 %v13254_v55  ;;  %v13349_v54 = vld [vmem:[%s14490_s12 + $0x38c] ss:$16 sps:$4 sm:$0xff]   ;;  %v13344_v55 = vld [vmem:[%s14490_s12 + $0x380] ss:$16 sps:$4 sm:$0xff]  }
 0x190   : > { %2197 = vmatpush1.bf16.msra.mxu0 %v13256_v56  ;;  %2361 = vmatpush1.bf16.msra.mxu1 %v13257_v57  ;;  %v13347_v56 = vld [vmem:[%s14490_s12 + $0x388] ss:$16 sps:$4 sm:$0xff]   ;;  %v13352_v57 = vld [vmem:[%s14490_s12 + $0x3a4] ss:$16 sps:$4 sm:$0xff]  }
 0x191   : > { %2198 = vmatprep.subr.bf16.mxu0 %v13258_v58  ;;  %2362 = vmatprep.subr.bf16.mxu1 %v13260_v59  ;;  %v13355_v58 = vld [vmem:[%s14490_s12 + $0x3ac] ss:$16 sps:$4 sm:$0xff]   ;;  %v13350_v59 = vld [vmem:[%s14490_s12 + $0x3a0] ss:$16 sps:$4 sm:$0xff]  }
 0x194   : > { %2199 = vmatpush1.bf16.msra.mxu0 %v13262_v60  ;;  %2363 = vmatpush1.bf16.msra.mxu1 %v13263_v61  ;;  %v13353_v60 = vld [vmem:[%s14490_s12 + $0x3a8] ss:$16 sps:$4 sm:$0xff]   ;;  %v13358_v61 = vld [vmem:[%s14490_s12 + $0x3c4] ss:$16 sps:$4 sm:$0xff]  }
 0x195   : > { %2200 = vmatprep.subr.bf16.mxu0 %v13264_v62  ;;  %2364 = vmatprep.subr.bf16.mxu1 %v13266_v63  ;;  %v13361_v62 = vld [vmem:[%s14490_s12 + $0x3cc] ss:$16 sps:$4 sm:$0xff]   ;;  %v13356_v63 = vld [vmem:[%s14490_s12 + $0x3c0] ss:$16 sps:$4 sm:$0xff]  }
 0x198   : > { %2201 = vmatpush1.bf16.msra.mxu0 %v13268_v0  ;;  %2365 = vmatpush1.bf16.msra.mxu1 %v13269_v1  ;;  %v13359_v0 = vld [vmem:[%s14490_s12 + $0x3c8] ss:$16 sps:$4 sm:$0xff]   ;;  %v13364_v1 = vld [vmem:[%s14490_s12 + $0x3e4] ss:$16 sps:$4 sm:$0xff]  }
 0x199   : > { %2211 = vmatprep.subr.bf16.mxu0 %v13274_v2  ;;  %2375 = vmatprep.subr.bf16.mxu1 %v13277_v3  ;;  %v13367_v2 = vld [vmem:[%s14490_s12 + $0x3ec] ss:$16 sps:$4 sm:$0xff]   ;;  %v13362_v3 = vld [vmem:[%s14490_s12 + $0x3e0] ss:$16 sps:$4 sm:$0xff]  }
 0x19b   : > { %2203 = vmatmul.mubr.bf16.vlgmr.msra.gmra.mrb[0].mxu0 %v10434_v4  ;;  %2367 = vmatmul.mubr.bf16.vlgmr.msra.gmra.mrb[0].mxu1 %v10434_v4  ;;  %v13365_v4 = vld [vmem:[%s14490_s12 + $0x3e8] ss:$16 sps:$4 sm:$0xff]  }
 0x19c   : > { %2212 = vmatpush1.bf16.msra.mxu0 %v13272_v5  ;;  %2376 = vmatpush1.bf16.msra.mxu1 %v13275_v6  ;;  %v13372_v5 = vld [vmem:[%s14490_s12 + $0x404] ss:$16 sps:$4 sm:$0xff]   ;;  %v13375_v6 = vld [vmem:[%s14490_s12 + $0x40c] ss:$16 sps:$4 sm:$0xff]  }
 0x19d   : > { %2213 = vmatprep.subr.bf16.mxu0 %v13280_v7  ;;  %2377 = vmatprep.subr.bf16.mxu1 %v13283_v8  ;;  %v10436_v7 = vcombine.low %v14619_v29, %v14619_v29  ;;  %v13370_v8 = vld [vmem:[%s14490_s12 + $0x400] ss:$16 sps:$4 sm:$0xff]   ;;  %v13405_v29 = vld [vmem:[%s14490_s12 + $0x4ac] ss:$16 sps:$4 sm:$0xff]  }
 0x19e   : > { %2243 = vmatprep.mubr.bf16.mxu0 %v10437_v30  ;;  %2407 = vmatprep.mubr.bf16.mxu1 %v10437_v30  ;;  %v13400_v30 = vld [vmem:[%s14490_s12 + $0x4a0] ss:$16 sps:$4 sm:$0xff]  }
 0x1a0   : > { %2214 = vmatpush1.bf16.msra.mxu0 %v13278_v9  ;;  %2378 = vmatpush1.bf16.msra.mxu1 %v13281_v10  ;;  %v13373_v9 = vld [vmem:[%s14490_s12 + $0x408] ss:$16 sps:$4 sm:$0xff]   ;;  %v13378_v10 = vld [vmem:[%s14490_s12 + $0x424] ss:$16 sps:$4 sm:$0xff]  }
 0x1a1   : > { %2215 = vmatprep.subr.bf16.mxu0 %v13286_v11  ;;  %2379 = vmatprep.subr.bf16.mxu1 %v13289_v12  ;;  %v14671_v11 = vld [vmem:[%s17180_s2 + $0x10] sm:$0xff]  ;;  %v13381_v12 = vld [vmem:[%s14490_s12 + $0x42c] ss:$16 sps:$4 sm:$0xff]  }
 0x1a4   : > { %2216 = vmatpush1.bf16.msra.mxu0 %v13284_v13  ;;  %2380 = vmatpush1.bf16.msra.mxu1 %v13287_v14  ;;  %v10439_v13 = vcombine.high %v14671_v11, %v14671_v11  ;;  %v13376_v14 = vld [vmem:[%s14490_s12 + $0x420] ss:$16 sps:$4 sm:$0xff]  }
 0x1a5   : > { %2217 = vmatprep.subr.bf16.mxu0 %v13292_v15  ;;  %2381 = vmatprep.subr.bf16.mxu1 %v13295_v16  ;;  %v13379_v15 = vld [vmem:[%s14490_s12 + $0x428] ss:$16 sps:$4 sm:$0xff]   ;;  %v13384_v16 = vld [vmem:[%s14490_s12 + $0x444] ss:$16 sps:$4 sm:$0xff]  }
 0x1a8   : > { %2218 = vmatpush1.bf16.msra.mxu0 %v13290_v17  ;;  %2382 = vmatpush1.bf16.msra.mxu1 %v13293_v18  ;;  %v13387_v17 = vld [vmem:[%s14490_s12 + $0x44c] ss:$16 sps:$4 sm:$0xff]   ;;  %v13382_v18 = vld [vmem:[%s14490_s12 + $0x440] ss:$16 sps:$4 sm:$0xff]  }
 0x1a9   : > { %2219 = vmatprep.subr.bf16.mxu0 %v13298_v19  ;;  %2383 = vmatprep.subr.bf16.mxu1 %v13301_v20  ;;  %v13385_v19 = vld [vmem:[%s14490_s12 + $0x448] ss:$16 sps:$4 sm:$0xff]   ;;  %v13390_v20 = vld [vmem:[%s14490_s12 + $0x464] ss:$16 sps:$4 sm:$0xff]  }
 0x1ac   : > { %2220 = vmatpush1.bf16.msra.mxu0 %v13296_v21  ;;  %2384 = vmatpush1.bf16.msra.mxu1 %v13299_v22  ;;  %v13393_v21 = vld [vmem:[%s14490_s12 + $0x46c] ss:$16 sps:$4 sm:$0xff]   ;;  %v13388_v22 = vld [vmem:[%s14490_s12 + $0x460] ss:$16 sps:$4 sm:$0xff]  }
 0x1ad   : > { %2221 = vmatprep.subr.bf16.mxu0 %v13304_v23  ;;  %2385 = vmatprep.subr.bf16.mxu1 %v13307_v24  ;;  %v13391_v23 = vld [vmem:[%s14490_s12 + $0x468] ss:$16 sps:$4 sm:$0xff]   ;;  %v13396_v24 = vld [vmem:[%s14490_s12 + $0x484] ss:$16 sps:$4 sm:$0xff]  }
 0x1b0   : > { %2222 = vmatpush1.bf16.msra.mxu0 %v13302_v25  ;;  %2386 = vmatpush1.bf16.msra.mxu1 %v13305_v26  ;;  %v13399_v25 = vld [vmem:[%s14490_s12 + $0x48c] ss:$16 sps:$4 sm:$0xff]   ;;  %v13394_v26 = vld [vmem:[%s14490_s12 + $0x480] ss:$16 sps:$4 sm:$0xff]  }
 0x1b1   : > { %2223 = vmatprep.subr.bf16.mxu0 %v13310_v27  ;;  %2387 = vmatprep.subr.bf16.mxu1 %v13313_v28  ;;  %v13397_v27 = vld [vmem:[%s14490_s12 + $0x488] ss:$16 sps:$4 sm:$0xff]   ;;  %v13402_v28 = vld [vmem:[%s14490_s12 + $0x4a4] ss:$16 sps:$4 sm:$0xff]  }
 0x1b4   : > { %2224 = vmatpush1.bf16.msra.mxu0 %v13308_v31  ;;  %2388 = vmatpush1.bf16.msra.mxu1 %v13311_v32  ;;  %v13403_v31 = vld [vmem:[%s14490_s12 + $0x4a8] ss:$16 sps:$4 sm:$0xff]   ;;  %v13408_v32 = vld [vmem:[%s14490_s12 + $0x4c4] ss:$16 sps:$4 sm:$0xff]  }
 0x1b5   : > { %2225 = vmatprep.subr.bf16.mxu0 %v13316_v33  ;;  %2389 = vmatprep.subr.bf16.mxu1 %v13319_v34  ;;  %v13411_v33 = vld [vmem:[%s14490_s12 + $0x4cc] ss:$16 sps:$4 sm:$0xff]   ;;  %v13406_v34 = vld [vmem:[%s14490_s12 + $0x4c0] ss:$16 sps:$4 sm:$0xff]  }
 0x1b8   : > { %2226 = vmatpush1.bf16.msra.mxu0 %v13314_v35  ;;  %2390 = vmatpush1.bf16.msra.mxu1 %v13317_v36  ;;  %v13409_v35 = vld [vmem:[%s14490_s12 + $0x4c8] ss:$16 sps:$4 sm:$0xff]   ;;  %v13414_v36 = vld [vmem:[%s14490_s12 + $0x4e4] ss:$16 sps:$4 sm:$0xff]  }
 0x1b9   : > { %2227 = vmatprep.subr.bf16.mxu0 %v13322_v37  ;;  %2391 = vmatprep.subr.bf16.mxu1 %v13325_v38  ;;  %v13417_v37 = vld [vmem:[%s14490_s12 + $0x4ec] ss:$16 sps:$4 sm:$0xff]   ;;  %v13412_v38 = vld [vmem:[%s14490_s12 + $0x4e0] ss:$16 sps:$4 sm:$0xff]  }
 0x1bc   : > { %2228 = vmatpush1.bf16.msra.mxu0 %v13320_v39  ;;  %2392 = vmatpush1.bf16.msra.mxu1 %v13323_v40  ;;  %v13415_v39 = vld [vmem:[%s14490_s12 + $0x4e8] ss:$16 sps:$4 sm:$0xff]   ;;  %v13420_v40 = vld [vmem:[%s14490_s12 + $0x504] ss:$16 sps:$4 sm:$0xff]  }
 0x1bd   : > { %2229 = vmatprep.subr.bf16.mxu0 %v13328_v41  ;;  %2393 = vmatprep.subr.bf16.mxu1 %v13331_v42  ;;  %v13423_v41 = vld [vmem:[%s14490_s12 + $0x50c] ss:$16 sps:$4 sm:$0xff]   ;;  %v13418_v42 = vld [vmem:[%s14490_s12 + $0x500] ss:$16 sps:$4 sm:$0xff]  }
 0x1c0   : > { %2230 = vmatpush1.bf16.msra.mxu0 %v13326_v43  ;;  %2394 = vmatpush1.bf16.msra.mxu1 %v13329_v44  ;;  %v13421_v43 = vld [vmem:[%s14490_s12 + $0x508] ss:$16 sps:$4 sm:$0xff]   ;;  %v13426_v44 = vld [vmem:[%s14490_s12 + $0x524] ss:$16 sps:$4 sm:$0xff]  }
 0x1c1   : > { %2231 = vmatprep.subr.bf16.mxu0 %v13334_v45  ;;  %2395 = vmatprep.subr.bf16.mxu1 %v13337_v46  ;;  %v13429_v45 = vld [vmem:[%s14490_s12 + $0x52c] ss:$16 sps:$4 sm:$0xff]   ;;  %v13424_v46 = vld [vmem:[%s14490_s12 + $0x520] ss:$16 sps:$4 sm:$0xff]  }
 0x1c4   : > { %2232 = vmatpush1.bf16.msra.mxu0 %v13332_v47  ;;  %2396 = vmatpush1.bf16.msra.mxu1 %v13335_v48  ;;  %v13427_v47 = vld [vmem:[%s14490_s12 + $0x528] ss:$16 sps:$4 sm:$0xff]   ;;  %v13432_v48 = vld [vmem:[%s14490_s12 + $0x544] ss:$16 sps:$4 sm:$0xff]  }
 0x1c5   : > { %2233 = vmatprep.subr.bf16.mxu0 %v13340_v49  ;;  %2397 = vmatprep.subr.bf16.mxu1 %v13343_v50  ;;  %v13435_v49 = vld [vmem:[%s14490_s12 + $0x54c] ss:$16 sps:$4 sm:$0xff]   ;;  %v13430_v50 = vld [vmem:[%s14490_s12 + $0x540] ss:$16 sps:$4 sm:$0xff]  }
 0x1c8   : > { %2234 = vmatpush1.bf16.msra.mxu0 %v13338_v51  ;;  %2398 = vmatpush1.bf16.msra.mxu1 %v13341_v52  ;;  %v13433_v51 = vld [vmem:[%s14490_s12 + $0x548] ss:$16 sps:$4 sm:$0xff]   ;;  %v13438_v52 = vld [vmem:[%s14490_s12 + $0x564] ss:$16 sps:$4 sm:$0xff]  }
 0x1c9   : > { %2235 = vmatprep.subr.bf16.mxu0 %v13346_v53  ;;  %2399 = vmatprep.subr.bf16.mxu1 %v13349_v54  ;;  %v13441_v53 = vld [vmem:[%s14490_s12 + $0x56c] ss:$16 sps:$4 sm:$0xff]   ;;  %v13436_v54 = vld [vmem:[%s14490_s12 + $0x560] ss:$16 sps:$4 sm:$0xff]  }
 0x1cc   : > { %2236 = vmatpush1.bf16.msra.mxu0 %v13344_v55  ;;  %2400 = vmatpush1.bf16.msra.mxu1 %v13347_v56  ;;  %v13439_v55 = vld [vmem:[%s14490_s12 + $0x568] ss:$16 sps:$4 sm:$0xff]   ;;  %v13444_v56 = vld [vmem:[%s14490_s12 + $0x584] ss:$16 sps:$4 sm:$0xff]  }
 0x1cd   : > { %2237 = vmatprep.subr.bf16.mxu0 %v13352_v57  ;;  %2401 = vmatprep.subr.bf16.mxu1 %v13355_v58  ;;  %v13447_v57 = vld [vmem:[%s14490_s12 + $0x58c] ss:$16 sps:$4 sm:$0xff]   ;;  %v13442_v58 = vld [vmem:[%s14490_s12 + $0x580] ss:$16 sps:$4 sm:$0xff]  }
 0x1d0   : > { %2238 = vmatpush1.bf16.msra.mxu0 %v13350_v59  ;;  %2402 = vmatpush1.bf16.msra.mxu1 %v13353_v60  ;;  %v13445_v59 = vld [vmem:[%s14490_s12 + $0x588] ss:$16 sps:$4 sm:$0xff]   ;;  %v13450_v60 = vld [vmem:[%s14490_s12 + $0x5a4] ss:$16 sps:$4 sm:$0xff]  }
 0x1d1   : > { %2239 = vmatprep.subr.bf16.mxu0 %v13358_v61  ;;  %2403 = vmatprep.subr.bf16.mxu1 %v13361_v62  ;;  %v13453_v61 = vld [vmem:[%s14490_s12 + $0x5ac] ss:$16 sps:$4 sm:$0xff]   ;;  %v13448_v62 = vld [vmem:[%s14490_s12 + $0x5a0] ss:$16 sps:$4 sm:$0xff]  }
 0x1d4   : > { %2240 = vmatpush1.bf16.msra.mxu0 %v13356_v63  ;;  %2404 = vmatpush1.bf16.msra.mxu1 %v13359_v0  ;;  %v13451_v63 = vld [vmem:[%s14490_s12 + $0x5a8] ss:$16 sps:$4 sm:$0xff]   ;;  %v13456_v0 = vld [vmem:[%s14490_s12 + $0x5c4] ss:$16 sps:$4 sm:$0xff]  }
 0x1d5   : > { %2241 = vmatprep.subr.bf16.mxu0 %v13364_v1  ;;  %2405 = vmatprep.subr.bf16.mxu1 %v13367_v2  ;;  %v13459_v1 = vld [vmem:[%s14490_s12 + $0x5cc] ss:$16 sps:$4 sm:$0xff]   ;;  %v13454_v2 = vld [vmem:[%s14490_s12 + $0x5c0] ss:$16 sps:$4 sm:$0xff]  }
 0x1d8   : > { %2242 = vmatpush1.bf16.msra.mxu0 %v13362_v3  ;;  %2406 = vmatpush1.bf16.msra.mxu1 %v13365_v4  ;;  %v13457_v3 = vld [vmem:[%s14490_s12 + $0x5c8] ss:$16 sps:$4 sm:$0xff]   ;;  %v13462_v4 = vld [vmem:[%s14490_s12 + $0x5e4] ss:$16 sps:$4 sm:$0xff]  }
 0x1d9   : > { %2252 = vmatprep.subr.bf16.mxu0 %v13372_v5  ;;  %2416 = vmatprep.subr.bf16.mxu1 %v13375_v6  ;;  %v13465_v5 = vld [vmem:[%s14490_s12 + $0x5ec] ss:$16 sps:$4 sm:$0xff]   ;;  %v13460_v6 = vld [vmem:[%s14490_s12 + $0x5e0] ss:$16 sps:$4 sm:$0xff]  }
 0x1db   : > { %2244 = vmatmul.mubr.bf16.vlgmr.msra.gmra.mrb[0].mxu0 %v10436_v7  ;;  %2408 = vmatmul.mubr.bf16.vlgmr.msra.gmra.mrb[0].mxu1 %v10436_v7  ;;  %v13463_v7 = vld [vmem:[%s14490_s12 + $0x5e8] ss:$16 sps:$4 sm:$0xff]  }
 0x1dc   : > { %2253 = vmatpush1.bf16.msra.mxu0 %v13370_v8  ;;  %2417 = vmatpush1.bf16.msra.mxu1 %v13373_v9  ;;  %v13470_v8 = vld [vmem:[%s14490_s12 + $0x604] ss:$16 sps:$4 sm:$0xff]   ;;  %v13473_v9 = vld [vmem:[%s14490_s12 + $0x60c] ss:$16 sps:$4 sm:$0xff]  }
 0x1dd   : > { %2254 = vmatprep.subr.bf16.mxu0 %v13378_v10  ;;  %2418 = vmatprep.subr.bf16.mxu1 %v13381_v12  ;;  %v10438_v10 = vcombine.low %v14671_v11, %v14671_v11  ;;  %v14741_v12 = vld [vmem:[%s17180_s2 + $0x18] sm:$0xff] }
 0x1de   : > { %2284 = vmatprep.mubr.bf16.mxu0 %v10439_v13  ;;  %2448 = vmatprep.mubr.bf16.mxu1 %v10439_v13  ;;  %v13468_v13 = vld [vmem:[%s14490_s12 + $0x600] ss:$16 sps:$4 sm:$0xff]   ;;  %v10441_v11 = vcombine.high %v14741_v12, %v14741_v12 }
 0x1e0   : > { %2255 = vmatpush1.bf16.msra.mxu0 %v13376_v14  ;;  %2419 = vmatpush1.bf16.msra.mxu1 %v13379_v15  ;;  %v13471_v14 = vld [vmem:[%s14490_s12 + $0x608] ss:$16 sps:$4 sm:$0xff]   ;;  %v13476_v15 = vld [vmem:[%s14490_s12 + $0x624] ss:$16 sps:$4 sm:$0xff]  }
 0x1e1   : > { %2256 = vmatprep.subr.bf16.mxu0 %v13384_v16  ;;  %2420 = vmatprep.subr.bf16.mxu1 %v13387_v17  ;;  %v13479_v16 = vld [vmem:[%s14490_s12 + $0x62c] ss:$16 sps:$4 sm:$0xff]   ;;  %v13474_v17 = vld [vmem:[%s14490_s12 + $0x620] ss:$16 sps:$4 sm:$0xff]  }
 0x1e4   : > { %2257 = vmatpush1.bf16.msra.mxu0 %v13382_v18  ;;  %2421 = vmatpush1.bf16.msra.mxu1 %v13385_v19  ;;  %v13477_v18 = vld [vmem:[%s14490_s12 + $0x628] ss:$16 sps:$4 sm:$0xff]   ;;  %v13482_v19 = vld [vmem:[%s14490_s12 + $0x644] ss:$16 sps:$4 sm:$0xff]  }
 0x1e5   : > { %2258 = vmatprep.subr.bf16.mxu0 %v13390_v20  ;;  %2422 = vmatprep.subr.bf16.mxu1 %v13393_v21  ;;  %v13485_v20 = vld [vmem:[%s14490_s12 + $0x64c] ss:$16 sps:$4 sm:$0xff]   ;;  %v13480_v21 = vld [vmem:[%s14490_s12 + $0x640] ss:$16 sps:$4 sm:$0xff]  }
 0x1e8   : > { %2259 = vmatpush1.bf16.msra.mxu0 %v13388_v22  ;;  %2423 = vmatpush1.bf16.msra.mxu1 %v13391_v23  ;;  %v13483_v22 = vld [vmem:[%s14490_s12 + $0x648] ss:$16 sps:$4 sm:$0xff]   ;;  %v13488_v23 = vld [vmem:[%s14490_s12 + $0x664] ss:$16 sps:$4 sm:$0xff]  }
 0x1e9   : > { %2260 = vmatprep.subr.bf16.mxu0 %v13396_v24  ;;  %2424 = vmatprep.subr.bf16.mxu1 %v13399_v25  ;;  %v13491_v24 = vld [vmem:[%s14490_s12 + $0x66c] ss:$16 sps:$4 sm:$0xff]   ;;  %v13486_v25 = vld [vmem:[%s14490_s12 + $0x660] ss:$16 sps:$4 sm:$0xff]  }
 0x1ec   : > { %2261 = vmatpush1.bf16.msra.mxu0 %v13394_v26  ;;  %2425 = vmatpush1.bf16.msra.mxu1 %v13397_v27  ;;  %v13489_v26 = vld [vmem:[%s14490_s12 + $0x668] ss:$16 sps:$4 sm:$0xff]   ;;  %v13494_v27 = vld [vmem:[%s14490_s12 + $0x684] ss:$16 sps:$4 sm:$0xff]  }
 0x1ed   : > { %2262 = vmatprep.subr.bf16.mxu0 %v13402_v28  ;;  %2426 = vmatprep.subr.bf16.mxu1 %v13405_v29  ;;  %v13497_v28 = vld [vmem:[%s14490_s12 + $0x68c] ss:$16 sps:$4 sm:$0xff]   ;;  %v13492_v29 = vld [vmem:[%s14490_s12 + $0x680] ss:$16 sps:$4 sm:$0xff]  }
 0x1f0   : > { %2263 = vmatpush1.bf16.msra.mxu0 %v13400_v30  ;;  %2427 = vmatpush1.bf16.msra.mxu1 %v13403_v31  ;;  %v13495_v30 = vld [vmem:[%s14490_s12 + $0x688] ss:$16 sps:$4 sm:$0xff]   ;;  %v13500_v31 = vld [vmem:[%s14490_s12 + $0x6a4] ss:$16 sps:$4 sm:$0xff]  }
 0x1f1   : > { %2264 = vmatprep.subr.bf16.mxu0 %v13408_v32  ;;  %2428 = vmatprep.subr.bf16.mxu1 %v13411_v33  ;;  %v13503_v32 = vld [vmem:[%s14490_s12 + $0x6ac] ss:$16 sps:$4 sm:$0xff]   ;;  %v13498_v33 = vld [vmem:[%s14490_s12 + $0x6a0] ss:$16 sps:$4 sm:$0xff]  }
 0x1f4   : > { %2265 = vmatpush1.bf16.msra.mxu0 %v13406_v34  ;;  %2429 = vmatpush1.bf16.msra.mxu1 %v13409_v35  ;;  %v13501_v34 = vld [vmem:[%s14490_s12 + $0x6a8] ss:$16 sps:$4 sm:$0xff]   ;;  %v13506_v35 = vld [vmem:[%s14490_s12 + $0x6c4] ss:$16 sps:$4 sm:$0xff]  }
 0x1f5   : > { %2266 = vmatprep.subr.bf16.mxu0 %v13414_v36  ;;  %2430 = vmatprep.subr.bf16.mxu1 %v13417_v37  ;;  %v13509_v36 = vld [vmem:[%s14490_s12 + $0x6cc] ss:$16 sps:$4 sm:$0xff]   ;;  %v13504_v37 = vld [vmem:[%s14490_s12 + $0x6c0] ss:$16 sps:$4 sm:$0xff]  }
 0x1f8   : > { %2267 = vmatpush1.bf16.msra.mxu0 %v13412_v38  ;;  %2431 = vmatpush1.bf16.msra.mxu1 %v13415_v39  ;;  %v13507_v38 = vld [vmem:[%s14490_s12 + $0x6c8] ss:$16 sps:$4 sm:$0xff]   ;;  %v13512_v39 = vld [vmem:[%s14490_s12 + $0x6e4] ss:$16 sps:$4 sm:$0xff]  }
 0x1f9   : > { %2268 = vmatprep.subr.bf16.mxu0 %v13420_v40  ;;  %2432 = vmatprep.subr.bf16.mxu1 %v13423_v41  ;;  %v13515_v40 = vld [vmem:[%s14490_s12 + $0x6ec] ss:$16 sps:$4 sm:$0xff]   ;;  %v13510_v41 = vld [vmem:[%s14490_s12 + $0x6e0] ss:$16 sps:$4 sm:$0xff]  }
 0x1fc   : > { %2269 = vmatpush1.bf16.msra.mxu0 %v13418_v42  ;;  %2433 = vmatpush1.bf16.msra.mxu1 %v13421_v43  ;;  %v13513_v42 = vld [vmem:[%s14490_s12 + $0x6e8] ss:$16 sps:$4 sm:$0xff]   ;;  %v13518_v43 = vld [vmem:[%s14490_s12 + $0x704] ss:$16 sps:$4 sm:$0xff]  }
 0x1fd   : > { %2270 = vmatprep.subr.bf16.mxu0 %v13426_v44  ;;  %2434 = vmatprep.subr.bf16.mxu1 %v13429_v45  ;;  %v13521_v44 = vld [vmem:[%s14490_s12 + $0x70c] ss:$16 sps:$4 sm:$0xff]   ;;  %v13516_v45 = vld [vmem:[%s14490_s12 + $0x700] ss:$16 sps:$4 sm:$0xff]  }
 0x200   : > { %2271 = vmatpush1.bf16.msra.mxu0 %v13424_v46  ;;  %2435 = vmatpush1.bf16.msra.mxu1 %v13427_v47  ;;  %v13519_v46 = vld [vmem:[%s14490_s12 + $0x708] ss:$16 sps:$4 sm:$0xff]   ;;  %v13524_v47 = vld [vmem:[%s14490_s12 + $0x724] ss:$16 sps:$4 sm:$0xff]  }
 0x201   : > { %2272 = vmatprep.subr.bf16.mxu0 %v13432_v48  ;;  %2436 = vmatprep.subr.bf16.mxu1 %v13435_v49  ;;  %v13527_v48 = vld [vmem:[%s14490_s12 + $0x72c] ss:$16 sps:$4 sm:$0xff]   ;;  %v13522_v49 = vld [vmem:[%s14490_s12 + $0x720] ss:$16 sps:$4 sm:$0xff]  }
 0x204   : > { %2273 = vmatpush1.bf16.msra.mxu0 %v13430_v50  ;;  %2437 = vmatpush1.bf16.msra.mxu1 %v13433_v51  ;;  %v13525_v50 = vld [vmem:[%s14490_s12 + $0x728] ss:$16 sps:$4 sm:$0xff]   ;;  %v13530_v51 = vld [vmem:[%s14490_s12 + $0x744] ss:$16 sps:$4 sm:$0xff]  }
 0x205   : > { %2274 = vmatprep.subr.bf16.mxu0 %v13438_v52  ;;  %2438 = vmatprep.subr.bf16.mxu1 %v13441_v53  ;;  %v13533_v52 = vld [vmem:[%s14490_s12 + $0x74c] ss:$16 sps:$4 sm:$0xff]   ;;  %v13528_v53 = vld [vmem:[%s14490_s12 + $0x740] ss:$16 sps:$4 sm:$0xff]  }
 0x208   : > { %2275 = vmatpush1.bf16.msra.mxu0 %v13436_v54  ;;  %2439 = vmatpush1.bf16.msra.mxu1 %v13439_v55  ;;  %v13531_v54 = vld [vmem:[%s14490_s12 + $0x748] ss:$16 sps:$4 sm:$0xff]   ;;  %v13536_v55 = vld [vmem:[%s14490_s12 + $0x764] ss:$16 sps:$4 sm:$0xff]  }
 0x209   : > { %2276 = vmatprep.subr.bf16.mxu0 %v13444_v56  ;;  %2440 = vmatprep.subr.bf16.mxu1 %v13447_v57  ;;  %v13539_v56 = vld [vmem:[%s14490_s12 + $0x76c] ss:$16 sps:$4 sm:$0xff]   ;;  %v13534_v57 = vld [vmem:[%s14490_s12 + $0x760] ss:$16 sps:$4 sm:$0xff]  }
 0x20c   : > { %2277 = vmatpush1.bf16.msra.mxu0 %v13442_v58  ;;  %2441 = vmatpush1.bf16.msra.mxu1 %v13445_v59  ;;  %v13537_v58 = vld [vmem:[%s14490_s12 + $0x768] ss:$16 sps:$4 sm:$0xff]   ;;  %v13542_v59 = vld [vmem:[%s14490_s12 + $0x784] ss:$16 sps:$4 sm:$0xff]  }
 0x20d   : > { %2278 = vmatprep.subr.bf16.mxu0 %v13450_v60  ;;  %2442 = vmatprep.subr.bf16.mxu1 %v13453_v61  ;;  %v13545_v60 = vld [vmem:[%s14490_s12 + $0x78c] ss:$16 sps:$4 sm:$0xff]   ;;  %v13540_v61 = vld [vmem:[%s14490_s12 + $0x780] ss:$16 sps:$4 sm:$0xff]  }
 0x210   : > { %2279 = vmatpush1.bf16.msra.mxu0 %v13448_v62  ;;  %2443 = vmatpush1.bf16.msra.mxu1 %v13451_v63  ;;  %v13543_v62 = vld [vmem:[%s14490_s12 + $0x788] ss:$16 sps:$4 sm:$0xff]   ;;  %v13548_v63 = vld [vmem:[%s14490_s12 + $0x7a4] ss:$16 sps:$4 sm:$0xff]  }
 0x211   : > { %2280 = vmatprep.subr.bf16.mxu0 %v13456_v0  ;;  %2444 = vmatprep.subr.bf16.mxu1 %v13459_v1  ;;  %v13551_v0 = vld [vmem:[%s14490_s12 + $0x7ac] ss:$16 sps:$4 sm:$0xff]   ;;  %v13546_v1 = vld [vmem:[%s14490_s12 + $0x7a0] ss:$16 sps:$4 sm:$0xff]  }
 0x214   : > { %2281 = vmatpush1.bf16.msra.mxu0 %v13454_v2  ;;  %2445 = vmatpush1.bf16.msra.mxu1 %v13457_v3  ;;  %v13549_v2 = vld [vmem:[%s14490_s12 + $0x7a8] ss:$16 sps:$4 sm:$0xff]   ;;  %v13554_v3 = vld [vmem:[%s14490_s12 + $0x7c4] ss:$16 sps:$4 sm:$0xff]  }
 0x215   : > { %2282 = vmatprep.subr.bf16.mxu0 %v13462_v4  ;;  %2446 = vmatprep.subr.bf16.mxu1 %v13465_v5  ;;  %v13557_v4 = vld [vmem:[%s14490_s12 + $0x7cc] ss:$16 sps:$4 sm:$0xff]   ;;  %v13552_v5 = vld [vmem:[%s14490_s12 + $0x7c0] ss:$16 sps:$4 sm:$0xff]  }
 0x218   : > { %2283 = vmatpush1.bf16.msra.mxu0 %v13460_v6  ;;  %2447 = vmatpush1.bf16.msra.mxu1 %v13463_v7  ;;  %v13555_v6 = vld [vmem:[%s14490_s12 + $0x7c8] ss:$16 sps:$4 sm:$0xff]   ;;  %v13560_v7 = vld [vmem:[%s14490_s12 + $0x7e4] ss:$16 sps:$4 sm:$0xff]  }
 0x219   : > { %2293 = vmatprep.subr.bf16.mxu0 %v13470_v8  ;;  %2457 = vmatprep.subr.bf16.mxu1 %v13473_v9  ;;  %v13563_v8 = vld [vmem:[%s14490_s12 + $0x7ec] ss:$16 sps:$4 sm:$0xff]   ;;  %v13558_v9 = vld [vmem:[%s14490_s12 + $0x7e0] ss:$16 sps:$4 sm:$0xff]  }
 0x21b   : > { %2285 = vmatmul.mubr.bf16.vlgmr.msra.gmra.mrb[0].mxu0 %v10438_v10  ;;  %2449 = vmatmul.mubr.bf16.vlgmr.msra.gmra.mrb[0].mxu1 %v10438_v10  ;;  %v13561_v10 = vld [vmem:[%s14490_s12 + $0x7e8] ss:$16 sps:$4 sm:$0xff]  }
 0x21c   : > { %2294 = vmatpush1.bf16.msra.mxu0 %v13468_v13  ;;  %2458 = vmatpush1.bf16.msra.mxu1 %v13471_v14  ;;  %v10440_v13 = vcombine.low %v14741_v12, %v14741_v12  ;;  %v842_v14 = vlaneseq }
 0x21d   : > { %2295 = vmatprep.subr.bf16.mxu0 %v13476_v15  ;;  %2459 = vmatprep.subr.bf16.mxu1 %v13479_v16 }
 0x21e   : > { %2325 = vmatprep.mubr.bf16.mxu0 %v10441_v11  ;;  %2489 = vmatprep.mubr.bf16.mxu1 %v10441_v11  ;;  %v14809_v15 = vshrl.u32 %v842_v14, 7 }
 0x220   : > { %2296 = vmatpush1.bf16.msra.mxu0 %v13474_v17  ;;  %2460 = vmatpush1.bf16.msra.mxu1 %v13477_v18  ;;  %17181 = vst [vmem:[#allocation31_spill] sm:$0xff] %v14809_v15  ;;  %v14812_v16 = vsub.s32 0, %v14809_v15  ;;  %v14816_v11 = vsub.s32 2, %v14809_v15  ;;  %v840_v17 = vld [vmem:[%s14497_s5] sm:$0xf]  ;;  %v14820_v18 = vsub.s32 1, %v14809_v15 }
 0x221   : > { %2297 = vmatprep.subr.bf16.mxu0 %v13482_v19  ;;  %2461 = vmatprep.subr.bf16.mxu1 %v13485_v20  ;;  %v14823_v12 = vsub.s32 3, %v14809_v15 }
 0x222   : > { %17182 = vst [vmem:[#allocation32_spill] sm:$0xff] %v14812_v16  ;;  %17183 = vst [vmem:[#allocation33_spill] sm:$0xff] %v14816_v11  ;;  %v845_v19 = vrot.slane %v840_v17, %v14812_v16  ;;  %v853_v20 = vrot.slane %v840_v17, %v14816_v11 }
 0x223   : > { %17184 = vst [vmem:[#allocation34_spill] sm:$0xff] %v14820_v18  ;;  %17185 = vst [vmem:[#allocation35_spill] sm:$0xff] %v14823_v12 }
 0x224   : > { %2298 = vmatpush1.bf16.msra.mxu0 %v13480_v21  ;;  %2462 = vmatpush1.bf16.msra.mxu1 %v13483_v22  ;;  %v849_v21 = vrot.slane %v840_v17, %v14820_v18  ;;  %v857_v22 = vrot.slane %v840_v17, %v14823_v12 }
 0x225   : > { %2299 = vmatprep.subr.bf16.mxu0 %v13488_v23  ;;  %2463 = vmatprep.subr.bf16.mxu1 %v13491_v24 }
 0x228   : > { %2300 = vmatpush1.bf16.msra.mxu0 %v13486_v25  ;;  %2464 = vmatpush1.bf16.msra.mxu1 %v13489_v26 }
 0x229   : > { %2301 = vmatprep.subr.bf16.mxu0 %v13494_v27  ;;  %2465 = vmatprep.subr.bf16.mxu1 %v13497_v28 }
 0x22c   : > { %2302 = vmatpush1.bf16.msra.mxu0 %v13492_v29  ;;  %2466 = vmatpush1.bf16.msra.mxu1 %v13495_v30 }
 0x22d   : > { %2303 = vmatprep.subr.bf16.mxu0 %v13500_v31  ;;  %2467 = vmatprep.subr.bf16.mxu1 %v13503_v32 }
 0x230   : > { %2304 = vmatpush1.bf16.msra.mxu0 %v13498_v33  ;;  %2468 = vmatpush1.bf16.msra.mxu1 %v13501_v34 }
 0x231   : > { %2305 = vmatprep.subr.bf16.mxu0 %v13506_v35  ;;  %2469 = vmatprep.subr.bf16.mxu1 %v13509_v36 }
 0x234   : > { %2306 = vmatpush1.bf16.msra.mxu0 %v13504_v37  ;;  %2470 = vmatpush1.bf16.msra.mxu1 %v13507_v38 }
 0x235   : > { %2307 = vmatprep.subr.bf16.mxu0 %v13512_v39  ;;  %2471 = vmatprep.subr.bf16.mxu1 %v13515_v40 }
 0x238   : > { %2308 = vmatpush1.bf16.msra.mxu0 %v13510_v41  ;;  %2472 = vmatpush1.bf16.msra.mxu1 %v13513_v42 }
 0x239   : > { %2309 = vmatprep.subr.bf16.mxu0 %v13518_v43  ;;  %2473 = vmatprep.subr.bf16.mxu1 %v13521_v44 }
 0x23c   : > { %2310 = vmatpush1.bf16.msra.mxu0 %v13516_v45  ;;  %2474 = vmatpush1.bf16.msra.mxu1 %v13519_v46 }
 0x23d   : > { %2311 = vmatprep.subr.bf16.mxu0 %v13524_v47  ;;  %2475 = vmatprep.subr.bf16.mxu1 %v13527_v48 }
 0x240   : > { %2312 = vmatpush1.bf16.msra.mxu0 %v13522_v49  ;;  %2476 = vmatpush1.bf16.msra.mxu1 %v13525_v50 }
 0x241   : > { %2313 = vmatprep.subr.bf16.mxu0 %v13530_v51  ;;  %2477 = vmatprep.subr.bf16.mxu1 %v13533_v52 }
 0x244   : > { %2314 = vmatpush1.bf16.msra.mxu0 %v13528_v53  ;;  %2478 = vmatpush1.bf16.msra.mxu1 %v13531_v54 }
 0x245   : > { %2315 = vmatprep.subr.bf16.mxu0 %v13536_v55  ;;  %2479 = vmatprep.subr.bf16.mxu1 %v13539_v56 }
 0x248   : > { %2316 = vmatpush1.bf16.msra.mxu0 %v13534_v57  ;;  %2480 = vmatpush1.bf16.msra.mxu1 %v13537_v58 }
 0x249   : > { %2317 = vmatprep.subr.bf16.mxu0 %v13542_v59  ;;  %2481 = vmatprep.subr.bf16.mxu1 %v13545_v60 }
 0x24c   : > { %2318 = vmatpush1.bf16.msra.mxu0 %v13540_v61  ;;  %2482 = vmatpush1.bf16.msra.mxu1 %v13543_v62 }
 0x24d   : > { %2319 = vmatprep.subr.bf16.mxu0 %v13548_v63  ;;  %2483 = vmatprep.subr.bf16.mxu1 %v13551_v0 }
 0x250   : > { %2320 = vmatpush1.bf16.msra.mxu0 %v13546_v1  ;;  %2484 = vmatpush1.bf16.msra.mxu1 %v13549_v2 }
 0x251   : > { %2321 = vmatprep.subr.bf16.mxu0 %v13554_v3  ;;  %2485 = vmatprep.subr.bf16.mxu1 %v13557_v4 }
 0x254   : > { %2322 = vmatpush1.bf16.msra.mxu0 %v13552_v5  ;;  %2486 = vmatpush1.bf16.msra.mxu1 %v13555_v6 }
 0x255   : > { %2323 = vmatprep.subr.bf16.mxu0 %v13560_v7  ;;  %2487 = vmatprep.subr.bf16.mxu1 %v13563_v8 }
 0x258   : > { %2324 = vmatpush1.bf16.msra.mxu0 %v13558_v9  ;;  %2488 = vmatpush1.bf16.msra.mxu1 %v13561_v10 }
 0x25b   : > { %2326 = vmatmul.mubr.bf16.vlgmr.msra.gmra.mrb[0].mxu0 %v10440_v13  ;;  %2490 = vmatmul.mubr.bf16.vlgmr.msra.gmra.mrb[0].mxu1 %v10440_v13 }
 0x32e   : > { %v2327_v23 = vpop.f32.mrb[0].mxu0  ;;  %v2491_v24 = vpop.f32.mrb[0].mxu1  ;;  %2515 = sbr.rel (%p10701_p2) target bundleno = 2338 (0x922), region = 116 }
 0x32f   : > { %v12936_v25 = vadd.f32 %v2327_v23, %v845_v19  ;;  %v12938_v26 = vadd.f32 %v2491_v24, %v853_v20  ;;  %v2329_v27 = vpop.f32.mrb[1].mxu0  ;;  %v2493_v28 = vpop.f32.mrb[1].mxu1 }
 0x330   : > { %v12937_v29 = vadd.f32 %v2329_v27, %v849_v21  ;;  %v12939_v30 = vadd.f32 %v2493_v28, %v857_v22  ;;  %v2331_v31 = vpop.f32.mrb[2].mxu0  ;;  %v2495_v32 = vpop.f32.mrb[2].mxu1 }
 0x331   : > { %v2498_v33 = vmax.f32 %v12936_v25, 0.0  ;;  %v2500_v34 = vmax.f32 %v12938_v26, 0.0  ;;  %v2332_v35 = vpop.f32.mrb[3].mxu0  ;;  %v2496_v36 = vpop.f32.mrb[3].mxu1 }
 0x332   : > { %v2499_v37 = vmax.f32 %v12937_v29, 0.0  ;;  %v2501_v38 = vmax.f32 %v12939_v30, 0.0 }
 0x333   : > { %2508 = vst [vmem:[%s2507_s19] sm:$0xff] %v2498_v33  ;;  %2510 = vst [vmem:[%s2507_s19 + $0x10] sm:$0xff] %v2500_v34 }
 0x334   : > { %2509 = vst [vmem:[%s2507_s19 + $0x8] sm:$0xff] %v2499_v37  ;;  %2511 = vst [vmem:[%s2507_s19 + $0x18] sm:$0xff] %v2501_v38 }
 0x335   : > { %v2516_v39 = vld [vmem:[#allocation10] sm:$0xff]  ;;  %v2517_v41 = vld [vmem:[#allocation10 + $0x8] sm:$0xff]  ;;  %vm5717_vm0 = vcmask 523264   ;;  %s14095_s27 = smov 64   ;;  %s17254_s12 = sld [smem:[#allocation74_spill]] }
 0x336   : > { %v2520_v40 = vld [vmem:[#allocation10 + $0x20] sm:$0xff]  ;;  %v2521_v43 = vld [vmem:[#allocation10 + $0x28] sm:$0xff] }
 0x337   : > { %v10703_v42 = vcombine.high %v2516_v39, %v2520_v40  ;;  %v10702_v44 = vcombine.low %v2516_v39, %v2520_v40  ;;  %v2524_v45 = vld [vmem:[#allocation10 + $0x40] sm:$0xff]  ;;  %v10705_v47 = vcombine.high %v2517_v41, %v2521_v43  ;;  %v10704_v48 = vcombine.low %v2517_v41, %v2521_v43  ;;  %v2525_v50 = vld [vmem:[#allocation10 + $0x48] sm:$0xff] }
 0x338   : > { %v2528_v46 = vld [vmem:[#allocation10 + $0x60] sm:$0xff]  ;;  %v2529_v51 = vld [vmem:[#allocation10 + $0x68] sm:$0xff] }
 0x339   : > { %v10711_v49 = vcombine.high %v2524_v45, %v2528_v46  ;;  %v2532_v52 = vld [vmem:[#allocation10 + $0x80] sm:$0xff]  ;;  %4118 = vmatprep.subr.bf16.mxu0 %v10703_v42  ;;  %v10713_v53 = vcombine.high %v2525_v50, %v2529_v51  ;;  %v2533_v55 = vld [vmem:[#allocation10 + $0x88] sm:$0xff]  ;;  %4224 = vmatprep.subr.bf16.mxu1 %v10705_v47  ;;  %v10710_v57 = vcombine.low %v2524_v45, %v2528_v46 }
 0x33a   : > { %v2536_v54 = vld [vmem:[#allocation10 + $0xa0] sm:$0xff]  ;;  %v2537_v56 = vld [vmem:[#allocation10 + $0xa8] sm:$0xff]  ;;  %4119 = vmatpush1.bf16.msra.mxu0 %v10702_v44  ;;  %4225 = vmatpush1.bf16.msra.mxu1 %v10704_v48  ;;  %v10712_v58 = vcombine.low %v2525_v50, %v2529_v51 }
 0x33b   : > { %4120 = vmatprep.subr.bf16.mxu0 %v10711_v49  ;;  %v10719_v59 = vcombine.high %v2532_v52, %v2536_v54  ;;  %4226 = vmatprep.subr.bf16.mxu1 %v10713_v53  ;;  %v10721_v60 = vcombine.high %v2533_v55, %v2537_v56  ;;  %v2540_v61 = vld [vmem:[#allocation10 + $0xc0] sm:$0xff]  ;;  %v2541_v63 = vld [vmem:[#allocation10 + $0xc8] sm:$0xff]  ;;  %v10718_v1 = vcombine.low %v2532_v52, %v2536_v54 }
 0x33c   : > { %v2544_v62 = vld [vmem:[#allocation10 + $0xe0] sm:$0xff]  ;;  %v2545_v0 = vld [vmem:[#allocation10 + $0xe8] sm:$0xff]  ;;  %v10720_v2 = vcombine.low %v2533_v55, %v2537_v56 }
 0x33d   : > { %v10727_v3 = vcombine.high %v2540_v61, %v2544_v62  ;;  %v10729_v4 = vcombine.high %v2541_v63, %v2545_v0  ;;  %v2548_v5 = vld [vmem:[#allocation10 + $0x100] sm:$0xff]  ;;  %v2549_v7 = vld [vmem:[#allocation10 + $0x108] sm:$0xff]  ;;  %v10726_v9 = vcombine.low %v2540_v61, %v2544_v62  ;;  %v10728_v10 = vcombine.low %v2541_v63, %v2545_v0 }
 0x33e   : > { %4121 = vmatpush1.bf16.msra.mxu0 %v10710_v57  ;;  %4227 = vmatpush1.bf16.msra.mxu1 %v10712_v58  ;;  %v2552_v6 = vld [vmem:[#allocation10 + $0x120] sm:$0xff]  ;;  %v2553_v8 = vld [vmem:[#allocation10 + $0x128] sm:$0xff] }
 0x33f   : > { %4122 = vmatprep.subr.bf16.mxu0 %v10719_v59  ;;  %4228 = vmatprep.subr.bf16.mxu1 %v10721_v60  ;;  %v10735_v13 = vcombine.high %v2548_v5, %v2552_v6  ;;  %v10737_v14 = vcombine.high %v2549_v7, %v2553_v8  ;;  %v2556_v17 = vld [vmem:[#allocation10 + $0x140] sm:$0xff]  ;;  %v2557_v20 = vld [vmem:[#allocation10 + $0x148] sm:$0xff]  ;;  %v10734_v22 = vcombine.low %v2548_v5, %v2552_v6 }
 0x340   : > { %v2560_v19 = vld [vmem:[#allocation10 + $0x160] sm:$0xff]  ;;  %v2561_v21 = vld [vmem:[#allocation10 + $0x168] sm:$0xff]  ;;  %v10736_v23 = vcombine.low %v2549_v7, %v2553_v8 }
 0x341   : > { %v10743_v24 = vcombine.high %v2556_v17, %v2560_v19  ;;  %v10745_v25 = vcombine.high %v2557_v20, %v2561_v21  ;;  %v2564_v26 = vld [vmem:[#allocation10 + $0x180] sm:$0xff]  ;;  %v2565_v28 = vld [vmem:[#allocation10 + $0x188] sm:$0xff]  ;;  %v10742_v30 = vcombine.low %v2556_v17, %v2560_v19  ;;  %v10744_v31 = vcombine.low %v2557_v20, %v2561_v21 }
 0x342   : > { %4123 = vmatpush1.bf16.msra.mxu0 %v10718_v1  ;;  %4229 = vmatpush1.bf16.msra.mxu1 %v10720_v2  ;;  %v2568_v27 = vld [vmem:[#allocation10 + $0x1a0] sm:$0xff]  ;;  %v2569_v29 = vld [vmem:[#allocation10 + $0x1a8] sm:$0xff] }
 0x343   : > { %4124 = vmatprep.subr.bf16.mxu0 %v10727_v3  ;;  %4230 = vmatprep.subr.bf16.mxu1 %v10729_v4  ;;  %v10751_v32 = vcombine.high %v2564_v26, %v2568_v27  ;;  %v2774_v33 = vld [vmem:[#allocation2 + $0x8] sm:$0xff]  ;;  %v10753_v35 = vcombine.high %v2565_v28, %v2569_v29  ;;  %v2573_v39 = vld [vmem:[#allocation10 + $0x1c8] sm:$0xff]  ;;  %v10750_v41 = vcombine.low %v2564_v26, %v2568_v27 }
 0x344   : > { %v2778_v34 = vld [vmem:[#allocation2 + $0x28] sm:$0xff]  ;;  %v2577_v40 = vld [vmem:[#allocation10 + $0x1e8] sm:$0xff]  ;;  %v10752_v42 = vcombine.low %v2565_v28, %v2569_v29 }
 0x345   : > { %v2572_v36 = vld [vmem:[#allocation10 + $0x1c0] sm:$0xff]  ;;  %v14830_v38 = vpack.c.bf16 %v2778_v34, %v2774_v33  ;;  %v10761_v44 = vcombine.high %v2573_v39, %v2577_v40  ;;  %v2581_v47 = vld [vmem:[#allocation10 + $0x208] sm:$0xff]  ;;  %v10760_v50 = vcombine.low %v2573_v39, %v2577_v40 }
 0x346   : > { %4125 = vmatpush1.bf16.msra.mxu0 %v10726_v9  ;;  %4231 = vmatpush1.bf16.msra.mxu1 %v10728_v10  ;;  %v2576_v37 = vld [vmem:[#allocation10 + $0x1e0] sm:$0xff]  ;;  %v2585_v48 = vld [vmem:[#allocation10 + $0x228] sm:$0xff] }
 0x347   : > { %4126 = vmatprep.subr.bf16.mxu0 %v10735_v13  ;;  %4232 = vmatprep.subr.bf16.mxu1 %v10737_v14  ;;  %v10759_v43 = vcombine.high %v2572_v36, %v2576_v37  ;;  %v2580_v45 = vld [vmem:[#allocation10 + $0x200] sm:$0xff]  ;;  %v10758_v49 = vcombine.low %v2572_v36, %v2576_v37  ;;  %v10769_v52 = vcombine.high %v2581_v47, %v2585_v48  ;;  %v2589_v55 = vld [vmem:[#allocation10 + $0x248] sm:$0xff] }
 0x348   : > { %4150 = vmatprep.mubr.bf16.mxu0 %v14830_v38  ;;  %v2584_v46 = vld [vmem:[#allocation10 + $0x220] sm:$0xff]  ;;  %4256 = vmatprep.mubr.bf16.mxu1 %v14830_v38  ;;  %v2593_v56 = vld [vmem:[#allocation10 + $0x268] sm:$0xff]  ;;  %v10768_v58 = vcombine.low %v2581_v47, %v2585_v48 }
 0x349   : > { %v10767_v51 = vcombine.high %v2580_v45, %v2584_v46  ;;  %v2588_v53 = vld [vmem:[#allocation10 + $0x240] sm:$0xff]  ;;  %v10766_v57 = vcombine.low %v2580_v45, %v2584_v46  ;;  %v10777_v60 = vcombine.high %v2589_v55, %v2593_v56  ;;  %v2597_v63 = vld [vmem:[#allocation10 + $0x288] sm:$0xff]  ;;  %v10776_v2 = vcombine.low %v2589_v55, %v2593_v56  ;;  %v2773_v56 = vld [vmem:[#allocation2] sm:$0xff] }
 0x34a   : > { %4127 = vmatpush1.bf16.msra.mxu0 %v10734_v22  ;;  %4233 = vmatpush1.bf16.msra.mxu1 %v10736_v23  ;;  %v2592_v54 = vld [vmem:[#allocation10 + $0x260] sm:$0xff]  ;;  %v2601_v0 = vld [vmem:[#allocation10 + $0x2a8] sm:$0xff] }
 0x34b   : > { %4128 = vmatprep.subr.bf16.mxu0 %v10743_v24  ;;  %4234 = vmatprep.subr.bf16.mxu1 %v10745_v25  ;;  %v10775_v59 = vcombine.high %v2588_v53, %v2592_v54  ;;  %v2596_v61 = vld [vmem:[#allocation10 + $0x280] sm:$0xff]  ;;  %v10774_v1 = vcombine.low %v2588_v53, %v2592_v54  ;;  %v10785_v4 = vcombine.high %v2597_v63, %v2601_v0  ;;  %v2605_v7 = vld [vmem:[#allocation10 + $0x2c8] sm:$0xff] }
 0x34c   : > { %v2600_v62 = vld [vmem:[#allocation10 + $0x2a0] sm:$0xff]  ;;  %v2609_v8 = vld [vmem:[#allocation10 + $0x2e8] sm:$0xff]  ;;  %v10784_v10 = vcombine.low %v2597_v63, %v2601_v0 }
 0x34d   : > { %v10783_v3 = vcombine.high %v2596_v61, %v2600_v62  ;;  %v2604_v5 = vld [vmem:[#allocation10 + $0x2c0] sm:$0xff]  ;;  %v10782_v9 = vcombine.low %v2596_v61, %v2600_v62  ;;  %v10793_v14 = vcombine.high %v2605_v7, %v2609_v8  ;;  %v2613_v20 = vld [vmem:[#allocation10 + $0x308] sm:$0xff]  ;;  %v10792_v23 = vcombine.low %v2605_v7, %v2609_v8 }
 0x34e   : > { %4129 = vmatpush1.bf16.msra.mxu0 %v10742_v30  ;;  %4235 = vmatpush1.bf16.msra.mxu1 %v10744_v31  ;;  %v2608_v6 = vld [vmem:[#allocation10 + $0x2e0] sm:$0xff]  ;;  %v2617_v21 = vld [vmem:[#allocation10 + $0x328] sm:$0xff] }
 0x34f   : > { %4130 = vmatprep.subr.bf16.mxu0 %v10751_v32  ;;  %4236 = vmatprep.subr.bf16.mxu1 %v10753_v35  ;;  %v10791_v13 = vcombine.high %v2604_v5, %v2608_v6  ;;  %v2612_v17 = vld [vmem:[#allocation10 + $0x300] sm:$0xff]  ;;  %v10790_v22 = vcombine.low %v2604_v5, %v2608_v6  ;;  %v10801_v25 = vcombine.high %v2613_v20, %v2617_v21  ;;  %v2621_v28 = vld [vmem:[#allocation10 + $0x348] sm:$0xff] }
 0x350   : > { %v2616_v19 = vld [vmem:[#allocation10 + $0x320] sm:$0xff]  ;;  %v2625_v29 = vld [vmem:[#allocation10 + $0x368] sm:$0xff]  ;;  %v10800_v31 = vcombine.low %v2613_v20, %v2617_v21  ;;  %v2785_v20 = vld [vmem:[#allocation2 + $0x60] sm:$0xff] }
 0x351   : > { %v10799_v24 = vcombine.high %v2612_v17, %v2616_v19  ;;  %v2620_v26 = vld [vmem:[#allocation10 + $0x340] sm:$0xff]  ;;  %v10798_v30 = vcombine.low %v2612_v17, %v2616_v19  ;;  %v10809_v33 = vcombine.high %v2621_v28, %v2625_v29  ;;  %v2629_v36 = vld [vmem:[#allocation10 + $0x388] sm:$0xff]  ;;  %v10808_v40 = vcombine.low %v2621_v28, %v2625_v29  ;;  %v2781_v19 = vld [vmem:[#allocation2 + $0x40] sm:$0xff] }
 0x352   : > { %4131 = vmatpush1.bf16.msra.mxu0 %v10750_v41  ;;  %4237 = vmatpush1.bf16.msra.mxu1 %v10752_v42  ;;  %v2624_v27 = vld [vmem:[#allocation10 + $0x360] sm:$0xff]  ;;  %v2633_v37 = vld [vmem:[#allocation10 + $0x3a8] sm:$0xff]  ;;  %v14842_v28 = vpack.c.bf16 %v2785_v20, %v2781_v19  ;;  %v2776_v29 = vld [vmem:[#allocation2 + $0x18] sm:$0xff] }
 0x353   : > { %4132 = vmatprep.subr.bf16.mxu0 %v10759_v43  ;;  %4238 = vmatprep.subr.bf16.mxu1 %v10761_v44  ;;  %v10807_v32 = vcombine.high %v2620_v26, %v2624_v27  ;;  %v2628_v34 = vld [vmem:[#allocation10 + $0x380] sm:$0xff]  ;;  %v10806_v39 = vcombine.low %v2620_v26, %v2624_v27  ;;  %v10817_v42 = vcombine.high %v2629_v36, %v2633_v37  ;;  %v2637_v45 = vld [vmem:[#allocation10 + $0x3c8] sm:$0xff] }
 0x354   : > { %v2632_v35 = vld [vmem:[#allocation10 + $0x3a0] sm:$0xff]  ;;  %v2641_v46 = vld [vmem:[#allocation10 + $0x3e8] sm:$0xff]  ;;  %v10816_v48 = vcombine.low %v2629_v36, %v2633_v37 }
 0x355   : > { %v10815_v41 = vcombine.high %v2628_v34, %v2632_v35  ;;  %v2636_v43 = vld [vmem:[#allocation10 + $0x3c0] sm:$0xff]  ;;  %v10814_v47 = vcombine.low %v2628_v34, %v2632_v35  ;;  %v2645_v53 = vld [vmem:[#allocation10 + $0x408] sm:$0xff] }
 0x356   : > { %4133 = vmatpush1.bf16.msra.mxu0 %v10758_v49  ;;  %4239 = vmatpush1.bf16.msra.mxu1 %v10760_v50  ;;  %v2640_v44 = vld [vmem:[#allocation10 + $0x3e0] sm:$0xff]  ;;  %v10825_v50 = vcombine.high %v2637_v45, %v2641_v46  ;;  %v2649_v54 = vld [vmem:[#allocation10 + $0x428] sm:$0xff] }
 0x357   : > { %4134 = vmatprep.subr.bf16.mxu0 %v10767_v51  ;;  %4240 = vmatprep.subr.bf16.mxu1 %v10769_v52  ;;  %v10823_v49 = vcombine.high %v2636_v43, %v2640_v44  ;;  %v2644_v51 = vld [vmem:[#allocation10 + $0x400] sm:$0xff]  ;;  %v10822_v55 = vcombine.low %v2636_v43, %v2640_v44  ;;  %v2653_v63 = vld [vmem:[#allocation10 + $0x448] sm:$0xff]  ;;  %v10832_v5 = vcombine.low %v2645_v53, %v2649_v54 }
 0x358   : > { %v2648_v52 = vld [vmem:[#allocation10 + $0x420] sm:$0xff]  ;;  %v2669_v26 = vld [vmem:[#allocation10 + $0x4c8] sm:$0xff] }
 0x359   : > { %v2652_v61 = vld [vmem:[#allocation10 + $0x440] sm:$0xff]  ;;  %v2673_v27 = vld [vmem:[#allocation10 + $0x4e8] sm:$0xff] }
 0x35a   : > { %4135 = vmatpush1.bf16.msra.mxu0 %v10766_v57  ;;  %4241 = vmatpush1.bf16.msra.mxu1 %v10768_v58  ;;  %v2777_v57 = vld [vmem:[#allocation2 + $0x20] sm:$0xff]  ;;  %v10824_v58 = vcombine.low %v2637_v45, %v2641_v46  ;;  %v2656_v62 = vld [vmem:[#allocation10 + $0x460] sm:$0xff]  ;;  %v2677_v36 = vld [vmem:[#allocation10 + $0x508] sm:$0xff]  ;;  %v10857_v37 = vcombine.high %v2669_v26, %v2673_v27 }
 0x35b   : > { %4136 = vmatprep.subr.bf16.mxu0 %v10775_v59  ;;  %4242 = vmatprep.subr.bf16.mxu1 %v10777_v60  ;;  %v10831_v59 = vcombine.high %v2644_v51, %v2648_v52  ;;  %v10833_v60 = vcombine.high %v2645_v53, %v2649_v54  ;;  %v14834_v0 = vpack.c.bf16 %v2777_v57, %v2773_v56  ;;  %v2660_v8 = vld [vmem:[#allocation10 + $0x480] sm:$0xff]  ;;  %v2685_v46 = vld [vmem:[#allocation10 + $0x548] sm:$0xff] }
 0x35c   : > { %v10839_v6 = vcombine.high %v2652_v61, %v2656_v62  ;;  %v10838_v17 = vcombine.low %v2652_v61, %v2656_v62  ;;  %v2676_v34 = vld [vmem:[#allocation10 + $0x500] sm:$0xff]  ;;  %v2693_v54 = vld [vmem:[#allocation10 + $0x588] sm:$0xff] }
 0x35d   : > { %v2680_v35 = vld [vmem:[#allocation10 + $0x520] sm:$0xff]  ;;  %v2697_v56 = vld [vmem:[#allocation10 + $0x5a8] sm:$0xff] }
 0x35e   : > { %4137 = vmatpush1.bf16.msra.mxu0 %v10774_v1  ;;  %4243 = vmatpush1.bf16.msra.mxu1 %v10776_v2  ;;  %v2657_v1 = vld [vmem:[#allocation10 + $0x468] sm:$0xff]  ;;  %v2782_v2 = vld [vmem:[#allocation2 + $0x48] sm:$0xff]  ;;  %v10863_v43 = vcombine.high %v2676_v34, %v2680_v35 }
 0x35f   : > { %4138 = vmatprep.subr.bf16.mxu0 %v10783_v3  ;;  %4244 = vmatprep.subr.bf16.mxu1 %v10785_v4  ;;  %v2786_v3 = vld [vmem:[#allocation2 + $0x68] sm:$0xff]  ;;  %v10830_v4 = vcombine.low %v2644_v51, %v2648_v52  ;;  %v10841_v7 = vcombine.high %v2653_v63, %v2657_v1  ;;  %v10840_v21 = vcombine.low %v2653_v63, %v2657_v1  ;;  %v2701_v62 = vld [vmem:[#allocation10 + $0x5c8] sm:$0xff] }
 0x360   : > { %v2684_v44 = vld [vmem:[#allocation10 + $0x540] sm:$0xff]  ;;  %v10881_v63 = vcombine.high %v2693_v54, %v2697_v56  ;;  %v2705_v1 = vld [vmem:[#allocation10 + $0x5e8] sm:$0xff] }
 0x361   : > { %v2688_v45 = vld [vmem:[#allocation10 + $0x560] sm:$0xff] }
 0x362   : > { %4139 = vmatpush1.bf16.msra.mxu0 %v10782_v9  ;;  %4245 = vmatpush1.bf16.msra.mxu1 %v10784_v10  ;;  %v2664_v9 = vld [vmem:[#allocation10 + $0x4a0] sm:$0xff]  ;;  %v14836_v10 = vpack.c.bf16 %v2786_v3, %v2782_v2  ;;  %v10871_v51 = vcombine.high %v2684_v44, %v2688_v45  ;;  %v10870_v57 = vcombine.low %v2684_v44, %v2688_v45 }
 0x363   : > { %4140 = vmatprep.subr.bf16.mxu0 %v10791_v13  ;;  %4246 = vmatprep.subr.bf16.mxu1 %v10793_v14  ;;  %v2661_v13 = vld [vmem:[#allocation10 + $0x488] sm:$0xff]  ;;  %v2692_v52 = vld [vmem:[#allocation10 + $0x580] sm:$0xff]  ;;  %v10880_v3 = vcombine.low %v2693_v54, %v2697_v56 }
 0x364   : > { %v2665_v14 = vld [vmem:[#allocation10 + $0x4a8] sm:$0xff]  ;;  %v2696_v53 = vld [vmem:[#allocation10 + $0x5a0] sm:$0xff] }
 0x365   : > { %v2704_v61 = vld [vmem:[#allocation10 + $0x5e0] sm:$0xff]  ;;  %v10878_v2 = vcombine.low %v2692_v52, %v2696_v53  ;;  %v2749_v56 = vld [vmem:[#allocation10 + $0x748] sm:$0xff] }
 0x366   : > { %4141 = vmatpush1.bf16.msra.mxu0 %v10790_v22  ;;  %4247 = vmatpush1.bf16.msra.mxu1 %v10792_v23  ;;  %v10847_v22 = vcombine.high %v2660_v8, %v2664_v9  ;;  %v10849_v23 = vcombine.high %v2661_v13, %v2665_v14  ;;  %v2716_v19 = vld [vmem:[#allocation10 + $0x640] sm:$0xff] }
 0x367   : > { %4142 = vmatprep.subr.bf16.mxu0 %v10799_v24  ;;  %4248 = vmatprep.subr.bf16.mxu1 %v10801_v25  ;;  %v2668_v24 = vld [vmem:[#allocation10 + $0x4c0] sm:$0xff] }
 0x368   : > { %v2672_v25 = vld [vmem:[#allocation10 + $0x4e0] sm:$0xff] }
 0x369   : > { %v2720_v20 = vld [vmem:[#allocation10 + $0x660] sm:$0xff] }
 0x36a   : > { %4143 = vmatpush1.bf16.msra.mxu0 %v10798_v30  ;;  %4249 = vmatpush1.bf16.msra.mxu1 %v10800_v31  ;;  %v2780_v30 = vld [vmem:[#allocation2 + $0x38] sm:$0xff]  ;;  %v10846_v31 = vcombine.low %v2660_v8, %v2664_v9  ;;  %v10889_v8 = vcombine.high %v2701_v62, %v2705_v1  ;;  %v2713_v9 = vld [vmem:[#allocation10 + $0x628] sm:$0xff]  ;;  %v2748_v54 = vld [vmem:[#allocation10 + $0x740] sm:$0xff] }
 0x36b   : > { %4144 = vmatprep.subr.bf16.mxu0 %v10807_v32  ;;  %4250 = vmatprep.subr.bf16.mxu1 %v10809_v33  ;;  %v10848_v32 = vcombine.low %v2661_v13, %v2665_v14  ;;  %v10855_v33 = vcombine.high %v2668_v24, %v2672_v25  ;;  %v10888_v14 = vcombine.low %v2701_v62, %v2705_v1  ;;  %v2756_v62 = vld [vmem:[#allocation10 + $0x780] sm:$0xff]  ;;  %v2757_v1 = vld [vmem:[#allocation10 + $0x788] sm:$0xff] }
 0x36c   : > { %v15053_v15 = vld [vmem:[#allocation13 + $0x1c8] ss:$16 sps:$4 sm:$0xff]  }
 0x36d   : > { %17211 = vst [vmem:[#allocation61_spill] sm:$0xff] %v15053_v15 }
 0x36e   : > { %4145 = vmatpush1.bf16.msra.mxu0 %v10806_v39  ;;  %4251 = vmatpush1.bf16.msra.mxu1 %v10808_v40  ;;  %v2681_v39 = vld [vmem:[#allocation10 + $0x528] sm:$0xff]  ;;  %v14844_v40 = vpack.c.bf16 %v2780_v30, %v2776_v29  ;;  %v2728_v29 = vld [vmem:[#allocation10 + $0x6a0] sm:$0xff] }
 0x36f   : > { %4146 = vmatprep.subr.bf16.mxu0 %v10815_v41  ;;  %4252 = vmatprep.subr.bf16.mxu1 %v10817_v42  ;;  %v10854_v41 = vcombine.low %v2668_v24, %v2672_v25  ;;  %v10856_v42 = vcombine.low %v2669_v26, %v2673_v27  ;;  %v10903_v26 = vcombine.high %v2716_v19, %v2720_v20  ;;  %v2724_v27 = vld [vmem:[#allocation10 + $0x680] sm:$0xff]  ;;  %v2725_v30 = vld [vmem:[#allocation10 + $0x688] sm:$0xff] }
 0x372   : > { %4147 = vmatpush1.bf16.msra.mxu0 %v10814_v47  ;;  %4253 = vmatpush1.bf16.msra.mxu1 %v10816_v48  ;;  %v10865_v47 = vcombine.high %v2677_v36, %v2681_v39  ;;  %v2689_v48 = vld [vmem:[#allocation10 + $0x568] sm:$0xff] }
 0x373   : > { %4148 = vmatprep.subr.bf16.mxu0 %v10823_v49  ;;  %4254 = vmatprep.subr.bf16.mxu1 %v10825_v50  ;;  %v10862_v49 = vcombine.low %v2676_v34, %v2680_v35  ;;  %v10864_v50 = vcombine.low %v2677_v36, %v2681_v39  ;;  %v10911_v35 = vcombine.high %v2724_v27, %v2728_v29  ;;  %v2732_v36 = vld [vmem:[#allocation10 + $0x6c0] sm:$0xff]  ;;  %v2733_v39 = vld [vmem:[#allocation10 + $0x6c8] sm:$0xff] }
 0x376   : > { %4149 = vmatpush1.bf16.msra.mxu0 %v10822_v55  ;;  %4255 = vmatpush1.bf16.msra.mxu1 %v10824_v58  ;;  %v10873_v55 = vcombine.high %v2685_v46, %v2689_v48  ;;  %v10872_v58 = vcombine.low %v2685_v46, %v2689_v48  ;;  %v2740_v46 = vld [vmem:[#allocation10 + $0x700] sm:$0xff]  ;;  %v2741_v48 = vld [vmem:[#allocation10 + $0x708] sm:$0xff] }
 0x377   : > { %4171 = vmatprep.subr.bf16.mxu0 %v10831_v59  ;;  %4277 = vmatprep.subr.bf16.mxu1 %v10833_v60  ;;  %v10879_v59 = vcombine.high %v2692_v52, %v2696_v53  ;;  %v2700_v60 = vld [vmem:[#allocation10 + $0x5c0] sm:$0xff] }
 0x378   : > { %v10886_v13 = vcombine.low %v2700_v60, %v2704_v61 }
 0x379   : > { %4151 = vmatmul.mubr.bf16.vlgmr.msra.gmra.mrb[0].mxu0 %v14834_v0  ;;  %4257 = vmatmul.mubr.bf16.vlgmr.msra.gmra.mrb[0].mxu1 %v14834_v0 }
 0x37a   : > { %4172 = vmatpush1.bf16.msra.mxu0 %v10830_v4  ;;  %4278 = vmatpush1.bf16.msra.mxu1 %v10832_v5  ;;  %v10887_v4 = vcombine.high %v2700_v60, %v2704_v61  ;;  %v2708_v5 = vld [vmem:[#allocation10 + $0x600] sm:$0xff] }
 0x37b   : > { %4173 = vmatprep.subr.bf16.mxu0 %v10839_v6  ;;  %4279 = vmatprep.subr.bf16.mxu1 %v10841_v7  ;;  %v2712_v6 = vld [vmem:[#allocation10 + $0x620] sm:$0xff]  ;;  %v2709_v7 = vld [vmem:[#allocation10 + $0x608] sm:$0xff] }
 0x37c   : > { %4160 = vmatprep.mubr.bf16.mxu0 %v14836_v10  ;;  %4266 = vmatprep.mubr.bf16.mxu1 %v14836_v10  ;;  %v10894_v24 = vcombine.low %v2708_v5, %v2712_v6  ;;  %v10896_v25 = vcombine.low %v2709_v7, %v2713_v9 }
 0x37e   : > { %4174 = vmatpush1.bf16.msra.mxu0 %v10838_v17  ;;  %4280 = vmatpush1.bf16.msra.mxu1 %v10840_v21  ;;  %v10895_v17 = vcombine.high %v2708_v5, %v2712_v6  ;;  %v2717_v21 = vld [vmem:[#allocation10 + $0x648] sm:$0xff] }
 0x37f   : > { %4175 = vmatprep.subr.bf16.mxu0 %v10847_v22  ;;  %4281 = vmatprep.subr.bf16.mxu1 %v10849_v23  ;;  %v10897_v22 = vcombine.high %v2709_v7, %v2713_v9  ;;  %v2721_v23 = vld [vmem:[#allocation10 + $0x668] sm:$0xff]  ;;  %v2768_v9 = vld [vmem:[#allocation10 + $0x7e0] sm:$0xff] }
 0x380   : > { %v10904_v34 = vcombine.low %v2717_v21, %v2721_v23 }
 0x381   : > { %4161 = vmatmul.mubr.bf16.gmra.mrb[4].mxu0 %v14842_v28  ;;  %4267 = vmatmul.mubr.bf16.gmra.mrb[4].mxu1 %v14842_v28 }
 0x382   : > { %4176 = vmatpush1.bf16.msra.mxu0 %v10846_v31  ;;  %4282 = vmatpush1.bf16.msra.mxu1 %v10848_v32  ;;  %v10905_v31 = vcombine.high %v2717_v21, %v2721_v23  ;;  %v2729_v32 = vld [vmem:[#allocation10 + $0x6a8] sm:$0xff]  ;;  %v2522_v23 = vld [vmem:[#allocation10 + $0x30] sm:$0xff] }
 0x383   : > { %4177 = vmatprep.subr.bf16.mxu0 %v10855_v33  ;;  %4283 = vmatprep.subr.bf16.mxu1 %v10857_v37  ;;  %v10902_v33 = vcombine.low %v2716_v19, %v2720_v20  ;;  %v2736_v37 = vld [vmem:[#allocation10 + $0x6e0] sm:$0xff]  ;;  %v10912_v44 = vcombine.low %v2725_v30, %v2729_v32 }
 0x384   : > { %4203 = vmatprep.mubr.bf16.mxu0 %v14844_v40  ;;  %4309 = vmatprep.mubr.bf16.mxu1 %v14844_v40  ;;  %v10919_v45 = vcombine.high %v2732_v36, %v2736_v37 }
 0x386   : > { %4178 = vmatpush1.bf16.msra.mxu0 %v10854_v41  ;;  %4284 = vmatpush1.bf16.msra.mxu1 %v10856_v42  ;;  %v10913_v41 = vcombine.high %v2725_v30, %v2729_v32  ;;  %v2737_v42 = vld [vmem:[#allocation10 + $0x6e8] sm:$0xff] }
 0x387   : > { %4179 = vmatprep.subr.bf16.mxu0 %v10863_v43  ;;  %4285 = vmatprep.subr.bf16.mxu1 %v10865_v47  ;;  %v10910_v43 = vcombine.low %v2724_v27, %v2728_v29  ;;  %v2744_v47 = vld [vmem:[#allocation10 + $0x720] sm:$0xff]  ;;  %v10920_v52 = vcombine.low %v2733_v39, %v2737_v42  ;;  %v2775_v27 = vld [vmem:[#allocation2 + $0x10] sm:$0xff] }
 0x388   : > { %v10927_v53 = vcombine.high %v2740_v46, %v2744_v47  ;;  %v2779_v29 = vld [vmem:[#allocation2 + $0x30] sm:$0xff] }
 0x38a   : > { %4180 = vmatpush1.bf16.msra.mxu0 %v10862_v49  ;;  %4286 = vmatpush1.bf16.msra.mxu1 %v10864_v50  ;;  %v10921_v49 = vcombine.high %v2733_v39, %v2737_v42  ;;  %v2745_v50 = vld [vmem:[#allocation10 + $0x728] sm:$0xff]  ;;  %v2784_v39 = vld [vmem:[#allocation2 + $0x58] sm:$0xff] }
 0x38b   : > { %4181 = vmatprep.subr.bf16.mxu0 %v10871_v51  ;;  %4287 = vmatprep.subr.bf16.mxu1 %v10873_v55  ;;  %v10918_v51 = vcombine.low %v2732_v36, %v2736_v37  ;;  %v2752_v55 = vld [vmem:[#allocation10 + $0x760] sm:$0xff]  ;;  %v10928_v60 = vcombine.low %v2741_v48, %v2745_v50  ;;  %v14850_v36 = vpack.c.bf16 %v2779_v29, %v2775_v27  ;;  %v2531_v37 = vld [vmem:[#allocation10 + $0x78] sm:$0xff] }
 0x38c   : > { %v10935_v61 = vcombine.high %v2748_v54, %v2752_v55  ;;  %v2567_v27 = vld [vmem:[#allocation10 + $0x198] sm:$0xff] }
 0x38d   : > { %v2571_v29 = vld [vmem:[#allocation10 + $0x1b8] sm:$0xff] }
 0x38e   : > { %4182 = vmatpush1.bf16.msra.mxu0 %v10870_v57  ;;  %4288 = vmatpush1.bf16.msra.mxu1 %v10872_v58  ;;  %v10929_v57 = vcombine.high %v2741_v48, %v2745_v50  ;;  %v2753_v58 = vld [vmem:[#allocation10 + $0x768] sm:$0xff]  ;;  %v2538_v48 = vld [vmem:[#allocation10 + $0xb0] sm:$0xff]  ;;  %v2539_v50 = vld [vmem:[#allocation10 + $0xb8] sm:$0xff] }
 0x38f   : > { %4183 = vmatprep.subr.bf16.mxu0 %v10879_v59  ;;  %4289 = vmatprep.subr.bf16.mxu1 %v10881_v63  ;;  %v10926_v59 = vcombine.low %v2740_v46, %v2744_v47  ;;  %v2760_v63 = vld [vmem:[#allocation10 + $0x7a0] sm:$0xff]  ;;  %v10936_v5 = vcombine.low %v2749_v56, %v2753_v58  ;;  %v2534_v47 = vld [vmem:[#allocation10 + $0x90] sm:$0xff] }
 0x390   : > { %v10943_v6 = vcombine.high %v2756_v62, %v2760_v63 }
 0x392   : > { %4184 = vmatpush1.bf16.msra.mxu0 %v10878_v2  ;;  %4290 = vmatpush1.bf16.msra.mxu1 %v10880_v3  ;;  %v10937_v2 = vcombine.high %v2749_v56, %v2753_v58  ;;  %v2761_v3 = vld [vmem:[#allocation10 + $0x7a8] sm:$0xff]  ;;  %v2546_v58 = vld [vmem:[#allocation10 + $0xf0] sm:$0xff] }
 0x393   : > { %4185 = vmatprep.subr.bf16.mxu0 %v10887_v4  ;;  %4291 = vmatprep.subr.bf16.mxu1 %v10889_v8  ;;  %v10934_v4 = vcombine.low %v2748_v54, %v2752_v55  ;;  %v10945_v7 = vcombine.high %v2757_v1, %v2761_v3  ;;  %v2764_v8 = vld [vmem:[#allocation10 + $0x7c0] sm:$0xff]  ;;  %v10944_v19 = vcombine.low %v2757_v1, %v2761_v3  ;;  %v2550_v3 = vld [vmem:[#allocation10 + $0x110] sm:$0xff] }
 0x394   : > { %v10951_v20 = vcombine.high %v2764_v8, %v2768_v9  ;;  %v10723_v55 = vcombine.high %v2534_v47, %v2538_v48 }
 0x396   : > { %4186 = vmatpush1.bf16.msra.mxu0 %v10886_v13  ;;  %4292 = vmatpush1.bf16.msra.mxu1 %v10888_v14  ;;  %v2765_v13 = vld [vmem:[#allocation10 + $0x7c8] sm:$0xff] }
 0x397   : > { %4187 = vmatprep.subr.bf16.mxu0 %v10895_v17  ;;  %4293 = vmatprep.subr.bf16.mxu1 %v10897_v22  ;;  %v2769_v14 = vld [vmem:[#allocation10 + $0x7e8] sm:$0xff]  ;;  %v10942_v17 = vcombine.low %v2756_v62, %v2760_v63  ;;  %v2518_v22 = vld [vmem:[#allocation10 + $0x10] sm:$0xff]  ;;  %v10722_v62 = vcombine.low %v2534_v47, %v2538_v48  ;;  %v2583_v47 = vld [vmem:[#allocation10 + $0x218] sm:$0xff] }
 0x398   : > { %v10953_v21 = vcombine.high %v2765_v13, %v2769_v14  ;;  %v10952_v30 = vcombine.low %v2765_v13, %v2769_v14  ;;  %v10706_v42 = vcombine.low %v2518_v22, %v2522_v23  ;;  %v2558_v14 = vld [vmem:[#allocation10 + $0x150] sm:$0xff]  ;;  %v2587_v48 = vld [vmem:[#allocation10 + $0x238] sm:$0xff] }
 0x39a   : > { %4188 = vmatpush1.bf16.msra.mxu0 %v10894_v24  ;;  %4294 = vmatpush1.bf16.msra.mxu1 %v10896_v25  ;;  %v2519_v24 = vld [vmem:[#allocation10 + $0x18] sm:$0xff] }
 0x39b   : > { %4189 = vmatprep.subr.bf16.mxu0 %v10903_v26  ;;  %4295 = vmatprep.subr.bf16.mxu1 %v10905_v31  ;;  %v2523_v25 = vld [vmem:[#allocation10 + $0x38] sm:$0xff]  ;;  %v10950_v26 = vcombine.low %v2764_v8, %v2768_v9  ;;  %v10707_v31 = vcombine.high %v2518_v22, %v2522_v23 }
 0x39c   : > { %v10709_v32 = vcombine.high %v2519_v24, %v2523_v25 }
 0x39e   : > { %4190 = vmatpush1.bf16.msra.mxu0 %v10902_v33  ;;  %4296 = vmatpush1.bf16.msra.mxu1 %v10904_v34  ;;  %v2526_v33 = vld [vmem:[#allocation10 + $0x50] sm:$0xff] }
 0x39f   : > { %4191 = vmatprep.subr.bf16.mxu0 %v10911_v35  ;;  %4297 = vmatprep.subr.bf16.mxu1 %v10913_v41  ;;  %v2530_v34 = vld [vmem:[#allocation10 + $0x70] sm:$0xff]  ;;  %v2527_v35 = vld [vmem:[#allocation10 + $0x58] sm:$0xff] }
 0x3a0   : > { %v2788_v41 = vld [vmem:[#allocation2 + $0x78] sm:$0xff]  ;;  %v10716_v54 = vcombine.low %v2527_v35, %v2531_v37 }
 0x3a1   : > { %v14852_v46 = vpack.c.bf16 %v2788_v41, %v2784_v39  ;;  %v10756_v41 = vcombine.low %v2567_v27, %v2571_v29 }
 0x3a2   : > { %4192 = vmatpush1.bf16.msra.mxu0 %v10910_v43  ;;  %4298 = vmatpush1.bf16.msra.mxu1 %v10912_v44  ;;  %v10708_v43 = vcombine.low %v2519_v24, %v2523_v25  ;;  %v10715_v44 = vcombine.high %v2526_v33, %v2530_v34  ;;  %v2566_v25 = vld [vmem:[#allocation10 + $0x190] sm:$0xff] }
 0x3a3   : > { %4193 = vmatprep.subr.bf16.mxu0 %v10919_v45  ;;  %4299 = vmatprep.subr.bf16.mxu1 %v10921_v49  ;;  %v10717_v45 = vcombine.high %v2527_v35, %v2531_v37  ;;  %v2535_v49 = vld [vmem:[#allocation10 + $0x98] sm:$0xff] }
 0x3a4   : > { %v10725_v56 = vcombine.high %v2535_v49, %v2539_v50  ;;  %v10724_v63 = vcombine.low %v2535_v49, %v2539_v50  ;;  %v2575_v35 = vld [vmem:[#allocation10 + $0x1d8] sm:$0xff] }
 0x3a5   : > { %v2579_v37 = vld [vmem:[#allocation10 + $0x1f8] sm:$0xff] }
 0x3a6   : > { %4194 = vmatpush1.bf16.msra.mxu0 %v10918_v51  ;;  %4300 = vmatpush1.bf16.msra.mxu1 %v10920_v52  ;;  %v10714_v51 = vcombine.low %v2526_v33, %v2530_v34  ;;  %v2783_v52 = vld [vmem:[#allocation2 + $0x50] sm:$0xff]  ;;  %v2574_v33 = vld [vmem:[#allocation10 + $0x1d0] sm:$0xff]  ;;  %v10764_v50 = vcombine.low %v2575_v35, %v2579_v37 }
 0x3a7   : > { %4195 = vmatprep.subr.bf16.mxu0 %v10927_v53  ;;  %4301 = vmatprep.subr.bf16.mxu1 %v10929_v57  ;;  %v2787_v53 = vld [vmem:[#allocation2 + $0x70] sm:$0xff]  ;;  %v2542_v57 = vld [vmem:[#allocation10 + $0xd0] sm:$0xff] }
 0x3a8   : > { %v10731_v1 = vcombine.high %v2542_v57, %v2546_v58  ;;  %v2578_v34 = vld [vmem:[#allocation10 + $0x1f0] sm:$0xff] }
 0x3a9   : > { %v10762_v49 = vcombine.low %v2574_v33, %v2578_v34 }
 0x3aa   : > { %4196 = vmatpush1.bf16.msra.mxu0 %v10926_v59  ;;  %4302 = vmatpush1.bf16.msra.mxu1 %v10928_v60  ;;  %v14858_v59 = vpack.c.bf16 %v2787_v53, %v2783_v52  ;;  %v2543_v60 = vld [vmem:[#allocation10 + $0xd8] sm:$0xff]  ;;  %v10773_v52 = vcombine.high %v2583_v47, %v2587_v48  ;;  %v2590_v53 = vld [vmem:[#allocation10 + $0x250] sm:$0xff] }
 0x3ab   : > { %4197 = vmatprep.subr.bf16.mxu0 %v10935_v61  ;;  %4303 = vmatprep.subr.bf16.mxu1 %v10937_v2  ;;  %v2547_v61 = vld [vmem:[#allocation10 + $0xf8] sm:$0xff] }
 0x3ac   : > { %v10733_v2 = vcombine.high %v2543_v60, %v2547_v61  ;;  %v10732_v8 = vcombine.low %v2543_v60, %v2547_v61 }
 0x3ae   : > { %4198 = vmatpush1.bf16.msra.mxu0 %v10934_v4  ;;  %4304 = vmatpush1.bf16.msra.mxu1 %v10936_v5  ;;  %v2554_v4 = vld [vmem:[#allocation10 + $0x130] sm:$0xff]  ;;  %v2551_v5 = vld [vmem:[#allocation10 + $0x118] sm:$0xff] }
 0x3af   : > { %4199 = vmatprep.subr.bf16.mxu0 %v10943_v6  ;;  %4305 = vmatprep.subr.bf16.mxu1 %v10945_v7  ;;  %v2555_v6 = vld [vmem:[#allocation10 + $0x138] sm:$0xff]  ;;  %v10730_v7 = vcombine.low %v2542_v57, %v2546_v58  ;;  %v10739_v9 = vcombine.high %v2550_v3, %v2554_v4  ;;  %v10772_v58 = vcombine.low %v2583_v47, %v2587_v48 }
 0x3b0   : > { %v10741_v13 = vcombine.high %v2551_v5, %v2555_v6  ;;  %v10740_v22 = vcombine.low %v2551_v5, %v2555_v6 }
 0x3b2   : > { %4200 = vmatpush1.bf16.msra.mxu0 %v10942_v17  ;;  %4306 = vmatpush1.bf16.msra.mxu1 %v10944_v19  ;;  %v2562_v17 = vld [vmem:[#allocation10 + $0x170] sm:$0xff]  ;;  %v2559_v19 = vld [vmem:[#allocation10 + $0x158] sm:$0xff] }
 0x3b3   : > { %4201 = vmatprep.subr.bf16.mxu0 %v10951_v20  ;;  %4307 = vmatprep.subr.bf16.mxu1 %v10953_v21  ;;  %v2563_v20 = vld [vmem:[#allocation10 + $0x178] sm:$0xff]  ;;  %v10738_v21 = vcombine.low %v2550_v3, %v2554_v4  ;;  %v10747_v23 = vcombine.high %v2558_v14, %v2562_v17 }
 0x3b4   : > { %v10749_v24 = vcombine.high %v2559_v19, %v2563_v20 }
 0x3b6   : > { %4202 = vmatpush1.bf16.msra.mxu0 %v10950_v26  ;;  %4308 = vmatpush1.bf16.msra.mxu1 %v10952_v30  ;;  %v2570_v26 = vld [vmem:[#allocation10 + $0x1b0] sm:$0xff]  ;;  %v10746_v30 = vcombine.low %v2558_v14, %v2562_v17 }
 0x3b7   : > { %4330 = vmatprep.subr.bf16.mxu0 %v10707_v31  ;;  %4436 = vmatprep.subr.bf16.mxu1 %v10709_v32  ;;  %v10748_v31 = vcombine.low %v2559_v19, %v2563_v20  ;;  %v10755_v32 = vcombine.high %v2566_v25, %v2570_v26  ;;  %v10754_v39 = vcombine.low %v2566_v25, %v2570_v26 }
 0x3b9   : > { %4204 = vmatmul.mubr.bf16.vlgmr.msra.gmra.mrb[0].mxu0 %v14850_v36  ;;  %4310 = vmatmul.mubr.bf16.vlgmr.msra.gmra.mrb[0].mxu1 %v14850_v36 }
 0x3ba   : > { %4331 = vmatpush1.bf16.msra.mxu0 %v10706_v42  ;;  %4437 = vmatpush1.bf16.msra.mxu1 %v10708_v43  ;;  %v10763_v42 = vcombine.high %v2574_v33, %v2578_v34  ;;  %v10765_v43 = vcombine.high %v2575_v35, %v2579_v37 }
 0x3bb   : > { %4332 = vmatprep.subr.bf16.mxu0 %v10715_v44  ;;  %4438 = vmatprep.subr.bf16.mxu1 %v10717_v45  ;;  %v2582_v44 = vld [vmem:[#allocation10 + $0x210] sm:$0xff] }
 0x3bc   : > { %4213 = vmatprep.mubr.bf16.mxu0 %v14852_v46  ;;  %4319 = vmatprep.mubr.bf16.mxu1 %v14852_v46  ;;  %v2586_v45 = vld [vmem:[#allocation10 + $0x230] sm:$0xff] }
 0x3bd   : > { %v10770_v57 = vcombine.low %v2582_v44, %v2586_v45 }
 0x3be   : > { %4333 = vmatpush1.bf16.msra.mxu0 %v10714_v51  ;;  %4439 = vmatpush1.bf16.msra.mxu1 %v10716_v54  ;;  %v10771_v51 = vcombine.high %v2582_v44, %v2586_v45  ;;  %v2594_v54 = vld [vmem:[#allocation10 + $0x270] sm:$0xff] }
 0x3bf   : > { %4334 = vmatprep.subr.bf16.mxu0 %v10723_v55  ;;  %4440 = vmatprep.subr.bf16.mxu1 %v10725_v56  ;;  %v2591_v55 = vld [vmem:[#allocation10 + $0x258] sm:$0xff]  ;;  %v10779_v60 = vcombine.high %v2590_v53, %v2594_v54  ;;  %v10778_v3 = vcombine.low %v2590_v53, %v2594_v54 }
 0x3c0   : > { %v2595_v56 = vld [vmem:[#allocation10 + $0x278] sm:$0xff] }
 0x3c1   : > { %4214 = vmatmul.mubr.bf16.gmra.mrb[4].mxu0 %v14858_v59  ;;  %4320 = vmatmul.mubr.bf16.gmra.mrb[4].mxu1 %v14858_v59  ;;  %v10781_v61 = vcombine.high %v2591_v55, %v2595_v56  ;;  %v10780_v4 = vcombine.low %v2591_v55, %v2595_v56 }
 0x3c2   : > { %4335 = vmatpush1.bf16.msra.mxu0 %v10722_v62  ;;  %4441 = vmatpush1.bf16.msra.mxu1 %v10724_v63  ;;  %v2598_v62 = vld [vmem:[#allocation10 + $0x290] sm:$0xff] }
 0x3c3   : > { %4336 = vmatprep.subr.bf16.mxu0 %v10731_v1  ;;  %4442 = vmatprep.subr.bf16.mxu1 %v10733_v2  ;;  %v2602_v63 = vld [vmem:[#allocation10 + $0x2b0] sm:$0xff]  ;;  %v2599_v1 = vld [vmem:[#allocation10 + $0x298] sm:$0xff] }
 0x3c4   : > { %4362 = vmatprep.mubr.bf16.mxu0 %v14830_v38  ;;  %4468 = vmatprep.mubr.bf16.mxu1 %v14830_v38  ;;  %v10757_v38 = vcombine.high %v2567_v27, %v2571_v29  ;;  %v2603_v2 = vld [vmem:[#allocation10 + $0x2b8] sm:$0xff]  ;;  %v10787_v5 = vcombine.high %v2598_v62, %v2602_v63  ;;  %v10786_v14 = vcombine.low %v2598_v62, %v2602_v63 }
 0x3c5   : > { %v10789_v6 = vcombine.high %v2599_v1, %v2603_v2  ;;  %v10788_v17 = vcombine.low %v2599_v1, %v2603_v2 }
 0x3c6   : > { %4337 = vmatpush1.bf16.msra.mxu0 %v10730_v7  ;;  %4443 = vmatpush1.bf16.msra.mxu1 %v10732_v8  ;;  %v2606_v7 = vld [vmem:[#allocation10 + $0x2d0] sm:$0xff] }
 0x3c7   : > { %4338 = vmatprep.subr.bf16.mxu0 %v10739_v9  ;;  %4444 = vmatprep.subr.bf16.mxu1 %v10741_v13  ;;  %v2610_v8 = vld [vmem:[#allocation10 + $0x2f0] sm:$0xff]  ;;  %v2607_v9 = vld [vmem:[#allocation10 + $0x2d8] sm:$0xff] }
 0x3c8   : > { %v2611_v13 = vld [vmem:[#allocation10 + $0x2f8] sm:$0xff]  ;;  %v10795_v19 = vcombine.high %v2606_v7, %v2610_v8  ;;  %v10794_v25 = vcombine.low %v2606_v7, %v2610_v8 }
 0x3c9   : > { %v10797_v20 = vcombine.high %v2607_v9, %v2611_v13  ;;  %v10796_v26 = vcombine.low %v2607_v9, %v2611_v13 }
 0x3ca   : > { %4339 = vmatpush1.bf16.msra.mxu0 %v10738_v21  ;;  %4445 = vmatpush1.bf16.msra.mxu1 %v10740_v22  ;;  %v2614_v21 = vld [vmem:[#allocation10 + $0x310] sm:$0xff] }
 0x3cb   : > { %4340 = vmatprep.subr.bf16.mxu0 %v10747_v23  ;;  %4446 = vmatprep.subr.bf16.mxu1 %v10749_v24  ;;  %v2618_v22 = vld [vmem:[#allocation10 + $0x330] sm:$0xff]  ;;  %v2615_v23 = vld [vmem:[#allocation10 + $0x318] sm:$0xff] }
 0x3cc   : > { %v2619_v24 = vld [vmem:[#allocation10 + $0x338] sm:$0xff]  ;;  %v10803_v27 = vcombine.high %v2614_v21, %v2618_v22  ;;  %v10802_v33 = vcombine.low %v2614_v21, %v2618_v22 }
 0x3cd   : > { %v10805_v29 = vcombine.high %v2615_v23, %v2619_v24  ;;  %v10804_v34 = vcombine.low %v2615_v23, %v2619_v24 }
 0x3ce   : > { %4341 = vmatpush1.bf16.msra.mxu0 %v10746_v30  ;;  %4447 = vmatpush1.bf16.msra.mxu1 %v10748_v31  ;;  %v2622_v30 = vld [vmem:[#allocation10 + $0x350] sm:$0xff] }
 0x3cf   : > { %4342 = vmatprep.subr.bf16.mxu0 %v10755_v32  ;;  %4448 = vmatprep.subr.bf16.mxu1 %v10757_v38  ;;  %v2626_v31 = vld [vmem:[#allocation10 + $0x370] sm:$0xff]  ;;  %v2623_v32 = vld [vmem:[#allocation10 + $0x358] sm:$0xff] }
 0x3d0   : > { %v2627_v38 = vld [vmem:[#allocation10 + $0x378] sm:$0xff]  ;;  %v10811_v35 = vcombine.high %v2622_v30, %v2626_v31  ;;  %v10810_v44 = vcombine.low %v2622_v30, %v2626_v31 }
 0x3d1   : > { %v10813_v37 = vcombine.high %v2623_v32, %v2627_v38  ;;  %v10812_v45 = vcombine.low %v2623_v32, %v2627_v38  ;;  %v2678_v38 = vld [vmem:[#allocation10 + $0x510] sm:$0xff] }
 0x3d2   : > { %4343 = vmatpush1.bf16.msra.mxu0 %v10754_v39  ;;  %4449 = vmatpush1.bf16.msra.mxu1 %v10756_v41  ;;  %v2630_v39 = vld [vmem:[#allocation10 + $0x390] sm:$0xff] }
 0x3d3   : > { %4344 = vmatprep.subr.bf16.mxu0 %v10763_v42  ;;  %4450 = vmatprep.subr.bf16.mxu1 %v10765_v43  ;;  %v2634_v41 = vld [vmem:[#allocation10 + $0x3b0] sm:$0xff]  ;;  %v2631_v42 = vld [vmem:[#allocation10 + $0x398] sm:$0xff] }
 0x3d4   : > { %v2635_v43 = vld [vmem:[#allocation10 + $0x3b8] sm:$0xff]  ;;  %v10819_v47 = vcombine.high %v2630_v39, %v2634_v41  ;;  %v10818_v53 = vcombine.low %v2630_v39, %v2634_v41 }
 0x3d5   : > { %v10821_v48 = vcombine.high %v2631_v42, %v2635_v43  ;;  %v10820_v54 = vcombine.low %v2631_v42, %v2635_v43  ;;  %v2686_v42 = vld [vmem:[#allocation10 + $0x550] sm:$0xff] }
 0x3d6   : > { %4345 = vmatpush1.bf16.msra.mxu0 %v10762_v49  ;;  %4451 = vmatpush1.bf16.msra.mxu1 %v10764_v50  ;;  %v2638_v49 = vld [vmem:[#allocation10 + $0x3d0] sm:$0xff] }
 0x3d7   : > { %4346 = vmatprep.subr.bf16.mxu0 %v10771_v51  ;;  %4452 = vmatprep.subr.bf16.mxu1 %v10773_v52  ;;  %v2642_v50 = vld [vmem:[#allocation10 + $0x3f0] sm:$0xff]  ;;  %v2639_v51 = vld [vmem:[#allocation10 + $0x3d8] sm:$0xff] }
 0x3d8   : > { %v2643_v52 = vld [vmem:[#allocation10 + $0x3f8] sm:$0xff]  ;;  %v10827_v55 = vcombine.high %v2638_v49, %v2642_v50  ;;  %v10826_v62 = vcombine.low %v2638_v49, %v2642_v50  ;;  %v2690_v43 = vld [vmem:[#allocation10 + $0x570] sm:$0xff] }
 0x3d9   : > { %v10829_v56 = vcombine.high %v2639_v51, %v2643_v52  ;;  %v10828_v63 = vcombine.low %v2639_v51, %v2643_v52  ;;  %v2694_v50 = vld [vmem:[#allocation10 + $0x590] sm:$0xff]  ;;  %v2695_v52 = vld [vmem:[#allocation10 + $0x598] sm:$0xff] }
 0x3da   : > { %4347 = vmatpush1.bf16.msra.mxu0 %v10770_v57  ;;  %4453 = vmatpush1.bf16.msra.mxu1 %v10772_v58  ;;  %v2646_v57 = vld [vmem:[#allocation10 + $0x410] sm:$0xff] }
 0x3db   : > { %4348 = vmatprep.subr.bf16.mxu0 %v10779_v60  ;;  %4454 = vmatprep.subr.bf16.mxu1 %v10781_v61  ;;  %v2650_v58 = vld [vmem:[#allocation10 + $0x430] sm:$0xff]  ;;  %v2647_v60 = vld [vmem:[#allocation10 + $0x418] sm:$0xff] }
 0x3dc   : > { %v2651_v61 = vld [vmem:[#allocation10 + $0x438] sm:$0xff]  ;;  %v10835_v1 = vcombine.high %v2646_v57, %v2650_v58  ;;  %v10834_v7 = vcombine.low %v2646_v57, %v2650_v58  ;;  %v2698_v51 = vld [vmem:[#allocation10 + $0x5b0] sm:$0xff] }
 0x3dd   : > { %v10837_v2 = vcombine.high %v2647_v60, %v2651_v61  ;;  %v10836_v8 = vcombine.low %v2647_v60, %v2651_v61  ;;  %v2702_v57 = vld [vmem:[#allocation10 + $0x5d0] sm:$0xff]  ;;  %v2703_v60 = vld [vmem:[#allocation10 + $0x5d8] sm:$0xff] }
 0x3de   : > { %4349 = vmatpush1.bf16.msra.mxu0 %v10778_v3  ;;  %4455 = vmatpush1.bf16.msra.mxu1 %v10780_v4  ;;  %v2654_v3 = vld [vmem:[#allocation10 + $0x450] sm:$0xff]  ;;  %v2707_v61 = vld [vmem:[#allocation10 + $0x5f8] sm:$0xff] }
 0x3df   : > { %4350 = vmatprep.subr.bf16.mxu0 %v10787_v5  ;;  %4456 = vmatprep.subr.bf16.mxu1 %v10789_v6  ;;  %v2658_v4 = vld [vmem:[#allocation10 + $0x470] sm:$0xff]  ;;  %v2655_v5 = vld [vmem:[#allocation10 + $0x458] sm:$0xff] }
 0x3e0   : > { %v2659_v6 = vld [vmem:[#allocation10 + $0x478] sm:$0xff]  ;;  %v10843_v9 = vcombine.high %v2654_v3, %v2658_v4  ;;  %v10842_v21 = vcombine.low %v2654_v3, %v2658_v4  ;;  %v2706_v58 = vld [vmem:[#allocation10 + $0x5f0] sm:$0xff] }
 0x3e1   : > { %v10845_v13 = vcombine.high %v2655_v5, %v2659_v6  ;;  %v10844_v22 = vcombine.low %v2655_v5, %v2659_v6  ;;  %v2710_v3 = vld [vmem:[#allocation10 + $0x610] sm:$0xff]  ;;  %v2711_v5 = vld [vmem:[#allocation10 + $0x618] sm:$0xff] }
 0x3e2   : > { %4351 = vmatpush1.bf16.msra.mxu0 %v10786_v14  ;;  %4457 = vmatpush1.bf16.msra.mxu1 %v10788_v17  ;;  %v2662_v14 = vld [vmem:[#allocation10 + $0x490] sm:$0xff]  ;;  %v2715_v6 = vld [vmem:[#allocation10 + $0x638] sm:$0xff] }
 0x3e3   : > { %4352 = vmatprep.subr.bf16.mxu0 %v10795_v19  ;;  %4458 = vmatprep.subr.bf16.mxu1 %v10797_v20  ;;  %v2666_v17 = vld [vmem:[#allocation10 + $0x4b0] sm:$0xff]  ;;  %v2663_v19 = vld [vmem:[#allocation10 + $0x498] sm:$0xff] }
 0x3e4   : > { %v2667_v20 = vld [vmem:[#allocation10 + $0x4b8] sm:$0xff]  ;;  %v10851_v23 = vcombine.high %v2662_v14, %v2666_v17  ;;  %v10850_v30 = vcombine.low %v2662_v14, %v2666_v17  ;;  %v2714_v4 = vld [vmem:[#allocation10 + $0x630] sm:$0xff] }
 0x3e5   : > { %v10853_v24 = vcombine.high %v2663_v19, %v2667_v20  ;;  %v2718_v14 = vld [vmem:[#allocation10 + $0x650] sm:$0xff] }
 0x3e6   : > { %4353 = vmatpush1.bf16.msra.mxu0 %v10794_v25  ;;  %4459 = vmatpush1.bf16.msra.mxu1 %v10796_v26  ;;  %v2670_v25 = vld [vmem:[#allocation10 + $0x4d0] sm:$0xff] }
 0x3e7   : > { %4354 = vmatprep.subr.bf16.mxu0 %v10803_v27  ;;  %4460 = vmatprep.subr.bf16.mxu1 %v10805_v29  ;;  %v2674_v26 = vld [vmem:[#allocation10 + $0x4f0] sm:$0xff]  ;;  %v2671_v27 = vld [vmem:[#allocation10 + $0x4d8] sm:$0xff] }
 0x3e8   : > { %v2675_v29 = vld [vmem:[#allocation10 + $0x4f8] sm:$0xff]  ;;  %v10859_v31 = vcombine.high %v2670_v25, %v2674_v26  ;;  %v2722_v17 = vld [vmem:[#allocation10 + $0x670] sm:$0xff] }
 0x3e9   : > { %v10861_v32 = vcombine.high %v2671_v27, %v2675_v29 }
 0x3ea   : > { %4355 = vmatpush1.bf16.msra.mxu0 %v10802_v33  ;;  %4461 = vmatpush1.bf16.msra.mxu1 %v10804_v34  ;;  %v2682_v33 = vld [vmem:[#allocation10 + $0x530] sm:$0xff]  ;;  %v2679_v34 = vld [vmem:[#allocation10 + $0x518] sm:$0xff] }
 0x3eb   : > { %4356 = vmatprep.subr.bf16.mxu0 %v10811_v35  ;;  %4462 = vmatprep.subr.bf16.mxu1 %v10813_v37  ;;  %v2683_v35 = vld [vmem:[#allocation10 + $0x538] sm:$0xff]  ;;  %v10858_v37 = vcombine.low %v2670_v25, %v2674_v26  ;;  %v10867_v39 = vcombine.high %v2678_v38, %v2682_v33  ;;  %v2726_v25 = vld [vmem:[#allocation10 + $0x690] sm:$0xff] }
 0x3ec   : > { %v10869_v41 = vcombine.high %v2679_v34, %v2683_v35  ;;  %v2730_v26 = vld [vmem:[#allocation10 + $0x6b0] sm:$0xff] }
 0x3ee   : > { %4357 = vmatpush1.bf16.msra.mxu0 %v10810_v44  ;;  %4463 = vmatpush1.bf16.msra.mxu1 %v10812_v45  ;;  %v2687_v44 = vld [vmem:[#allocation10 + $0x558] sm:$0xff] }
 0x3ef   : > { %4358 = vmatprep.subr.bf16.mxu0 %v10819_v47  ;;  %4464 = vmatprep.subr.bf16.mxu1 %v10821_v48  ;;  %v2691_v45 = vld [vmem:[#allocation10 + $0x578] sm:$0xff]  ;;  %v10866_v47 = vcombine.low %v2678_v38, %v2682_v33  ;;  %v10868_v48 = vcombine.low %v2679_v34, %v2683_v35  ;;  %v2734_v38 = vld [vmem:[#allocation10 + $0x6d0] sm:$0xff] }
 0x3f0   : > { %v10877_v49 = vcombine.high %v2687_v44, %v2691_v45  ;;  %v2738_v33 = vld [vmem:[#allocation10 + $0x6f0] sm:$0xff]  ;;  %v2735_v34 = vld [vmem:[#allocation10 + $0x6d8] sm:$0xff] }
 0x3f1   : > { %v2739_v35 = vld [vmem:[#allocation10 + $0x6f8] sm:$0xff] }
 0x3f2   : > { %4359 = vmatpush1.bf16.msra.mxu0 %v10818_v53  ;;  %4465 = vmatpush1.bf16.msra.mxu1 %v10820_v54  ;;  %v2699_v53 = vld [vmem:[#allocation10 + $0x5b8] sm:$0xff]  ;;  %v10874_v54 = vcombine.low %v2686_v42, %v2690_v43 }
 0x3f3   : > { %4360 = vmatprep.subr.bf16.mxu0 %v10827_v55  ;;  %4466 = vmatprep.subr.bf16.mxu1 %v10829_v56  ;;  %v10876_v55 = vcombine.low %v2687_v44, %v2691_v45  ;;  %v10883_v56 = vcombine.high %v2694_v50, %v2698_v51  ;;  %v2743_v44 = vld [vmem:[#allocation10 + $0x718] sm:$0xff] }
 0x3f4   : > { %v2747_v45 = vld [vmem:[#allocation10 + $0x738] sm:$0xff] }
 0x3f6   : > { %4361 = vmatpush1.bf16.msra.mxu0 %v10826_v62  ;;  %4467 = vmatpush1.bf16.msra.mxu1 %v10828_v63  ;;  %v10882_v62 = vcombine.low %v2694_v50, %v2698_v51  ;;  %v10884_v63 = vcombine.low %v2695_v52, %v2699_v53  ;;  %v2750_v50 = vld [vmem:[#allocation10 + $0x750] sm:$0xff] }
 0x3f7   : > { %4383 = vmatprep.subr.bf16.mxu0 %v10835_v1  ;;  %4489 = vmatprep.subr.bf16.mxu1 %v10837_v2  ;;  %v10891_v1 = vcombine.high %v2702_v57, %v2706_v58  ;;  %v10893_v2 = vcombine.high %v2703_v60, %v2707_v61  ;;  %v2754_v51 = vld [vmem:[#allocation10 + $0x770] sm:$0xff] }
 0x3f9   : > { %4363 = vmatmul.mubr.bf16.vlgmr.msra.gmra.mrb[8].mxu0 %v14834_v0  ;;  %4469 = vmatmul.mubr.bf16.vlgmr.msra.gmra.mrb[8].mxu1 %v14834_v0  ;;  %v10852_v0 = vcombine.low %v2663_v19, %v2667_v20  ;;  %v2719_v19 = vld [vmem:[#allocation10 + $0x658] sm:$0xff] }
 0x3fa   : > { %4384 = vmatpush1.bf16.msra.mxu0 %v10834_v7  ;;  %4490 = vmatpush1.bf16.msra.mxu1 %v10836_v8  ;;  %v10890_v7 = vcombine.low %v2702_v57, %v2706_v58  ;;  %v10892_v8 = vcombine.low %v2703_v60, %v2707_v61  ;;  %v2723_v20 = vld [vmem:[#allocation10 + $0x678] sm:$0xff]  ;;  %v2758_v57 = vld [vmem:[#allocation10 + $0x790] sm:$0xff] }
 0x3fb   : > { %4385 = vmatprep.subr.bf16.mxu0 %v10843_v9  ;;  %4491 = vmatprep.subr.bf16.mxu1 %v10845_v13  ;;  %v10899_v9 = vcombine.high %v2710_v3, %v2714_v4  ;;  %v10901_v13 = vcombine.high %v2711_v5, %v2715_v6  ;;  %v2762_v58 = vld [vmem:[#allocation10 + $0x7b0] sm:$0xff]  ;;  %v2759_v60 = vld [vmem:[#allocation10 + $0x798] sm:$0xff] }
 0x3fc   : > { %4372 = vmatprep.mubr.bf16.mxu0 %v14836_v10  ;;  %4478 = vmatprep.mubr.bf16.mxu1 %v14836_v10  ;;  %v10860_v10 = vcombine.low %v2671_v27, %v2675_v29  ;;  %v2727_v27 = vld [vmem:[#allocation10 + $0x698] sm:$0xff] }
 0x3fd   : > { %v2731_v29 = vld [vmem:[#allocation10 + $0x6b8] sm:$0xff] }
 0x3fe   : > { %4386 = vmatpush1.bf16.msra.mxu0 %v10842_v21  ;;  %4492 = vmatpush1.bf16.msra.mxu1 %v10844_v22  ;;  %v10898_v21 = vcombine.low %v2710_v3, %v2714_v4  ;;  %v10900_v22 = vcombine.low %v2711_v5, %v2715_v6  ;;  %v2763_v61 = vld [vmem:[#allocation10 + $0x7b8] sm:$0xff]  ;;  %v2766_v3 = vld [vmem:[#allocation10 + $0x7d0] sm:$0xff] }
 0x3ff   : > { %4387 = vmatprep.subr.bf16.mxu0 %v10851_v23  ;;  %4493 = vmatprep.subr.bf16.mxu1 %v10853_v24  ;;  %v10907_v23 = vcombine.high %v2718_v14, %v2722_v17  ;;  %v10909_v24 = vcombine.high %v2719_v19, %v2723_v20  ;;  %v2770_v4 = vld [vmem:[#allocation10 + $0x7f0] sm:$0xff]  ;;  %v2767_v5 = vld [vmem:[#allocation10 + $0x7d8] sm:$0xff] }
 0x400   : > { %v2771_v6 = vld [vmem:[#allocation10 + $0x7f8] sm:$0xff] }
 0x401   : > { %4373 = vmatmul.mubr.bf16.gmra.mrb[12].mxu0 %v14842_v28  ;;  %4479 = vmatmul.mubr.bf16.gmra.mrb[12].mxu1 %v14842_v28  ;;  %v10875_v28 = vcombine.high %v2686_v42, %v2690_v43  ;;  %v2742_v42 = vld [vmem:[#allocation10 + $0x710] sm:$0xff] }
 0x402   : > { %4388 = vmatpush1.bf16.msra.mxu0 %v10850_v30  ;;  %4494 = vmatpush1.bf16.msra.mxu1 %v10852_v0  ;;  %v10906_v30 = vcombine.low %v2718_v14, %v2722_v17  ;;  %v10908_v0 = vcombine.low %v2719_v19, %v2723_v20  ;;  %v2746_v43 = vld [vmem:[#allocation10 + $0x730] sm:$0xff]  ;;  %v10954_v14 = vcombine.low %v2766_v3, %v2770_v4  ;;  %v14872_v19 = vld [vmem:[#allocation13 + $0x4] ss:$16 sps:$4 sm:$0xff]  }
 0x403   : > { %4389 = vmatprep.subr.bf16.mxu0 %v10859_v31  ;;  %4495 = vmatprep.subr.bf16.mxu1 %v10861_v32  ;;  %v10915_v31 = vcombine.high %v2726_v25, %v2730_v26  ;;  %v10917_v32 = vcombine.high %v2727_v27, %v2731_v29  ;;  %v10956_v17 = vcombine.low %v2767_v5, %v2771_v6  ;;  %v14874_v20 = vld [vmem:[#allocation13 + $0xc] ss:$16 sps:$4 sm:$0xff]  }
 0x404   : > { %4415 = vmatprep.mubr.bf16.mxu0 %v14844_v40  ;;  %4521 = vmatprep.mubr.bf16.mxu1 %v14844_v40  ;;  %v10885_v40 = vcombine.high %v2695_v52, %v2699_v53  ;;  %v2751_v52 = vld [vmem:[#allocation10 + $0x758] sm:$0xff] }
 0x405   : > { %v2755_v53 = vld [vmem:[#allocation10 + $0x778] sm:$0xff] }
 0x406   : > { %4390 = vmatpush1.bf16.msra.mxu0 %v10858_v37  ;;  %4496 = vmatpush1.bf16.msra.mxu1 %v10860_v10  ;;  %v10914_v37 = vcombine.low %v2726_v25, %v2730_v26  ;;  %v10916_v10 = vcombine.low %v2727_v27, %v2731_v29  ;;  %v14891_v25 = vld [vmem:[#allocation13 + $0x20] ss:$16 sps:$4 sm:$0xff]   ;;  %v14895_v26 = vld [vmem:[#allocation13 + $0x28] ss:$16 sps:$4 sm:$0xff]   ;;  %v14897_v27 = vld [vmem:[#allocation13 + $0x44] ss:$16 sps:$4 sm:$0xff]  }
 0x407   : > { %4391 = vmatprep.subr.bf16.mxu0 %v10867_v39  ;;  %4497 = vmatprep.subr.bf16.mxu1 %v10869_v41  ;;  %v10923_v39 = vcombine.high %v2734_v38, %v2738_v33  ;;  %v10925_v41 = vcombine.high %v2735_v34, %v2739_v35  ;;  %v14900_v29 = vld [vmem:[#allocation13 + $0x4c] ss:$16 sps:$4 sm:$0xff]  }
 0x40a   : > { %4392 = vmatpush1.bf16.msra.mxu0 %v10866_v47  ;;  %4498 = vmatpush1.bf16.msra.mxu1 %v10868_v48  ;;  %v10922_v47 = vcombine.low %v2734_v38, %v2738_v33  ;;  %v10924_v48 = vcombine.low %v2735_v34, %v2739_v35  ;;  %v14923_v38 = vld [vmem:[#allocation13 + $0x84] ss:$16 sps:$4 sm:$0xff]   ;;  %v14926_v33 = vld [vmem:[#allocation13 + $0x8c] ss:$16 sps:$4 sm:$0xff]   ;;  %v14929_v34 = vld [vmem:[#allocation13 + $0x80] ss:$16 sps:$4 sm:$0xff]  }
 0x40b   : > { %4393 = vmatprep.subr.bf16.mxu0 %v10875_v28  ;;  %4499 = vmatprep.subr.bf16.mxu1 %v10877_v49  ;;  %v10931_v28 = vcombine.high %v2742_v42, %v2746_v43  ;;  %v10933_v49 = vcombine.high %v2743_v44, %v2747_v45  ;;  %v14935_v35 = vld [vmem:[#allocation13 + $0xa4] ss:$16 sps:$4 sm:$0xff]  }
 0x40e   : > { %4394 = vmatpush1.bf16.msra.mxu0 %v10874_v54  ;;  %4500 = vmatpush1.bf16.msra.mxu1 %v10876_v55  ;;  %v10930_v54 = vcombine.low %v2742_v42, %v2746_v43  ;;  %v10932_v55 = vcombine.low %v2743_v44, %v2747_v45  ;;  %v14950_v42 = vld [vmem:[#allocation13 + $0xcc] ss:$16 sps:$4 sm:$0xff]   ;;  %v14953_v43 = vld [vmem:[#allocation13 + $0xc0] ss:$16 sps:$4 sm:$0xff]   ;;  %v14957_v44 = vld [vmem:[#allocation13 + $0xc8] ss:$16 sps:$4 sm:$0xff]  }
 0x40f   : > { %4395 = vmatprep.subr.bf16.mxu0 %v10883_v56  ;;  %4501 = vmatprep.subr.bf16.mxu1 %v10885_v40  ;;  %v10939_v56 = vcombine.high %v2750_v50, %v2754_v51  ;;  %v10941_v40 = vcombine.high %v2751_v52, %v2755_v53  ;;  %v14959_v45 = vld [vmem:[#allocation13 + $0xe4] ss:$16 sps:$4 sm:$0xff]  }
 0x412   : > { %4396 = vmatpush1.bf16.msra.mxu0 %v10882_v62  ;;  %4502 = vmatpush1.bf16.msra.mxu1 %v10884_v63  ;;  %v10938_v62 = vcombine.low %v2750_v50, %v2754_v51  ;;  %v10940_v63 = vcombine.low %v2751_v52, %v2755_v53  ;;  %v14974_v50 = vld [vmem:[#allocation13 + $0x10c] ss:$16 sps:$4 sm:$0xff]   ;;  %v14977_v51 = vld [vmem:[#allocation13 + $0x100] ss:$16 sps:$4 sm:$0xff]   ;;  %v14981_v52 = vld [vmem:[#allocation13 + $0x108] ss:$16 sps:$4 sm:$0xff]  }
 0x413   : > { %4397 = vmatprep.subr.bf16.mxu0 %v10891_v1  ;;  %4503 = vmatprep.subr.bf16.mxu1 %v10893_v2  ;;  %v10947_v1 = vcombine.high %v2758_v57, %v2762_v58  ;;  %v10949_v2 = vcombine.high %v2759_v60, %v2763_v61  ;;  %17186 = vst [vmem:[#allocation36_spill] sm:$0xff] %v14977_v51  ;;  %17187 = vst [vmem:[#allocation37_spill] sm:$0xff] %v14981_v52  ;;  %v14983_v53 = vld [vmem:[#allocation13 + $0x124] ss:$16 sps:$4 sm:$0xff]  }
 0x414   : > { %17188 = vst [vmem:[#allocation38_spill] sm:$0xff] %v14983_v53 }
 0x416   : > { %4398 = vmatpush1.bf16.msra.mxu0 %v10890_v7  ;;  %4504 = vmatpush1.bf16.msra.mxu1 %v10892_v8  ;;  %v10946_v7 = vcombine.low %v2758_v57, %v2762_v58  ;;  %v10948_v8 = vcombine.low %v2759_v60, %v2763_v61  ;;  %v14998_v57 = vld [vmem:[#allocation13 + $0x14c] ss:$16 sps:$4 sm:$0xff]   ;;  %v15001_v58 = vld [vmem:[#allocation13 + $0x140] ss:$16 sps:$4 sm:$0xff]   ;;  %v15005_v60 = vld [vmem:[#allocation13 + $0x148] ss:$16 sps:$4 sm:$0xff]  }
 0x417   : > { %4399 = vmatprep.subr.bf16.mxu0 %v10899_v9  ;;  %4505 = vmatprep.subr.bf16.mxu1 %v10901_v13  ;;  %v10955_v9 = vcombine.high %v2766_v3, %v2770_v4  ;;  %v10957_v13 = vcombine.high %v2767_v5, %v2771_v6  ;;  %17193 = vst [vmem:[#allocation43_spill] sm:$0xff] %v14998_v57  ;;  %17194 = vst [vmem:[#allocation44_spill] sm:$0xff] %v15001_v58  ;;  %v15007_v61 = vld [vmem:[#allocation13 + $0x164] ss:$16 sps:$4 sm:$0xff]   ;;  %v15022_v3 = vld [vmem:[#allocation13 + $0x18c] ss:$16 sps:$4 sm:$0xff]  }
 0x418   : > { %17195 = vst [vmem:[#allocation45_spill] sm:$0xff] %v15005_v60  ;;  %17196 = vst [vmem:[#allocation46_spill] sm:$0xff] %v15007_v61  ;;  %v15025_v4 = vld [vmem:[#allocation13 + $0x180] ss:$16 sps:$4 sm:$0xff]   ;;  %v15029_v5 = vld [vmem:[#allocation13 + $0x188] ss:$16 sps:$4 sm:$0xff]  }
 0x419   : > { %17201 = vst [vmem:[#allocation51_spill] sm:$0xff] %v15022_v3  ;;  %17202 = vst [vmem:[#allocation52_spill] sm:$0xff] %v15025_v4  ;;  %v15031_v6 = vld [vmem:[#allocation13 + $0x1a4] ss:$16 sps:$4 sm:$0xff]  }
 0x41a   : > { %4400 = vmatpush1.bf16.msra.mxu0 %v10898_v21  ;;  %4506 = vmatpush1.bf16.msra.mxu1 %v10900_v22  ;;  %v14876_v21 = vld [vmem:[#allocation13] ss:$16 sps:$4 sm:$0xff]   ;;  %v14879_v22 = vld [vmem:[#allocation13 + $0x8] ss:$16 sps:$4 sm:$0xff]   ;;  %17203 = vst [vmem:[#allocation53_spill] sm:$0xff] %v15029_v5  ;;  %17204 = vst [vmem:[#allocation54_spill] sm:$0xff] %v15031_v6 }
 0x41b   : > { %4401 = vmatprep.subr.bf16.mxu0 %v10907_v23  ;;  %4507 = vmatprep.subr.bf16.mxu1 %v10909_v24  ;;  %v14882_v23 = vld [vmem:[#allocation13 + $0x24] ss:$16 sps:$4 sm:$0xff]   ;;  %v14885_v24 = vld [vmem:[#allocation13 + $0x2c] ss:$16 sps:$4 sm:$0xff]  }
 0x41e   : > { %4402 = vmatpush1.bf16.msra.mxu0 %v10906_v30  ;;  %4508 = vmatpush1.bf16.msra.mxu1 %v10908_v0  ;;  %v14909_v30 = vld [vmem:[#allocation13 + $0x64] ss:$16 sps:$4 sm:$0xff]   ;;  %v14913_v0 = vld [vmem:[#allocation13 + $0x6c] ss:$16 sps:$4 sm:$0xff]  }
 0x41f   : > { %4403 = vmatprep.subr.bf16.mxu0 %v10915_v31  ;;  %4509 = vmatprep.subr.bf16.mxu1 %v10917_v32  ;;  %v14917_v31 = vld [vmem:[#allocation13 + $0x60] ss:$16 sps:$4 sm:$0xff]   ;;  %v14921_v32 = vld [vmem:[#allocation13 + $0x68] ss:$16 sps:$4 sm:$0xff]  }
 0x422   : > { %4404 = vmatpush1.bf16.msra.mxu0 %v10914_v37  ;;  %4510 = vmatpush1.bf16.msra.mxu1 %v10916_v10  ;;  %v14938_v37 = vld [vmem:[#allocation13 + $0xac] ss:$16 sps:$4 sm:$0xff]   ;;  %v14941_v10 = vld [vmem:[#allocation13 + $0xa0] ss:$16 sps:$4 sm:$0xff]  }
 0x423   : > { %4405 = vmatprep.subr.bf16.mxu0 %v10923_v39  ;;  %4511 = vmatprep.subr.bf16.mxu1 %v10925_v41  ;;  %v14945_v39 = vld [vmem:[#allocation13 + $0xa8] ss:$16 sps:$4 sm:$0xff]   ;;  %v14947_v41 = vld [vmem:[#allocation13 + $0xc4] ss:$16 sps:$4 sm:$0xff]  }
 0x426   : > { %4406 = vmatpush1.bf16.msra.mxu0 %v10922_v47  ;;  %4512 = vmatpush1.bf16.msra.mxu1 %v10924_v48  ;;  %v14962_v47 = vld [vmem:[#allocation13 + $0xec] ss:$16 sps:$4 sm:$0xff]   ;;  %v14965_v48 = vld [vmem:[#allocation13 + $0xe0] ss:$16 sps:$4 sm:$0xff]  }
 0x427   : > { %4407 = vmatprep.subr.bf16.mxu0 %v10931_v28  ;;  %4513 = vmatprep.subr.bf16.mxu1 %v10933_v49  ;;  %v14969_v28 = vld [vmem:[#allocation13 + $0xe8] ss:$16 sps:$4 sm:$0xff]   ;;  %v14971_v49 = vld [vmem:[#allocation13 + $0x104] ss:$16 sps:$4 sm:$0xff]  }
 0x42a   : > { %4408 = vmatpush1.bf16.msra.mxu0 %v10930_v54  ;;  %4514 = vmatpush1.bf16.msra.mxu1 %v10932_v55  ;;  %v14986_v54 = vld [vmem:[#allocation13 + $0x12c] ss:$16 sps:$4 sm:$0xff]   ;;  %v14989_v55 = vld [vmem:[#allocation13 + $0x120] ss:$16 sps:$4 sm:$0xff]  }
 0x42b   : > { %4409 = vmatprep.subr.bf16.mxu0 %v10939_v56  ;;  %4515 = vmatprep.subr.bf16.mxu1 %v10941_v40  ;;  %17189 = vst [vmem:[#allocation39_spill] sm:$0xff] %v14986_v54  ;;  %17190 = vst [vmem:[#allocation40_spill] sm:$0xff] %v14989_v55  ;;  %v14993_v56 = vld [vmem:[#allocation13 + $0x128] ss:$16 sps:$4 sm:$0xff]   ;;  %v14995_v40 = vld [vmem:[#allocation13 + $0x144] ss:$16 sps:$4 sm:$0xff]  }
 0x42c   : > { %17191 = vst [vmem:[#allocation41_spill] sm:$0xff] %v14993_v56  ;;  %17192 = vst [vmem:[#allocation42_spill] sm:$0xff] %v14995_v40 }
 0x42e   : > { %4410 = vmatpush1.bf16.msra.mxu0 %v10938_v62  ;;  %4516 = vmatpush1.bf16.msra.mxu1 %v10940_v63  ;;  %v15010_v62 = vld [vmem:[#allocation13 + $0x16c] ss:$16 sps:$4 sm:$0xff]   ;;  %v15013_v63 = vld [vmem:[#allocation13 + $0x160] ss:$16 sps:$4 sm:$0xff]  }
 0x42f   : > { %4411 = vmatprep.subr.bf16.mxu0 %v10947_v1  ;;  %4517 = vmatprep.subr.bf16.mxu1 %v10949_v2  ;;  %17197 = vst [vmem:[#allocation47_spill] sm:$0xff] %v15010_v62  ;;  %17198 = vst [vmem:[#allocation48_spill] sm:$0xff] %v15013_v63  ;;  %v15017_v1 = vld [vmem:[#allocation13 + $0x168] ss:$16 sps:$4 sm:$0xff]   ;;  %v15019_v2 = vld [vmem:[#allocation13 + $0x184] ss:$16 sps:$4 sm:$0xff]  }
 0x430   : > { %17199 = vst [vmem:[#allocation49_spill] sm:$0xff] %v15017_v1  ;;  %17200 = vst [vmem:[#allocation50_spill] sm:$0xff] %v15019_v2 }
 0x432   : > { %4412 = vmatpush1.bf16.msra.mxu0 %v10946_v7  ;;  %4518 = vmatpush1.bf16.msra.mxu1 %v10948_v8  ;;  %v15034_v7 = vld [vmem:[#allocation13 + $0x1ac] ss:$16 sps:$4 sm:$0xff]   ;;  %v15037_v8 = vld [vmem:[#allocation13 + $0x1a0] ss:$16 sps:$4 sm:$0xff]  }
 0x433   : > { %4413 = vmatprep.subr.bf16.mxu0 %v10955_v9  ;;  %4519 = vmatprep.subr.bf16.mxu1 %v10957_v13  ;;  %17205 = vst [vmem:[#allocation55_spill] sm:$0xff] %v15034_v7  ;;  %17206 = vst [vmem:[#allocation56_spill] sm:$0xff] %v15037_v8  ;;  %v15041_v9 = vld [vmem:[#allocation13 + $0x1a8] ss:$16 sps:$4 sm:$0xff]   ;;  %v15043_v13 = vld [vmem:[#allocation13 + $0x1c4] ss:$16 sps:$4 sm:$0xff]  }
 0x434   : > { %17207 = vst [vmem:[#allocation57_spill] sm:$0xff] %v15041_v9  ;;  %17208 = vst [vmem:[#allocation58_spill] sm:$0xff] %v15043_v13 }
 0x436   : > { %4414 = vmatpush1.bf16.msra.mxu0 %v10954_v14  ;;  %4520 = vmatpush1.bf16.msra.mxu1 %v10956_v17  ;;  %v15046_v14 = vld [vmem:[#allocation13 + $0x1cc] ss:$16 sps:$4 sm:$0xff]   ;;  %v15049_v17 = vld [vmem:[#allocation13 + $0x1c0] ss:$16 sps:$4 sm:$0xff]  }
 0x437   : > { %5020 = vmatprep.subr.bf16.mxu0 %v14872_v19  ;;  %5093 = vmatprep.subr.bf16.mxu1 %v14874_v20  ;;  %17209 = vst [vmem:[#allocation59_spill] sm:$0xff] %v15046_v14  ;;  %17210 = vst [vmem:[#allocation60_spill] sm:$0xff] %v15049_v17 }
 0x439   : > { %4416 = vmatmul.mubr.bf16.vlgmr.msra.gmra.mrb[8].mxu0 %v14850_v36  ;;  %4522 = vmatmul.mubr.bf16.vlgmr.msra.gmra.mrb[8].mxu1 %v14850_v36  ;;  %v14903_v36 = vld [vmem:[#allocation13 + $0x40] ss:$16 sps:$4 sm:$0xff]  }
 0x43a   : > { %4425 = vmatprep.mubr.bf16.mxu0 %v14852_v46  ;;  %4531 = vmatprep.mubr.bf16.mxu1 %v14852_v46  ;;  %v14907_v46 = vld [vmem:[#allocation13 + $0x48] ss:$16 sps:$4 sm:$0xff]  }
 0x43b   : > { %5021 = vmatpush1.bf16.msra.mxu0 %v14876_v21  ;;  %5094 = vmatpush1.bf16.msra.mxu1 %v14879_v22 }
 0x43c   : > { %5022 = vmatprep.subr.bf16.mxu0 %v14882_v23  ;;  %5095 = vmatprep.subr.bf16.mxu1 %v14885_v24 }
 0x43f   : > { %5023 = vmatpush1.bf16.msra.mxu0 %v14891_v25  ;;  %5096 = vmatpush1.bf16.msra.mxu1 %v14895_v26 }
 0x440   : > { %5024 = vmatprep.subr.bf16.mxu0 %v14897_v27  ;;  %5097 = vmatprep.subr.bf16.mxu1 %v14900_v29 }
 0x441   : > { %4426 = vmatmul.mubr.bf16.gmra.mrb[12].mxu0 %v14858_v59  ;;  %4532 = vmatmul.mubr.bf16.gmra.mrb[12].mxu1 %v14858_v59  ;;  %v14933_v59 = vld [vmem:[#allocation13 + $0x88] ss:$16 sps:$4 sm:$0xff]  }
 0x443   : > { %5025 = vmatpush1.bf16.msra.mxu0 %v14903_v36  ;;  %5098 = vmatpush1.bf16.msra.mxu1 %v14907_v46 }
 0x444   : > { %5026 = vmatprep.subr.bf16.mxu0 %v14909_v30  ;;  %5099 = vmatprep.subr.bf16.mxu1 %v14913_v0 }
 0x447   : > { %5027 = vmatpush1.bf16.msra.mxu0 %v14917_v31  ;;  %5100 = vmatpush1.bf16.msra.mxu1 %v14921_v32 }
 0x448   : > { %5028 = vmatprep.subr.bf16.mxu0 %v14923_v38  ;;  %5101 = vmatprep.subr.bf16.mxu1 %v14926_v33 }
 0x44b   : > { %5029 = vmatpush1.bf16.msra.mxu0 %v14929_v34  ;;  %5102 = vmatpush1.bf16.msra.mxu1 %v14933_v59 }
 0x44c   : > { %5030 = vmatprep.subr.bf16.mxu0 %v14935_v35  ;;  %5103 = vmatprep.subr.bf16.mxu1 %v14938_v37 }
 0x44f   : > { %5031 = vmatpush1.bf16.msra.mxu0 %v14941_v10  ;;  %5104 = vmatpush1.bf16.msra.mxu1 %v14945_v39 }
 0x450   : > { %5032 = vmatprep.subr.bf16.mxu0 %v14947_v41  ;;  %5105 = vmatprep.subr.bf16.mxu1 %v14950_v42 }
 0x453   : > { %5033 = vmatpush1.bf16.msra.mxu0 %v14953_v43  ;;  %5106 = vmatpush1.bf16.msra.mxu1 %v14957_v44 }
 0x454   : > { %5034 = vmatprep.subr.bf16.mxu0 %v14959_v45  ;;  %5107 = vmatprep.subr.bf16.mxu1 %v14962_v47 }
 0x457   : > { %5035 = vmatpush1.bf16.msra.mxu0 %v14965_v48  ;;  %5108 = vmatpush1.bf16.msra.mxu1 %v14969_v28 }
 0x458   : > { %5036 = vmatprep.subr.bf16.mxu0 %v14971_v49  ;;  %5109 = vmatprep.subr.bf16.mxu1 %v14974_v50 }
 0x45b   : > { %5037 = vmatpush1.bf16.msra.mxu0 %v14977_v51  ;;  %5110 = vmatpush1.bf16.msra.mxu1 %v14981_v52 }
 0x45c   : > { %5038 = vmatprep.subr.bf16.mxu0 %v14983_v53  ;;  %5111 = vmatprep.subr.bf16.mxu1 %v14986_v54 }
 0x45f   : > { %5039 = vmatpush1.bf16.msra.mxu0 %v14989_v55  ;;  %5112 = vmatpush1.bf16.msra.mxu1 %v14993_v56 }
 0x460   : > { %5040 = vmatprep.subr.bf16.mxu0 %v14995_v40  ;;  %5113 = vmatprep.subr.bf16.mxu1 %v14998_v57 }
 0x463   : > { %5041 = vmatpush1.bf16.msra.mxu0 %v15001_v58  ;;  %5114 = vmatpush1.bf16.msra.mxu1 %v15005_v60 }
 0x464   : > { %5042 = vmatprep.subr.bf16.mxu0 %v15007_v61  ;;  %5115 = vmatprep.subr.bf16.mxu1 %v15010_v62 }
 0x467   : > { %5043 = vmatpush1.bf16.msra.mxu0 %v15013_v63  ;;  %5116 = vmatpush1.bf16.msra.mxu1 %v15017_v1 }
 0x468   : > { %5044 = vmatprep.subr.bf16.mxu0 %v15019_v2  ;;  %5117 = vmatprep.subr.bf16.mxu1 %v15022_v3 }
 0x46b   : > { %5045 = vmatpush1.bf16.msra.mxu0 %v15025_v4  ;;  %5118 = vmatpush1.bf16.msra.mxu1 %v15029_v5  ;;  %v15055_v5 = vld [vmem:[#allocation13 + $0x1e4] ss:$16 sps:$4 sm:$0xff]  }
 0x46c   : > { %5046 = vmatprep.subr.bf16.mxu0 %v15031_v6  ;;  %5119 = vmatprep.subr.bf16.mxu1 %v15034_v7  ;;  %17212 = vst [vmem:[#allocation62_spill] sm:$0xff] %v15055_v5  ;;  %v15058_v6 = vld [vmem:[#allocation13 + $0x1ec] ss:$16 sps:$4 sm:$0xff]   ;;  %v15061_v7 = vld [vmem:[#allocation13 + $0x1e0] ss:$16 sps:$4 sm:$0xff]  }
 0x46d   : > { %17213 = vst [vmem:[#allocation63_spill] sm:$0xff] %v15058_v6  ;;  %17214 = vst [vmem:[#allocation64_spill] sm:$0xff] %v15061_v7 }
 0x46f   : > { %5047 = vmatpush1.bf16.msra.mxu0 %v15037_v8  ;;  %5120 = vmatpush1.bf16.msra.mxu1 %v15041_v9  ;;  %v15065_v8 = vld [vmem:[#allocation13 + $0x1e8] ss:$16 sps:$4 sm:$0xff]  }
 0x470   : > { %5048 = vmatprep.subr.bf16.mxu0 %v15043_v13  ;;  %5121 = vmatprep.subr.bf16.mxu1 %v15046_v14  ;;  %17215 = vst [vmem:[#allocation65_spill] sm:$0xff] %v15065_v8  ;;  %v15072_v14 = vld [vmem:[#allocation11] sm:$0xff] }
 0x471   : > { %17216 = vst [vmem:[#allocation66_spill] sm:$0xff] %v15072_v14 }
 0x473   : > { %5049 = vmatpush1.bf16.msra.mxu0 %v15049_v17  ;;  %5122 = vmatpush1.bf16.msra.mxu1 %v15053_v15  ;;  %v2801_v17 = vrot.slane %v15072_v14, %v14812_v16  ;;  %v2805_v15 = vrot.slane %v15072_v14, %v14820_v18 }
 0x474   : > { %5050 = vmatprep.subr.bf16.mxu0 %v15055_v5  ;;  %5123 = vmatprep.subr.bf16.mxu1 %v15058_v6  ;;  %v2809_v5 = vrot.slane %v15072_v14, %v14816_v11 }
 0x477   : > { %5051 = vmatpush1.bf16.msra.mxu0 %v15061_v7  ;;  %5124 = vmatpush1.bf16.msra.mxu1 %v15065_v8  ;;  %v2813_v7 = vrot.slane %v15072_v14, %v14823_v12 }
 0x478   : > { %5238 = vmatprep.subr.bf16.mxu0 %v14872_v19  ;;  %5311 = vmatprep.subr.bf16.mxu1 %v14874_v20 }
 0x48c   : > { %v4205_v6 = vpop.f32.mrb[0].mxu0  ;;  %v4311_v13 = vpop.f32.mrb[0].mxu1 }
 0x48d   : > { %v12964_v8 = vadd.f32 %v4205_v6, %v2801_v17  ;;  %v4207_v19 = vpop.f32.mrb[1].mxu0  ;;  %v12972_v9 = vadd.f32 %v4311_v13, %v2809_v5  ;;  %v4313_v4 = vpop.f32.mrb[1].mxu1 }
 0x48e   : > { %v12965_v20 = vadd.f32 %v4207_v19, %v2805_v15  ;;  %v4209_v3 = vpop.f32.mrb[2].mxu0  ;;  %v12973_v2 = vadd.f32 %v4313_v4, %v2813_v7  ;;  %v4315_v16 = vpop.f32.mrb[2].mxu1 }
 0x48f   : > { %v12966_v1 = vadd.f32 %v4209_v3, %v2801_v17  ;;  %v4211_v63 = vpop.f32.mrb[3].mxu0  ;;  %v12974_v62 = vadd.f32 %v4315_v16, %v2809_v5  ;;  %v4317_v61 = vpop.f32.mrb[3].mxu1  ;;  %v4542_v60 = vmax.f32 %v12964_v8, 0.0  ;;  %v4544_v57 = vmax.f32 %v12972_v9, 0.0 }
 0x490   : > { %v12967_v11 = vadd.f32 %v4211_v63, %v2805_v15  ;;  %v12975_v58 = vadd.f32 %v4317_v61, %v2813_v7  ;;  %v4543_v12 = vmax.f32 %v12965_v20, 0.0  ;;  %v4545_v40 = vmax.f32 %v12973_v2, 0.0 }
 0x491   : > { %v4550_v18 = vmax.f32 %v12966_v1, 0.0  ;;  %v4552_v14 = vmax.f32 %v12974_v62, 0.0 }
 0x492   : > { %v4551_v6 = vmax.f32 %v12967_v11, 0.0  ;;  %v4553_v13 = vmax.f32 %v12975_v58, 0.0 }
 0x493   : > { %v4574_v56 = vpack.c.bf16 %v4550_v18, %v4542_v60  ;;  %v4582_v19 = vpack.c.bf16 %v4552_v14, %v4544_v57 }
 0x494   : > { %v4575_v55 = vpack.c.bf16 %v4551_v6, %v4543_v12  ;;  %v4215_v54 = vpop.f32.mrb[4].mxu0  ;;  %v4583_v4 = vpack.c.bf16 %v4553_v13, %v4545_v40  ;;  %v4321_v53 = vpop.f32.mrb[4].mxu1  ;;  %v17248_v6 = vld [vmem:[#allocation66_spill] sm:$0xff] }
 0x495   : > { %v12968_v3 = vadd.f32 %v4215_v54, %v2801_v17  ;;  %v4217_v52 = vpop.f32.mrb[5].mxu0  ;;  %v12976_v16 = vadd.f32 %v4321_v53, %v2809_v5  ;;  %v4323_v51 = vpop.f32.mrb[5].mxu1 }
 0x496   : > { %v12969_v63 = vadd.f32 %v4217_v52, %v2805_v15  ;;  %v4219_v8 = vpop.f32.mrb[6].mxu0  ;;  %5052 = vmatprep.mubr.bf16.mxu0 %v4575_v55  ;;  %5125 = vmatprep.mubr.bf16.mxu1 %v4575_v55  ;;  %v12977_v61 = vadd.f32 %v4323_v51, %v2813_v7  ;;  %v4325_v62 = vpop.f32.mrb[6].mxu1 }
 0x497   : > { %v12970_v1 = vadd.f32 %v4219_v8, %v2801_v17  ;;  %v4221_v11 = vpop.f32.mrb[7].mxu0  ;;  %5053 = vmatmul.mubr.bf16.vlgmr.msra.gmra.mrb[16].mxu0 %v4574_v56  ;;  %5126 = vmatmul.mubr.bf16.vlgmr.msra.gmra.mrb[16].mxu1 %v4574_v56  ;;  %v4560_v18 = vmax.f32 %v12976_v16, 0.0  ;;  %v12978_v57 = vadd.f32 %v4325_v62, %v2809_v5  ;;  %v4327_v58 = vpop.f32.mrb[7].mxu1  ;;  %v4558_v53 = vmax.f32 %v12968_v3, 0.0 }
 0x498   : > { %v12971_v12 = vadd.f32 %v4221_v11, %v2805_v15  ;;  %5239 = vmatpush1.bf16.msra.mxu0 %v14876_v21  ;;  %5312 = vmatpush1.bf16.msra.mxu1 %v14879_v22  ;;  %v12979_v54 = vadd.f32 %v4327_v58, %v2813_v7  ;;  %v4559_v51 = vmax.f32 %v12969_v63, 0.0  ;;  %v4561_v60 = vmax.f32 %v12977_v61, 0.0  ;;  %v17217_v22 = vld [vmem:[#allocation36_spill] sm:$0xff]  ;;  %v17247_v7 = vld [vmem:[#allocation31_spill] sm:$0xff] }
 0x499   : > { %v4566_v52 = vmax.f32 %v12970_v1, 0.0  ;;  %5240 = vmatprep.subr.bf16.mxu0 %v14882_v23  ;;  %5313 = vmatprep.subr.bf16.mxu1 %v14885_v24  ;;  %v4568_v55 = vmax.f32 %v12978_v57, 0.0  ;;  %v17218_v23 = vld [vmem:[#allocation37_spill] sm:$0xff]  ;;  %v17219_v24 = vld [vmem:[#allocation38_spill] sm:$0xff]  ;;  %v2816_v9 = vsub.s32 4, %v17247_v7  ;;  %v2824_v14 = vsub.s32 6, %v17247_v7 }
 0x49a   : > { %v4567_v40 = vmax.f32 %v12971_v12, 0.0  ;;  %v4569_v2 = vmax.f32 %v12979_v54, 0.0  ;;  %v2820_v17 = vsub.s32 5, %v17247_v7  ;;  %v2828_v20 = vsub.s32 7, %v17247_v7 }
 0x49b   : > { %v4576_v56 = vpack.c.bf16 %v4566_v52, %v4558_v53  ;;  %v4584_v5 = vpack.c.bf16 %v4568_v55, %v4560_v18  ;;  %v2817_v13 = vrot.slane %v17248_v6, %v2816_v9 }
 0x49c   : > { %v4577_v15 = vpack.c.bf16 %v4567_v40, %v4559_v51  ;;  %5241 = vmatpush1.bf16.msra.mxu0 %v14891_v25  ;;  %5314 = vmatpush1.bf16.msra.mxu1 %v14895_v26  ;;  %v4585_v21 = vpack.c.bf16 %v4569_v2, %v4561_v60  ;;  %v17220_v25 = vld [vmem:[#allocation39_spill] sm:$0xff]  ;;  %v17221_v26 = vld [vmem:[#allocation40_spill] sm:$0xff]  ;;  %v2829_v3 = vrot.slane %v17248_v6, %v2828_v20 }
 0x49d   : > { %5242 = vmatprep.subr.bf16.mxu0 %v14897_v27  ;;  %5315 = vmatprep.subr.bf16.mxu1 %v14900_v29  ;;  %v17222_v27 = vld [vmem:[#allocation41_spill] sm:$0xff]  ;;  %v17223_v29 = vld [vmem:[#allocation42_spill] sm:$0xff] }
 0x49e   : > { %5062 = vmatprep.mubr.bf16.mxu0 %v4577_v15  ;;  %5135 = vmatprep.mubr.bf16.mxu1 %v4577_v15 }
 0x49f   : > { %5063 = vmatmul.mubr.bf16.gmra.mrb[20].mxu0 %v4576_v56  ;;  %5136 = vmatmul.mubr.bf16.gmra.mrb[20].mxu1 %v4576_v56 }
 0x4a0   : > { %5072 = vmatprep.mubr.bf16.mxu0 %v4583_v4  ;;  %5145 = vmatprep.mubr.bf16.mxu1 %v4583_v4  ;;  %v2821_v4 = vrot.slane %v17248_v6, %v2820_v17 }
 0x4a1   : > { %5243 = vmatpush1.bf16.msra.mxu0 %v14903_v36  ;;  %5316 = vmatpush1.bf16.msra.mxu1 %v14907_v46  ;;  %v17224_v36 = vld [vmem:[#allocation43_spill] sm:$0xff]  ;;  %v17225_v46 = vld [vmem:[#allocation44_spill] sm:$0xff] }
 0x4a2   : > { %5244 = vmatprep.subr.bf16.mxu0 %v14909_v30  ;;  %5317 = vmatprep.subr.bf16.mxu1 %v14913_v0  ;;  %v17226_v30 = vld [vmem:[#allocation45_spill] sm:$0xff]  ;;  %v17227_v0 = vld [vmem:[#allocation46_spill] sm:$0xff] }
 0x4a5   : > { %5245 = vmatpush1.bf16.msra.mxu0 %v14917_v31  ;;  %5318 = vmatpush1.bf16.msra.mxu1 %v14921_v32  ;;  %v17228_v31 = vld [vmem:[#allocation47_spill] sm:$0xff]  ;;  %v17229_v32 = vld [vmem:[#allocation48_spill] sm:$0xff] }
 0x4a6   : > { %5246 = vmatprep.subr.bf16.mxu0 %v14923_v38  ;;  %5319 = vmatprep.subr.bf16.mxu1 %v14926_v33  ;;  %v17230_v38 = vld [vmem:[#allocation49_spill] sm:$0xff]  ;;  %v17231_v33 = vld [vmem:[#allocation50_spill] sm:$0xff] }
 0x4a7   : > { %5073 = vmatmul.mubr.bf16.gmra.mrb[24].mxu0 %v4582_v19  ;;  %5146 = vmatmul.mubr.bf16.gmra.mrb[24].mxu1 %v4582_v19  ;;  %v2825_v19 = vrot.slane %v17248_v6, %v2824_v14 }
 0x4a8   : > { %5082 = vmatprep.mubr.bf16.mxu0 %v4585_v21  ;;  %5155 = vmatprep.mubr.bf16.mxu1 %v4585_v21 }
 0x4a9   : > { %5247 = vmatpush1.bf16.msra.mxu0 %v14929_v34  ;;  %5320 = vmatpush1.bf16.msra.mxu1 %v14933_v59  ;;  %v17232_v34 = vld [vmem:[#allocation51_spill] sm:$0xff]  ;;  %v17233_v59 = vld [vmem:[#allocation52_spill] sm:$0xff] }
 0x4aa   : > { %5248 = vmatprep.subr.bf16.mxu0 %v14935_v35  ;;  %5321 = vmatprep.subr.bf16.mxu1 %v14938_v37  ;;  %v17234_v35 = vld [vmem:[#allocation53_spill] sm:$0xff]  ;;  %v17235_v37 = vld [vmem:[#allocation54_spill] sm:$0xff] }
 0x4ad   : > { %5249 = vmatpush1.bf16.msra.mxu0 %v14941_v10  ;;  %5322 = vmatpush1.bf16.msra.mxu1 %v14945_v39  ;;  %v17236_v10 = vld [vmem:[#allocation55_spill] sm:$0xff]  ;;  %v17237_v39 = vld [vmem:[#allocation56_spill] sm:$0xff] }
 0x4ae   : > { %5250 = vmatprep.subr.bf16.mxu0 %v14947_v41  ;;  %5323 = vmatprep.subr.bf16.mxu1 %v14950_v42  ;;  %v17238_v41 = vld [vmem:[#allocation57_spill] sm:$0xff]  ;;  %v17239_v42 = vld [vmem:[#allocation58_spill] sm:$0xff] }
 0x4af   : > { %5083 = vmatmul.mubr.bf16.gmra.mrb[28].mxu0 %v4584_v5  ;;  %5156 = vmatmul.mubr.bf16.gmra.mrb[28].mxu1 %v4584_v5 }
 0x4b1   : > { %5251 = vmatpush1.bf16.msra.mxu0 %v14953_v43  ;;  %5324 = vmatpush1.bf16.msra.mxu1 %v14957_v44  ;;  %v17240_v43 = vld [vmem:[#allocation59_spill] sm:$0xff]  ;;  %v17241_v44 = vld [vmem:[#allocation60_spill] sm:$0xff] }
 0x4b2   : > { %5252 = vmatprep.subr.bf16.mxu0 %v14959_v45  ;;  %5325 = vmatprep.subr.bf16.mxu1 %v14962_v47  ;;  %v17242_v45 = vld [vmem:[#allocation61_spill] sm:$0xff]  ;;  %v17243_v47 = vld [vmem:[#allocation62_spill] sm:$0xff] }
 0x4b5   : > { %5253 = vmatpush1.bf16.msra.mxu0 %v14965_v48  ;;  %5326 = vmatpush1.bf16.msra.mxu1 %v14969_v28  ;;  %v17244_v48 = vld [vmem:[#allocation63_spill] sm:$0xff] }
 0x4b6   : > { %5254 = vmatprep.subr.bf16.mxu0 %v14971_v49  ;;  %5327 = vmatprep.subr.bf16.mxu1 %v14974_v50  ;;  %v15142_v28 = vld [vmem:[#allocation16 + $0x4] ss:$8 sps:$4 sm:$0xff]   ;;  %v17246_v50 = vld [vmem:[#allocation65_spill] sm:$0xff] }
 0x4b7   : > { %v17245_v49 = vld [vmem:[#allocation64_spill] sm:$0xff] }
 0x4b9   : > { %5255 = vmatpush1.bf16.msra.mxu0 %v17217_v22  ;;  %5328 = vmatpush1.bf16.msra.mxu1 %v17218_v23 }
 0x4ba   : > { %5256 = vmatprep.subr.bf16.mxu0 %v17219_v24  ;;  %5329 = vmatprep.subr.bf16.mxu1 %v17220_v25 }
 0x4bd   : > { %5257 = vmatpush1.bf16.msra.mxu0 %v17221_v26  ;;  %5330 = vmatpush1.bf16.msra.mxu1 %v17222_v27  ;;  %v15158_v27 = vld [vmem:[#allocation16] ss:$8 sps:$4 sm:$0xff]  }
 0x4be   : > { %5258 = vmatprep.subr.bf16.mxu0 %v17223_v29  ;;  %5331 = vmatprep.subr.bf16.mxu1 %v17224_v36 }
 0x4c1   : > { %5259 = vmatpush1.bf16.msra.mxu0 %v17225_v46  ;;  %5332 = vmatpush1.bf16.msra.mxu1 %v17226_v30 }
 0x4c2   : > { %5260 = vmatprep.subr.bf16.mxu0 %v17227_v0  ;;  %5333 = vmatprep.subr.bf16.mxu1 %v17228_v31  ;;  %v15160_v0 = vld [vmem:[#allocation16 + $0x14] ss:$8 sps:$4 sm:$0xff]  }
 0x4c5   : > { %5261 = vmatpush1.bf16.msra.mxu0 %v17229_v32  ;;  %5334 = vmatpush1.bf16.msra.mxu1 %v17230_v38 }
 0x4c6   : > { %5262 = vmatprep.subr.bf16.mxu0 %v17231_v33  ;;  %5335 = vmatprep.subr.bf16.mxu1 %v17232_v34 }
 0x4c9   : > { %5263 = vmatpush1.bf16.msra.mxu0 %v17233_v59  ;;  %5336 = vmatpush1.bf16.msra.mxu1 %v17234_v35 }
 0x4ca   : > { %5264 = vmatprep.subr.bf16.mxu0 %v17235_v37  ;;  %5337 = vmatprep.subr.bf16.mxu1 %v17236_v10 }
 0x4cd   : > { %5265 = vmatpush1.bf16.msra.mxu0 %v17237_v39  ;;  %5338 = vmatpush1.bf16.msra.mxu1 %v17238_v41 }
 0x4ce   : > { %5266 = vmatprep.subr.bf16.mxu0 %v17239_v42  ;;  %5339 = vmatprep.subr.bf16.mxu1 %v17240_v43  ;;  %v15164_v42 = vld [vmem:[#allocation16 + $0x10] ss:$8 sps:$4 sm:$0xff]  }
 0x4d1   : > { %5267 = vmatpush1.bf16.msra.mxu0 %v17241_v44  ;;  %5340 = vmatpush1.bf16.msra.mxu1 %v17242_v45 }
 0x4d2   : > { %5268 = vmatprep.subr.bf16.mxu0 %v17243_v47  ;;  %5341 = vmatprep.subr.bf16.mxu1 %v17244_v48  ;;  %v15168_v47 = vld [vmem:[#allocation16 + $0x24] ss:$8 sps:$4 sm:$0xff]  }
 0x4d5   : > { %5269 = vmatpush1.bf16.msra.mxu0 %v17245_v49  ;;  %5342 = vmatpush1.bf16.msra.mxu1 %v17246_v50 }
 0x4d6   : > { %5564 = vmatprep.subr.bf16.mxu0 %v15142_v28  ;;  %5830 = vmatprep.subr.bf16.mxu1 %v15142_v28 }
 0x50c   : > { %v4417_v16 = vpop.f32.mrb[8].mxu0  ;;  %v4523_v8 = vpop.f32.mrb[8].mxu1 }
 0x50d   : > { %v12980_v63 = vadd.f32 %v4417_v16, %v2817_v13  ;;  %v4419_v61 = vpop.f32.mrb[9].mxu0  ;;  %v12988_v1 = vadd.f32 %v4523_v8, %v2825_v19  ;;  %v4525_v11 = vpop.f32.mrb[9].mxu1  ;;  %v15184_v16 = vld [vmem:[#allocation16 + $0x44] ss:$8 sps:$4 sm:$0xff]   ;;  %v15192_v8 = vld [vmem:[#allocation16 + $0x54] ss:$8 sps:$4 sm:$0xff]  }
 0x50e   : > { %v12981_v62 = vadd.f32 %v4419_v61, %v2821_v4  ;;  %v4421_v18 = vpop.f32.mrb[10].mxu0  ;;  %v12989_v57 = vadd.f32 %v4525_v11, %v2829_v3  ;;  %v4527_v58 = vpop.f32.mrb[10].mxu1  ;;  %v15198_v61 = vld [vmem:[#allocation16 + $0x50] ss:$8 sps:$4 sm:$0xff]   ;;  %v15210_v11 = vld [vmem:[#allocation16 + $0x74] ss:$8 sps:$4 sm:$0xff]  }
 0x50f   : > { %v12982_v12 = vadd.f32 %v4421_v18, %v2817_v13  ;;  %v4423_v53 = vpop.f32.mrb[11].mxu0  ;;  %v12990_v52 = vadd.f32 %v4527_v58, %v2825_v19  ;;  %v4529_v51 = vpop.f32.mrb[11].mxu1  ;;  %v4546_v55 = vmax.f32 %v12980_v63, 0.0  ;;  %v4548_v56 = vmax.f32 %v12988_v1, 0.0  ;;  %v15188_v63 = vld [vmem:[#allocation16 + $0x40] ss:$8 sps:$4 sm:$0xff]  }
 0x510   : > { %v12983_v54 = vadd.f32 %v4423_v53, %v2821_v4  ;;  %v12991_v60 = vadd.f32 %v4529_v51, %v2829_v3  ;;  %v4547_v2 = vmax.f32 %v12981_v62, 0.0  ;;  %v4549_v21 = vmax.f32 %v12989_v57, 0.0  ;;  %v15202_v1 = vld [vmem:[#allocation16 + $0x64] ss:$8 sps:$4 sm:$0xff]   ;;  %v15206_v62 = vld [vmem:[#allocation16 + $0x60] ss:$8 sps:$4 sm:$0xff]  }
 0x511   : > { %v4554_v40 = vmax.f32 %v12982_v12, 0.0  ;;  %v4556_v5 = vmax.f32 %v12990_v52, 0.0  ;;  %v14094_v18 = vmov 0   ;;  %v15216_v57 = vld [vmem:[#allocation16 + $0x70] ss:$8 sps:$4 sm:$0xff]   ;;  %v17251_v51 = vld [vmem:[#allocation34_spill] sm:$0xff] }
 0x512   : > { %v4555_v15 = vmax.f32 %v12983_v54, 0.0  ;;  %v4557_v23 = vmax.f32 %v12991_v60, 0.0  ;;  %v4670_v12 = vld [vmem:[#allocation14] sm:$0xf]  ;;  %v17249_v58 = vld [vmem:[#allocation32_spill] sm:$0xff] }
 0x513   : > { %v4590_v22 = vpack.c.bf16 %v4554_v40, %v4546_v55  ;;  %v15156_v24 = vpack.c.bf16 %v4556_v5, %v4548_v56  ;;  %v15225_v53 = vrot.slane %v4670_v12, %v17249_v58  ;;  %v17250_v52 = vld [vmem:[#allocation33_spill] sm:$0xff]  ;;  %v15231_v55 = vrot.slane %v4670_v12, %v17251_v51  ;;  %v17252_v40 = vld [vmem:[#allocation35_spill] sm:$0xff] }
 0x514   : > { %v4591_v25 = vpack.c.bf16 %v4555_v15, %v4547_v2  ;;  %v4427_v26 = vpop.f32.mrb[12].mxu0  ;;  %v4599_v29 = vpack.c.bf16 %v4557_v23, %v4549_v21  ;;  %v4533_v46 = vpop.f32.mrb[12].mxu1  ;;  %v15228_v54 = vrot.slane %v4670_v12, %v17250_v52  ;;  %v15234_v60 = vrot.slane %v4670_v12, %v17252_v40 }
 0x515   : > { %v12984_v36 = vadd.f32 %v4427_v26, %v2817_v13  ;;  %v4429_v30 = vpop.f32.mrb[13].mxu0  ;;  %v12992_v31 = vadd.f32 %v4533_v46, %v2825_v19  ;;  %v4535_v38 = vpop.f32.mrb[13].mxu1 }
 0x516   : > { %v12985_v32 = vadd.f32 %v4429_v30, %v2821_v4  ;;  %v4431_v33 = vpop.f32.mrb[14].mxu0  ;;  %5270 = vmatprep.mubr.bf16.mxu0 %v4591_v25  ;;  %5343 = vmatprep.mubr.bf16.mxu1 %v4591_v25  ;;  %v12993_v34 = vadd.f32 %v4535_v38, %v2829_v3  ;;  %v4537_v35 = vpop.f32.mrb[14].mxu1 }
 0x517   : > { %v12986_v59 = vadd.f32 %v4431_v33, %v2817_v13  ;;  %v4433_v37 = vpop.f32.mrb[15].mxu0  ;;  %5271 = vmatmul.mubr.bf16.vlgmr.msra.gmra.mrb[32].mxu0 %v4590_v22  ;;  %5344 = vmatmul.mubr.bf16.vlgmr.msra.gmra.mrb[32].mxu1 %v4590_v22  ;;  %v12994_v10 = vadd.f32 %v4537_v35, %v2825_v19  ;;  %v4539_v41 = vpop.f32.mrb[15].mxu1  ;;  %v4562_v43 = vmax.f32 %v12984_v36, 0.0  ;;  %v4564_v48 = vmax.f32 %v12992_v31, 0.0  ;;  %v15173_v19 = vld [vmem:[#allocation16 + $0x20] ss:$8 sps:$4 sm:$0xff]  }
 0x518   : > { %v12987_v39 = vadd.f32 %v4433_v37, %v2821_v4  ;;  %5565 = vmatpush1.bf16.msra.mxu0 %v15158_v27  ;;  %5831 = vmatpush1.bf16.msra.mxu1 %v15158_v27  ;;  %v12995_v45 = vadd.f32 %v4539_v41, %v2829_v3  ;;  %v4563_v49 = vmax.f32 %v12985_v32, 0.0  ;;  %v4565_v9 = vmax.f32 %v12993_v34, 0.0  ;;  %v15176_v4 = vld [vmem:[#allocation16 + $0x34] ss:$8 sps:$4 sm:$0xff]   ;;  %v15180_v3 = vld [vmem:[#allocation16 + $0x30] ss:$8 sps:$4 sm:$0xff]  }
 0x519   : > { %v4570_v44 = vmax.f32 %v12986_v59, 0.0  ;;  %5566 = vmatprep.subr.bf16.mxu0 %v15160_v0  ;;  %5832 = vmatprep.subr.bf16.mxu1 %v15160_v0  ;;  %v4572_v50 = vmax.f32 %v12994_v10, 0.0 }
 0x51a   : > { %v4571_v7 = vmax.f32 %v12987_v39, 0.0  ;;  %v4573_v17 = vmax.f32 %v12995_v45, 0.0 }
 0x51b   : > { %v4592_v14 = vpack.c.bf16 %v4570_v44, %v4562_v43  ;;  %v4600_v20 = vpack.c.bf16 %v4572_v50, %v4564_v48 }
 0x51c   : > { %v4593_v6 = vpack.c.bf16 %v4571_v7, %v4563_v49  ;;  %5567 = vmatpush1.bf16.msra.mxu0 %v15164_v42  ;;  %5833 = vmatpush1.bf16.msra.mxu1 %v15164_v42  ;;  %v4601_v13 = vpack.c.bf16 %v4573_v17, %v4565_v9 }
 0x51d   : > { %5568 = vmatprep.subr.bf16.mxu0 %v15168_v47  ;;  %5834 = vmatprep.subr.bf16.mxu1 %v15168_v47 }
 0x51e   : > { %5280 = vmatprep.mubr.bf16.mxu0 %v4593_v6  ;;  %5353 = vmatprep.mubr.bf16.mxu1 %v4593_v6 }
 0x51f   : > { %5281 = vmatmul.mubr.bf16.gmra.mrb[36].mxu0 %v4592_v14  ;;  %5354 = vmatmul.mubr.bf16.gmra.mrb[36].mxu1 %v4592_v14 }
 0x520   : > { %5290 = vmatprep.mubr.bf16.mxu0 %v4599_v29  ;;  %5363 = vmatprep.mubr.bf16.mxu1 %v4599_v29 }
 0x521   : > { %5569 = vmatpush1.bf16.msra.mxu0 %v15173_v19  ;;  %5835 = vmatpush1.bf16.msra.mxu1 %v15173_v19 }
 0x522   : > { %5570 = vmatprep.subr.bf16.mxu0 %v15176_v4  ;;  %5836 = vmatprep.subr.bf16.mxu1 %v15176_v4 }
 0x525   : > { %5571 = vmatpush1.bf16.msra.mxu0 %v15180_v3  ;;  %5837 = vmatpush1.bf16.msra.mxu1 %v15180_v3 }
 0x526   : > { %5572 = vmatprep.subr.bf16.mxu0 %v15184_v16  ;;  %5838 = vmatprep.subr.bf16.mxu1 %v15184_v16 }
 0x527   : > { %5291 = vmatmul.mubr.bf16.gmra.mrb[40].mxu0 %v15156_v24  ;;  %5364 = vmatmul.mubr.bf16.gmra.mrb[40].mxu1 %v15156_v24 }
 0x528   : > { %5300 = vmatprep.mubr.bf16.mxu0 %v4601_v13  ;;  %5373 = vmatprep.mubr.bf16.mxu1 %v4601_v13 }
 0x529   : > { %5573 = vmatpush1.bf16.msra.mxu0 %v15188_v63  ;;  %5839 = vmatpush1.bf16.msra.mxu1 %v15188_v63 }
 0x52a   : > { %5574 = vmatprep.subr.bf16.mxu0 %v15192_v8  ;;  %5840 = vmatprep.subr.bf16.mxu1 %v15192_v8 }
 0x52d   : > { %5575 = vmatpush1.bf16.msra.mxu0 %v15198_v61  ;;  %5841 = vmatpush1.bf16.msra.mxu1 %v15198_v61 }
 0x52e   : > { %5576 = vmatprep.subr.bf16.mxu0 %v15202_v1  ;;  %5842 = vmatprep.subr.bf16.mxu1 %v15202_v1 }
 0x52f   : > { %5301 = vmatmul.mubr.bf16.gmra.mrb[44].mxu0 %v4600_v20  ;;  %5374 = vmatmul.mubr.bf16.gmra.mrb[44].mxu1 %v4600_v20 }
 0x530   : > { %5596 = vmatprep.mubr.bf16.mxu0 %v14094_v18  ;;  %5862 = vmatprep.mubr.bf16.mxu1 %v14094_v18 }
 0x531   : > { %5577 = vmatpush1.bf16.msra.mxu0 %v15206_v62  ;;  %5843 = vmatpush1.bf16.msra.mxu1 %v15206_v62 }
 0x532   : > { %5578 = vmatprep.subr.bf16.mxu0 %v15210_v11  ;;  %5844 = vmatprep.subr.bf16.mxu1 %v15210_v11 }
 0x535   : > { %5579 = vmatpush1.bf16.msra.mxu0 %v15216_v57  ;;  %5845 = vmatpush1.bf16.msra.mxu1 %v15216_v57 }
 0x536   : > { %6095 = vmatprep.subr.bf16.mxu0 %v15142_v28  ;;  %6360 = vmatprep.subr.bf16.mxu1 %v15142_v28 }
 0x56a   : > { %v5054_v56 = vpop.f32.mrb[16].mxu0  ;;  %v5127_v2 = vpop.f32.mrb[16].mxu1 }
 0x56b   : > { %v5055_v5 = vadd.f32 %v5054_v56, %v15225_v53  ;;  %v5128_v15 = vadd.f32 %v5127_v2, %v15228_v54  ;;  %v5056_v28 = vpop.f32.mrb[17].mxu0  ;;  %v5129_v21 = vpop.f32.mrb[17].mxu1 }
 0x56c   : > { %v5057_v22 = vadd.f32 %v5056_v28, %v15231_v55  ;;  %v5130_v23 = vadd.f32 %v5129_v21, %v15234_v60  ;;  %v5058_v24 = vpop.f32.mrb[18].mxu0  ;;  %v5131_v25 = vpop.f32.mrb[18].mxu1 }
 0x56d   : > { %v5059_v26 = vadd.f32 %v5058_v24, %v15225_v53  ;;  %v5132_v29 = vadd.f32 %v5131_v25, %v15228_v54  ;;  %v5060_v36 = vpop.f32.mrb[19].mxu0  ;;  %v5133_v46 = vpop.f32.mrb[19].mxu1  ;;  %v5166_v32 = vmax.f32 %v5055_v5, 0.0  ;;  %v5168_v38 = vmax.f32 %v5128_v15, 0.0 }
 0x56e   : > { %v5061_v30 = vadd.f32 %v5060_v36, %v15231_v55  ;;  %v5134_v31 = vadd.f32 %v5133_v46, %v15234_v60  ;;  %v5167_v59 = vmax.f32 %v5057_v22, 0.0  ;;  %v5169_v35 = vmax.f32 %v5130_v23, 0.0 }
 0x56f   : > { %v5170_v33 = vmax.f32 %v5059_v26, 0.0  ;;  %v5172_v34 = vmax.f32 %v5132_v29, 0.0 }
 0x570   : > { %v5171_v37 = vmax.f32 %v5061_v30, 0.0  ;;  %v5173_v10 = vmax.f32 %v5134_v31, 0.0 }
 0x571   : > { %v5198_v39 = vpack.c.bf16 %v5170_v33, %v5166_v32  ;;  %v15244_v41 = vpack.c.bf16 %v5172_v34, %v5168_v38 }
 0x572   : > { %v5206_v43 = vpack.c.bf16 %v5171_v37, %v5167_v59  ;;  %v15246_v44 = vpack.c.bf16 %v5173_v10, %v5169_v35  ;;  %v5064_v45 = vpop.f32.mrb[20].mxu0  ;;  %v5137_v48 = vpop.f32.mrb[20].mxu1 }
 0x573   : > { %v5065_v49 = vadd.f32 %v5064_v45, %v15225_v53  ;;  %v5138_v50 = vadd.f32 %v5137_v48, %v15228_v54  ;;  %v5066_v7 = vpop.f32.mrb[21].mxu0  ;;  %v5139_v9 = vpop.f32.mrb[21].mxu1  ;;  %5597 = vmatmul.mubr.bf16.vlgmr.msra.gmra.mrb[48].mxu0 %v5198_v39 }
 0x574   : > { %v5067_v14 = vadd.f32 %v5066_v7, %v15231_v55  ;;  %v5140_v17 = vadd.f32 %v5139_v9, %v15234_v60  ;;  %v5068_v20 = vpop.f32.mrb[22].mxu0  ;;  %v5141_v6 = vpop.f32.mrb[22].mxu1  ;;  %5863 = vmatmul.mubr.bf16.vlgmr.msra.gmra.mrb[48].mxu1 %v5206_v43  ;;  %5606 = vmatprep.mubr.bf16.mxu0 %v14094_v18 }
 0x575   : > { %v5069_v13 = vadd.f32 %v5068_v20, %v15225_v53  ;;  %v5142_v12 = vadd.f32 %v5141_v6, %v15228_v54  ;;  %v5070_v52 = vpop.f32.mrb[23].mxu0  ;;  %v5143_v40 = vpop.f32.mrb[23].mxu1  ;;  %5872 = vmatprep.mubr.bf16.mxu1 %v14094_v18  ;;  %6096 = vmatpush1.bf16.msra.mxu0 %v15158_v27  ;;  %v5174_v5 = vmax.f32 %v5065_v49, 0.0  ;;  %v5176_v15 = vmax.f32 %v5138_v50, 0.0 }
 0x576   : > { %v5071_v56 = vadd.f32 %v5070_v52, %v15231_v55  ;;  %v5144_v2 = vadd.f32 %v5143_v40, %v15234_v60  ;;  %6097 = vmatprep.subr.bf16.mxu0 %v15160_v0  ;;  %6361 = vmatpush1.bf16.msra.mxu1 %v15158_v27  ;;  %v5175_v22 = vmax.f32 %v5067_v14, 0.0  ;;  %v5177_v23 = vmax.f32 %v5140_v17, 0.0 }
 0x577   : > { %v5178_v28 = vmax.f32 %v5069_v13, 0.0  ;;  %v5180_v21 = vmax.f32 %v5142_v12, 0.0  ;;  %6362 = vmatprep.subr.bf16.mxu1 %v15160_v0 }
 0x578   : > { %v5179_v24 = vmax.f32 %v5071_v56, 0.0  ;;  %v5181_v25 = vmax.f32 %v5144_v2, 0.0 }
 0x579   : > { %v5199_v26 = vpack.c.bf16 %v5178_v28, %v5174_v5  ;;  %v15262_v29 = vpack.c.bf16 %v5180_v21, %v5176_v15  ;;  %6098 = vmatpush1.bf16.msra.mxu0 %v15164_v42 }
 0x57a   : > { %v5207_v36 = vpack.c.bf16 %v5179_v24, %v5175_v22  ;;  %v15265_v46 = vpack.c.bf16 %v5181_v25, %v5177_v23  ;;  %v5074_v30 = vpop.f32.mrb[24].mxu0  ;;  %v5147_v27 = vpop.f32.mrb[24].mxu1  ;;  %6099 = vmatprep.subr.bf16.mxu0 %v15168_v47  ;;  %6363 = vmatpush1.bf16.msra.mxu1 %v15164_v42 }
 0x57b   : > { %v5075_v0 = vadd.f32 %v5074_v30, %v15225_v53  ;;  %v5148_v31 = vadd.f32 %v5147_v27, %v15228_v54  ;;  %v5076_v32 = vpop.f32.mrb[25].mxu0  ;;  %v5149_v38 = vpop.f32.mrb[25].mxu1  ;;  %5607 = vmatmul.mubr.bf16.gmra.mrb[52].mxu0 %v5199_v26  ;;  %6364 = vmatprep.subr.bf16.mxu1 %v15168_v47 }
 0x57c   : > { %v5077_v33 = vadd.f32 %v5076_v32, %v15231_v55  ;;  %v5150_v34 = vadd.f32 %v5149_v38, %v15234_v60  ;;  %v5078_v59 = vpop.f32.mrb[26].mxu0  ;;  %v5151_v35 = vpop.f32.mrb[26].mxu1  ;;  %5873 = vmatmul.mubr.bf16.gmra.mrb[52].mxu1 %v5207_v36  ;;  %5616 = vmatprep.mubr.bf16.mxu0 %v14094_v18 }
 0x57d   : > { %v5079_v42 = vadd.f32 %v5078_v59, %v15225_v53  ;;  %v5152_v37 = vadd.f32 %v5151_v35, %v15228_v54  ;;  %v5080_v10 = vpop.f32.mrb[27].mxu0  ;;  %v5153_v39 = vpop.f32.mrb[27].mxu1  ;;  %5882 = vmatprep.mubr.bf16.mxu1 %v14094_v18  ;;  %6100 = vmatpush1.bf16.msra.mxu0 %v15173_v19  ;;  %v5182_v45 = vmax.f32 %v5075_v0, 0.0  ;;  %v5184_v48 = vmax.f32 %v5148_v31, 0.0 }
 0x57e   : > { %v5081_v47 = vadd.f32 %v5080_v10, %v15231_v55  ;;  %v5154_v43 = vadd.f32 %v5153_v39, %v15234_v60  ;;  %6101 = vmatprep.subr.bf16.mxu0 %v15176_v4  ;;  %6365 = vmatpush1.bf16.msra.mxu1 %v15173_v19  ;;  %v5183_v7 = vmax.f32 %v5077_v33, 0.0  ;;  %v5185_v9 = vmax.f32 %v5150_v34, 0.0 }
 0x57f   : > { %v5186_v49 = vmax.f32 %v5079_v42, 0.0  ;;  %v5188_v50 = vmax.f32 %v5152_v37, 0.0  ;;  %6366 = vmatprep.subr.bf16.mxu1 %v15176_v4 }
 0x580   : > { %v5187_v14 = vmax.f32 %v5081_v47, 0.0  ;;  %v5189_v17 = vmax.f32 %v5154_v43, 0.0 }
 0x581   : > { %v5200_v20 = vpack.c.bf16 %v5186_v49, %v5182_v45  ;;  %v15284_v6 = vpack.c.bf16 %v5188_v50, %v5184_v48  ;;  %6102 = vmatpush1.bf16.msra.mxu0 %v15180_v3 }
 0x582   : > { %v5208_v13 = vpack.c.bf16 %v5187_v14, %v5183_v7  ;;  %v15287_v12 = vpack.c.bf16 %v5189_v17, %v5185_v9  ;;  %v5084_v52 = vpop.f32.mrb[28].mxu0  ;;  %v5157_v19 = vpop.f32.mrb[28].mxu1  ;;  %6103 = vmatprep.subr.bf16.mxu0 %v15184_v16  ;;  %6367 = vmatpush1.bf16.msra.mxu1 %v15180_v3 }
 0x583   : > { %v5085_v4 = vadd.f32 %v5084_v52, %v15225_v53  ;;  %v5158_v40 = vadd.f32 %v5157_v19, %v15228_v54  ;;  %v5086_v56 = vpop.f32.mrb[29].mxu0  ;;  %v5159_v2 = vpop.f32.mrb[29].mxu1  ;;  %5617 = vmatmul.mubr.bf16.gmra.mrb[56].mxu0 %v5200_v20  ;;  %6368 = vmatprep.subr.bf16.mxu1 %v15184_v16 }
 0x584   : > { %v5087_v5 = vadd.f32 %v5086_v56, %v15231_v55  ;;  %v5160_v15 = vadd.f32 %v5159_v2, %v15234_v60  ;;  %v5088_v28 = vpop.f32.mrb[30].mxu0  ;;  %v5161_v21 = vpop.f32.mrb[30].mxu1  ;;  %5883 = vmatmul.mubr.bf16.gmra.mrb[56].mxu1 %v5208_v13  ;;  %5626 = vmatprep.mubr.bf16.mxu0 %v14094_v18 }
 0x585   : > { %v5089_v3 = vadd.f32 %v5088_v28, %v15225_v53  ;;  %v5162_v22 = vadd.f32 %v5161_v21, %v15228_v54  ;;  %v5090_v23 = vpop.f32.mrb[31].mxu0  ;;  %v5163_v24 = vpop.f32.mrb[31].mxu1  ;;  %5892 = vmatprep.mubr.bf16.mxu1 %v14094_v18  ;;  %6104 = vmatpush1.bf16.msra.mxu0 %v15188_v63  ;;  %v5190_v26 = vmax.f32 %v5085_v4, 0.0  ;;  %v5192_v36 = vmax.f32 %v5158_v40, 0.0 }
 0x586   : > { %v5091_v16 = vadd.f32 %v5090_v23, %v15231_v55  ;;  %v5164_v25 = vadd.f32 %v5163_v24, %v15234_v60  ;;  %6105 = vmatprep.subr.bf16.mxu0 %v15192_v8  ;;  %6369 = vmatpush1.bf16.msra.mxu1 %v15188_v63  ;;  %v5191_v0 = vmax.f32 %v5087_v5, 0.0  ;;  %v5193_v31 = vmax.f32 %v5160_v15, 0.0  ;;  %v15322_v63 = vld [vmem:[#allocation19] sm:$0xff]  }
 0x587   : > { %v5194_v30 = vmax.f32 %v5089_v3, 0.0  ;;  %v5196_v27 = vmax.f32 %v5162_v22, 0.0  ;;  %6370 = vmatprep.subr.bf16.mxu1 %v15192_v8 }
 0x588   : > { %v5195_v32 = vmax.f32 %v5091_v16, 0.0  ;;  %v5197_v38 = vmax.f32 %v5164_v25, 0.0 }
 0x589   : > { %v5201_v33 = vpack.c.bf16 %v5194_v30, %v5190_v26  ;;  %v15306_v34 = vpack.c.bf16 %v5196_v27, %v5192_v36  ;;  %6106 = vmatpush1.bf16.msra.mxu0 %v15198_v61 }
 0x58a   : > { %v5209_v59 = vpack.c.bf16 %v5195_v32, %v5191_v0  ;;  %v15309_v35 = vpack.c.bf16 %v5197_v38, %v5193_v31  ;;  %6107 = vmatprep.subr.bf16.mxu0 %v15202_v1  ;;  %6371 = vmatpush1.bf16.msra.mxu1 %v15198_v61 }
 0x58b   : > { %5627 = vmatmul.mubr.bf16.gmra.mrb[60].mxu0 %v5201_v33  ;;  %6372 = vmatprep.subr.bf16.mxu1 %v15202_v1 }
 0x58c   : > { %5893 = vmatmul.mubr.bf16.gmra.mrb[60].mxu1 %v5209_v59  ;;  %5636 = vmatprep.mubr.bf16.mxu0 %v14094_v18 }
 0x58d   : > { %5902 = vmatprep.mubr.bf16.mxu1 %v14094_v18  ;;  %6108 = vmatpush1.bf16.msra.mxu0 %v15206_v62 }
 0x58e   : > { %6109 = vmatprep.subr.bf16.mxu0 %v15210_v11  ;;  %6373 = vmatpush1.bf16.msra.mxu1 %v15206_v62 }
 0x58f   : > { %6374 = vmatprep.subr.bf16.mxu1 %v15210_v11 }
 0x591   : > { %6110 = vmatpush1.bf16.msra.mxu0 %v15216_v57 }
 0x592   : > { %6375 = vmatpush1.bf16.msra.mxu1 %v15216_v57  ;;  %12616 = vmatprep.subr.bf16.mxu0 %v15322_v63 }
 0x593   : > { %12656 = vmatprep.subr.bf16.mxu1 %v15322_v63 }
 0x5ea   : > { %v5272_v8 = vpop.f32.mrb[32].mxu0  ;;  %v5345_v61 = vpop.f32.mrb[32].mxu1 }
 0x5eb   : > { %v5273_v1 = vadd.f32 %v5272_v8, %v15225_v53  ;;  %v5346_v42 = vadd.f32 %v5345_v61, %v15228_v54  ;;  %v5274_v37 = vpop.f32.mrb[33].mxu0  ;;  %v5347_v62 = vpop.f32.mrb[33].mxu1 }
 0x5ec   : > { %v5275_v11 = vadd.f32 %v5274_v37, %v15231_v55  ;;  %v5348_v10 = vadd.f32 %v5347_v62, %v15234_v60  ;;  %v5276_v39 = vpop.f32.mrb[34].mxu0  ;;  %v5349_v57 = vpop.f32.mrb[34].mxu1 }
 0x5ed   : > { %v5277_v47 = vadd.f32 %v5276_v39, %v15225_v53  ;;  %v5350_v43 = vadd.f32 %v5349_v57, %v15228_v54  ;;  %v5278_v45 = vpop.f32.mrb[35].mxu0  ;;  %v5351_v48 = vpop.f32.mrb[35].mxu1  ;;  %v5384_v7 = vmax.f32 %v5273_v1, 0.0  ;;  %v5386_v9 = vmax.f32 %v5346_v42, 0.0 }
 0x5ee   : > { %v5279_v49 = vadd.f32 %v5278_v45, %v15231_v55  ;;  %v5352_v50 = vadd.f32 %v5351_v48, %v15234_v60  ;;  %v5385_v20 = vmax.f32 %v5275_v11, 0.0  ;;  %v5387_v13 = vmax.f32 %v5348_v10, 0.0 }
 0x5ef   : > { %v5388_v14 = vmax.f32 %v5277_v47, 0.0  ;;  %v5390_v17 = vmax.f32 %v5350_v43, 0.0 }
 0x5f0   : > { %v5389_v52 = vmax.f32 %v5279_v49, 0.0  ;;  %v5391_v19 = vmax.f32 %v5352_v50, 0.0 }
 0x5f1   : > { %v5416_v4 = vpack.c.bf16 %v5388_v14, %v5384_v7  ;;  %v15334_v40 = vpack.c.bf16 %v5390_v17, %v5386_v9 }
 0x5f2   : > { %v5424_v56 = vpack.c.bf16 %v5389_v52, %v5385_v20  ;;  %v15336_v2 = vpack.c.bf16 %v5391_v19, %v5387_v13  ;;  %v5282_v5 = vpop.f32.mrb[36].mxu0  ;;  %v5355_v15 = vpop.f32.mrb[36].mxu1 }
 0x5f3   : > { %v5283_v28 = vadd.f32 %v5282_v5, %v15225_v53  ;;  %v5356_v21 = vadd.f32 %v5355_v15, %v15228_v54  ;;  %v5284_v3 = vpop.f32.mrb[37].mxu0  ;;  %v5357_v22 = vpop.f32.mrb[37].mxu1  ;;  %5637 = vmatmul.mubr.bf16.gmra.mrb[64].mxu0 %v5416_v4 }
 0x5f4   : > { %v5285_v23 = vadd.f32 %v5284_v3, %v15231_v55  ;;  %v5358_v24 = vadd.f32 %v5357_v22, %v15234_v60  ;;  %v5286_v16 = vpop.f32.mrb[38].mxu0  ;;  %v5359_v25 = vpop.f32.mrb[38].mxu1  ;;  %5903 = vmatmul.mubr.bf16.gmra.mrb[64].mxu1 %v5424_v56  ;;  %5646 = vmatprep.mubr.bf16.mxu0 %v14094_v18 }
 0x5f5   : > { %v5287_v26 = vadd.f32 %v5286_v16, %v15225_v53  ;;  %v5360_v36 = vadd.f32 %v5359_v25, %v15228_v54  ;;  %v5288_v30 = vpop.f32.mrb[39].mxu0  ;;  %v5361_v27 = vpop.f32.mrb[39].mxu1  ;;  %5912 = vmatprep.mubr.bf16.mxu1 %v14094_v18  ;;  %v5392_v32 = vmax.f32 %v5283_v28, 0.0  ;;  %v5394_v38 = vmax.f32 %v5356_v21, 0.0 }
 0x5f6   : > { %v5289_v0 = vadd.f32 %v5288_v30, %v15231_v55  ;;  %v5362_v31 = vadd.f32 %v5361_v27, %v15234_v60  ;;  %v5393_v8 = vmax.f32 %v5285_v23, 0.0  ;;  %v5395_v61 = vmax.f32 %v5358_v24, 0.0 }
 0x5f7   : > { %v5396_v33 = vmax.f32 %v5287_v26, 0.0  ;;  %v5398_v59 = vmax.f32 %v5360_v36, 0.0 }
 0x5f8   : > { %v5397_v1 = vmax.f32 %v5289_v0, 0.0  ;;  %v5399_v42 = vmax.f32 %v5362_v31, 0.0 }
 0x5f9   : > { %v5417_v37 = vpack.c.bf16 %v5396_v33, %v5392_v32  ;;  %v15348_v62 = vpack.c.bf16 %v5398_v59, %v5394_v38 }
 0x5fa   : > { %v5425_v11 = vpack.c.bf16 %v5397_v1, %v5393_v8  ;;  %v15350_v10 = vpack.c.bf16 %v5399_v42, %v5395_v61  ;;  %v5292_v39 = vpop.f32.mrb[40].mxu0  ;;  %v5365_v57 = vpop.f32.mrb[40].mxu1 }
 0x5fb   : > { %v5293_v47 = vadd.f32 %v5292_v39, %v15225_v53  ;;  %v5366_v43 = vadd.f32 %v5365_v57, %v15228_v54  ;;  %v5294_v45 = vpop.f32.mrb[41].mxu0  ;;  %v5367_v48 = vpop.f32.mrb[41].mxu1  ;;  %5647 = vmatmul.mubr.bf16.gmra.mrb[68].mxu0 %v5417_v37 }
 0x5fc   : > { %v5295_v49 = vadd.f32 %v5294_v45, %v15231_v55  ;;  %v5368_v50 = vadd.f32 %v5367_v48, %v15234_v60  ;;  %v5296_v7 = vpop.f32.mrb[42].mxu0  ;;  %v5369_v9 = vpop.f32.mrb[42].mxu1  ;;  %5913 = vmatmul.mubr.bf16.gmra.mrb[68].mxu1 %v5425_v11  ;;  %5656 = vmatprep.mubr.bf16.mxu0 %v14094_v18 }
 0x5fd   : > { %v5297_v14 = vadd.f32 %v5296_v7, %v15225_v53  ;;  %v5370_v17 = vadd.f32 %v5369_v9, %v15228_v54  ;;  %v5298_v20 = vpop.f32.mrb[43].mxu0  ;;  %v5371_v13 = vpop.f32.mrb[43].mxu1  ;;  %5922 = vmatprep.mubr.bf16.mxu1 %v14094_v18  ;;  %v5400_v4 = vmax.f32 %v5293_v47, 0.0  ;;  %v5402_v56 = vmax.f32 %v5366_v43, 0.0 }
 0x5fe   : > { %v5299_v52 = vadd.f32 %v5298_v20, %v15231_v55  ;;  %v5372_v19 = vadd.f32 %v5371_v13, %v15234_v60  ;;  %v5401_v28 = vmax.f32 %v5295_v49, 0.0  ;;  %v5403_v21 = vmax.f32 %v5368_v50, 0.0 }
 0x5ff   : > { %v5404_v5 = vmax.f32 %v5297_v14, 0.0  ;;  %v5406_v15 = vmax.f32 %v5370_v17, 0.0 }
 0x600   : > { %v5405_v3 = vmax.f32 %v5299_v52, 0.0  ;;  %v5407_v22 = vmax.f32 %v5372_v19, 0.0 }
 0x601   : > { %v5418_v23 = vpack.c.bf16 %v5404_v5, %v5400_v4  ;;  %v15362_v24 = vpack.c.bf16 %v5406_v15, %v5402_v56 }
 0x602   : > { %v5426_v16 = vpack.c.bf16 %v5405_v3, %v5401_v28  ;;  %v15364_v25 = vpack.c.bf16 %v5407_v22, %v5403_v21  ;;  %v5302_v26 = vpop.f32.mrb[44].mxu0  ;;  %v5375_v36 = vpop.f32.mrb[44].mxu1 }
 0x603   : > { %v5303_v30 = vadd.f32 %v5302_v26, %v15225_v53  ;;  %v5376_v27 = vadd.f32 %v5375_v36, %v15228_v54  ;;  %v5304_v0 = vpop.f32.mrb[45].mxu0  ;;  %v5377_v31 = vpop.f32.mrb[45].mxu1  ;;  %5657 = vmatmul.mubr.bf16.gmra.mrb[72].mxu0 %v5418_v23 }
 0x604   : > { %v5305_v32 = vadd.f32 %v5304_v0, %v15231_v55  ;;  %v5378_v38 = vadd.f32 %v5377_v31, %v15234_v60  ;;  %v5306_v33 = vpop.f32.mrb[46].mxu0  ;;  %v5379_v59 = vpop.f32.mrb[46].mxu1  ;;  %5923 = vmatmul.mubr.bf16.gmra.mrb[72].mxu1 %v5426_v16  ;;  %5666 = vmatprep.mubr.bf16.mxu0 %v14094_v18 }
 0x605   : > { %v5307_v8 = vadd.f32 %v5306_v33, %v15225_v53  ;;  %v5380_v61 = vadd.f32 %v5379_v59, %v15228_v54  ;;  %v5308_v1 = vpop.f32.mrb[47].mxu0  ;;  %v5381_v42 = vpop.f32.mrb[47].mxu1  ;;  %5932 = vmatprep.mubr.bf16.mxu1 %v14094_v18  ;;  %v5408_v39 = vmax.f32 %v5303_v30, 0.0  ;;  %v5410_v57 = vmax.f32 %v5376_v27, 0.0 }
 0x606   : > { %v5309_v37 = vadd.f32 %v5308_v1, %v15231_v55  ;;  %v5382_v11 = vadd.f32 %v5381_v42, %v15234_v60  ;;  %v5409_v45 = vmax.f32 %v5305_v32, 0.0  ;;  %v5411_v48 = vmax.f32 %v5378_v38, 0.0  ;;  %v15382_v55 = vld [vmem:[#allocation19 + $0x8] sm:$0xff]   ;;  %v15390_v60 = vld [vmem:[#allocation19 + $0x10] sm:$0xff]  }
 0x607   : > { %v5412_v47 = vmax.f32 %v5307_v8, 0.0  ;;  %v5414_v43 = vmax.f32 %v5380_v61, 0.0 }
 0x608   : > { %v5413_v49 = vmax.f32 %v5309_v37, 0.0  ;;  %v5415_v50 = vmax.f32 %v5382_v11, 0.0 }
 0x609   : > { %v5419_v7 = vpack.c.bf16 %v5412_v47, %v5408_v39  ;;  %v15376_v53 = vpack.c.bf16 %v5414_v43, %v5410_v57 }
 0x60a   : > { %v5427_v54 = vpack.c.bf16 %v5413_v49, %v5409_v45  ;;  %v15378_v9 = vpack.c.bf16 %v5415_v50, %v5411_v48 }
 0x60b   : > { %5667 = vmatmul.mubr.bf16.gmra.mrb[76].mxu0 %v5419_v7 }
 0x60c   : > { %5933 = vmatmul.mubr.bf16.gmra.mrb[76].mxu1 %v5427_v54  ;;  %6127 = vmatprep.mubr.bf16.mxu0 %v14094_v18 }
 0x60d   : > { %6392 = vmatprep.mubr.bf16.mxu1 %v14094_v18 }
 0x613   : > { %6128 = vmatmul.mubr.bf16.vlgmr.msra.gmra.mrb[80].mxu0 %v15244_v41  ;;  %v15396_v41 = vld [vmem:[#allocation19 + $0x18] sm:$0xff]  }
 0x614   : > { %6393 = vmatmul.mubr.bf16.vlgmr.msra.gmra.mrb[80].mxu1 %v15246_v44  ;;  %6137 = vmatprep.mubr.bf16.mxu0 %v14094_v18  ;;  %v5464_v44 = vld [vmem:[#allocation17] sm:$0x3] }
 0x615   : > { %6402 = vmatprep.mubr.bf16.mxu1 %v14094_v18  ;;  %12617 = vmatpush3.bf16.msra.mxu0 %v15322_v63 }
 0x616   : > { %12618 = vmatprep.subr.bf16.mxu0 %v15382_v55  ;;  %12657 = vmatpush3.bf16.msra.mxu1 %v15322_v63 }
 0x617   : > { %12658 = vmatprep.subr.bf16.mxu1 %v15382_v55 }
 0x619   : > { %12619 = vmatpush3.bf16.msra.mxu0 %v15382_v55 }
 0x61a   : > { %12620 = vmatprep.subr.bf16.mxu0 %v15390_v60  ;;  %12659 = vmatpush3.bf16.msra.mxu1 %v15382_v55 }
 0x61b   : > { %6138 = vmatmul.mubr.bf16.gmra.mrb[84].mxu0 %v15262_v29  ;;  %12660 = vmatprep.subr.bf16.mxu1 %v15390_v60  ;;  %v15430_v29 = vrot.slane %v5464_v44, %v17249_v58 }
 0x61c   : > { %6403 = vmatmul.mubr.bf16.gmra.mrb[84].mxu1 %v15265_v46  ;;  %6147 = vmatprep.mubr.bf16.mxu0 %v14094_v18  ;;  %v15434_v46 = vrot.slane %v5464_v44, %v17251_v51 }
 0x61d   : > { %6412 = vmatprep.mubr.bf16.mxu1 %v14094_v18  ;;  %12621 = vmatpush3.bf16.msra.mxu0 %v15390_v60 }
 0x61e   : > { %12622 = vmatprep.subr.bf16.mxu0 %v15396_v41  ;;  %12661 = vmatpush3.bf16.msra.mxu1 %v15390_v60 }
 0x61f   : > { %12662 = vmatprep.subr.bf16.mxu1 %v15396_v41 }
 0x621   : > { %12623 = vmatpush3.bf16.msra.mxu0 %v15396_v41 }
 0x622   : > { %12663 = vmatpush3.bf16.msra.mxu1 %v15396_v41  ;;  %12696 = vmatprep.subr.bf16.mxu0 %v15322_v63 }
 0x623   : > { %6148 = vmatmul.mubr.bf16.gmra.mrb[88].mxu0 %v15284_v6  ;;  %12736 = vmatprep.subr.bf16.mxu1 %v15322_v63 }
 0x624   : > { %6413 = vmatmul.mubr.bf16.gmra.mrb[88].mxu1 %v15287_v12  ;;  %6157 = vmatprep.mubr.bf16.mxu0 %v14094_v18 }
 0x625   : > { %6422 = vmatprep.mubr.bf16.mxu1 %v14094_v18 }
 0x62b   : > { %6158 = vmatmul.mubr.bf16.gmra.mrb[92].mxu0 %v15306_v34 }
 0x62c   : > { %6423 = vmatmul.mubr.bf16.gmra.mrb[92].mxu1 %v15309_v35  ;;  %6167 = vmatprep.mubr.bf16.mxu0 %v14094_v18 }
 0x62d   : > { %6432 = vmatprep.mubr.bf16.mxu1 %v14094_v18 }
 0x633   : > { %6168 = vmatmul.mubr.bf16.gmra.mrb[96].mxu0 %v15334_v40 }
 0x634   : > { %6433 = vmatmul.mubr.bf16.gmra.mrb[96].mxu1 %v15336_v2  ;;  %6177 = vmatprep.mubr.bf16.mxu0 %v14094_v18 }
 0x635   : > { %6442 = vmatprep.mubr.bf16.mxu1 %v14094_v18 }
 0x63b   : > { %6178 = vmatmul.mubr.bf16.gmra.mrb[100].mxu0 %v15348_v62 }
 0x63c   : > { %6443 = vmatmul.mubr.bf16.gmra.mrb[100].mxu1 %v15350_v10  ;;  %6187 = vmatprep.mubr.bf16.mxu0 %v14094_v18 }
 0x63d   : > { %6452 = vmatprep.mubr.bf16.mxu1 %v14094_v18 }
 0x643   : > { %6188 = vmatmul.mubr.bf16.gmra.mrb[104].mxu0 %v15362_v24 }
 0x644   : > { %6453 = vmatmul.mubr.bf16.gmra.mrb[104].mxu1 %v15364_v25  ;;  %6197 = vmatprep.mubr.bf16.mxu0 %v14094_v18 }
 0x645   : > { %6462 = vmatprep.mubr.bf16.mxu1 %v14094_v18 }
 0x646   : > { %v5598_v6 = vpop.f32.mrb[48].mxu0 }
 0x647   : > { %v5599_v12 = vadd.f32 %v5598_v6, %v15430_v29  ;;  %v5600_v34 = vpop.f32.mrb[49].mxu0  ;;  %v5864_v35 = vpop.f32.mrb[48].mxu1 }
 0x648   : > { %v5601_v40 = vadd.f32 %v5600_v34, %v15434_v46  ;;  %v5865_v2 = vadd.f32 %v5864_v35, %v15430_v29  ;;  %v5602_v58 = vpop.f32.mrb[50].mxu0  ;;  %v5866_v62 = vpop.f32.mrb[49].mxu1 }
 0x649   : > { %v5603_v10 = vadd.f32 %v5602_v58, %v15430_v29  ;;  %v5867_v51 = vadd.f32 %v5866_v62, %v15434_v46  ;;  %v5604_v14 = vpop.f32.mrb[51].mxu0  ;;  %v5868_v17 = vpop.f32.mrb[50].mxu1  ;;  %v5677_v52 = vmax.f32 %v5599_v12, 0.0 }
 0x64a   : > { %v5605_v20 = vadd.f32 %v5604_v14, %v15434_v46  ;;  %v5869_v18 = vadd.f32 %v5868_v17, %v15430_v29  ;;  %v5870_v13 = vpop.f32.mrb[51].mxu1  ;;  %v5678_v56 = vmax.f32 %v5601_v40, 0.0  ;;  %v5943_v5 = vmax.f32 %v5865_v2, 0.0 }
 0x64b   : > { %v5679_v19 = vmax.f32 %v5603_v10, 0.0  ;;  %v5871_v4 = vadd.f32 %v5870_v13, %v15434_v46  ;;  %6198 = vmatmul.mubr.bf16.gmra.mrb[108].mxu0 %v15376_v53  ;;  %v5944_v21 = vmax.f32 %v5867_v51, 0.0 }
 0x64c   : > { %v5680_v15 = vmax.f32 %v5605_v20, 0.0  ;;  %v5945_v28 = vmax.f32 %v5869_v18, 0.0  ;;  %6463 = vmatmul.mubr.bf16.gmra.mrb[108].mxu1 %v15378_v9 }
 0x64d   : > { %v5946_v3 = vmax.f32 %v5871_v4, 0.0  ;;  %v5709_v22 = vpack.c.bf16 %v5679_v19, %v5677_v52 }
 0x64e   : > { %v15448_v23 = vpack.c.bf16 %v5680_v15, %v5678_v56  ;;  %v15450_v24 = vpack.c.bf16 %v5945_v28, %v5943_v5  ;;  %v5608_v16 = vpop.f32.mrb[52].mxu0 }
 0x64f   : > { %v15452_v25 = vpack.c.bf16 %v5946_v3, %v5944_v21  ;;  %v5609_v26 = vadd.f32 %v5608_v16, %v15430_v29  ;;  %v5610_v36 = vpop.f32.mrb[53].mxu0  ;;  %v5874_v30 = vpop.f32.mrb[52].mxu1  ;;  %5734 = vrot.lane.b32.xlu0 %v5709_v22, %s14095_s27  ;;  %5718 = vst.msk [vmem:[#allocation5] sm:$0xff] %vm5717_vm0, %v5709_v22 }
 0x650   : > { %5774 = vst.msk [vmem:[#allocation5 + $0x200] sm:$0xff] %vm5717_vm0, %v15448_v23  ;;  %5983 = vst.msk [vmem:[#allocation5 + $0x40] sm:$0xff] %vm5717_vm0, %v15450_v24  ;;  %v5611_v27 = vadd.f32 %v5610_v36, %v15434_v46  ;;  %v5875_v0 = vadd.f32 %v5874_v30, %v15430_v29  ;;  %v5612_v31 = vpop.f32.mrb[54].mxu0  ;;  %v5876_v32 = vpop.f32.mrb[53].mxu1 }
 0x651   : > { %6039 = vst.msk [vmem:[#allocation5 + $0x240] sm:$0xff] %vm5717_vm0, %v15452_v25  ;;  %v5613_v38 = vadd.f32 %v5612_v31, %v15430_v29  ;;  %v5877_v33 = vadd.f32 %v5876_v32, %v15434_v46  ;;  %v5614_v59 = vpop.f32.mrb[55].mxu0  ;;  %v5878_v8 = vpop.f32.mrb[54].mxu1  ;;  %v5681_v37 = vmax.f32 %v5609_v26, 0.0 }
 0x652   : > { %v5615_v61 = vadd.f32 %v5614_v59, %v15434_v46  ;;  %v5879_v1 = vadd.f32 %v5878_v8, %v15430_v29  ;;  %v5880_v42 = vpop.f32.mrb[55].mxu1  ;;  %v5682_v57 = vmax.f32 %v5611_v27, 0.0  ;;  %v5947_v47 = vmax.f32 %v5875_v0, 0.0 }
 0x653   : > { %v5683_v11 = vmax.f32 %v5613_v38, 0.0  ;;  %v5881_v39 = vadd.f32 %v5880_v42, %v15434_v46  ;;  %v5948_v48 = vmax.f32 %v5877_v33, 0.0 }
 0x654   : > { %v5684_v43 = vmax.f32 %v5615_v61, 0.0  ;;  %v5949_v45 = vmax.f32 %v5879_v1, 0.0 }
 0x655   : > { %v5950_v49 = vmax.f32 %v5881_v39, 0.0  ;;  %v5710_v50 = vpack.c.bf16 %v5683_v11, %v5681_v37 }
 0x656   : > { %v15470_v7 = vpack.c.bf16 %v5684_v43, %v5682_v57  ;;  %v15472_v53 = vpack.c.bf16 %v5949_v45, %v5947_v47  ;;  %v5618_v54 = vpop.f32.mrb[56].mxu0  ;;  %v6627_v9 = vld [vmem:[#allocation5] sm:$0xff] }
 0x657   : > { %v15474_v44 = vpack.c.bf16 %v5950_v49, %v5948_v48  ;;  %v5619_v6 = vadd.f32 %v5618_v54, %v15430_v29  ;;  %v5620_v12 = vpop.f32.mrb[57].mxu0  ;;  %v5884_v34 = vpop.f32.mrb[56].mxu1  ;;  %5736 = vrot.lane.b32.xlu1 %v5710_v50, %s14095_s27  ;;  %5719 = vst.msk [vmem:[#allocation5 + $0x8] sm:$0xff] %vm5717_vm0, %v5710_v50  ;;  %12624 = vmatprep.mubr.msk.bf16.mxu0 %vm5717_vm0, %v6627_v9 }
 0x658   : > { %5775 = vst.msk [vmem:[#allocation5 + $0x208] sm:$0xff] %vm5717_vm0, %v15470_v7  ;;  %5984 = vst.msk [vmem:[#allocation5 + $0x48] sm:$0xff] %vm5717_vm0, %v15472_v53  ;;  %v5621_v35 = vadd.f32 %v5620_v12, %v15434_v46  ;;  %v5885_v40 = vadd.f32 %v5884_v34, %v15430_v29  ;;  %v5622_v2 = vpop.f32.mrb[58].mxu0  ;;  %v5886_v58 = vpop.f32.mrb[57].mxu1 }
 0x659   : > { %6040 = vst.msk [vmem:[#allocation5 + $0x248] sm:$0xff] %vm5717_vm0, %v15474_v44  ;;  %v5623_v62 = vadd.f32 %v5622_v2, %v15430_v29  ;;  %v5887_v10 = vadd.f32 %v5886_v58, %v15434_v46  ;;  %v5624_v51 = vpop.f32.mrb[59].mxu0  ;;  %v5888_v14 = vpop.f32.mrb[58].mxu1  ;;  %v5685_v13 = vmax.f32 %v5619_v6, 0.0 }
 0x65a   : > { %v5625_v17 = vadd.f32 %v5624_v51, %v15434_v46  ;;  %v5889_v20 = vadd.f32 %v5888_v14, %v15430_v29  ;;  %v5890_v18 = vpop.f32.mrb[59].mxu1  ;;  %v5686_v4 = vmax.f32 %v5621_v35, 0.0  ;;  %v5951_v56 = vmax.f32 %v5885_v40, 0.0 }
 0x65b   : > { %v5687_v52 = vmax.f32 %v5623_v62, 0.0  ;;  %v5891_v19 = vadd.f32 %v5890_v18, %v15434_v46  ;;  %v5952_v21 = vmax.f32 %v5887_v10, 0.0 }
 0x65c   : > { %v5688_v5 = vmax.f32 %v5625_v17, 0.0  ;;  %v5953_v15 = vmax.f32 %v5889_v20, 0.0 }
 0x65d   : > { %v15493_v28 = vpack.c.bf16 %v5687_v52, %v5685_v13  ;;  %v5954_v3 = vmax.f32 %v5891_v19, 0.0 }
 0x65e   : > { %v15495_v22 = vpack.c.bf16 %v5688_v5, %v5686_v4  ;;  %v15497_v16 = vpack.c.bf16 %v5953_v15, %v5951_v56  ;;  %v5628_v26 = vpop.f32.mrb[60].mxu0  ;;  %v6628_v36 = vld [vmem:[#allocation5 + $0x8] sm:$0xff] }
 0x65f   : > { %5720 = vst.msk [vmem:[#allocation5 + $0x10] sm:$0xff] %vm5717_vm0, %v15493_v28  ;;  %v15501_v30 = vpack.c.bf16 %v5954_v3, %v5952_v21  ;;  %v5629_v27 = vadd.f32 %v5628_v26, %v15430_v29  ;;  %v5630_v0 = vpop.f32.mrb[61].mxu0  ;;  %v5894_v31 = vpop.f32.mrb[60].mxu1  ;;  %12625 = vmatmul.mubr.msk.bf16.vlgmr.msra.gmra.mrb[112].mxu0 %vm5717_vm0, %v6628_v36 }
 0x660   : > { %5776 = vst.msk [vmem:[#allocation5 + $0x210] sm:$0xff] %vm5717_vm0, %v15495_v22  ;;  %5985 = vst.msk [vmem:[#allocation5 + $0x50] sm:$0xff] %vm5717_vm0, %v15497_v16  ;;  %v5631_v32 = vadd.f32 %v5630_v0, %v15434_v46  ;;  %v5895_v38 = vadd.f32 %v5894_v31, %v15430_v29  ;;  %v5632_v33 = vpop.f32.mrb[62].mxu0  ;;  %v5896_v59 = vpop.f32.mrb[61].mxu1  ;;  %12697 = vmatpush3.bf16.msra.mxu0 %v15322_v63 }
 0x661   : > { %6041 = vst.msk [vmem:[#allocation5 + $0x250] sm:$0xff] %vm5717_vm0, %v15501_v30  ;;  %v5633_v8 = vadd.f32 %v5632_v33, %v15430_v29  ;;  %v5897_v61 = vadd.f32 %v5896_v59, %v15434_v46  ;;  %v5634_v1 = vpop.f32.mrb[63].mxu0  ;;  %v5898_v42 = vpop.f32.mrb[62].mxu1  ;;  %12698 = vmatprep.subr.bf16.mxu0 %v15382_v55  ;;  %v5689_v57 = vmax.f32 %v5629_v27, 0.0 }
 0x662   : > { %v5635_v37 = vadd.f32 %v5634_v1, %v15434_v46  ;;  %v5899_v11 = vadd.f32 %v5898_v42, %v15430_v29  ;;  %v5900_v39 = vpop.f32.mrb[63].mxu1  ;;  %v5690_v45 = vmax.f32 %v5631_v32, 0.0  ;;  %v5955_v48 = vmax.f32 %v5895_v38, 0.0 }
 0x663   : > { %v5691_v47 = vmax.f32 %v5633_v8, 0.0  ;;  %v5901_v43 = vadd.f32 %v5900_v39, %v15434_v46  ;;  %v5956_v9 = vmax.f32 %v5897_v61, 0.0 }
 0x664   : > { %v5692_v49 = vmax.f32 %v5635_v37, 0.0  ;;  %v5957_v50 = vmax.f32 %v5899_v11, 0.0  ;;  %12699 = vmatpush3.bf16.msra.mxu0 %v15382_v55 }
 0x665   : > { %v15521_v54 = vpack.c.bf16 %v5691_v47, %v5689_v57  ;;  %v5958_v6 = vmax.f32 %v5901_v43, 0.0  ;;  %12700 = vmatprep.subr.bf16.mxu0 %v15390_v60 }
 0x666   : > { %v15524_v12 = vpack.c.bf16 %v5692_v49, %v5690_v45  ;;  %v15526_v34 = vpack.c.bf16 %v5957_v50, %v5955_v48  ;;  %v6629_v35 = vld [vmem:[#allocation5 + $0x10] sm:$0xff] }
 0x667   : > { %5721 = vst.msk [vmem:[#allocation5 + $0x18] sm:$0xff] %vm5717_vm0, %v15521_v54  ;;  %v15530_v40 = vpack.c.bf16 %v5958_v6, %v5956_v9  ;;  %12628 = vmatprep.mubr.msk.bf16.mxu0 %vm5717_vm0, %v6629_v35 }
 0x668   : > { %5777 = vst.msk [vmem:[#allocation5 + $0x218] sm:$0xff] %vm5717_vm0, %v15524_v12  ;;  %5986 = vst.msk [vmem:[#allocation5 + $0x58] sm:$0xff] %vm5717_vm0, %v15526_v34  ;;  %12701 = vmatpush3.bf16.msra.mxu0 %v15390_v60 }
 0x669   : > { %6042 = vst.msk [vmem:[#allocation5 + $0x258] sm:$0xff] %vm5717_vm0, %v15530_v40  ;;  %12702 = vmatprep.subr.bf16.mxu0 %v15396_v41 }
 0x66c   : > { %12703 = vmatpush3.bf16.msra.mxu0 %v15396_v41 }
 0x66d   : > { %12776 = vmatprep.subr.bf16.mxu0 %v15322_v63 }
 0x66e   : > { %v6630_v2 = vld [vmem:[#allocation5 + $0x18] sm:$0xff] }
 0x66f   : > { %12629 = vmatmul.mubr.msk.bf16.gmra.mrb[116].mxu0 %vm5717_vm0, %v6630_v2 }
 0x6c1   : > { %v5735_v58 = vpop.permute.xlu0 %5734 }
 0x6c2   : > { %5758 = vst.msk [vmem:[#allocation5 + $0x100] sm:$0xff] %vm5717_vm0, %v5735_v58 }
 0x6c6   : > { %v5638_v62 = vpop.f32.mrb[64].mxu0 }
 0x6c7   : > { %v5639_v10 = vadd.f32 %v5638_v62, %v15430_v29  ;;  %v5640_v51 = vpop.f32.mrb[65].mxu0  ;;  %v5904_v14 = vpop.f32.mrb[64].mxu1 }
 0x6c8   : > { %v5641_v17 = vadd.f32 %v5640_v51, %v15434_v46  ;;  %v5905_v20 = vadd.f32 %v5904_v14, %v15430_v29  ;;  %v5642_v18 = vpop.f32.mrb[66].mxu0  ;;  %v5906_v13 = vpop.f32.mrb[65].mxu1 }
 0x6c9   : > { %v5643_v52 = vadd.f32 %v5642_v18, %v15430_v29  ;;  %v5907_v63 = vadd.f32 %v5906_v13, %v15434_v46  ;;  %v5644_v19 = vpop.f32.mrb[67].mxu0  ;;  %v5908_v4 = vpop.f32.mrb[66].mxu1  ;;  %v5693_v3 = vmax.f32 %v5639_v10, 0.0 }
 0x6ca   : > { %v5645_v56 = vadd.f32 %v5644_v19, %v15434_v46  ;;  %v5909_v5 = vadd.f32 %v5908_v4, %v15430_v29  ;;  %v5737_v15 = vpop.permute.xlu1 %5736  ;;  %v5910_v21 = vpop.f32.mrb[67].mxu1  ;;  %v5694_v27 = vmax.f32 %v5641_v17, 0.0  ;;  %v5959_v0 = vmax.f32 %v5905_v20, 0.0 }
 0x6cb   : > { %v5695_v26 = vmax.f32 %v5643_v52, 0.0  ;;  %5759 = vst.msk [vmem:[#allocation5 + $0x108] sm:$0xff] %vm5717_vm0, %v5737_v15  ;;  %v5911_v36 = vadd.f32 %v5910_v21, %v15434_v46  ;;  %v5960_v33 = vmax.f32 %v5907_v63, 0.0 }
 0x6cc   : > { %v5696_v31 = vmax.f32 %v5645_v56, 0.0  ;;  %v5961_v32 = vmax.f32 %v5909_v5, 0.0 }
 0x6cd   : > { %v15554_v38 = vpack.c.bf16 %v5695_v26, %v5693_v3  ;;  %v5962_v59 = vmax.f32 %v5911_v36, 0.0 }
 0x6ce   : > { %v15556_v8 = vpack.c.bf16 %v5696_v31, %v5694_v27  ;;  %v15558_v61 = vpack.c.bf16 %v5961_v32, %v5959_v0  ;;  %v5648_v1 = vpop.f32.mrb[68].mxu0 }
 0x6cf   : > { %5722 = vst.msk [vmem:[#allocation5 + $0x20] sm:$0xff] %vm5717_vm0, %v15554_v38  ;;  %v15562_v42 = vpack.c.bf16 %v5962_v59, %v5960_v33  ;;  %v5649_v37 = vadd.f32 %v5648_v1, %v15430_v29  ;;  %v5650_v11 = vpop.f32.mrb[69].mxu0  ;;  %v5914_v39 = vpop.f32.mrb[68].mxu1 }
 0x6d0   : > { %5778 = vst.msk [vmem:[#allocation5 + $0x220] sm:$0xff] %vm5717_vm0, %v15556_v8  ;;  %5987 = vst.msk [vmem:[#allocation5 + $0x60] sm:$0xff] %vm5717_vm0, %v15558_v61  ;;  %v5651_v57 = vadd.f32 %v5650_v11, %v15434_v46  ;;  %v5915_v47 = vadd.f32 %v5914_v39, %v15430_v29  ;;  %v5652_v43 = vpop.f32.mrb[70].mxu0  ;;  %v5916_v45 = vpop.f32.mrb[69].mxu1 }
 0x6d1   : > { %6043 = vst.msk [vmem:[#allocation5 + $0x260] sm:$0xff] %vm5717_vm0, %v15562_v42  ;;  %v5653_v48 = vadd.f32 %v5652_v43, %v15430_v29  ;;  %v5917_v49 = vadd.f32 %v5916_v45, %v15434_v46  ;;  %v5654_v50 = vpop.f32.mrb[71].mxu0  ;;  %v5918_v9 = vpop.f32.mrb[70].mxu1  ;;  %v5697_v58 = vmax.f32 %v5649_v37, 0.0 }
 0x6d2   : > { %v5655_v6 = vadd.f32 %v5654_v50, %v15434_v46  ;;  %v5919_v35 = vadd.f32 %v5918_v9, %v15430_v29  ;;  %v5920_v2 = vpop.f32.mrb[71].mxu1  ;;  %v5698_v51 = vmax.f32 %v5651_v57, 0.0  ;;  %v5963_v14 = vmax.f32 %v5915_v47, 0.0 }
 0x6d3   : > { %v5699_v62 = vmax.f32 %v5653_v48, 0.0  ;;  %v5921_v10 = vadd.f32 %v5920_v2, %v15434_v46  ;;  %v5964_v13 = vmax.f32 %v5917_v49, 0.0 }
 0x6d4   : > { %v5700_v17 = vmax.f32 %v5655_v6, 0.0  ;;  %v5965_v20 = vmax.f32 %v5919_v35, 0.0 }
 0x6d5   : > { %v15578_v18 = vpack.c.bf16 %v5699_v62, %v5697_v58  ;;  %v5966_v52 = vmax.f32 %v5921_v10, 0.0 }
 0x6d6   : > { %v15580_v63 = vpack.c.bf16 %v5700_v17, %v5698_v51  ;;  %v15582_v19 = vpack.c.bf16 %v5965_v20, %v5963_v14  ;;  %v5658_v4 = vpop.f32.mrb[72].mxu0  ;;  %v6631_v56 = vld [vmem:[#allocation5 + $0x20] sm:$0xff] }
 0x6d7   : > { %5723 = vst.msk [vmem:[#allocation5 + $0x28] sm:$0xff] %vm5717_vm0, %v15578_v18  ;;  %v15586_v5 = vpack.c.bf16 %v5966_v52, %v5964_v13  ;;  %v5659_v15 = vadd.f32 %v5658_v4, %v15430_v29  ;;  %v5660_v21 = vpop.f32.mrb[73].mxu0  ;;  %v5924_v3 = vpop.f32.mrb[72].mxu1  ;;  %12632 = vmatprep.mubr.msk.bf16.mxu0 %vm5717_vm0, %v6631_v56 }
 0x6d8   : > { %5779 = vst.msk [vmem:[#allocation5 + $0x228] sm:$0xff] %vm5717_vm0, %v15580_v63  ;;  %5988 = vst.msk [vmem:[#allocation5 + $0x68] sm:$0xff] %vm5717_vm0, %v15582_v19  ;;  %v5661_v26 = vadd.f32 %v5660_v21, %v15434_v46  ;;  %v5925_v36 = vadd.f32 %v5924_v3, %v15430_v29  ;;  %v5662_v27 = vpop.f32.mrb[74].mxu0  ;;  %v5926_v0 = vpop.f32.mrb[73].mxu1 }
 0x6d9   : > { %6044 = vst.msk [vmem:[#allocation5 + $0x268] sm:$0xff] %vm5717_vm0, %v15586_v5  ;;  %v5663_v31 = vadd.f32 %v5662_v27, %v15430_v29  ;;  %v5927_v32 = vadd.f32 %v5926_v0, %v15434_v46  ;;  %v5664_v33 = vpop.f32.mrb[75].mxu0  ;;  %v5928_v59 = vpop.f32.mrb[74].mxu1  ;;  %v5701_v39 = vmax.f32 %v5659_v15, 0.0 }
 0x6da   : > { %v5665_v1 = vadd.f32 %v5664_v33, %v15434_v46  ;;  %v5929_v37 = vadd.f32 %v5928_v59, %v15430_v29  ;;  %v5930_v11 = vpop.f32.mrb[75].mxu1  ;;  %v5702_v43 = vmax.f32 %v5661_v26, 0.0  ;;  %v5967_v45 = vmax.f32 %v5925_v36, 0.0 }
 0x6db   : > { %v5703_v57 = vmax.f32 %v5663_v31, 0.0  ;;  %v5931_v47 = vadd.f32 %v5930_v11, %v15434_v46  ;;  %v5968_v9 = vmax.f32 %v5927_v32, 0.0 }
 0x6dc   : > { %v5704_v48 = vmax.f32 %v5665_v1, 0.0  ;;  %v5969_v49 = vmax.f32 %v5929_v37, 0.0 }
 0x6dd   : > { %v15603_v50 = vpack.c.bf16 %v5703_v57, %v5701_v39  ;;  %v5970_v6 = vmax.f32 %v5931_v47, 0.0 }
 0x6de   : > { %v15605_v35 = vpack.c.bf16 %v5704_v48, %v5702_v43  ;;  %v15607_v2 = vpack.c.bf16 %v5969_v49, %v5967_v45  ;;  %v5668_v58 = vpop.f32.mrb[76].mxu0  ;;  %v6632_v62 = vld [vmem:[#allocation5 + $0x28] sm:$0xff] }
 0x6df   : > { %5724 = vst.msk [vmem:[#allocation5 + $0x30] sm:$0xff] %vm5717_vm0, %v15603_v50  ;;  %v15611_v10 = vpack.c.bf16 %v5970_v6, %v5968_v9  ;;  %v5669_v51 = vadd.f32 %v5668_v58, %v15430_v29  ;;  %v5670_v14 = vpop.f32.mrb[77].mxu0  ;;  %v5934_v17 = vpop.f32.mrb[76].mxu1  ;;  %12633 = vmatmul.mubr.msk.bf16.gmra.mrb[120].mxu0 %vm5717_vm0, %v6632_v62 }
 0x6e0   : > { %5780 = vst.msk [vmem:[#allocation5 + $0x230] sm:$0xff] %vm5717_vm0, %v15605_v35  ;;  %5989 = vst.msk [vmem:[#allocation5 + $0x70] sm:$0xff] %vm5717_vm0, %v15607_v2  ;;  %v5671_v20 = vadd.f32 %v5670_v14, %v15434_v46  ;;  %v5935_v13 = vadd.f32 %v5934_v17, %v15430_v29  ;;  %v5672_v52 = vpop.f32.mrb[78].mxu0  ;;  %v5936_v4 = vpop.f32.mrb[77].mxu1 }
 0x6e1   : > { %6045 = vst.msk [vmem:[#allocation5 + $0x270] sm:$0xff] %vm5717_vm0, %v15611_v10  ;;  %v5673_v56 = vadd.f32 %v5672_v52, %v15430_v29  ;;  %v5937_v15 = vadd.f32 %v5936_v4, %v15434_v46  ;;  %v5674_v21 = vpop.f32.mrb[79].mxu0  ;;  %v5938_v3 = vpop.f32.mrb[78].mxu1  ;;  %v5705_v0 = vmax.f32 %v5669_v51, 0.0 }
 0x6e2   : > { %v5675_v26 = vadd.f32 %v5674_v21, %v15434_v46  ;;  %v5939_v36 = vadd.f32 %v5938_v3, %v15430_v29  ;;  %v5940_v27 = vpop.f32.mrb[79].mxu1  ;;  %v5706_v33 = vmax.f32 %v5671_v20, 0.0  ;;  %v5971_v59 = vmax.f32 %v5935_v13, 0.0 }
 0x6e3   : > { %v5707_v31 = vmax.f32 %v5673_v56, 0.0  ;;  %v5941_v32 = vadd.f32 %v5940_v27, %v15434_v46  ;;  %v5972_v39 = vmax.f32 %v5937_v15, 0.0 }
 0x6e4   : > { %v5708_v1 = vmax.f32 %v5675_v26, 0.0  ;;  %v5973_v37 = vmax.f32 %v5939_v36, 0.0 }
 0x6e5   : > { %v15628_v11 = vpack.c.bf16 %v5707_v31, %v5705_v0  ;;  %v5974_v57 = vmax.f32 %v5941_v32, 0.0 }
 0x6e6   : > { %v15630_v47 = vpack.c.bf16 %v5708_v1, %v5706_v33  ;;  %v15632_v43 = vpack.c.bf16 %v5973_v37, %v5971_v59  ;;  %v6129_v45 = vpop.f32.mrb[80].mxu0  ;;  %v6633_v48 = vld [vmem:[#allocation5 + $0x30] sm:$0xff] }
 0x6e7   : > { %5725 = vst.msk [vmem:[#allocation5 + $0x38] sm:$0xff] %vm5717_vm0, %v15628_v11  ;;  %v15636_v49 = vpack.c.bf16 %v5974_v57, %v5972_v39  ;;  %v6130_v9 = vadd.f32 %v6129_v45, %v15430_v29  ;;  %v6131_v6 = vpop.f32.mrb[81].mxu0  ;;  %v6394_v58 = vpop.f32.mrb[80].mxu1  ;;  %12636 = vmatprep.mubr.msk.bf16.mxu0 %vm5717_vm0, %v6633_v48 }
 0x6e8   : > { %5781 = vst.msk [vmem:[#allocation5 + $0x238] sm:$0xff] %vm5717_vm0, %v15630_v47  ;;  %5990 = vst.msk [vmem:[#allocation5 + $0x78] sm:$0xff] %vm5717_vm0, %v15632_v43  ;;  %v6132_v62 = vadd.f32 %v6131_v6, %v15434_v46  ;;  %v6395_v51 = vadd.f32 %v6394_v58, %v15430_v29  ;;  %v6133_v14 = vpop.f32.mrb[82].mxu0  ;;  %v6396_v17 = vpop.f32.mrb[81].mxu1 }
 0x6e9   : > { %6046 = vst.msk [vmem:[#allocation5 + $0x278] sm:$0xff] %vm5717_vm0, %v15636_v49  ;;  %v6134_v20 = vadd.f32 %v6133_v14, %v15430_v29  ;;  %v6397_v13 = vadd.f32 %v6396_v17, %v15434_v46  ;;  %v6135_v52 = vpop.f32.mrb[83].mxu0  ;;  %v6398_v4 = vpop.f32.mrb[82].mxu1  ;;  %v6208_v3 = vmax.f32 %v6130_v9, 0.0 }
 0x6ea   : > { %v6136_v56 = vadd.f32 %v6135_v52, %v15434_v46  ;;  %v6399_v15 = vadd.f32 %v6398_v4, %v15430_v29  ;;  %v6400_v21 = vpop.f32.mrb[83].mxu1  ;;  %v6209_v27 = vmax.f32 %v6132_v62, 0.0  ;;  %v6473_v0 = vmax.f32 %v6395_v51, 0.0  ;;  %v6635_v62 = vld [vmem:[#allocation5 + $0x40] sm:$0xff] }
 0x6eb   : > { %v6210_v26 = vmax.f32 %v6134_v20, 0.0  ;;  %v6401_v36 = vadd.f32 %v6400_v21, %v15434_v46  ;;  %v6474_v59 = vmax.f32 %v6397_v13, 0.0 }
 0x6ec   : > { %v6211_v31 = vmax.f32 %v6136_v56, 0.0  ;;  %v6475_v32 = vmax.f32 %v6399_v15, 0.0 }
 0x6ed   : > { %v6240_v33 = vpack.c.bf16 %v6210_v26, %v6208_v3  ;;  %v6476_v1 = vmax.f32 %v6401_v36, 0.0 }
 0x6ee   : > { %v15653_v37 = vpack.c.bf16 %v6211_v31, %v6209_v27  ;;  %v15655_v39 = vpack.c.bf16 %v6475_v32, %v6473_v0  ;;  %v6139_v57 = vpop.f32.mrb[84].mxu0  ;;  %v6634_v45 = vld [vmem:[#allocation5 + $0x38] sm:$0xff] }
 0x6ef   : > { %6248 = vst.msk [vmem:[#allocation5 + $0x80] sm:$0xff] %vm5717_vm0, %v6240_v33  ;;  %v15658_v48 = vpack.c.bf16 %v6476_v1, %v6474_v59  ;;  %v6140_v9 = vadd.f32 %v6139_v57, %v15430_v29  ;;  %v6141_v6 = vpop.f32.mrb[85].mxu0  ;;  %v6404_v58 = vpop.f32.mrb[84].mxu1  ;;  %6264 = vrot.lane.b32.xlu0 %v6240_v33, %s14095_s27  ;;  %12637 = vmatmul.mubr.msk.bf16.gmra.mrb[124].mxu0 %vm5717_vm0, %v6634_v45 }
 0x6f0   : > { %6304 = vst.msk [vmem:[#allocation5 + $0x280] sm:$0xff] %vm5717_vm0, %v15653_v37  ;;  %6513 = vst.msk [vmem:[#allocation5 + $0xc0] sm:$0xff] %vm5717_vm0, %v15655_v39  ;;  %v6142_v51 = vadd.f32 %v6141_v6, %v15434_v46  ;;  %v6405_v14 = vadd.f32 %v6404_v58, %v15430_v29  ;;  %v6143_v17 = vpop.f32.mrb[86].mxu0  ;;  %v6406_v20 = vpop.f32.mrb[85].mxu1  ;;  %12640 = vmatprep.mubr.msk.bf16.mxu0 %vm5717_vm0, %v6635_v62 }
 0x6f1   : > { %6569 = vst.msk [vmem:[#allocation5 + $0x2c0] sm:$0xff] %vm5717_vm0, %v15658_v48  ;;  %v6144_v13 = vadd.f32 %v6143_v17, %v15430_v29  ;;  %v6407_v52 = vadd.f32 %v6406_v20, %v15434_v46  ;;  %v6145_v4 = vpop.f32.mrb[87].mxu0  ;;  %v6408_v56 = vpop.f32.mrb[86].mxu1  ;;  %v6212_v26 = vmax.f32 %v6140_v9, 0.0 }
 0x6f2   : > { %v6146_v15 = vadd.f32 %v6145_v4, %v15434_v46  ;;  %v6409_v21 = vadd.f32 %v6408_v56, %v15430_v29  ;;  %v6410_v3 = vpop.f32.mrb[87].mxu1  ;;  %v6213_v0 = vmax.f32 %v6142_v51, 0.0  ;;  %v6477_v31 = vmax.f32 %v6405_v14, 0.0  ;;  %v6636_v14 = vld [vmem:[#allocation5 + $0x48] sm:$0xff]  ;;  %v6637_v56 = vld [vmem:[#allocation5 + $0x50] sm:$0xff] }
 0x6f3   : > { %v6214_v36 = vmax.f32 %v6144_v13, 0.0  ;;  %v6411_v27 = vadd.f32 %v6410_v3, %v15434_v46  ;;  %5738 = vrot.lane.b32.xlu0 %v15493_v28, %s14095_s27  ;;  %v6478_v1 = vmax.f32 %v6407_v52, 0.0 }
 0x6f4   : > { %v6215_v32 = vmax.f32 %v6146_v15, 0.0  ;;  %v6479_v33 = vmax.f32 %v6409_v21, 0.0 }
 0x6f5   : > { %v6241_v59 = vpack.c.bf16 %v6214_v36, %v6212_v26  ;;  %v6480_v57 = vmax.f32 %v6411_v27, 0.0 }
 0x6f6   : > { %v15679_v45 = vpack.c.bf16 %v6215_v32, %v6213_v0  ;;  %v15681_v6 = vpack.c.bf16 %v6479_v33, %v6477_v31  ;;  %v6149_v58 = vpop.f32.mrb[88].mxu0  ;;  %v7112_v62 = vld [vmem:[#allocation5 + $0x80] sm:$0xff] }
 0x6f7   : > { %6249 = vst.msk [vmem:[#allocation5 + $0x88] sm:$0xff] %vm5717_vm0, %v6241_v59  ;;  %v15684_v9 = vpack.c.bf16 %v6480_v57, %v6478_v1  ;;  %v6150_v17 = vadd.f32 %v6149_v58, %v15430_v29  ;;  %v6151_v28 = vpop.f32.mrb[89].mxu0  ;;  %v6414_v51 = vpop.f32.mrb[88].mxu1  ;;  %12664 = vmatprep.mubr.msk.bf16.mxu1 %vm5717_vm0, %v7112_v62  ;;  %6266 = vrot.lane.b32.xlu1 %v6241_v59, %s14095_s27 }
 0x6f8   : > { %6305 = vst.msk [vmem:[#allocation5 + $0x288] sm:$0xff] %vm5717_vm0, %v15679_v45  ;;  %6514 = vst.msk [vmem:[#allocation5 + $0xc8] sm:$0xff] %vm5717_vm0, %v15681_v6  ;;  %v6152_v20 = vadd.f32 %v6151_v28, %v15434_v46  ;;  %v6415_v13 = vadd.f32 %v6414_v51, %v15430_v29  ;;  %5740 = vrot.lane.b32.xlu0 %v15521_v54, %s14095_s27  ;;  %12641 = vmatmul.mubr.msk.bf16.gmra.mrb[128].mxu0 %vm5717_vm0, %v6636_v14  ;;  %v6153_v52 = vpop.f32.mrb[90].mxu0  ;;  %v6416_v4 = vpop.f32.mrb[89].mxu1 }
 0x6f9   : > { %6570 = vst.msk [vmem:[#allocation5 + $0x2c8] sm:$0xff] %vm5717_vm0, %v15684_v9  ;;  %v6154_v15 = vadd.f32 %v6153_v52, %v15430_v29  ;;  %v6417_v21 = vadd.f32 %v6416_v4, %v15434_v46  ;;  %12644 = vmatprep.mubr.msk.bf16.mxu0 %vm5717_vm0, %v6637_v56  ;;  %v6155_v3 = vpop.f32.mrb[91].mxu0  ;;  %v6418_v26 = vpop.f32.mrb[90].mxu1  ;;  %v6216_v0 = vmax.f32 %v6150_v17, 0.0 }
 0x6fa   : > { %v6156_v36 = vadd.f32 %v6155_v3, %v15434_v46  ;;  %v6419_v54 = vadd.f32 %v6418_v26, %v15430_v29  ;;  %v6420_v27 = vpop.f32.mrb[91].mxu1  ;;  %v6217_v33 = vmax.f32 %v6152_v20, 0.0  ;;  %v6481_v59 = vmax.f32 %v6415_v13, 0.0 }
 0x6fb   : > { %v6218_v31 = vmax.f32 %v6154_v15, 0.0  ;;  %v6421_v32 = vadd.f32 %v6420_v27, %v15434_v46  ;;  %v6482_v62 = vmax.f32 %v6417_v21, 0.0 }
 0x6fc   : > { %v6219_v1 = vmax.f32 %v6156_v36, 0.0  ;;  %v6483_v57 = vmax.f32 %v6419_v54, 0.0  ;;  %5742 = vrot.lane.b32.xlu0 %v15554_v38, %s14095_s27  ;;  %v6638_v38 = vld [vmem:[#allocation5 + $0x58] sm:$0xff]  ;;  %v6639_v36 = vld [vmem:[#allocation5 + $0x60] sm:$0xff] }
 0x6fd   : > { %v6242_v58 = vpack.c.bf16 %v6218_v31, %v6216_v0  ;;  %v6484_v28 = vmax.f32 %v6421_v32, 0.0  ;;  %v15732_v32 = vld [vmem:[#allocation19] sm:$0xff]  }
 0x6fe   : > { %v15708_v51 = vpack.c.bf16 %v6219_v1, %v6217_v33  ;;  %v15710_v14 = vpack.c.bf16 %v6483_v57, %v6481_v59  ;;  %v6159_v52 = vpop.f32.mrb[92].mxu0  ;;  %v7113_v4 = vld [vmem:[#allocation5 + $0x88] sm:$0xff] }
 0x6ff   : > { %6250 = vst.msk [vmem:[#allocation5 + $0x90] sm:$0xff] %vm5717_vm0, %v6242_v58  ;;  %v15713_v17 = vpack.c.bf16 %v6484_v28, %v6482_v62  ;;  %v6160_v20 = vadd.f32 %v6159_v52, %v15430_v29  ;;  %v6161_v13 = vpop.f32.mrb[93].mxu0  ;;  %v6424_v56 = vpop.f32.mrb[92].mxu1  ;;  %12665 = vmatmul.mubr.msk.bf16.vlgmr.msra.gmra.mrb[112].mxu1 %vm5717_vm0, %v7113_v4  ;;  %6268 = vrot.lane.b32.xlu1 %v6242_v58, %s14095_s27 }
 0x700   : > { %6306 = vst.msk [vmem:[#allocation5 + $0x290] sm:$0xff] %vm5717_vm0, %v15708_v51  ;;  %6515 = vst.msk [vmem:[#allocation5 + $0xd0] sm:$0xff] %vm5717_vm0, %v15710_v14  ;;  %v6162_v15 = vadd.f32 %v6161_v13, %v15434_v46  ;;  %v6425_v21 = vadd.f32 %v6424_v56, %v15430_v29  ;;  %5744 = vrot.lane.b32.xlu0 %v15578_v18, %s14095_s27  ;;  %12645 = vmatmul.mubr.msk.bf16.gmra.mrb[132].mxu0 %vm5717_vm0, %v6638_v38  ;;  %v6163_v3 = vpop.f32.mrb[94].mxu0  ;;  %v6426_v26 = vpop.f32.mrb[93].mxu1 }
 0x701   : > { %6571 = vst.msk [vmem:[#allocation5 + $0x2d0] sm:$0xff] %vm5717_vm0, %v15713_v17  ;;  %v6164_v54 = vadd.f32 %v6163_v3, %v15430_v29  ;;  %v6427_v27 = vadd.f32 %v6426_v26, %v15434_v46  ;;  %12648 = vmatprep.mubr.msk.bf16.mxu0 %vm5717_vm0, %v6639_v36  ;;  %v6165_v0 = vpop.f32.mrb[95].mxu0  ;;  %v6428_v31 = vpop.f32.mrb[94].mxu1  ;;  %12737 = vmatpush3.bf16.msra.mxu1 %v15732_v32  ;;  %v6220_v1 = vmax.f32 %v6160_v20, 0.0 }
 0x702   : > { %v6166_v18 = vadd.f32 %v6165_v0, %v15434_v46  ;;  %v6429_v33 = vadd.f32 %v6428_v31, %v15430_v29  ;;  %v6430_v59 = vpop.f32.mrb[95].mxu1  ;;  %12738 = vmatprep.subr.bf16.mxu1 %v15382_v55  ;;  %v6221_v62 = vmax.f32 %v6162_v15, 0.0  ;;  %v6485_v28 = vmax.f32 %v6425_v21, 0.0 }
 0x703   : > { %v6222_v57 = vmax.f32 %v6164_v54, 0.0  ;;  %v6431_v58 = vadd.f32 %v6430_v59, %v15434_v46  ;;  %v6486_v56 = vmax.f32 %v6427_v27, 0.0 }
 0x704   : > { %v6223_v52 = vmax.f32 %v6166_v18, 0.0  ;;  %v6487_v4 = vmax.f32 %v6429_v33, 0.0  ;;  %5746 = vrot.lane.b32.xlu0 %v15603_v50, %s14095_s27  ;;  %v6641_v33 = vld [vmem:[#allocation5 + $0x70] sm:$0xff] }
 0x705   : > { %v6243_v13 = vpack.c.bf16 %v6222_v57, %v6220_v1  ;;  %v6488_v38 = vmax.f32 %v6431_v58, 0.0  ;;  %12739 = vmatpush3.bf16.msra.mxu1 %v15382_v55  ;;  %v6640_v55 = vld [vmem:[#allocation5 + $0x68] sm:$0xff] }
 0x706   : > { %v15742_v3 = vpack.c.bf16 %v6223_v52, %v6221_v62  ;;  %v15744_v26 = vpack.c.bf16 %v6487_v4, %v6485_v28  ;;  %v6169_v20 = vpop.f32.mrb[96].mxu0  ;;  %v7114_v36 = vld [vmem:[#allocation5 + $0x90] sm:$0xff]  ;;  %12740 = vmatprep.subr.bf16.mxu1 %v15390_v60 }
 0x707   : > { %6251 = vst.msk [vmem:[#allocation5 + $0x98] sm:$0xff] %vm5717_vm0, %v6243_v13  ;;  %v15748_v15 = vpack.c.bf16 %v6488_v38, %v6486_v56  ;;  %v6170_v21 = vadd.f32 %v6169_v20, %v15430_v29  ;;  %v6171_v50 = vpop.f32.mrb[97].mxu0  ;;  %v6434_v54 = vpop.f32.mrb[96].mxu1  ;;  %12668 = vmatprep.mubr.msk.bf16.mxu1 %vm5717_vm0, %v7114_v36  ;;  %6270 = vrot.lane.b32.xlu1 %v6243_v13, %s14095_s27 }
 0x708   : > { %6307 = vst.msk [vmem:[#allocation5 + $0x298] sm:$0xff] %vm5717_vm0, %v15742_v3  ;;  %6516 = vst.msk [vmem:[#allocation5 + $0xd8] sm:$0xff] %vm5717_vm0, %v15744_v26  ;;  %v6172_v27 = vadd.f32 %v6171_v50, %v15434_v46  ;;  %v6435_v0 = vadd.f32 %v6434_v54, %v15430_v29  ;;  %5748 = vrot.lane.b32.xlu0 %v15628_v11, %s14095_s27  ;;  %12649 = vmatmul.mubr.msk.bf16.gmra.mrb[136].mxu0 %vm5717_vm0, %v6640_v55  ;;  %v6173_v31 = vpop.f32.mrb[98].mxu0  ;;  %v6436_v18 = vpop.f32.mrb[97].mxu1  ;;  %v15774_v55 = vld [vmem:[#allocation19 + $0x18] sm:$0xff]  }
 0x709   : > { %6572 = vst.msk [vmem:[#allocation5 + $0x2d8] sm:$0xff] %vm5717_vm0, %v15748_v15  ;;  %v6174_v59 = vadd.f32 %v6173_v31, %v15430_v29  ;;  %v6437_v1 = vadd.f32 %v6436_v18, %v15434_v46  ;;  %12652 = vmatprep.mubr.msk.bf16.mxu0 %vm5717_vm0, %v6641_v33  ;;  %v6175_v57 = vpop.f32.mrb[99].mxu0  ;;  %v6438_v58 = vpop.f32.mrb[98].mxu1  ;;  %12741 = vmatpush3.bf16.msra.mxu1 %v15390_v60  ;;  %v6224_v52 = vmax.f32 %v6170_v21, 0.0 }
 0x70a   : > { %v6176_v11 = vadd.f32 %v6175_v57, %v15434_v46  ;;  %v6439_v62 = vadd.f32 %v6438_v58, %v15430_v29  ;;  %v6440_v28 = vpop.f32.mrb[99].mxu1  ;;  %12742 = vmatprep.subr.bf16.mxu1 %v15396_v41  ;;  %v6225_v56 = vmax.f32 %v6172_v27, 0.0  ;;  %v6489_v38 = vmax.f32 %v6435_v0, 0.0 }
 0x70b   : > { %v6226_v4 = vmax.f32 %v6174_v59, 0.0  ;;  %v6441_v13 = vadd.f32 %v6440_v28, %v15434_v46  ;;  %v6490_v60 = vmax.f32 %v6437_v1, 0.0  ;;  %v6642_v59 = vld [vmem:[#allocation5 + $0x78] sm:$0xff] }
 0x70c   : > { %v6227_v20 = vmax.f32 %v6176_v11, 0.0  ;;  %v6491_v36 = vmax.f32 %v6439_v62, 0.0  ;;  %5999 = vrot.lane.b32.xlu0 %v15450_v24, %s14095_s27  ;;  %v7561_v62 = vld [vmem:[#allocation5 + $0x100] sm:$0xff] }
 0x70d   : > { %v6244_v50 = vpack.c.bf16 %v6226_v4, %v6224_v52  ;;  %v6492_v54 = vmax.f32 %v6441_v13, 0.0  ;;  %12743 = vmatpush3.bf16.msra.mxu1 %v15774_v55 }
 0x70e   : > { %v15777_v31 = vpack.c.bf16 %v6227_v20, %v6225_v56  ;;  %v15779_v41 = vpack.c.bf16 %v6491_v36, %v6489_v38  ;;  %v6179_v21 = vpop.f32.mrb[100].mxu0  ;;  %v7115_v18 = vld [vmem:[#allocation5 + $0x98] sm:$0xff]  ;;  %12816 = vmatprep.subr.bf16.mxu1 %v15732_v32 }
 0x70f   : > { %6252 = vst.msk [vmem:[#allocation5 + $0xa0] sm:$0xff] %vm5717_vm0, %v6244_v50  ;;  %v15783_v27 = vpack.c.bf16 %v6492_v54, %v6490_v60  ;;  %v6180_v24 = vadd.f32 %v6179_v21, %v15430_v29  ;;  %v6181_v0 = vpop.f32.mrb[101].mxu0  ;;  %v6444_v33 = vpop.f32.mrb[100].mxu1  ;;  %12669 = vmatmul.mubr.msk.bf16.gmra.mrb[116].mxu1 %vm5717_vm0, %v7115_v18  ;;  %6272 = vrot.lane.b32.xlu1 %v6244_v50, %s14095_s27 }
 0x710   : > { %6308 = vst.msk [vmem:[#allocation5 + $0x2a0] sm:$0xff] %vm5717_vm0, %v15777_v31  ;;  %6517 = vst.msk [vmem:[#allocation5 + $0xe0] sm:$0xff] %vm5717_vm0, %v15779_v41  ;;  %v6182_v1 = vadd.f32 %v6181_v0, %v15434_v46  ;;  %v6445_v57 = vadd.f32 %v6444_v33, %v15430_v29  ;;  %6001 = vrot.lane.b32.xlu0 %v15472_v53, %s14095_s27  ;;  %12653 = vmatmul.mubr.msk.bf16.gmra.mrb[140].mxu0 %vm5717_vm0, %v6642_v59  ;;  %v6183_v58 = vpop.f32.mrb[102].mxu0  ;;  %v6446_v11 = vpop.f32.mrb[101].mxu1 }
 0x711   : > { %6573 = vst.msk [vmem:[#allocation5 + $0x2e0] sm:$0xff] %vm5717_vm0, %v15783_v27  ;;  %v6184_v28 = vadd.f32 %v6183_v58, %v15430_v29  ;;  %v6447_v52 = vadd.f32 %v6446_v11, %v15434_v46  ;;  %12704 = vmatprep.mubr.msk.bf16.mxu0 %vm5717_vm0, %v7561_v62  ;;  %v6185_v4 = vpop.f32.mrb[103].mxu0  ;;  %v6448_v13 = vpop.f32.mrb[102].mxu1  ;;  %v6228_v20 = vmax.f32 %v6180_v24, 0.0 }
 0x712   : > { %v6186_v56 = vadd.f32 %v6185_v4, %v15434_v46  ;;  %v6449_v53 = vadd.f32 %v6448_v13, %v15430_v29  ;;  %v6450_v38 = vpop.f32.mrb[103].mxu1  ;;  %v6229_v60 = vmax.f32 %v6182_v1, 0.0  ;;  %v6493_v54 = vmax.f32 %v6445_v57, 0.0 }
 0x713   : > { %v6230_v36 = vmax.f32 %v6184_v28, 0.0  ;;  %v6451_v50 = vadd.f32 %v6450_v38, %v15434_v46  ;;  %v6494_v33 = vmax.f32 %v6447_v52, 0.0 }
 0x714   : > { %v6231_v21 = vmax.f32 %v6186_v56, 0.0  ;;  %v6495_v18 = vmax.f32 %v6449_v53, 0.0  ;;  %6003 = vrot.lane.b32.xlu0 %v15497_v16, %s14095_s27  ;;  %v7562_v16 = vld [vmem:[#allocation5 + $0x108] sm:$0xff] }
 0x715   : > { %v6245_v0 = vpack.c.bf16 %v6230_v36, %v6228_v20  ;;  %v6496_v59 = vmax.f32 %v6451_v50, 0.0 }
 0x716   : > { %v15807_v58 = vpack.c.bf16 %v6231_v21, %v6229_v60  ;;  %v15809_v11 = vpack.c.bf16 %v6495_v18, %v6493_v54  ;;  %v6189_v62 = vpop.f32.mrb[104].mxu0  ;;  %v7116_v4 = vld [vmem:[#allocation5 + $0xa0] sm:$0xff] }
 0x717   : > { %6253 = vst.msk [vmem:[#allocation5 + $0xa8] sm:$0xff] %vm5717_vm0, %v6245_v0  ;;  %v15812_v24 = vpack.c.bf16 %v6496_v59, %v6494_v33  ;;  %v6190_v1 = vadd.f32 %v6189_v62, %v15430_v29  ;;  %v6191_v57 = vpop.f32.mrb[105].mxu0  ;;  %v6454_v28 = vpop.f32.mrb[104].mxu1  ;;  %12672 = vmatprep.mubr.msk.bf16.mxu1 %vm5717_vm0, %v7116_v4  ;;  %6274 = vrot.lane.b32.xlu1 %v6245_v0, %s14095_s27  ;;  %v15833_v21 = vld [vmem:[#allocation19 + $0x8] sm:$0xff]  }
 0x718   : > { %6309 = vst.msk [vmem:[#allocation5 + $0x2a8] sm:$0xff] %vm5717_vm0, %v15807_v58  ;;  %6518 = vst.msk [vmem:[#allocation5 + $0xe8] sm:$0xff] %vm5717_vm0, %v15809_v11  ;;  %v6192_v52 = vadd.f32 %v6191_v57, %v15434_v46  ;;  %v6455_v13 = vadd.f32 %v6454_v28, %v15430_v29  ;;  %6005 = vrot.lane.b32.xlu0 %v15526_v34, %s14095_s27  ;;  %12705 = vmatmul.mubr.msk.bf16.vlgmr.msra.gmra.mrb[144].mxu0 %vm5717_vm0, %v7562_v16  ;;  %v6193_v56 = vpop.f32.mrb[106].mxu0  ;;  %v6456_v53 = vpop.f32.mrb[105].mxu1 }
 0x719   : > { %6574 = vst.msk [vmem:[#allocation5 + $0x2e8] sm:$0xff] %vm5717_vm0, %v15812_v24  ;;  %v6194_v38 = vadd.f32 %v6193_v56, %v15430_v29  ;;  %v6457_v20 = vadd.f32 %v6456_v53, %v15434_v46  ;;  %v6195_v36 = vpop.f32.mrb[107].mxu0  ;;  %v6458_v50 = vpop.f32.mrb[106].mxu1  ;;  %12777 = vmatpush3.bf16.msra.mxu0 %v15732_v32  ;;  %v6232_v18 = vmax.f32 %v6190_v1, 0.0 }
 0x71a   : > { %v6196_v60 = vadd.f32 %v6195_v36, %v15434_v46  ;;  %v6459_v54 = vadd.f32 %v6458_v50, %v15430_v29  ;;  %v6460_v34 = vpop.f32.mrb[107].mxu1  ;;  %12778 = vmatprep.subr.bf16.mxu0 %v15833_v21  ;;  %v6233_v59 = vmax.f32 %v6192_v52, 0.0  ;;  %v6497_v62 = vmax.f32 %v6455_v13, 0.0  ;;  %v15844_v50 = vld [vmem:[#allocation19 + $0x10] sm:$0xff]  }
 0x71b   : > { %v6234_v0 = vmax.f32 %v6194_v38, 0.0  ;;  %v6461_v33 = vadd.f32 %v6460_v34, %v15434_v46  ;;  %v6498_v16 = vmax.f32 %v6457_v20, 0.0 }
 0x71c   : > { %v6235_v4 = vmax.f32 %v6196_v60, 0.0  ;;  %v6499_v57 = vmax.f32 %v6459_v54, 0.0  ;;  %6007 = vrot.lane.b32.xlu0 %v15558_v61, %s14095_s27 }
 0x71d   : > { %v6246_v28 = vpack.c.bf16 %v6234_v0, %v6232_v18  ;;  %v6500_v56 = vmax.f32 %v6461_v33, 0.0  ;;  %12779 = vmatpush3.bf16.msra.mxu0 %v15833_v21 }
 0x71e   : > { %v15840_v53 = vpack.c.bf16 %v6235_v4, %v6233_v59  ;;  %v15842_v36 = vpack.c.bf16 %v6499_v57, %v6497_v62  ;;  %v6199_v1 = vpop.f32.mrb[108].mxu0  ;;  %v7117_v38 = vld [vmem:[#allocation5 + $0xa8] sm:$0xff]  ;;  %12780 = vmatprep.subr.bf16.mxu0 %v15844_v50 }
 0x71f   : > { %6254 = vst.msk [vmem:[#allocation5 + $0xb0] sm:$0xff] %vm5717_vm0, %v6246_v28  ;;  %v15848_v52 = vpack.c.bf16 %v6500_v56, %v6498_v16  ;;  %v6200_v61 = vadd.f32 %v6199_v1, %v15430_v29  ;;  %v6201_v13 = vpop.f32.mrb[109].mxu0  ;;  %v6464_v20 = vpop.f32.mrb[108].mxu1  ;;  %12673 = vmatmul.mubr.msk.bf16.gmra.mrb[120].mxu1 %vm5717_vm0, %v7117_v38  ;;  %6276 = vrot.lane.b32.xlu1 %v6246_v28, %s14095_s27 }
 0x720   : > { %6310 = vst.msk [vmem:[#allocation5 + $0x2b0] sm:$0xff] %vm5717_vm0, %v15840_v53  ;;  %6519 = vst.msk [vmem:[#allocation5 + $0xf0] sm:$0xff] %vm5717_vm0, %v15842_v36  ;;  %v6202_v60 = vadd.f32 %v6201_v13, %v15434_v46  ;;  %v6465_v54 = vadd.f32 %v6464_v20, %v15430_v29  ;;  %6009 = vrot.lane.b32.xlu0 %v15582_v19, %s14095_s27  ;;  %v6203_v34 = vpop.f32.mrb[110].mxu0  ;;  %v6466_v18 = vpop.f32.mrb[109].mxu1 }
 0x721   : > { %17253 = vst [vmem:[#allocation36_spill] sm:$0xff] %v15848_v52  ;;  %6575 = vst.msk [vmem:[#allocation5 + $0x2f0] sm:$0xff] %vm5717_vm0, %v15848_v52  ;;  %v6204_v0 = vadd.f32 %v6203_v34, %v15430_v29  ;;  %v6467_v33 = vadd.f32 %v6466_v18, %v15434_v46  ;;  %v6205_v59 = vpop.f32.mrb[111].mxu0  ;;  %v6468_v62 = vpop.f32.mrb[110].mxu1  ;;  %12781 = vmatpush3.bf16.msra.mxu0 %v15844_v50  ;;  %v6236_v19 = vmax.f32 %v6200_v61, 0.0 }
 0x722   : > { %v6206_v4 = vadd.f32 %v6205_v59, %v15434_v46  ;;  %v6469_v57 = vadd.f32 %v6468_v62, %v15430_v29  ;;  %v6470_v28 = vpop.f32.mrb[111].mxu1  ;;  %12782 = vmatprep.subr.bf16.mxu0 %v15774_v55  ;;  %v6237_v1 = vmax.f32 %v6202_v60, 0.0  ;;  %v6501_v38 = vmax.f32 %v6465_v54, 0.0  ;;  %v15910_v62 = vld [vmem:[#allocation22] ss:$0 sm:$0xff] }
 0x723   : > { %v6238_v16 = vmax.f32 %v6204_v0, 0.0  ;;  %v6471_v56 = vadd.f32 %v6470_v28, %v15434_v46  ;;  %v6502_v18 = vmax.f32 %v6467_v33, 0.0  ;;  %v7121_v28 = vld [vmem:[#allocation5 + $0xc8] sm:$0xff] }
 0x724   : > { %v6239_v13 = vmax.f32 %v6206_v4, 0.0  ;;  %v6503_v20 = vmax.f32 %v6469_v57, 0.0  ;;  %6011 = vrot.lane.b32.xlu0 %v15607_v2, %s14095_s27 }
 0x725   : > { %v6247_v34 = vpack.c.bf16 %v6238_v16, %v6236_v19  ;;  %v6504_v52 = vmax.f32 %v6471_v56, 0.0  ;;  %12783 = vmatpush3.bf16.msra.mxu0 %v15774_v55 }
 0x726   : > { %v15873_v29 = vpack.c.bf16 %v6239_v13, %v6237_v1  ;;  %v15875_v59 = vpack.c.bf16 %v6503_v20, %v6501_v38  ;;  %v7118_v61 = vld [vmem:[#allocation5 + $0xb0] sm:$0xff]  ;;  %12856 = vmatprep.subr.bf16.mxu0 %v15732_v32  ;;  %v7124_v20 = vld [vmem:[#allocation5 + $0xe0] sm:$0xff] }
 0x727   : > { %6255 = vst.msk [vmem:[#allocation5 + $0xb8] sm:$0xff] %vm5717_vm0, %v6247_v34  ;;  %v15879_v46 = vpack.c.bf16 %v6504_v52, %v6502_v18  ;;  %12676 = vmatprep.mubr.msk.bf16.mxu1 %vm5717_vm0, %v7118_v61  ;;  %6278 = vrot.lane.b32.xlu1 %v6247_v34, %s14095_s27  ;;  %v7120_v52 = vld [vmem:[#allocation5 + $0xc0] sm:$0xff] }
 0x728   : > { %6311 = vst.msk [vmem:[#allocation5 + $0x2b8] sm:$0xff] %vm5717_vm0, %v15873_v29  ;;  %6520 = vst.msk [vmem:[#allocation5 + $0xf8] sm:$0xff] %vm5717_vm0, %v15875_v59  ;;  %6013 = vrot.lane.b32.xlu0 %v15632_v43, %s14095_s27  ;;  %v15901_v43 = vld [vmem:[#allocation20] ss:$0 sm:$0xff] }
 0x729   : > { %6576 = vst.msk [vmem:[#allocation5 + $0x2f8] sm:$0xff] %vm5717_vm0, %v15879_v46 }
 0x72b   : > { %6529 = vrot.lane.b32.xlu1 %v15655_v39, %s14095_s27 }
 0x72c   : > { %5790 = vrot.lane.b32.xlu0 %v15448_v23, %s14095_s27 }
 0x72e   : > { %v7119_v2 = vld [vmem:[#allocation5 + $0xb8] sm:$0xff] }
 0x72f   : > { %12677 = vmatmul.mubr.msk.bf16.gmra.mrb[124].mxu1 %vm5717_vm0, %v7119_v2  ;;  %6531 = vrot.lane.b32.xlu1 %v15681_v6, %s14095_s27 }
 0x730   : > { %5792 = vrot.lane.b32.xlu0 %v15470_v7, %s14095_s27  ;;  %12680 = vmatprep.mubr.msk.bf16.mxu1 %vm5717_vm0, %v7120_v52 }
 0x732   : > { %v12626_v60 = vpop.f32.mrb[112].mxu0 }
 0x733   : > { %v6764_v39 = vadd.f32 %v12626_v60, %v15901_v43  ;;  %6533 = vrot.lane.b32.xlu1 %v15710_v14, %s14095_s27  ;;  %v6755_v23 = vpop.f32.mrb[113].mxu0 }
 0x734   : > { %5794 = vrot.lane.b32.xlu0 %v15495_v22, %s14095_s27  ;;  %v6756_v6 = vadd.f32 %v15901_v43, %v6755_v23  ;;  %v12627_v54 = vpop.f32.mrb[114].mxu0  ;;  %v7122_v22 = vld [vmem:[#allocation5 + $0xd0] sm:$0xff] }
 0x735   : > { %v6884_v0 = vmax.f32 %v6764_v39, 0.0  ;;  %v6767_v7 = vadd.f32 %v12627_v54, %v15901_v43  ;;  %v6758_v33 = vpop.f32.mrb[115].mxu0  ;;  %v7125_v39 = vld [vmem:[#allocation5 + $0xe8] sm:$0xff] }
 0x736   : > { %v6882_v4 = vmax.f32 %v6756_v6, 0.0  ;;  %v6759_v57 = vadd.f32 %v15901_v43, %v6758_v33 }
 0x737   : > { %v6885_v19 = vmax.f32 %v6767_v7, 0.0  ;;  %12681 = vmatmul.mubr.msk.bf16.gmra.mrb[128].mxu1 %vm5717_vm0, %v7121_v28  ;;  %6535 = vrot.lane.b32.xlu1 %v15744_v26, %s14095_s27  ;;  %v6922_v16 = vmul.f32 %v15910_v62, %v6884_v0  ;;  %v17255_v28 = vld [vmem:[#allocation36_spill] sm:$0xff] }
 0x738   : > { %v6883_v14 = vmax.f32 %v6759_v57, 0.0  ;;  %5796 = vrot.lane.b32.xlu0 %v15524_v12, %s14095_s27  ;;  %12684 = vmatprep.mubr.msk.bf16.mxu1 %vm5717_vm0, %v7122_v22  ;;  %v6920_v1 = vmul.f32 %v15910_v62, %v6882_v4  ;;  %v7123_v12 = vld [vmem:[#allocation5 + $0xd8] sm:$0xff] }
 0x739   : > { %v6923_v56 = vmul.f32 %v15910_v62, %v6885_v19 }
 0x73a   : > { %v6921_v38 = vmul.f32 %v15910_v62, %v6883_v14 }
 0x73b   : > { %v11697_v13 = vpack.c.bf16 %v6923_v56, %v6922_v16  ;;  %6537 = vrot.lane.b32.xlu1 %v15779_v41, %s14095_s27 }
 0x73c   : > { %v11692_v26 = vpack.c.bf16 %v6921_v38, %v6920_v1  ;;  %5798 = vrot.lane.b32.xlu0 %v15556_v8, %s14095_s27 }
 0x73d   : > { %12329 = vst [vmem:[%s17254_s12 + $0x8] sm:$0xff] %v11697_v13  }
 0x73e   : > { %11693 = vst [vmem:[%s17254_s12] sm:$0xff] %v11692_v26  }
 0x73f   : > { %12685 = vmatmul.mubr.msk.bf16.gmra.mrb[132].mxu1 %vm5717_vm0, %v7123_v12  ;;  %6539 = vrot.lane.b32.xlu1 %v15809_v11, %s14095_s27 }
 0x740   : > { %5800 = vrot.lane.b32.xlu0 %v15580_v63, %s14095_s27  ;;  %12688 = vmatprep.mubr.msk.bf16.mxu1 %vm5717_vm0, %v7124_v20 }
 0x742   : > { %v12630_v8 = vpop.f32.mrb[116].mxu0 }
 0x743   : > { %v6780_v41 = vadd.f32 %v12630_v8, %v15901_v43  ;;  %6541 = vrot.lane.b32.xlu1 %v15842_v36, %s14095_s27  ;;  %v6771_v34 = vpop.f32.mrb[117].mxu0  ;;  %v7126_v36 = vld [vmem:[#allocation5 + $0xf0] sm:$0xff] }
 0x744   : > { %5802 = vrot.lane.b32.xlu0 %v15605_v35, %s14095_s27  ;;  %v6772_v18 = vadd.f32 %v15901_v43, %v6771_v34  ;;  %v12631_v61 = vpop.f32.mrb[118].mxu0 }
 0x745   : > { %v6888_v11 = vmax.f32 %v6780_v41, 0.0  ;;  %v6783_v2 = vadd.f32 %v12631_v61, %v15901_v43  ;;  %v6774_v52 = vpop.f32.mrb[119].mxu0 }
 0x746   : > { %v6886_v63 = vmax.f32 %v6772_v18, 0.0  ;;  %v6775_v60 = vadd.f32 %v15901_v43, %v6774_v52 }
 0x747   : > { %v6889_v23 = vmax.f32 %v6783_v2, 0.0  ;;  %12689 = vmatmul.mubr.msk.bf16.gmra.mrb[136].mxu1 %vm5717_vm0, %v7125_v39  ;;  %6543 = vrot.lane.b32.xlu1 %v15875_v59, %s14095_s27  ;;  %v6926_v35 = vmul.f32 %v15910_v62, %v6888_v11 }
 0x748   : > { %v6887_v6 = vmax.f32 %v6775_v60, 0.0  ;;  %5804 = vrot.lane.b32.xlu0 %v15630_v47, %s14095_s27  ;;  %12692 = vmatprep.mubr.msk.bf16.mxu1 %vm5717_vm0, %v7126_v36  ;;  %v6924_v0 = vmul.f32 %v15910_v62, %v6886_v63  ;;  %v7127_v47 = vld [vmem:[#allocation5 + $0xf8] sm:$0xff]  ;;  %v8459_v36 = vld [vmem:[#allocation5 + $0x200] sm:$0xff] }
 0x749   : > { %v6927_v54 = vmul.f32 %v15910_v62, %v6889_v23 }
 0x74a   : > { %v6925_v7 = vmul.f32 %v15910_v62, %v6887_v6 }
 0x74b   : > { %v11707_v33 = vpack.c.bf16 %v6927_v54, %v6926_v35  ;;  %6320 = vrot.lane.b32.xlu1 %v15653_v37, %s14095_s27 }
 0x74c   : > { %v11702_v59 = vpack.c.bf16 %v6925_v7, %v6924_v0  ;;  %6055 = vrot.lane.b32.xlu0 %v15452_v25, %s14095_s27 }
 0x74d   : > { %12331 = vst [vmem:[%s17254_s12 + $0x18] sm:$0xff] %v11707_v33  }
 0x74e   : > { %12330 = vst [vmem:[%s17254_s12 + $0x10] sm:$0xff] %v11702_v59   ;;  %v8460_v59 = vld [vmem:[#allocation5 + $0x208] sm:$0xff] }
 0x74f   : > { %12693 = vmatmul.mubr.msk.bf16.gmra.mrb[140].mxu1 %vm5717_vm0, %v7127_v47  ;;  %6322 = vrot.lane.b32.xlu1 %v15679_v45, %s14095_s27  ;;  %v8461_v47 = vld [vmem:[#allocation5 + $0x210] sm:$0xff] }
 0x750   : > { %6057 = vrot.lane.b32.xlu0 %v15474_v44, %s14095_s27 }
 0x753   : > { %6324 = vrot.lane.b32.xlu1 %v15708_v51, %s14095_s27 }
 0x754   : > { %6059 = vrot.lane.b32.xlu0 %v15501_v30, %s14095_s27 }
 0x757   : > { %6326 = vrot.lane.b32.xlu1 %v15742_v3, %s14095_s27 }
 0x758   : > { %6061 = vrot.lane.b32.xlu0 %v15530_v40, %s14095_s27 }
 0x75b   : > { %6328 = vrot.lane.b32.xlu1 %v15777_v31, %s14095_s27 }
 0x75c   : > { %6063 = vrot.lane.b32.xlu0 %v15562_v42, %s14095_s27 }
 0x75f   : > { %6330 = vrot.lane.b32.xlu1 %v15807_v58, %s14095_s27 }
 0x760   : > { %6065 = vrot.lane.b32.xlu0 %v15586_v5, %s14095_s27 }
 0x761   : > { %v6265_v25 = vpop.permute.xlu0 %6264 }
 0x762   : > { %6288 = vst.msk [vmem:[#allocation5 + $0x180] sm:$0xff] %vm5717_vm0, %v6265_v25 }
 0x763   : > { %6332 = vrot.lane.b32.xlu1 %v15840_v53, %s14095_s27 }
 0x764   : > { %6067 = vrot.lane.b32.xlu0 %v15611_v10, %s14095_s27 }
 0x765   : > { %v5739_v44 = vpop.permute.xlu0 %5738 }
 0x766   : > { %5760 = vst.msk [vmem:[#allocation5 + $0x110] sm:$0xff] %vm5717_vm0, %v5739_v44 }
 0x767   : > { %6334 = vrot.lane.b32.xlu1 %v15873_v29, %s14095_s27 }
 0x768   : > { %6069 = vrot.lane.b32.xlu0 %v15636_v49, %s14095_s27 }
 0x769   : > { %v6267_v30 = vpop.permute.xlu1 %6266  ;;  %v8010_v40 = vld [vmem:[#allocation5 + $0x180] sm:$0xff] }
 0x76a   : > { %6289 = vst.msk [vmem:[#allocation5 + $0x188] sm:$0xff] %vm5717_vm0, %v6267_v30  ;;  %v5741_v42 = vpop.permute.xlu0 %5740  ;;  %12744 = vmatprep.mubr.msk.bf16.mxu1 %vm5717_vm0, %v8010_v40 }
 0x76b   : > { %5761 = vst.msk [vmem:[#allocation5 + $0x118] sm:$0xff] %vm5717_vm0, %v5741_v42  ;;  %6585 = vrot.lane.b32.xlu1 %v15658_v48, %s14095_s27 }
 0x76d   : > { %v7563_v5 = vld [vmem:[#allocation5 + $0x110] sm:$0xff] }
 0x76e   : > { %v5743_v10 = vpop.permute.xlu0 %5742  ;;  %12708 = vmatprep.mubr.msk.bf16.mxu0 %vm5717_vm0, %v7563_v5 }
 0x76f   : > { %5762 = vst.msk [vmem:[#allocation5 + $0x120] sm:$0xff] %vm5717_vm0, %v5743_v10  ;;  %6587 = vrot.lane.b32.xlu1 %v15684_v9, %s14095_s27  ;;  %v8462_v10 = vld [vmem:[#allocation5 + $0x218] sm:$0xff] }
 0x771   : > { %v6269_v49 = vpop.permute.xlu1 %6268  ;;  %v8011_v37 = vld [vmem:[#allocation5 + $0x188] sm:$0xff] }
 0x772   : > { %6290 = vst.msk [vmem:[#allocation5 + $0x190] sm:$0xff] %vm5717_vm0, %v6269_v49  ;;  %v5745_v45 = vpop.permute.xlu0 %5744  ;;  %v7564_v51 = vld [vmem:[#allocation5 + $0x118] sm:$0xff]  ;;  %12745 = vmatmul.mubr.msk.bf16.vlgmr.msra.gmra.mrb[144].mxu1 %vm5717_vm0, %v8011_v37 }
 0x773   : > { %5763 = vst.msk [vmem:[#allocation5 + $0x128] sm:$0xff] %vm5717_vm0, %v5745_v45  ;;  %12709 = vmatmul.mubr.msk.bf16.gmra.mrb[148].mxu0 %vm5717_vm0, %v7564_v51  ;;  %6589 = vrot.lane.b32.xlu1 %v15713_v17, %s14095_s27  ;;  %v8463_v45 = vld [vmem:[#allocation5 + $0x220] sm:$0xff] }
 0x774   : > { %12817 = vmatpush3.bf16.msra.mxu1 %v15732_v32 }
 0x775   : > { %12818 = vmatprep.subr.bf16.mxu1 %v15833_v21 }
 0x776   : > { %v5747_v48 = vpop.permute.xlu0 %5746  ;;  %v7565_v9 = vld [vmem:[#allocation5 + $0x120] sm:$0xff] }
 0x777   : > { %5764 = vst.msk [vmem:[#allocation5 + $0x130] sm:$0xff] %vm5717_vm0, %v5747_v48  ;;  %12712 = vmatprep.mubr.msk.bf16.mxu0 %vm5717_vm0, %v7565_v9  ;;  %6591 = vrot.lane.b32.xlu1 %v15748_v15, %s14095_s27 }
 0x778   : > { %12819 = vmatpush3.bf16.msra.mxu1 %v15833_v21 }
 0x779   : > { %v6271_v3 = vpop.permute.xlu1 %6270  ;;  %v8012_v31 = vld [vmem:[#allocation5 + $0x190] sm:$0xff]  ;;  %12820 = vmatprep.subr.bf16.mxu1 %v15844_v50 }
 0x77a   : > { %6291 = vst.msk [vmem:[#allocation5 + $0x198] sm:$0xff] %vm5717_vm0, %v6271_v3  ;;  %v5749_v17 = vpop.permute.xlu0 %5748  ;;  %v7566_v58 = vld [vmem:[#allocation5 + $0x128] sm:$0xff]  ;;  %12748 = vmatprep.mubr.msk.bf16.mxu1 %vm5717_vm0, %v8012_v31 }
 0x77b   : > { %5765 = vst.msk [vmem:[#allocation5 + $0x138] sm:$0xff] %vm5717_vm0, %v5749_v17  ;;  %12713 = vmatmul.mubr.msk.bf16.gmra.mrb[152].mxu0 %vm5717_vm0, %v7566_v58  ;;  %6593 = vrot.lane.b32.xlu1 %v15783_v27, %s14095_s27 }
 0x77c   : > { %12821 = vmatpush3.bf16.msra.mxu1 %v15844_v50 }
 0x77d   : > { %12822 = vmatprep.subr.bf16.mxu1 %v15774_v55 }
 0x77e   : > { %v6000_v15 = vpop.permute.xlu0 %5999  ;;  %v7567_v53 = vld [vmem:[#allocation5 + $0x130] sm:$0xff] }
 0x77f   : > { %6023 = vst.msk [vmem:[#allocation5 + $0x140] sm:$0xff] %vm5717_vm0, %v6000_v15  ;;  %12716 = vmatprep.mubr.msk.bf16.mxu0 %vm5717_vm0, %v7567_v53  ;;  %6595 = vrot.lane.b32.xlu1 %v15812_v24, %s14095_s27 }
 0x780   : > { %12823 = vmatpush3.bf16.msra.mxu1 %v15774_v55 }
 0x781   : > { %v6273_v29 = vpop.permute.xlu1 %6272  ;;  %v8013_v4 = vld [vmem:[#allocation5 + $0x198] sm:$0xff]  ;;  %12896 = vmatprep.subr.bf16.mxu1 %v15732_v32 }
 0x782   : > { %6292 = vst.msk [vmem:[#allocation5 + $0x1a0] sm:$0xff] %vm5717_vm0, %v6273_v29  ;;  %v6002_v27 = vpop.permute.xlu0 %6001  ;;  %v7568_v57 = vld [vmem:[#allocation5 + $0x138] sm:$0xff]  ;;  %12749 = vmatmul.mubr.msk.bf16.gmra.mrb[148].mxu1 %vm5717_vm0, %v8013_v4 }
 0x783   : > { %6024 = vst.msk [vmem:[#allocation5 + $0x148] sm:$0xff] %vm5717_vm0, %v6002_v27  ;;  %12717 = vmatmul.mubr.msk.bf16.gmra.mrb[156].mxu0 %vm5717_vm0, %v7568_v57  ;;  %6597 = vrot.lane.b32.xlu1 %v17255_v28, %s14095_s27 }
 0x786   : > { %v6004_v24 = vpop.permute.xlu0 %6003  ;;  %v7569_v19 = vld [vmem:[#allocation5 + $0x140] sm:$0xff] }
 0x787   : > { %6025 = vst.msk [vmem:[#allocation5 + $0x150] sm:$0xff] %vm5717_vm0, %v6004_v24  ;;  %12720 = vmatprep.mubr.msk.bf16.mxu0 %vm5717_vm0, %v7569_v19  ;;  %6599 = vrot.lane.b32.xlu1 %v15879_v46, %s14095_s27 }
 0x789   : > { %v6275_v22 = vpop.permute.xlu1 %6274  ;;  %v8014_v14 = vld [vmem:[#allocation5 + $0x1a0] sm:$0xff] }
 0x78a   : > { %6293 = vst.msk [vmem:[#allocation5 + $0x1a8] sm:$0xff] %vm5717_vm0, %v6275_v22  ;;  %v6006_v16 = vpop.permute.xlu0 %6005  ;;  %v7570_v56 = vld [vmem:[#allocation5 + $0x148] sm:$0xff]  ;;  %12752 = vmatprep.mubr.msk.bf16.mxu1 %vm5717_vm0, %v8014_v14 }
 0x78b   : > { %6026 = vst.msk [vmem:[#allocation5 + $0x158] sm:$0xff] %vm5717_vm0, %v6006_v16  ;;  %12721 = vmatmul.mubr.msk.bf16.gmra.mrb[160].mxu0 %vm5717_vm0, %v7570_v56  ;;  %v8464_v56 = vld [vmem:[#allocation5 + $0x228] sm:$0xff] }
 0x78e   : > { %v6008_v1 = vpop.permute.xlu0 %6007  ;;  %v7571_v38 = vld [vmem:[#allocation5 + $0x150] sm:$0xff] }
 0x78f   : > { %6027 = vst.msk [vmem:[#allocation5 + $0x160] sm:$0xff] %vm5717_vm0, %v6008_v1  ;;  %12724 = vmatprep.mubr.msk.bf16.mxu0 %vm5717_vm0, %v7571_v38 }
 0x791   : > { %v6277_v13 = vpop.permute.xlu1 %6276  ;;  %v8015_v46 = vld [vmem:[#allocation5 + $0x1a8] sm:$0xff] }
 0x792   : > { %6294 = vst.msk [vmem:[#allocation5 + $0x1b0] sm:$0xff] %vm5717_vm0, %v6277_v13  ;;  %v6010_v26 = vpop.permute.xlu0 %6009  ;;  %v7572_v12 = vld [vmem:[#allocation5 + $0x158] sm:$0xff]  ;;  %12753 = vmatmul.mubr.msk.bf16.gmra.mrb[152].mxu1 %vm5717_vm0, %v8015_v46 }
 0x793   : > { %6028 = vst.msk [vmem:[#allocation5 + $0x168] sm:$0xff] %vm5717_vm0, %v6010_v26  ;;  %12725 = vmatmul.mubr.msk.bf16.gmra.mrb[164].mxu0 %vm5717_vm0, %v7572_v12 }
 0x796   : > { %v6012_v20 = vpop.permute.xlu0 %6011  ;;  %v7573_v8 = vld [vmem:[#allocation5 + $0x160] sm:$0xff] }
 0x797   : > { %6029 = vst.msk [vmem:[#allocation5 + $0x170] sm:$0xff] %vm5717_vm0, %v6012_v20  ;;  %12728 = vmatprep.mubr.msk.bf16.mxu0 %vm5717_vm0, %v7573_v8 }
 0x799   : > { %v6279_v41 = vpop.permute.xlu1 %6278  ;;  %v8016_v34 = vld [vmem:[#allocation5 + $0x1b0] sm:$0xff] }
 0x79a   : > { %6295 = vst.msk [vmem:[#allocation5 + $0x1b8] sm:$0xff] %vm5717_vm0, %v6279_v41  ;;  %v6014_v18 = vpop.permute.xlu0 %6013  ;;  %v7574_v61 = vld [vmem:[#allocation5 + $0x168] sm:$0xff]  ;;  %12756 = vmatprep.mubr.msk.bf16.mxu1 %vm5717_vm0, %v8016_v34  ;;  %v8466_v34 = vld [vmem:[#allocation5 + $0x238] sm:$0xff] }
 0x79b   : > { %6030 = vst.msk [vmem:[#allocation5 + $0x178] sm:$0xff] %vm5717_vm0, %v6014_v18  ;;  %12729 = vmatmul.mubr.msk.bf16.gmra.mrb[168].mxu0 %vm5717_vm0, %v7574_v61  ;;  %v8908_v18 = vld [vmem:[#allocation5 + $0x280] sm:$0xff] }
 0x79d   : > { %v6530_v11 = vpop.permute.xlu1 %6529 }
 0x79e   : > { %6553 = vst.msk [vmem:[#allocation5 + $0x1c0] sm:$0xff] %vm5717_vm0, %v6530_v11  ;;  %v5791_v2 = vpop.permute.xlu0 %5790  ;;  %v7575_v52 = vld [vmem:[#allocation5 + $0x170] sm:$0xff] }
 0x79f   : > { %5814 = vst.msk [vmem:[#allocation5 + $0x300] sm:$0xff] %vm5717_vm0, %v5791_v2  ;;  %12732 = vmatprep.mubr.msk.bf16.mxu0 %vm5717_vm0, %v7575_v52  ;;  %v8467_v2 = vld [vmem:[#allocation5 + $0x240] sm:$0xff] }
 0x7a1   : > { %v6532_v63 = vpop.permute.xlu1 %6531  ;;  %v8017_v60 = vld [vmem:[#allocation5 + $0x1b8] sm:$0xff] }
 0x7a2   : > { %6554 = vst.msk [vmem:[#allocation5 + $0x1c8] sm:$0xff] %vm5717_vm0, %v6532_v63  ;;  %v5793_v39 = vpop.permute.xlu0 %5792  ;;  %v7576_v23 = vld [vmem:[#allocation5 + $0x178] sm:$0xff]  ;;  %12757 = vmatmul.mubr.msk.bf16.gmra.mrb[156].mxu1 %vm5717_vm0, %v8017_v60 }
 0x7a3   : > { %5815 = vst.msk [vmem:[#allocation5 + $0x308] sm:$0xff] %vm5717_vm0, %v5793_v39  ;;  %12733 = vmatmul.mubr.msk.bf16.gmra.mrb[172].mxu0 %vm5717_vm0, %v7576_v23 }
 0x7a4   : > { %12784 = vmatprep.mubr.msk.bf16.mxu0 %vm5717_vm0, %v8459_v36 }
 0x7a5   : > { %v6534_v6 = vpop.permute.xlu1 %6533  ;;  %v8018_v35 = vld [vmem:[#allocation5 + $0x1c0] sm:$0xff] }
 0x7a6   : > { %6555 = vst.msk [vmem:[#allocation5 + $0x1d0] sm:$0xff] %vm5717_vm0, %v6534_v6  ;;  %v5795_v54 = vpop.permute.xlu0 %5794  ;;  %12760 = vmatprep.mubr.msk.bf16.mxu1 %vm5717_vm0, %v8018_v35 }
 0x7a7   : > { %5816 = vst.msk [vmem:[#allocation5 + $0x310] sm:$0xff] %vm5717_vm0, %v5795_v54 }
 0x7a9   : > { %v6536_v0 = vpop.permute.xlu1 %6535  ;;  %v8019_v7 = vld [vmem:[#allocation5 + $0x1c8] sm:$0xff] }
 0x7aa   : > { %6556 = vst.msk [vmem:[#allocation5 + $0x1d8] sm:$0xff] %vm5717_vm0, %v6536_v0  ;;  %v5797_v33 = vpop.permute.xlu0 %5796  ;;  %12761 = vmatmul.mubr.msk.bf16.gmra.mrb[160].mxu1 %vm5717_vm0, %v8019_v7 }
 0x7ab   : > { %5817 = vst.msk [vmem:[#allocation5 + $0x318] sm:$0xff] %vm5717_vm0, %v5797_v33  ;;  %12785 = vmatmul.mubr.msk.bf16.vlgmr.msra.gmra.mrb[176].mxu0 %vm5717_vm0, %v8460_v59 }
 0x7ac   : > { %12788 = vmatprep.mubr.msk.bf16.mxu0 %vm5717_vm0, %v8461_v47  ;;  %12857 = vmatpush3.bf16.msra.mxu0 %v15732_v32 }
 0x7ad   : > { %v6538_v25 = vpop.permute.xlu1 %6537  ;;  %v8020_v44 = vld [vmem:[#allocation5 + $0x1d0] sm:$0xff]  ;;  %12858 = vmatprep.subr.bf16.mxu0 %v15833_v21 }
 0x7ae   : > { %6557 = vst.msk [vmem:[#allocation5 + $0x1e0] sm:$0xff] %vm5717_vm0, %v6538_v25  ;;  %v5799_v30 = vpop.permute.xlu0 %5798  ;;  %12764 = vmatprep.mubr.msk.bf16.mxu1 %vm5717_vm0, %v8020_v44  ;;  %v8909_v25 = vld [vmem:[#allocation5 + $0x288] sm:$0xff] }
 0x7af   : > { %5818 = vst.msk [vmem:[#allocation5 + $0x320] sm:$0xff] %vm5717_vm0, %v5799_v30 }
 0x7b0   : > { %12859 = vmatpush3.bf16.msra.mxu0 %v15833_v21 }
 0x7b1   : > { %v6540_v40 = vpop.permute.xlu1 %6539  ;;  %v8021_v42 = vld [vmem:[#allocation5 + $0x1d8] sm:$0xff]  ;;  %12860 = vmatprep.subr.bf16.mxu0 %v15844_v50 }
 0x7b2   : > { %6558 = vst.msk [vmem:[#allocation5 + $0x1e8] sm:$0xff] %vm5717_vm0, %v6540_v40  ;;  %v5801_v32 = vpop.permute.xlu0 %5800  ;;  %v12634_v5 = vpop.f32.mrb[120].mxu0  ;;  %12765 = vmatmul.mubr.msk.bf16.gmra.mrb[164].mxu1 %vm5717_vm0, %v8021_v42  ;;  %v8468_v42 = vld [vmem:[#allocation5 + $0x248] sm:$0xff] }
 0x7b3   : > { %5819 = vst.msk [vmem:[#allocation5 + $0x328] sm:$0xff] %vm5717_vm0, %v5801_v32  ;;  %v6796_v49 = vadd.f32 %v12634_v5, %v15901_v43  ;;  %12789 = vmatmul.mubr.msk.bf16.gmra.mrb[180].mxu0 %vm5717_vm0, %v8462_v10  ;;  %v6787_v37 = vpop.f32.mrb[121].mxu0  ;;  %v13694_v10 = vld [vmem:[#allocation19] sm:$0xff]  }
 0x7b4   : > { %v6788_v51 = vadd.f32 %v15901_v43, %v6787_v37  ;;  %12792 = vmatprep.mubr.msk.bf16.mxu0 %vm5717_vm0, %v8463_v45  ;;  %v12635_v48 = vpop.f32.mrb[122].mxu0  ;;  %12861 = vmatpush3.bf16.msra.mxu0 %v15844_v50  ;;  %v8910_v37 = vld [vmem:[#allocation5 + $0x290] sm:$0xff] }
 0x7b5   : > { %v6892_v9 = vmax.f32 %v6796_v49, 0.0  ;;  %v6799_v3 = vadd.f32 %v12635_v48, %v15901_v43  ;;  %v6542_v31 = vpop.permute.xlu1 %6541  ;;  %v6790_v17 = vpop.f32.mrb[123].mxu0  ;;  %v8022_v58 = vld [vmem:[#allocation5 + $0x1e0] sm:$0xff]  ;;  %12862 = vmatprep.subr.bf16.mxu0 %v15774_v55  ;;  %v8469_v49 = vld [vmem:[#allocation5 + $0x250] sm:$0xff] }
 0x7b6   : > { %v6890_v15 = vmax.f32 %v6788_v51, 0.0  ;;  %6559 = vst.msk [vmem:[#allocation5 + $0x1f0] sm:$0xff] %vm5717_vm0, %v6542_v31  ;;  %v5803_v53 = vpop.permute.xlu0 %5802  ;;  %v6791_v29 = vadd.f32 %v15901_v43, %v6790_v17  ;;  %12768 = vmatprep.mubr.msk.bf16.mxu1 %vm5717_vm0, %v8022_v58 }
 0x7b7   : > { %v6893_v4 = vmax.f32 %v6799_v3, 0.0  ;;  %5820 = vst.msk [vmem:[#allocation5 + $0x330] sm:$0xff] %vm5717_vm0, %v5803_v53  ;;  %v6930_v57 = vmul.f32 %v15910_v62, %v6892_v9 }
 0x7b8   : > { %v6891_v27 = vmax.f32 %v6791_v29, 0.0  ;;  %12863 = vmatpush3.bf16.msra.mxu0 %v15774_v55  ;;  %v6928_v22 = vmul.f32 %v15910_v62, %v6890_v15  ;;  %v8465_v55 = vld [vmem:[#allocation5 + $0x230] sm:$0xff] }
 0x7b9   : > { %v6931_v28 = vmul.f32 %v15910_v62, %v6893_v4  ;;  %v6544_v24 = vpop.permute.xlu1 %6543  ;;  %v8023_v19 = vld [vmem:[#allocation5 + $0x1e8] sm:$0xff] }
 0x7ba   : > { %v6929_v14 = vmul.f32 %v15910_v62, %v6891_v27  ;;  %6560 = vst.msk [vmem:[#allocation5 + $0x1f8] sm:$0xff] %vm5717_vm0, %v6544_v24  ;;  %v5805_v16 = vpop.permute.xlu0 %5804  ;;  %12769 = vmatmul.mubr.msk.bf16.gmra.mrb[168].mxu1 %vm5717_vm0, %v8023_v19  ;;  %v8911_v24 = vld [vmem:[#allocation5 + $0x298] sm:$0xff] }
 0x7bb   : > { %v11717_v1 = vpack.c.bf16 %v6931_v28, %v6930_v57  ;;  %5821 = vst.msk [vmem:[#allocation5 + $0x338] sm:$0xff] %vm5717_vm0, %v5805_v16  ;;  %12793 = vmatmul.mubr.msk.bf16.gmra.mrb[184].mxu0 %vm5717_vm0, %v8464_v56  ;;  %v8470_v56 = vld [vmem:[#allocation5 + $0x258] sm:$0xff] }
 0x7bc   : > { %v11712_v38 = vpack.c.bf16 %v6929_v14, %v6928_v22  ;;  %12796 = vmatprep.mubr.msk.bf16.mxu0 %vm5717_vm0, %v8465_v55 }
 0x7bd   : > { %12333 = vst [vmem:[%s17254_s12 + $0x28] sm:$0xff] %v11717_v1   ;;  %v6321_v13 = vpop.permute.xlu1 %6320  ;;  %v8024_v46 = vld [vmem:[#allocation5 + $0x1f0] sm:$0xff]  ;;  %v8912_v1 = vld [vmem:[#allocation5 + $0x2a0] sm:$0xff] }
 0x7be   : > { %12332 = vst [vmem:[%s17254_s12 + $0x20] sm:$0xff] %v11712_v38   ;;  %6344 = vst.msk [vmem:[#allocation5 + $0x380] sm:$0xff] %vm5717_vm0, %v6321_v13  ;;  %v6056_v26 = vpop.permute.xlu0 %6055  ;;  %12772 = vmatprep.mubr.msk.bf16.mxu1 %vm5717_vm0, %v8024_v46 }
 0x7bf   : > { %6079 = vst.msk [vmem:[#allocation5 + $0x340] sm:$0xff] %vm5717_vm0, %v6056_v26  ;;  %v8471_v26 = vld [vmem:[#allocation5 + $0x260] sm:$0xff] }
 0x7c1   : > { %v6323_v12 = vpop.permute.xlu1 %6322  ;;  %v8025_v20 = vld [vmem:[#allocation5 + $0x1f8] sm:$0xff] }
 0x7c2   : > { %6345 = vst.msk [vmem:[#allocation5 + $0x388] sm:$0xff] %vm5717_vm0, %v6323_v12  ;;  %v6058_v8 = vpop.permute.xlu0 %6057  ;;  %v12638_v41 = vpop.f32.mrb[124].mxu0  ;;  %12773 = vmatmul.mubr.msk.bf16.gmra.mrb[172].mxu1 %vm5717_vm0, %v8025_v20 }
 0x7c3   : > { %6080 = vst.msk [vmem:[#allocation5 + $0x348] sm:$0xff] %vm5717_vm0, %v6058_v8  ;;  %v6812_v61 = vadd.f32 %v12638_v41, %v15901_v43  ;;  %12797 = vmatmul.mubr.msk.bf16.gmra.mrb[188].mxu0 %vm5717_vm0, %v8466_v34  ;;  %v6803_v11 = vpop.f32.mrb[125].mxu0  ;;  %12824 = vmatprep.mubr.msk.bf16.mxu1 %vm5717_vm0, %v8908_v18 }
 0x7c4   : > { %v6804_v52 = vadd.f32 %v15901_v43, %v6803_v11  ;;  %12800 = vmatprep.mubr.msk.bf16.mxu0 %vm5717_vm0, %v8467_v2  ;;  %v12639_v63 = vpop.f32.mrb[126].mxu0 }
 0x7c5   : > { %v6896_v60 = vmax.f32 %v6812_v61, 0.0  ;;  %v6815_v39 = vadd.f32 %v12639_v63, %v15901_v43  ;;  %v6325_v23 = vpop.permute.xlu1 %6324  ;;  %v6806_v36 = vpop.f32.mrb[127].mxu0 }
 0x7c6   : > { %v6894_v6 = vmax.f32 %v6804_v52, 0.0  ;;  %6346 = vst.msk [vmem:[#allocation5 + $0x390] sm:$0xff] %vm5717_vm0, %v6325_v23  ;;  %v6060_v35 = vpop.permute.xlu0 %6059  ;;  %v6807_v54 = vadd.f32 %v15901_v43, %v6806_v36 }
 0x7c7   : > { %v6897_v0 = vmax.f32 %v6815_v39, 0.0  ;;  %6081 = vst.msk [vmem:[#allocation5 + $0x350] sm:$0xff] %vm5717_vm0, %v6060_v35  ;;  %v6934_v33 = vmul.f32 %v15910_v62, %v6896_v60  ;;  %v13695_v60 = vld [vmem:[#allocation19 + $0x18] sm:$0xff]  }
 0x7c8   : > { %v6895_v7 = vmax.f32 %v6807_v54, 0.0  ;;  %v6932_v44 = vmul.f32 %v15910_v62, %v6894_v6 }
 0x7c9   : > { %v6935_v59 = vmul.f32 %v15910_v62, %v6897_v0  ;;  %v6327_v47 = vpop.permute.xlu1 %6326 }
 0x7ca   : > { %v6933_v30 = vmul.f32 %v15910_v62, %v6895_v7  ;;  %6347 = vst.msk [vmem:[#allocation5 + $0x398] sm:$0xff] %vm5717_vm0, %v6327_v47  ;;  %v6062_v40 = vpop.permute.xlu0 %6061  ;;  %12825 = vmatmul.mubr.msk.bf16.vlgmr.msra.gmra.mrb[176].mxu1 %vm5717_vm0, %v8909_v25 }
 0x7cb   : > { %v11727_v32 = vpack.c.bf16 %v6935_v59, %v6934_v33  ;;  %6082 = vst.msk [vmem:[#allocation5 + $0x358] sm:$0xff] %vm5717_vm0, %v6062_v40  ;;  %v12642_v5 = vpop.f32.mrb[128].mxu0  ;;  %12801 = vmatmul.mubr.msk.bf16.gmra.mrb[192].mxu0 %vm5717_vm0, %v8468_v42  ;;  %12897 = vmatpush3.bf16.msra.mxu1 %v13694_v10 }
 0x7cc   : > { %v11722_v45 = vpack.c.bf16 %v6933_v30, %v6932_v44  ;;  %v6828_v51 = vadd.f32 %v12642_v5, %v15901_v43  ;;  %v6819_v48 = vpop.f32.mrb[129].mxu0  ;;  %12804 = vmatprep.mubr.msk.bf16.mxu0 %vm5717_vm0, %v8469_v49  ;;  %12828 = vmatprep.mubr.msk.bf16.mxu1 %vm5717_vm0, %v8910_v37  ;;  %v8913_v30 = vld [vmem:[#allocation5 + $0x2a8] sm:$0xff] }
 0x7cd   : > { %12335 = vst [vmem:[%s17254_s12 + $0x38] sm:$0xff] %v11727_v32   ;;  %v6820_v9 = vadd.f32 %v15901_v43, %v6819_v48  ;;  %v12643_v3 = vpop.f32.mrb[130].mxu0  ;;  %v6329_v31 = vpop.permute.xlu1 %6328  ;;  %12898 = vmatprep.subr.bf16.mxu1 %v15833_v21  ;;  %v8472_v37 = vld [vmem:[#allocation5 + $0x268] sm:$0xff] }
 0x7ce   : > { %12334 = vst [vmem:[%s17254_s12 + $0x30] sm:$0xff] %v11722_v45   ;;  %v6900_v17 = vmax.f32 %v6828_v51, 0.0  ;;  %v6831_v58 = vadd.f32 %v12643_v3, %v15901_v43  ;;  %6348 = vst.msk [vmem:[#allocation5 + $0x3a0] sm:$0xff] %vm5717_vm0, %v6329_v31  ;;  %v6064_v15 = vpop.permute.xlu0 %6063  ;;  %v6822_v53 = vpop.f32.mrb[131].mxu0  ;;  %v8914_v45 = vld [vmem:[#allocation5 + $0x2b0] sm:$0xff] }
 0x7cf   : > { %v6898_v29 = vmax.f32 %v6820_v9, 0.0  ;;  %6083 = vst.msk [vmem:[#allocation5 + $0x360] sm:$0xff] %vm5717_vm0, %v6064_v15  ;;  %v6823_v4 = vadd.f32 %v15901_v43, %v6822_v53  ;;  %12899 = vmatpush3.bf16.msra.mxu1 %v15833_v21  ;;  %v8473_v3 = vld [vmem:[#allocation5 + $0x270] sm:$0xff] }
 0x7d0   : > { %v6901_v27 = vmax.f32 %v6831_v58, 0.0  ;;  %12900 = vmatprep.subr.bf16.mxu1 %v15844_v50  ;;  %v6938_v19 = vmul.f32 %v15910_v62, %v6900_v17 }
 0x7d1   : > { %v6899_v57 = vmax.f32 %v6823_v4, 0.0  ;;  %v6331_v28 = vpop.permute.xlu1 %6330  ;;  %v6936_v21 = vmul.f32 %v15910_v62, %v6898_v29 }
 0x7d2   : > { %v6939_v22 = vmul.f32 %v15910_v62, %v6901_v27  ;;  %6349 = vst.msk [vmem:[#allocation5 + $0x3a8] sm:$0xff] %vm5717_vm0, %v6331_v28  ;;  %v6066_v14 = vpop.permute.xlu0 %6065  ;;  %v12666_v16 = vpop.f32.mrb[112].mxu1  ;;  %12829 = vmatmul.mubr.msk.bf16.gmra.mrb[180].mxu1 %vm5717_vm0, %v8911_v24 }
 0x7d3   : > { %v6937_v55 = vmul.f32 %v15910_v62, %v6899_v57  ;;  %6084 = vst.msk [vmem:[#allocation5 + $0x368] sm:$0xff] %vm5717_vm0, %v6066_v14  ;;  %v12646_v38 = vpop.f32.mrb[132].mxu0  ;;  %v7219_v13 = vadd.f32 %v12666_v16, %v15901_v43  ;;  %12805 = vmatmul.mubr.msk.bf16.gmra.mrb[196].mxu0 %vm5717_vm0, %v8470_v56  ;;  %v7210_v46 = vpop.f32.mrb[113].mxu1  ;;  %12832 = vmatprep.mubr.msk.bf16.mxu1 %vm5717_vm0, %v8912_v1 }
 0x7d4   : > { %v11737_v12 = vpack.c.bf16 %v6939_v22, %v6938_v19  ;;  %v6844_v20 = vadd.f32 %v12646_v38, %v15901_v43  ;;  %v6835_v8 = vpop.f32.mrb[133].mxu0  ;;  %v7211_v41 = vadd.f32 %v15901_v43, %v7210_v46  ;;  %12808 = vmatprep.mubr.msk.bf16.mxu0 %vm5717_vm0, %v8471_v26  ;;  %v12667_v34 = vpop.f32.mrb[114].mxu1  ;;  %12901 = vmatpush3.bf16.msra.mxu1 %v15844_v50  ;;  %v8474_v26 = vld [vmem:[#allocation5 + $0x278] sm:$0xff] }
 0x7d5   : > { %v11732_v18 = vpack.c.bf16 %v6937_v55, %v6936_v21  ;;  %v7339_v61 = vmax.f32 %v7219_v13, 0.0  ;;  %v6836_v11 = vadd.f32 %v15901_v43, %v6835_v8  ;;  %v12647_v2 = vpop.f32.mrb[134].mxu0  ;;  %v7222_v52 = vadd.f32 %v12667_v34, %v15901_v43  ;;  %v7213_v63 = vpop.f32.mrb[115].mxu1  ;;  %12902 = vmatprep.subr.bf16.mxu1 %v13695_v60  ;;  %v8915_v21 = vld [vmem:[#allocation5 + $0x2b8] sm:$0xff] }
 0x7d6   : > { %12337 = vst [vmem:[%s17254_s12 + $0x48] sm:$0xff] %v11737_v12   ;;  %v6904_v39 = vmax.f32 %v6844_v20, 0.0  ;;  %v7337_v23 = vmax.f32 %v7211_v41, 0.0  ;;  %v6847_v36 = vadd.f32 %v12647_v2, %v15901_v43  ;;  %v7214_v50 = vadd.f32 %v15901_v43, %v7213_v63  ;;  %v6333_v6 = vpop.permute.xlu1 %6332  ;;  %v6068_v35 = vpop.permute.xlu0 %6067  ;;  %v8916_v12 = vld [vmem:[#allocation5 + $0x2c0] sm:$0xff] }
 0x7d7   : > { %12336 = vst [vmem:[%s17254_s12 + $0x40] sm:$0xff] %v11732_v18   ;;  %v7340_v54 = vmax.f32 %v7222_v52, 0.0  ;;  %6350 = vst.msk [vmem:[#allocation5 + $0x3b0] sm:$0xff] %vm5717_vm0, %v6333_v6  ;;  %v6838_v0 = vpop.f32.mrb[135].mxu0  ;;  %v7371_v59 = vmul.f32 %v15910_v62, %v7339_v61  ;;  %v6902_v47 = vmax.f32 %v6836_v11, 0.0  ;;  %v9357_v61 = vld [vmem:[#allocation5 + $0x300] sm:$0xff] }
 0x7d8   : > { %6085 = vst.msk [vmem:[#allocation5 + $0x370] sm:$0xff] %vm5717_vm0, %v6068_v35  ;;  %v6905_v7 = vmax.f32 %v6847_v36, 0.0  ;;  %v7338_v33 = vmax.f32 %v7214_v50, 0.0  ;;  %12903 = vmatpush3.bf16.msra.mxu1 %v13695_v60  ;;  %v6839_v44 = vadd.f32 %v15901_v43, %v6838_v0  ;;  %v6942_v40 = vmul.f32 %v15910_v62, %v6904_v39 }
 0x7d9   : > { %v7372_v25 = vmul.f32 %v15910_v62, %v7340_v54  ;;  %v7369_v42 = vmul.f32 %v15910_v62, %v7337_v23  ;;  %v6940_v53 = vmul.f32 %v15910_v62, %v6902_v47 }
 0x7da   : > { %v6943_v32 = vmul.f32 %v15910_v62, %v6905_v7  ;;  %v7370_v5 = vmul.f32 %v15910_v62, %v7338_v33  ;;  %v6335_v10 = vpop.permute.xlu1 %6334  ;;  %v6070_v49 = vpop.permute.xlu0 %6069  ;;  %12833 = vmatmul.mubr.msk.bf16.gmra.mrb[184].mxu1 %vm5717_vm0, %v8913_v30  ;;  %v6903_v48 = vmax.f32 %v6839_v44, 0.0 }
 0x7db   : > { %v11777_v51 = vpack.c.bf16 %v7372_v25, %v7371_v59  ;;  %6351 = vst.msk [vmem:[#allocation5 + $0x3b8] sm:$0xff] %vm5717_vm0, %v6335_v10  ;;  %6086 = vst.msk [vmem:[#allocation5 + $0x378] sm:$0xff] %vm5717_vm0, %v6070_v49  ;;  %v12650_v9 = vpop.f32.mrb[136].mxu0  ;;  %12809 = vmatmul.mubr.msk.bf16.gmra.mrb[200].mxu0 %vm5717_vm0, %v8472_v37  ;;  %12836 = vmatprep.mubr.msk.bf16.mxu1 %vm5717_vm0, %v8914_v45  ;;  %v8917_v49 = vld [vmem:[#allocation5 + $0x2c8] sm:$0xff] }
 0x7dc   : > { %v11747_v31 = vpack.c.bf16 %v6943_v32, %v6942_v40  ;;  %v11772_v17 = vpack.c.bf16 %v7370_v5, %v7369_v42  ;;  %v6860_v58 = vadd.f32 %v12650_v9, %v15901_v43  ;;  %v6851_v15 = vpop.f32.mrb[137].mxu0  ;;  %12812 = vmatprep.mubr.msk.bf16.mxu0 %vm5717_vm0, %v8473_v3  ;;  %v6941_v29 = vmul.f32 %v15910_v62, %v6903_v48  ;;  %v9358_v3 = vld [vmem:[#allocation5 + $0x308] sm:$0xff] }
 0x7dd   : > { %12345 = vst [vmem:[%s17254_s12 + $0x88] sm:$0xff] %v11777_v51   ;;  %v6852_v4 = vadd.f32 %v15901_v43, %v6851_v15  ;;  %v12651_v27 = vpop.f32.mrb[138].mxu0 }
 0x7de   : > { %12339 = vst [vmem:[%s17254_s12 + $0x58] sm:$0xff] %v11747_v31   ;;  %12344 = vst [vmem:[%s17254_s12 + $0x80] sm:$0xff] %v11772_v17   ;;  %v6908_v57 = vmax.f32 %v6860_v58, 0.0  ;;  %v6863_v28 = vadd.f32 %v12651_v27, %v15901_v43  ;;  %v6586_v24 = vpop.permute.xlu1 %6585  ;;  %v6854_v19 = vpop.f32.mrb[139].mxu0  ;;  %v11742_v22 = vpack.c.bf16 %v6941_v29, %v6940_v53  ;;  %v8918_v31 = vld [vmem:[#allocation5 + $0x2d0] sm:$0xff] }
 0x7df   : > { %v6906_v14 = vmax.f32 %v6852_v4, 0.0  ;;  %6609 = vst.msk [vmem:[#allocation5 + $0x3c0] sm:$0xff] %vm5717_vm0, %v6586_v24  ;;  %v6855_v16 = vadd.f32 %v15901_v43, %v6854_v19  ;;  %v9359_v29 = vld [vmem:[#allocation5 + $0x310] sm:$0xff] }
 0x7e0   : > { %v6909_v56 = vmax.f32 %v6863_v28, 0.0  ;;  %12338 = vst [vmem:[%s17254_s12 + $0x50] sm:$0xff] %v11742_v22   ;;  %v6946_v55 = vmul.f32 %v15910_v62, %v6908_v57 }
 0x7e1   : > { %v6907_v1 = vmax.f32 %v6855_v16, 0.0  ;;  %v6944_v20 = vmul.f32 %v15910_v62, %v6906_v14  ;;  %v16260_v14 = vld [vmem:[#allocation20] ss:$0 sm:$0xff] }
 0x7e2   : > { %v6947_v38 = vmul.f32 %v15910_v62, %v6909_v56  ;;  %v6588_v13 = vpop.permute.xlu1 %6587  ;;  %v12670_v46 = vpop.f32.mrb[116].mxu1  ;;  %12837 = vmatmul.mubr.msk.bf16.gmra.mrb[188].mxu1 %vm5717_vm0, %v8915_v21 }
 0x7e3   : > { %v6945_v8 = vmul.f32 %v15910_v62, %v6907_v1  ;;  %6610 = vst.msk [vmem:[#allocation5 + $0x3c8] sm:$0xff] %vm5717_vm0, %v6588_v13  ;;  %v12654_v41 = vpop.f32.mrb[140].mxu0  ;;  %v7235_v34 = vadd.f32 %v12670_v46, %v15901_v43  ;;  %12813 = vmatmul.mubr.msk.bf16.gmra.mrb[204].mxu0 %vm5717_vm0, %v8474_v26  ;;  %v7226_v18 = vpop.f32.mrb[117].mxu1  ;;  %12840 = vmatprep.mubr.msk.bf16.mxu1 %vm5717_vm0, %v8916_v12  ;;  %v8919_v13 = vld [vmem:[#allocation5 + $0x2d8] sm:$0xff] }
 0x7e4   : > { %v11757_v11 = vpack.c.bf16 %v6947_v38, %v6946_v55  ;;  %v6876_v2 = vadd.f32 %v12654_v41, %v15901_v43  ;;  %v6867_v52 = vpop.f32.mrb[141].mxu0  ;;  %v7227_v63 = vadd.f32 %v15901_v43, %v7226_v18  ;;  %12864 = vmatprep.mubr.msk.bf16.mxu0 %vm5717_vm0, %v9357_v61  ;;  %v12671_v60 = vpop.f32.mrb[118].mxu1  ;;  %v16268_v46 = vld [vmem:[#allocation22] ss:$0 sm:$0xff] }
 0x7e5   : > { %v11752_v39 = vpack.c.bf16 %v6945_v8, %v6944_v20  ;;  %v7343_v23 = vmax.f32 %v7235_v34, 0.0  ;;  %v6868_v36 = vadd.f32 %v15901_v43, %v6867_v52  ;;  %v12655_v50 = vpop.f32.mrb[142].mxu0  ;;  %v7238_v6 = vadd.f32 %v12671_v60, %v15901_v43  ;;  %v7229_v35 = vpop.f32.mrb[119].mxu1  ;;  %v9360_v41 = vld [vmem:[#allocation5 + $0x318] sm:$0xff]  ;;  %v8920_v34 = vld [vmem:[#allocation5 + $0x2e0] sm:$0xff] }
 0x7e6   : > { %12341 = vst [vmem:[%s17254_s12 + $0x68] sm:$0xff] %v11757_v11   ;;  %v6912_v54 = vmax.f32 %v6876_v2, 0.0  ;;  %v7341_v0 = vmax.f32 %v7227_v63, 0.0  ;;  %v6879_v7 = vadd.f32 %v12655_v50, %v15901_v43  ;;  %v7230_v33 = vadd.f32 %v15901_v43, %v7229_v35  ;;  %v6590_v59 = vpop.permute.xlu1 %6589  ;;  %v6870_v47 = vpop.f32.mrb[143].mxu0  ;;  %v9361_v52 = vld [vmem:[#allocation5 + $0x320] sm:$0xff] }
 0x7e7   : > { %12340 = vst [vmem:[%s17254_s12 + $0x60] sm:$0xff] %v11752_v39   ;;  %v6910_v25 = vmax.f32 %v6868_v36, 0.0  ;;  %v7344_v44 = vmax.f32 %v7238_v6, 0.0  ;;  %6611 = vst.msk [vmem:[#allocation5 + $0x3d0] sm:$0xff] %vm5717_vm0, %v6590_v59  ;;  %v6871_v30 = vadd.f32 %v15901_v43, %v6870_v47  ;;  %v7375_v32 = vmul.f32 %v15910_v62, %v7343_v23 }
 0x7e8   : > { %v6913_v40 = vmax.f32 %v6879_v7, 0.0  ;;  %v7342_v42 = vmax.f32 %v7230_v33, 0.0  ;;  %v6950_v37 = vmul.f32 %v15910_v62, %v6912_v54  ;;  %v7373_v45 = vmul.f32 %v15910_v62, %v7341_v0 }
 0x7e9   : > { %v7376_v5 = vmul.f32 %v15910_v62, %v7344_v44  ;;  %v6911_v10 = vmax.f32 %v6871_v30, 0.0  ;;  %v6948_v17 = vmul.f32 %v15910_v62, %v6910_v25  ;;  %v8921_v25 = vld [vmem:[#allocation5 + $0x2e8] sm:$0xff] }
 0x7ea   : > { %v6951_v51 = vmul.f32 %v15910_v62, %v6913_v40  ;;  %v7374_v48 = vmul.f32 %v15910_v62, %v7342_v42  ;;  %v6592_v9 = vpop.permute.xlu1 %6591  ;;  %12841 = vmatmul.mubr.msk.bf16.gmra.mrb[192].mxu1 %vm5717_vm0, %v8917_v49  ;;  %v9362_v42 = vld [vmem:[#allocation5 + $0x328] sm:$0xff] }
 0x7eb   : > { %v11787_v58 = vpack.c.bf16 %v7376_v5, %v7375_v32  ;;  %v6949_v15 = vmul.f32 %v15910_v62, %v6911_v10  ;;  %6612 = vst.msk [vmem:[#allocation5 + $0x3d8] sm:$0xff] %vm5717_vm0, %v6592_v9  ;;  %v12706_v53 = vpop.f32.mrb[144].mxu0  ;;  %12865 = vmatmul.mubr.msk.bf16.vlgmr.msra.gmra.mrb[208].mxu0 %vm5717_vm0, %v9358_v3  ;;  %12844 = vmatprep.mubr.msk.bf16.mxu1 %vm5717_vm0, %v8918_v31  ;;  %v8922_v32 = vld [vmem:[#allocation5 + $0x2f0] sm:$0xff]  ;;  %v9365_v31 = vld [vmem:[#allocation5 + $0x340] sm:$0xff] }
 0x7ec   : > { %v11767_v4 = vpack.c.bf16 %v6951_v51, %v6950_v37  ;;  %v11782_v27 = vpack.c.bf16 %v7374_v48, %v7373_v45  ;;  %v7668_v57 = vadd.f32 %v12706_v53, %v15901_v43  ;;  %v7659_v28 = vpop.f32.mrb[145].mxu0  ;;  %12868 = vmatprep.mubr.msk.bf16.mxu0 %vm5717_vm0, %v9359_v29  ;;  %v9363_v10 = vld [vmem:[#allocation5 + $0x330] sm:$0xff]  ;;  %v8923_v37 = vld [vmem:[#allocation5 + $0x2f8] sm:$0xff]  ;;  %v9806_v48 = vld [vmem:[#allocation5 + $0x380] sm:$0xff] }
 0x7ed   : > { %12347 = vst [vmem:[%s17254_s12 + $0x98] sm:$0xff] %v11787_v58   ;;  %v11762_v62 = vpack.c.bf16 %v6949_v15, %v6948_v17  ;;  %v7660_v24 = vadd.f32 %v15901_v43, %v7659_v28  ;;  %v12707_v19 = vpop.f32.mrb[146].mxu0  ;;  %v9364_v51 = vld [vmem:[#allocation5 + $0x338] sm:$0xff] }
 0x7ee   : > { %12343 = vst [vmem:[%s17254_s12 + $0x78] sm:$0xff] %v11767_v4   ;;  %12346 = vst [vmem:[%s17254_s12 + $0x90] sm:$0xff] %v11782_v27   ;;  %v7788_v22 = vmax.f32 %v7668_v57, 0.0  ;;  %v7671_v16 = vadd.f32 %v16260_v14, %v12707_v19  ;;  %v6594_v56 = vpop.permute.xlu1 %6593  ;;  %v7662_v1 = vpop.f32.mrb[147].mxu0  ;;  %v9807_v19 = vld [vmem:[#allocation5 + $0x388] sm:$0xff] }
 0x7ef   : > { %12342 = vst [vmem:[%s17254_s12 + $0x70] sm:$0xff] %v11762_v62   ;;  %v7786_v43 = vmax.f32 %v7660_v24, 0.0  ;;  %6613 = vst.msk [vmem:[#allocation5 + $0x3e0] sm:$0xff] %vm5717_vm0, %v6594_v56  ;;  %v7663_v21 = vadd.f32 %v16260_v14, %v7662_v1  ;;  %v9366_v1 = vld [vmem:[#allocation5 + $0x348] sm:$0xff] }
 0x7f0   : > { %v7789_v55 = vmax.f32 %v7671_v16, 0.0  ;;  %v7820_v26 = vmul.f32 %v16268_v46, %v7788_v22 }
 0x7f1   : > { %v7787_v38 = vmax.f32 %v7663_v21, 0.0  ;;  %v7818_v18 = vmul.f32 %v16268_v46, %v7786_v43  ;;  %v9808_v43 = vld [vmem:[#allocation5 + $0x390] sm:$0xff] }
 0x7f2   : > { %v7821_v12 = vmul.f32 %v16268_v46, %v7789_v55  ;;  %v6596_v20 = vpop.permute.xlu1 %6595  ;;  %v12674_v8 = vpop.f32.mrb[120].mxu1  ;;  %12845 = vmatmul.mubr.msk.bf16.gmra.mrb[196].mxu1 %vm5717_vm0, %v8919_v13  ;;  %v9367_v13 = vld [vmem:[#allocation5 + $0x350] sm:$0xff] }
 0x7f3   : > { %v7819_v61 = vmul.f32 %v16268_v46, %v7787_v38  ;;  %6614 = vst.msk [vmem:[#allocation5 + $0x3e8] sm:$0xff] %vm5717_vm0, %v6596_v20  ;;  %v7251_v11 = vadd.f32 %v16260_v14, %v12674_v8  ;;  %12869 = vmatmul.mubr.msk.bf16.gmra.mrb[212].mxu0 %vm5717_vm0, %v9360_v41  ;;  %v7242_v2 = vpop.f32.mrb[121].mxu1  ;;  %12848 = vmatprep.mubr.msk.bf16.mxu1 %vm5717_vm0, %v8920_v34 }
 0x7f4   : > { %v11857_v63 = vpack.c.bf16 %v7821_v12, %v7820_v26  ;;  %v7243_v60 = vadd.f32 %v16260_v14, %v7242_v2  ;;  %12872 = vmatprep.mubr.msk.bf16.mxu0 %vm5717_vm0, %v9361_v52  ;;  %v12675_v39 = vpop.f32.mrb[122].mxu1 }
 0x7f5   : > { %v11852_v23 = vpack.c.bf16 %v7819_v61, %v7818_v18  ;;  %v7347_v36 = vmax.f32 %v7251_v11, 0.0  ;;  %v7254_v50 = vadd.f32 %v16260_v14, %v12675_v39  ;;  %v7245_v6 = vpop.f32.mrb[123].mxu1 }
 0x7f6   : > { %12361 = vst [vmem:[%s17254_s12 + $0x108] sm:$0xff] %v11857_v63   ;;  %v7345_v35 = vmax.f32 %v7243_v60, 0.0  ;;  %v7246_v54 = vadd.f32 %v16260_v14, %v7245_v6  ;;  %v6598_v0 = vpop.permute.xlu1 %6597  ;;  %v9809_v60 = vld [vmem:[#allocation5 + $0x398] sm:$0xff]  ;;  %v9810_v6 = vld [vmem:[#allocation5 + $0x3a0] sm:$0xff] }
 0x7f7   : > { %12360 = vst [vmem:[%s17254_s12 + $0x100] sm:$0xff] %v11852_v23   ;;  %v7348_v7 = vmax.f32 %v7254_v50, 0.0  ;;  %6615 = vst.msk [vmem:[#allocation5 + $0x3f0] sm:$0xff] %vm5717_vm0, %v6598_v0  ;;  %v7379_v59 = vmul.f32 %v16268_v46, %v7347_v36  ;;  %v9368_v50 = vld [vmem:[#allocation5 + $0x358] sm:$0xff] }
 0x7f8   : > { %v7346_v33 = vmax.f32 %v7246_v54, 0.0  ;;  %v7377_v44 = vmul.f32 %v16268_v46, %v7345_v35 }
 0x7f9   : > { %v7380_v47 = vmul.f32 %v16268_v46, %v7348_v7  ;;  %v9369_v7 = vld [vmem:[#allocation5 + $0x360] sm:$0xff] }
 0x7fa   : > { %v7378_v30 = vmul.f32 %v16268_v46, %v7346_v33  ;;  %v6600_v40 = vpop.permute.xlu1 %6599  ;;  %12849 = vmatmul.mubr.msk.bf16.gmra.mrb[200].mxu1 %vm5717_vm0, %v8921_v25 }
 0x7fb   : > { %v11797_v5 = vpack.c.bf16 %v7380_v47, %v7379_v59  ;;  %6616 = vst.msk [vmem:[#allocation5 + $0x3f8] sm:$0xff] %vm5717_vm0, %v6600_v40  ;;  %12873 = vmatmul.mubr.msk.bf16.gmra.mrb[216].mxu0 %vm5717_vm0, %v9362_v42  ;;  %12852 = vmatprep.mubr.msk.bf16.mxu1 %vm5717_vm0, %v8922_v32 }
 0x7fc   : > { %v11792_v49 = vpack.c.bf16 %v7378_v30, %v7377_v44  ;;  %12876 = vmatprep.mubr.msk.bf16.mxu0 %vm5717_vm0, %v9363_v10 }
 0x7fd   : > { %12349 = vst [vmem:[%s17254_s12 + $0xa8] sm:$0xff] %v11797_v5  }
 0x7fe   : > { %12348 = vst [vmem:[%s17254_s12 + $0xa0] sm:$0xff] %v11792_v49  }
 0x802   : > { %v12678_v45 = vpop.f32.mrb[124].mxu1  ;;  %12853 = vmatmul.mubr.msk.bf16.gmra.mrb[204].mxu1 %vm5717_vm0, %v8923_v37  ;;  %v9811_v37 = vld [vmem:[#allocation5 + $0x3a8] sm:$0xff] }
 0x803   : > { %v7267_v9 = vadd.f32 %v16260_v14, %v12678_v45  ;;  %12877 = vmatmul.mubr.msk.bf16.gmra.mrb[220].mxu0 %vm5717_vm0, %v9364_v51  ;;  %v7258_v3 = vpop.f32.mrb[125].mxu1  ;;  %12904 = vmatprep.mubr.msk.bf16.mxu1 %vm5717_vm0, %v9806_v48 }
 0x804   : > { %v7259_v17 = vadd.f32 %v16260_v14, %v7258_v3  ;;  %12880 = vmatprep.mubr.msk.bf16.mxu0 %vm5717_vm0, %v9365_v31  ;;  %v12679_v58 = vpop.f32.mrb[126].mxu1  ;;  %v9812_v3 = vld [vmem:[#allocation5 + $0x3b0] sm:$0xff] }
 0x805   : > { %v7351_v15 = vmax.f32 %v7267_v9, 0.0  ;;  %v7270_v53 = vadd.f32 %v16260_v14, %v12679_v58  ;;  %v7261_v29 = vpop.f32.mrb[127].mxu1  ;;  %v9370_v9 = vld [vmem:[#allocation5 + $0x368] sm:$0xff] }
 0x806   : > { %v7349_v4 = vmax.f32 %v7259_v17, 0.0  ;;  %v7262_v27 = vadd.f32 %v16260_v14, %v7261_v29 }
 0x807   : > { %v7352_v57 = vmax.f32 %v7270_v53, 0.0  ;;  %v7383_v62 = vmul.f32 %v16268_v46, %v7351_v15  ;;  %v9371_v15 = vld [vmem:[#allocation5 + $0x370] sm:$0xff] }
 0x808   : > { %v7350_v28 = vmax.f32 %v7262_v27, 0.0  ;;  %v7381_v22 = vmul.f32 %v16268_v46, %v7349_v4 }
 0x809   : > { %v7384_v24 = vmul.f32 %v16268_v46, %v7352_v57 }
 0x80a   : > { %v7382_v16 = vmul.f32 %v16268_v46, %v7350_v28  ;;  %v12682_v56 = vpop.f32.mrb[128].mxu1  ;;  %12905 = vmatmul.mubr.msk.bf16.vlgmr.msra.gmra.mrb[208].mxu1 %vm5717_vm0, %v9807_v19 }
 0x80b   : > { %v11807_v21 = vpack.c.bf16 %v7384_v24, %v7383_v62  ;;  %v7283_v55 = vadd.f32 %v16260_v14, %v12682_v56  ;;  %12881 = vmatmul.mubr.msk.bf16.gmra.mrb[224].mxu0 %vm5717_vm0, %v9366_v1  ;;  %v7274_v38 = vpop.f32.mrb[129].mxu1  ;;  %12908 = vmatprep.mubr.msk.bf16.mxu1 %vm5717_vm0, %v9808_v43  ;;  %v9813_v1 = vld [vmem:[#allocation5 + $0x3b8] sm:$0xff] }
 0x80c   : > { %v11802_v26 = vpack.c.bf16 %v7382_v16, %v7381_v22  ;;  %v7275_v12 = vadd.f32 %v16260_v14, %v7274_v38  ;;  %12884 = vmatprep.mubr.msk.bf16.mxu0 %vm5717_vm0, %v9367_v13  ;;  %v12683_v20 = vpop.f32.mrb[130].mxu1  ;;  %v9372_v38 = vld [vmem:[#allocation5 + $0x378] sm:$0xff]  ;;  %v9814_v13 = vld [vmem:[#allocation5 + $0x3c0] sm:$0xff] }
 0x80d   : > { %12351 = vst [vmem:[%s17254_s12 + $0xb8] sm:$0xff] %v11807_v21   ;;  %v7355_v8 = vmax.f32 %v7283_v55, 0.0  ;;  %v7286_v41 = vadd.f32 %v16260_v14, %v12683_v20  ;;  %v7277_v34 = vpop.f32.mrb[131].mxu1 }
 0x80e   : > { %12350 = vst [vmem:[%s17254_s12 + $0xb0] sm:$0xff] %v11802_v26   ;;  %v7353_v18 = vmax.f32 %v7275_v12, 0.0  ;;  %v7278_v61 = vadd.f32 %v16260_v14, %v7277_v34 }
 0x80f   : > { %v7356_v11 = vmax.f32 %v7286_v41, 0.0  ;;  %v7387_v52 = vmul.f32 %v16268_v46, %v7355_v8 }
 0x810   : > { %v7354_v2 = vmax.f32 %v7278_v61, 0.0  ;;  %v7385_v39 = vmul.f32 %v16268_v46, %v7353_v18 }
 0x811   : > { %v7388_v63 = vmul.f32 %v16268_v46, %v7356_v11 }
 0x812   : > { %v7386_v23 = vmul.f32 %v16268_v46, %v7354_v2  ;;  %v12686_v36 = vpop.f32.mrb[132].mxu1  ;;  %12909 = vmatmul.mubr.msk.bf16.gmra.mrb[212].mxu1 %vm5717_vm0, %v9809_v60 }
 0x813   : > { %v11817_v35 = vpack.c.bf16 %v7388_v63, %v7387_v52  ;;  %v7299_v54 = vadd.f32 %v16260_v14, %v12686_v36  ;;  %12885 = vmatmul.mubr.msk.bf16.gmra.mrb[228].mxu0 %vm5717_vm0, %v9368_v50  ;;  %v7290_v0 = vpop.f32.mrb[133].mxu1  ;;  %12912 = vmatprep.mubr.msk.bf16.mxu1 %vm5717_vm0, %v9810_v6  ;;  %v9815_v36 = vld [vmem:[#allocation5 + $0x3c8] sm:$0xff] }
 0x814   : > { %v11812_v33 = vpack.c.bf16 %v7386_v23, %v7385_v39  ;;  %v7291_v59 = vadd.f32 %v16260_v14, %v7290_v0  ;;  %12888 = vmatprep.mubr.msk.bf16.mxu0 %vm5717_vm0, %v9369_v7  ;;  %v12687_v47 = vpop.f32.mrb[134].mxu1  ;;  %v9817_v7 = vld [vmem:[#allocation5 + $0x3d8] sm:$0xff] }
 0x815   : > { %12353 = vst [vmem:[%s17254_s12 + $0xc8] sm:$0xff] %v11817_v35   ;;  %v7359_v25 = vmax.f32 %v7299_v54, 0.0  ;;  %v7302_v44 = vadd.f32 %v16260_v14, %v12687_v47  ;;  %v7293_v30 = vpop.f32.mrb[135].mxu1  ;;  %v9816_v35 = vld [vmem:[#allocation5 + $0x3d0] sm:$0xff] }
 0x816   : > { %12352 = vst [vmem:[%s17254_s12 + $0xc0] sm:$0xff] %v11812_v33   ;;  %v7357_v40 = vmax.f32 %v7291_v59, 0.0  ;;  %v7294_v42 = vadd.f32 %v16260_v14, %v7293_v30  ;;  %v9818_v33 = vld [vmem:[#allocation5 + $0x3e0] sm:$0xff]  ;;  %v9819_v59 = vld [vmem:[#allocation5 + $0x3e8] sm:$0xff]  ;;  %v9820_v47 = vld [vmem:[#allocation5 + $0x3f0] sm:$0xff] }
 0x817   : > { %v7360_v32 = vmax.f32 %v7302_v44, 0.0  ;;  %v7391_v10 = vmul.f32 %v16268_v46, %v7359_v25  ;;  %v9821_v25 = vld [vmem:[#allocation5 + $0x3f8] sm:$0xff] }
 0x818   : > { %v7358_v5 = vmax.f32 %v7294_v42, 0.0  ;;  %v7389_v45 = vmul.f32 %v16268_v46, %v7357_v40 }
 0x819   : > { %v7392_v49 = vmul.f32 %v16268_v46, %v7360_v32 }
 0x81a   : > { %v7390_v51 = vmul.f32 %v16268_v46, %v7358_v5  ;;  %v12690_v48 = vpop.f32.mrb[136].mxu1  ;;  %12913 = vmatmul.mubr.msk.bf16.gmra.mrb[216].mxu1 %vm5717_vm0, %v9811_v37 }
 0x81b   : > { %v11827_v31 = vpack.c.bf16 %v7392_v49, %v7391_v10  ;;  %v7315_v17 = vadd.f32 %v16260_v14, %v12690_v48  ;;  %12889 = vmatmul.mubr.msk.bf16.gmra.mrb[232].mxu0 %vm5717_vm0, %v9370_v9  ;;  %v7306_v58 = vpop.f32.mrb[137].mxu1  ;;  %12916 = vmatprep.mubr.msk.bf16.mxu1 %vm5717_vm0, %v9812_v3 }
 0x81c   : > { %v11822_v53 = vpack.c.bf16 %v7390_v51, %v7389_v45  ;;  %v7307_v29 = vadd.f32 %v16260_v14, %v7306_v58  ;;  %12892 = vmatprep.mubr.msk.bf16.mxu0 %vm5717_vm0, %v9371_v15  ;;  %v12691_v4 = vpop.f32.mrb[138].mxu1 }
 0x81d   : > { %12355 = vst [vmem:[%s17254_s12 + $0xd8] sm:$0xff] %v11827_v31   ;;  %v7363_v27 = vmax.f32 %v7315_v17, 0.0  ;;  %v7318_v57 = vadd.f32 %v16260_v14, %v12691_v4  ;;  %v7309_v28 = vpop.f32.mrb[139].mxu1 }
 0x81e   : > { %12354 = vst [vmem:[%s17254_s12 + $0xd0] sm:$0xff] %v11822_v53   ;;  %v7361_v62 = vmax.f32 %v7307_v29, 0.0  ;;  %v7310_v24 = vadd.f32 %v16260_v14, %v7309_v28 }
 0x81f   : > { %v7364_v19 = vmax.f32 %v7318_v57, 0.0  ;;  %v7395_v16 = vmul.f32 %v16268_v46, %v7363_v27 }
 0x820   : > { %v7362_v22 = vmax.f32 %v7310_v24, 0.0  ;;  %v7393_v43 = vmul.f32 %v16268_v46, %v7361_v62 }
 0x821   : > { %v7396_v56 = vmul.f32 %v16268_v46, %v7364_v19 }
 0x822   : > { %v7394_v21 = vmul.f32 %v16268_v46, %v7362_v22  ;;  %v12694_v55 = vpop.f32.mrb[140].mxu1  ;;  %12917 = vmatmul.mubr.msk.bf16.gmra.mrb[220].mxu1 %vm5717_vm0, %v9813_v1 }
 0x823   : > { %v11837_v26 = vpack.c.bf16 %v7396_v56, %v7395_v16  ;;  %v7331_v12 = vadd.f32 %v16260_v14, %v12694_v55  ;;  %12893 = vmatmul.mubr.msk.bf16.gmra.mrb[236].mxu0 %vm5717_vm0, %v9372_v38  ;;  %v7322_v20 = vpop.f32.mrb[141].mxu1  ;;  %12920 = vmatprep.mubr.msk.bf16.mxu1 %vm5717_vm0, %v9814_v13 }
 0x824   : > { %v11832_v8 = vpack.c.bf16 %v7394_v21, %v7393_v43  ;;  %v7323_v41 = vadd.f32 %v16260_v14, %v7322_v20  ;;  %v12695_v34 = vpop.f32.mrb[142].mxu1 }
 0x825   : > { %12357 = vst [vmem:[%s17254_s12 + $0xe8] sm:$0xff] %v11837_v26   ;;  %v7367_v18 = vmax.f32 %v7331_v12, 0.0  ;;  %v7334_v61 = vadd.f32 %v16260_v14, %v12695_v34  ;;  %v7325_v11 = vpop.f32.mrb[143].mxu1 }
 0x826   : > { %12356 = vst [vmem:[%s17254_s12 + $0xe0] sm:$0xff] %v11832_v8   ;;  %v7365_v2 = vmax.f32 %v7323_v41, 0.0  ;;  %v7326_v52 = vadd.f32 %v16260_v14, %v7325_v11 }
 0x827   : > { %v7368_v63 = vmax.f32 %v7334_v61, 0.0  ;;  %v7399_v39 = vmul.f32 %v16268_v46, %v7367_v18 }
 0x828   : > { %v7366_v60 = vmax.f32 %v7326_v52, 0.0  ;;  %v7397_v50 = vmul.f32 %v16268_v46, %v7365_v2 }
 0x829   : > { %v7400_v23 = vmul.f32 %v16268_v46, %v7368_v63 }
 0x82a   : > { %v7398_v6 = vmul.f32 %v16268_v46, %v7366_v60  ;;  %12921 = vmatmul.mubr.msk.bf16.gmra.mrb[224].mxu1 %vm5717_vm0, %v9815_v36 }
 0x82b   : > { %v11847_v54 = vpack.c.bf16 %v7400_v23, %v7399_v39  ;;  %12924 = vmatprep.mubr.msk.bf16.mxu1 %vm5717_vm0, %v9816_v35 }
 0x82c   : > { %v11842_v0 = vpack.c.bf16 %v7398_v6, %v7397_v50 }
 0x82d   : > { %12359 = vst [vmem:[%s17254_s12 + $0xf8] sm:$0xff] %v11847_v54  }
 0x82e   : > { %12358 = vst [vmem:[%s17254_s12 + $0xf0] sm:$0xff] %v11842_v0  }
 0x832   : > { %12925 = vmatmul.mubr.msk.bf16.gmra.mrb[228].mxu1 %vm5717_vm0, %v9817_v7 }
 0x833   : > { %12928 = vmatprep.mubr.msk.bf16.mxu1 %vm5717_vm0, %v9818_v33 }
 0x83a   : > { %12929 = vmatmul.mubr.msk.bf16.gmra.mrb[232].mxu1 %vm5717_vm0, %v9819_v59 }
 0x83b   : > { %12932 = vmatprep.mubr.msk.bf16.mxu1 %vm5717_vm0, %v9820_v47 }
 0x842   : > { %12933 = vmatmul.mubr.msk.bf16.gmra.mrb[236].mxu1 %vm5717_vm0, %v9821_v25 }
 0x845   : > { %v12746_v44 = vpop.f32.mrb[144].mxu1 }
 0x846   : > { %v12710_v30 = vpop.f32.mrb[148].mxu0  ;;  %v8117_v40 = vadd.f32 %v16260_v14, %v12746_v44  ;;  %v8108_v42 = vpop.f32.mrb[145].mxu1 }
 0x847   : > { %v7684_v32 = vadd.f32 %v16260_v14, %v12710_v30  ;;  %v7675_v5 = vpop.f32.mrb[149].mxu0  ;;  %v8109_v10 = vadd.f32 %v16260_v14, %v8108_v42  ;;  %v12747_v49 = vpop.f32.mrb[146].mxu1 }
 0x848   : > { %v8237_v37 = vmax.f32 %v8117_v40, 0.0  ;;  %v7676_v45 = vadd.f32 %v16260_v14, %v7675_v5  ;;  %v12711_v51 = vpop.f32.mrb[150].mxu0  ;;  %v8120_v48 = vadd.f32 %v16260_v14, %v12747_v49  ;;  %v8111_v9 = vpop.f32.mrb[147].mxu1 }
 0x849   : > { %v7792_v3 = vmax.f32 %v7684_v32, 0.0  ;;  %v8235_v31 = vmax.f32 %v8109_v10, 0.0  ;;  %v7687_v17 = vadd.f32 %v16260_v14, %v12711_v51  ;;  %v7678_v58 = vpop.f32.mrb[151].mxu0  ;;  %v8112_v15 = vadd.f32 %v16260_v14, %v8111_v9 }
 0x84a   : > { %v7790_v53 = vmax.f32 %v7676_v45, 0.0  ;;  %v8238_v29 = vmax.f32 %v8120_v48, 0.0  ;;  %v7679_v4 = vadd.f32 %v16260_v14, %v7678_v58  ;;  %v8269_v28 = vmul.f32 %v16268_v46, %v8237_v37 }
 0x84b   : > { %v7793_v27 = vmax.f32 %v7687_v17, 0.0  ;;  %v8236_v57 = vmax.f32 %v8112_v15, 0.0  ;;  %v7824_v19 = vmul.f32 %v16268_v46, %v7792_v3  ;;  %v8267_v22 = vmul.f32 %v16268_v46, %v8235_v31 }
 0x84c   : > { %v8270_v62 = vmul.f32 %v16268_v46, %v8238_v29  ;;  %v7791_v24 = vmax.f32 %v7679_v4, 0.0  ;;  %v7822_v1 = vmul.f32 %v16268_v46, %v7790_v53 }
 0x84d   : > { %v7825_v16 = vmul.f32 %v16268_v46, %v7793_v27  ;;  %v8268_v56 = vmul.f32 %v16268_v46, %v8236_v57 }
 0x84e   : > { %v11937_v43 = vpack.c.bf16 %v8270_v62, %v8269_v28  ;;  %v7823_v21 = vmul.f32 %v16268_v46, %v7791_v24  ;;  %v12714_v55 = vpop.f32.mrb[152].mxu0 }
 0x84f   : > { %v11867_v38 = vpack.c.bf16 %v7825_v16, %v7824_v19  ;;  %v11932_v13 = vpack.c.bf16 %v8268_v56, %v8267_v22  ;;  %v7700_v26 = vadd.f32 %v16260_v14, %v12714_v55  ;;  %v7691_v12 = vpop.f32.mrb[153].mxu0 }
 0x850   : > { %12377 = vst [vmem:[%s17254_s12 + $0x188] sm:$0xff] %v11937_v43   ;;  %v11862_v20 = vpack.c.bf16 %v7823_v21, %v7822_v1  ;;  %v7692_v8 = vadd.f32 %v16260_v14, %v7691_v12  ;;  %v12715_v41 = vpop.f32.mrb[154].mxu0 }
 0x851   : > { %12363 = vst [vmem:[%s17254_s12 + $0x118] sm:$0xff] %v11867_v38   ;;  %12376 = vst [vmem:[%s17254_s12 + $0x180] sm:$0xff] %v11932_v13   ;;  %v7796_v34 = vmax.f32 %v7700_v26, 0.0  ;;  %v7703_v18 = vadd.f32 %v16260_v14, %v12715_v41  ;;  %v7694_v61 = vpop.f32.mrb[155].mxu0 }
 0x852   : > { %12362 = vst [vmem:[%s17254_s12 + $0x110] sm:$0xff] %v11862_v20   ;;  %v7794_v11 = vmax.f32 %v7692_v8, 0.0  ;;  %v7695_v2 = vadd.f32 %v16260_v14, %v7694_v61 }
 0x853   : > { %v7797_v52 = vmax.f32 %v7703_v18, 0.0  ;;  %v7828_v60 = vmul.f32 %v16268_v46, %v7796_v34 }
 0x854   : > { %v7795_v63 = vmax.f32 %v7695_v2, 0.0  ;;  %v7826_v36 = vmul.f32 %v16268_v46, %v7794_v11 }
 0x855   : > { %v7829_v39 = vmul.f32 %v16268_v46, %v7797_v52  ;;  %v12750_v23 = vpop.f32.mrb[148].mxu1 }
 0x856   : > { %v7827_v50 = vmul.f32 %v16268_v46, %v7795_v63  ;;  %v12718_v6 = vpop.f32.mrb[156].mxu0  ;;  %v8133_v35 = vadd.f32 %v16260_v14, %v12750_v23  ;;  %v8124_v54 = vpop.f32.mrb[149].mxu1 }
 0x857   : > { %v11877_v0 = vpack.c.bf16 %v7829_v39, %v7828_v60  ;;  %v7716_v7 = vadd.f32 %v16260_v14, %v12718_v6  ;;  %v7707_v33 = vpop.f32.mrb[157].mxu0  ;;  %v8125_v59 = vadd.f32 %v16260_v14, %v8124_v54  ;;  %v12751_v47 = vpop.f32.mrb[150].mxu1 }
 0x858   : > { %v11872_v25 = vpack.c.bf16 %v7827_v50, %v7826_v36  ;;  %v8241_v44 = vmax.f32 %v8133_v35, 0.0  ;;  %v7708_v30 = vadd.f32 %v16260_v14, %v7707_v33  ;;  %v12719_v40 = vpop.f32.mrb[158].mxu0  ;;  %v8136_v42 = vadd.f32 %v16260_v14, %v12751_v47  ;;  %v8127_v32 = vpop.f32.mrb[151].mxu1 }
 0x859   : > { %12365 = vst [vmem:[%s17254_s12 + $0x128] sm:$0xff] %v11877_v0   ;;  %v7800_v5 = vmax.f32 %v7716_v7, 0.0  ;;  %v8239_v10 = vmax.f32 %v8125_v59, 0.0  ;;  %v7719_v49 = vadd.f32 %v16260_v14, %v12719_v40  ;;  %v7710_v37 = vpop.f32.mrb[159].mxu0  ;;  %v8128_v45 = vadd.f32 %v16260_v14, %v8127_v32 }
 0x85a   : > { %12364 = vst [vmem:[%s17254_s12 + $0x120] sm:$0xff] %v11872_v25   ;;  %v7798_v51 = vmax.f32 %v7708_v30, 0.0  ;;  %v8242_v48 = vmax.f32 %v8136_v42, 0.0  ;;  %v7711_v9 = vadd.f32 %v16260_v14, %v7710_v37  ;;  %v8273_v17 = vmul.f32 %v16268_v46, %v8241_v44 }
 0x85b   : > { %v7801_v3 = vmax.f32 %v7719_v49, 0.0  ;;  %v8240_v31 = vmax.f32 %v8128_v45, 0.0  ;;  %v7832_v53 = vmul.f32 %v16268_v46, %v7800_v5  ;;  %v8271_v29 = vmul.f32 %v16268_v46, %v8239_v10 }
 0x85c   : > { %v8274_v58 = vmul.f32 %v16268_v46, %v8242_v48  ;;  %v7799_v15 = vmax.f32 %v7711_v9, 0.0  ;;  %v7830_v57 = vmul.f32 %v16268_v46, %v7798_v51 }
 0x85d   : > { %v7833_v4 = vmul.f32 %v16268_v46, %v7801_v3  ;;  %v8272_v27 = vmul.f32 %v16268_v46, %v8240_v31 }
 0x85e   : > { %v11947_v28 = vpack.c.bf16 %v8274_v58, %v8273_v17  ;;  %v7831_v62 = vmul.f32 %v16268_v46, %v7799_v15  ;;  %v12722_v24 = vpop.f32.mrb[160].mxu0 }
 0x85f   : > { %v11887_v19 = vpack.c.bf16 %v7833_v4, %v7832_v53  ;;  %v11942_v22 = vpack.c.bf16 %v8272_v27, %v8271_v29  ;;  %v7732_v16 = vadd.f32 %v16260_v14, %v12722_v24  ;;  %v7723_v56 = vpop.f32.mrb[161].mxu0 }
 0x860   : > { %12379 = vst [vmem:[%s17254_s12 + $0x198] sm:$0xff] %v11947_v28   ;;  %v11882_v1 = vpack.c.bf16 %v7831_v62, %v7830_v57  ;;  %v7724_v43 = vadd.f32 %v16260_v14, %v7723_v56  ;;  %v12723_v21 = vpop.f32.mrb[162].mxu0 }
 0x861   : > { %12367 = vst [vmem:[%s17254_s12 + $0x138] sm:$0xff] %v11887_v19   ;;  %12378 = vst [vmem:[%s17254_s12 + $0x190] sm:$0xff] %v11942_v22   ;;  %v7804_v55 = vmax.f32 %v7732_v16, 0.0  ;;  %v7735_v38 = vadd.f32 %v16260_v14, %v12723_v21  ;;  %v7726_v13 = vpop.f32.mrb[163].mxu0 }
 0x862   : > { %12366 = vst [vmem:[%s17254_s12 + $0x130] sm:$0xff] %v11882_v1   ;;  %v7802_v26 = vmax.f32 %v7724_v43, 0.0  ;;  %v7727_v12 = vadd.f32 %v16260_v14, %v7726_v13 }
 0x863   : > { %v7805_v20 = vmax.f32 %v7735_v38, 0.0  ;;  %v7836_v41 = vmul.f32 %v16268_v46, %v7804_v55 }
 0x864   : > { %v7803_v8 = vmax.f32 %v7727_v12, 0.0  ;;  %v7834_v61 = vmul.f32 %v16268_v46, %v7802_v26 }
 0x865   : > { %v7837_v34 = vmul.f32 %v16268_v46, %v7805_v20  ;;  %v12754_v18 = vpop.f32.mrb[152].mxu1 }
 0x866   : > { %v7835_v11 = vmul.f32 %v16268_v46, %v7803_v8  ;;  %v12726_v2 = vpop.f32.mrb[164].mxu0  ;;  %v8149_v52 = vadd.f32 %v16260_v14, %v12754_v18  ;;  %v8140_v63 = vpop.f32.mrb[153].mxu1 }
 0x867   : > { %v11897_v60 = vpack.c.bf16 %v7837_v34, %v7836_v41  ;;  %v7748_v39 = vadd.f32 %v16260_v14, %v12726_v2  ;;  %v7739_v23 = vpop.f32.mrb[165].mxu0  ;;  %v8141_v36 = vadd.f32 %v16260_v14, %v8140_v63  ;;  %v12755_v50 = vpop.f32.mrb[154].mxu1 }
 0x868   : > { %v11892_v6 = vpack.c.bf16 %v7835_v11, %v7834_v61  ;;  %v8245_v35 = vmax.f32 %v8149_v52, 0.0  ;;  %v7740_v54 = vadd.f32 %v16260_v14, %v7739_v23  ;;  %v12727_v0 = vpop.f32.mrb[166].mxu0  ;;  %v8152_v7 = vadd.f32 %v16260_v14, %v12755_v50  ;;  %v8143_v33 = vpop.f32.mrb[155].mxu1 }
 0x869   : > { %12369 = vst [vmem:[%s17254_s12 + $0x148] sm:$0xff] %v11897_v60   ;;  %v7808_v59 = vmax.f32 %v7748_v39, 0.0  ;;  %v8243_v47 = vmax.f32 %v8141_v36, 0.0  ;;  %v7751_v25 = vadd.f32 %v16260_v14, %v12727_v0  ;;  %v7742_v44 = vpop.f32.mrb[167].mxu0  ;;  %v8144_v30 = vadd.f32 %v16260_v14, %v8143_v33 }
 0x86a   : > { %12368 = vst [vmem:[%s17254_s12 + $0x140] sm:$0xff] %v11892_v6   ;;  %v7806_v40 = vmax.f32 %v7740_v54, 0.0  ;;  %v8246_v42 = vmax.f32 %v8152_v7, 0.0  ;;  %v7743_v32 = vadd.f32 %v16260_v14, %v7742_v44  ;;  %v8277_v49 = vmul.f32 %v16268_v46, %v8245_v35 }
 0x86b   : > { %v7809_v5 = vmax.f32 %v7751_v25, 0.0  ;;  %v8244_v10 = vmax.f32 %v8144_v30, 0.0  ;;  %v7840_v51 = vmul.f32 %v16268_v46, %v7808_v59  ;;  %v8275_v48 = vmul.f32 %v16268_v46, %v8243_v47 }
 0x86c   : > { %v8278_v37 = vmul.f32 %v16268_v46, %v8246_v42  ;;  %v7807_v45 = vmax.f32 %v7743_v32, 0.0  ;;  %v7838_v31 = vmul.f32 %v16268_v46, %v7806_v40 }
 0x86d   : > { %v7841_v9 = vmul.f32 %v16268_v46, %v7809_v5  ;;  %v8276_v3 = vmul.f32 %v16268_v46, %v8244_v10 }
 0x86e   : > { %v11957_v17 = vpack.c.bf16 %v8278_v37, %v8277_v49  ;;  %v7839_v58 = vmul.f32 %v16268_v46, %v7807_v45  ;;  %v12730_v15 = vpop.f32.mrb[168].mxu0 }
 0x86f   : > { %v11907_v53 = vpack.c.bf16 %v7841_v9, %v7840_v51  ;;  %v11952_v29 = vpack.c.bf16 %v8276_v3, %v8275_v48  ;;  %v7764_v4 = vadd.f32 %v16260_v14, %v12730_v15  ;;  %v7755_v27 = vpop.f32.mrb[169].mxu0 }
 0x870   : > { %12381 = vst [vmem:[%s17254_s12 + $0x1a8] sm:$0xff] %v11957_v17   ;;  %v11902_v57 = vpack.c.bf16 %v7839_v58, %v7838_v31  ;;  %v7756_v28 = vadd.f32 %v16260_v14, %v7755_v27  ;;  %v12731_v62 = vpop.f32.mrb[170].mxu0 }
 0x871   : > { %12371 = vst [vmem:[%s17254_s12 + $0x158] sm:$0xff] %v11907_v53   ;;  %12380 = vst [vmem:[%s17254_s12 + $0x1a0] sm:$0xff] %v11952_v29   ;;  %v7812_v24 = vmax.f32 %v7764_v4, 0.0  ;;  %v7767_v19 = vadd.f32 %v16260_v14, %v12731_v62  ;;  %v7758_v22 = vpop.f32.mrb[171].mxu0 }
 0x872   : > { %12370 = vst [vmem:[%s17254_s12 + $0x150] sm:$0xff] %v11902_v57   ;;  %v7810_v16 = vmax.f32 %v7756_v28, 0.0  ;;  %v7759_v56 = vadd.f32 %v16260_v14, %v7758_v22 }
 0x873   : > { %v7813_v1 = vmax.f32 %v7767_v19, 0.0  ;;  %v7844_v21 = vmul.f32 %v16268_v46, %v7812_v24 }
 0x874   : > { %v7811_v43 = vmax.f32 %v7759_v56, 0.0  ;;  %v7842_v13 = vmul.f32 %v16268_v46, %v7810_v16 }
 0x875   : > { %v7845_v55 = vmul.f32 %v16268_v46, %v7813_v1  ;;  %v12758_v38 = vpop.f32.mrb[156].mxu1 }
 0x876   : > { %v7843_v26 = vmul.f32 %v16268_v46, %v7811_v43  ;;  %v12734_v12 = vpop.f32.mrb[172].mxu0  ;;  %v8165_v20 = vadd.f32 %v16260_v14, %v12758_v38  ;;  %v8156_v8 = vpop.f32.mrb[157].mxu1 }
 0x877   : > { %v11917_v41 = vpack.c.bf16 %v7845_v55, %v7844_v21  ;;  %v7780_v34 = vadd.f32 %v16260_v14, %v12734_v12  ;;  %v7771_v18 = vpop.f32.mrb[173].mxu0  ;;  %v8157_v61 = vadd.f32 %v16260_v14, %v8156_v8  ;;  %v12759_v11 = vpop.f32.mrb[158].mxu1 }
 0x878   : > { %v11912_v2 = vpack.c.bf16 %v7843_v26, %v7842_v13  ;;  %v8249_v52 = vmax.f32 %v8165_v20, 0.0  ;;  %v7772_v63 = vadd.f32 %v16260_v14, %v7771_v18  ;;  %v12735_v60 = vpop.f32.mrb[174].mxu0  ;;  %v8168_v39 = vadd.f32 %v16260_v14, %v12759_v11  ;;  %v8159_v23 = vpop.f32.mrb[159].mxu1 }
 0x879   : > { %12373 = vst [vmem:[%s17254_s12 + $0x168] sm:$0xff] %v11917_v41   ;;  %v7816_v36 = vmax.f32 %v7780_v34, 0.0  ;;  %v8247_v50 = vmax.f32 %v8157_v61, 0.0  ;;  %v7783_v6 = vadd.f32 %v16260_v14, %v12735_v60  ;;  %v7774_v35 = vpop.f32.mrb[175].mxu0  ;;  %v8160_v54 = vadd.f32 %v16260_v14, %v8159_v23 }
 0x87a   : > { %12372 = vst [vmem:[%s17254_s12 + $0x160] sm:$0xff] %v11912_v2   ;;  %v7814_v0 = vmax.f32 %v7772_v63, 0.0  ;;  %v8250_v7 = vmax.f32 %v8168_v39, 0.0  ;;  %v7775_v33 = vadd.f32 %v16260_v14, %v7774_v35  ;;  %v8281_v25 = vmul.f32 %v16268_v46, %v8249_v52 }
 0x87b   : > { %v7817_v59 = vmax.f32 %v7783_v6, 0.0  ;;  %v8248_v47 = vmax.f32 %v8160_v54, 0.0  ;;  %v7848_v40 = vmul.f32 %v16268_v46, %v7816_v36  ;;  %v8279_v42 = vmul.f32 %v16268_v46, %v8247_v50 }
 0x87c   : > { %v8282_v44 = vmul.f32 %v16268_v46, %v8250_v7  ;;  %v7815_v30 = vmax.f32 %v7775_v33, 0.0  ;;  %v7846_v49 = vmul.f32 %v16268_v46, %v7814_v0 }
 0x87d   : > { %v7849_v32 = vmul.f32 %v16268_v46, %v7817_v59  ;;  %v8280_v5 = vmul.f32 %v16268_v46, %v8248_v47  ;;  %v12762_v10 = vpop.f32.mrb[160].mxu1 }
 0x87e   : > { %v11967_v37 = vpack.c.bf16 %v8282_v44, %v8281_v25  ;;  %v7847_v45 = vmul.f32 %v16268_v46, %v7815_v30  ;;  %v8181_v51 = vadd.f32 %v16260_v14, %v12762_v10  ;;  %v12786_v48 = vpop.f32.mrb[176].mxu0  ;;  %v8172_v9 = vpop.f32.mrb[161].mxu1 }
 0x87f   : > { %v11927_v3 = vpack.c.bf16 %v7849_v32, %v7848_v40  ;;  %v11962_v31 = vpack.c.bf16 %v8280_v5, %v8279_v42  ;;  %v8566_v17 = vadd.f32 %v16260_v14, %v12786_v48  ;;  %v8173_v58 = vadd.f32 %v16260_v14, %v8172_v9  ;;  %v8557_v15 = vpop.f32.mrb[177].mxu0  ;;  %v12763_v53 = vpop.f32.mrb[162].mxu1 }
 0x880   : > { %12383 = vst [vmem:[%s17254_s12 + $0x1b8] sm:$0xff] %v11967_v37   ;;  %v11922_v29 = vpack.c.bf16 %v7847_v45, %v7846_v49  ;;  %v8253_v4 = vmax.f32 %v8181_v51, 0.0  ;;  %v8558_v27 = vadd.f32 %v16260_v14, %v8557_v15  ;;  %v8184_v57 = vadd.f32 %v16260_v14, %v12763_v53  ;;  %v12787_v28 = vpop.f32.mrb[178].mxu0  ;;  %v8175_v62 = vpop.f32.mrb[163].mxu1 }
 0x881   : > { %12375 = vst [vmem:[%s17254_s12 + $0x178] sm:$0xff] %v11927_v3   ;;  %12382 = vst [vmem:[%s17254_s12 + $0x1b0] sm:$0xff] %v11962_v31   ;;  %v8686_v24 = vmax.f32 %v8566_v17, 0.0  ;;  %v8251_v19 = vmax.f32 %v8173_v58, 0.0  ;;  %v8569_v22 = vadd.f32 %v16260_v14, %v12787_v28  ;;  %v8176_v16 = vadd.f32 %v16260_v14, %v8175_v62  ;;  %v8560_v56 = vpop.f32.mrb[179].mxu0 }
 0x882   : > { %12374 = vst [vmem:[%s17254_s12 + $0x170] sm:$0xff] %v11922_v29   ;;  %v8684_v1 = vmax.f32 %v8558_v27, 0.0  ;;  %v8254_v43 = vmax.f32 %v8184_v57, 0.0  ;;  %v8561_v21 = vadd.f32 %v16260_v14, %v8560_v56  ;;  %v8285_v13 = vmul.f32 %v16268_v46, %v8253_v4 }
 0x883   : > { %v8687_v55 = vmax.f32 %v8569_v22, 0.0  ;;  %v8252_v38 = vmax.f32 %v8176_v16, 0.0  ;;  %v8718_v20 = vmul.f32 %v16268_v46, %v8686_v24  ;;  %v8283_v8 = vmul.f32 %v16268_v46, %v8251_v19 }
 0x884   : > { %v8286_v26 = vmul.f32 %v16268_v46, %v8254_v43  ;;  %v8685_v12 = vmax.f32 %v8561_v21, 0.0  ;;  %v8716_v61 = vmul.f32 %v16268_v46, %v8684_v1  ;;  %v16605_v43 = vld [vmem:[#allocation20] ss:$0 sm:$0xff] }
 0x885   : > { %v8719_v41 = vmul.f32 %v16268_v46, %v8687_v55  ;;  %v8284_v34 = vmul.f32 %v16268_v46, %v8252_v38  ;;  %v12766_v18 = vpop.f32.mrb[164].mxu1 }
 0x886   : > { %v11977_v11 = vpack.c.bf16 %v8286_v26, %v8285_v13  ;;  %v8717_v2 = vmul.f32 %v16268_v46, %v8685_v12  ;;  %v8197_v52 = vadd.f32 %v16260_v14, %v12766_v18  ;;  %v12790_v63 = vpop.f32.mrb[180].mxu0  ;;  %v8188_v60 = vpop.f32.mrb[165].mxu1 }
 0x887   : > { %v12017_v39 = vpack.c.bf16 %v8719_v41, %v8718_v20  ;;  %v11972_v23 = vpack.c.bf16 %v8284_v34, %v8283_v8  ;;  %v8582_v36 = vadd.f32 %v16260_v14, %v12790_v63  ;;  %v8189_v50 = vadd.f32 %v16260_v14, %v8188_v60  ;;  %v8573_v6 = vpop.f32.mrb[181].mxu0  ;;  %v12767_v35 = vpop.f32.mrb[166].mxu1 }
 0x888   : > { %12385 = vst [vmem:[%s17254_s12 + $0x1c8] sm:$0xff] %v11977_v11   ;;  %v12012_v54 = vpack.c.bf16 %v8717_v2, %v8716_v61  ;;  %v8257_v0 = vmax.f32 %v8197_v52, 0.0  ;;  %v8574_v7 = vadd.f32 %v16260_v14, %v8573_v6  ;;  %v8200_v33 = vadd.f32 %v16260_v14, %v12767_v35  ;;  %v12791_v59 = vpop.f32.mrb[182].mxu0  ;;  %v8191_v47 = vpop.f32.mrb[167].mxu1  ;;  %v16621_v11 = vld [vmem:[#allocation22] ss:$0 sm:$0xff] }
 0x889   : > { %12393 = vst [vmem:[%s17254_s12 + $0x208] sm:$0xff] %v12017_v39   ;;  %12384 = vst [vmem:[%s17254_s12 + $0x1c0] sm:$0xff] %v11972_v23   ;;  %v8690_v25 = vmax.f32 %v8582_v36, 0.0  ;;  %v8255_v44 = vmax.f32 %v8189_v50, 0.0  ;;  %v8585_v30 = vadd.f32 %v16260_v14, %v12791_v59  ;;  %v8192_v40 = vadd.f32 %v16260_v14, %v8191_v47  ;;  %v8576_v42 = vpop.f32.mrb[183].mxu0 }
 0x88a   : > { %12392 = vst [vmem:[%s17254_s12 + $0x200] sm:$0xff] %v12012_v54   ;;  %v8688_v32 = vmax.f32 %v8574_v7, 0.0  ;;  %v8258_v5 = vmax.f32 %v8200_v33, 0.0  ;;  %v8577_v10 = vadd.f32 %v16260_v14, %v8576_v42  ;;  %v8289_v45 = vmul.f32 %v16268_v46, %v8257_v0 }
 0x88b   : > { %v8691_v49 = vmax.f32 %v8585_v30, 0.0  ;;  %v8256_v37 = vmax.f32 %v8192_v40, 0.0  ;;  %v8722_v9 = vmul.f32 %v16268_v46, %v8690_v25  ;;  %v8287_v3 = vmul.f32 %v16268_v46, %v8255_v44 }
 0x88c   : > { %v8290_v51 = vmul.f32 %v16268_v46, %v8258_v5  ;;  %v8689_v48 = vmax.f32 %v8577_v10, 0.0  ;;  %v8720_v15 = vmul.f32 %v16268_v46, %v8688_v32 }
 0x88d   : > { %v8723_v31 = vmul.f32 %v16268_v46, %v8691_v49  ;;  %v8288_v17 = vmul.f32 %v16268_v46, %v8256_v37  ;;  %v12770_v58 = vpop.f32.mrb[168].mxu1 }
 0x88e   : > { %v11987_v53 = vpack.c.bf16 %v8290_v51, %v8289_v45  ;;  %v8721_v29 = vmul.f32 %v16268_v46, %v8689_v48  ;;  %v8213_v4 = vadd.f32 %v16260_v14, %v12770_v58  ;;  %v12794_v27 = vpop.f32.mrb[184].mxu0  ;;  %v8204_v57 = vpop.f32.mrb[169].mxu1 }
 0x88f   : > { %v12027_v28 = vpack.c.bf16 %v8723_v31, %v8722_v9  ;;  %v11982_v62 = vpack.c.bf16 %v8288_v17, %v8287_v3  ;;  %v8598_v24 = vadd.f32 %v16260_v14, %v12794_v27  ;;  %v8205_v19 = vadd.f32 %v16260_v14, %v8204_v57  ;;  %v8589_v22 = vpop.f32.mrb[185].mxu0  ;;  %v12771_v16 = vpop.f32.mrb[170].mxu1 }
 0x890   : > { %12387 = vst [vmem:[%s17254_s12 + $0x1d8] sm:$0xff] %v11987_v53   ;;  %v12022_v56 = vpack.c.bf16 %v8721_v29, %v8720_v15  ;;  %v8261_v1 = vmax.f32 %v8213_v4, 0.0  ;;  %v8590_v46 = vadd.f32 %v16605_v43, %v8589_v22  ;;  %v8216_v21 = vadd.f32 %v16605_v43, %v12771_v16  ;;  %v12795_v55 = vpop.f32.mrb[186].mxu0  ;;  %v8207_v38 = vpop.f32.mrb[171].mxu1 }
 0x891   : > { %12395 = vst [vmem:[%s17254_s12 + $0x218] sm:$0xff] %v12027_v28   ;;  %12386 = vst [vmem:[%s17254_s12 + $0x1d0] sm:$0xff] %v11982_v62   ;;  %v8694_v14 = vmax.f32 %v8598_v24, 0.0  ;;  %v8259_v13 = vmax.f32 %v8205_v19, 0.0  ;;  %v8601_v26 = vadd.f32 %v16605_v43, %v12795_v55  ;;  %v8208_v12 = vadd.f32 %v16605_v43, %v8207_v38  ;;  %v8592_v20 = vpop.f32.mrb[187].mxu0 }
 0x892   : > { %12394 = vst [vmem:[%s17254_s12 + $0x210] sm:$0xff] %v12022_v56   ;;  %v8692_v8 = vmax.f32 %v8590_v46, 0.0  ;;  %v8262_v41 = vmax.f32 %v8216_v21, 0.0  ;;  %v8593_v34 = vadd.f32 %v16605_v43, %v8592_v20  ;;  %v8293_v2 = vmul.f32 %v16621_v11, %v8261_v1 }
 0x893   : > { %v8695_v18 = vmax.f32 %v8601_v26, 0.0  ;;  %v8260_v61 = vmax.f32 %v8208_v12, 0.0  ;;  %v8726_v60 = vmul.f32 %v16621_v11, %v8694_v14  ;;  %v8291_v39 = vmul.f32 %v16621_v11, %v8259_v13 }
 0x894   : > { %v8294_v52 = vmul.f32 %v16621_v11, %v8262_v41  ;;  %v8693_v63 = vmax.f32 %v8593_v34, 0.0  ;;  %v8724_v6 = vmul.f32 %v16621_v11, %v8692_v8 }
 0x895   : > { %v8727_v23 = vmul.f32 %v16621_v11, %v8695_v18  ;;  %v8292_v36 = vmul.f32 %v16621_v11, %v8260_v61  ;;  %v12774_v50 = vpop.f32.mrb[172].mxu1 }
 0x896   : > { %v11997_v35 = vpack.c.bf16 %v8294_v52, %v8293_v2  ;;  %v8725_v54 = vmul.f32 %v16621_v11, %v8693_v63  ;;  %v8229_v0 = vadd.f32 %v16605_v43, %v12774_v50  ;;  %v12798_v7 = vpop.f32.mrb[188].mxu0  ;;  %v8220_v33 = vpop.f32.mrb[173].mxu1 }
 0x897   : > { %v12037_v59 = vpack.c.bf16 %v8727_v23, %v8726_v60  ;;  %v11992_v47 = vpack.c.bf16 %v8292_v36, %v8291_v39  ;;  %v8614_v25 = vadd.f32 %v16605_v43, %v12798_v7  ;;  %v8221_v44 = vadd.f32 %v16605_v43, %v8220_v33  ;;  %v8605_v30 = vpop.f32.mrb[189].mxu0  ;;  %v12775_v40 = vpop.f32.mrb[174].mxu1 }
 0x898   : > { %12389 = vst [vmem:[%s17254_s12 + $0x1e8] sm:$0xff] %v11997_v35   ;;  %v12032_v42 = vpack.c.bf16 %v8725_v54, %v8724_v6  ;;  %v8265_v32 = vmax.f32 %v8229_v0, 0.0  ;;  %v8606_v5 = vadd.f32 %v16605_v43, %v8605_v30  ;;  %v8232_v10 = vadd.f32 %v16605_v43, %v12775_v40  ;;  %v12799_v49 = vpop.f32.mrb[190].mxu0  ;;  %v8223_v37 = vpop.f32.mrb[175].mxu1 }
 0x899   : > { %12397 = vst [vmem:[%s17254_s12 + $0x228] sm:$0xff] %v12037_v59   ;;  %12388 = vst [vmem:[%s17254_s12 + $0x1e0] sm:$0xff] %v11992_v47   ;;  %v8698_v45 = vmax.f32 %v8614_v25, 0.0  ;;  %v8263_v51 = vmax.f32 %v8221_v44, 0.0  ;;  %v8617_v48 = vadd.f32 %v16605_v43, %v12799_v49  ;;  %v8224_v9 = vadd.f32 %v16605_v43, %v8223_v37  ;;  %v8608_v3 = vpop.f32.mrb[191].mxu0 }
 0x89a   : > { %12396 = vst [vmem:[%s17254_s12 + $0x220] sm:$0xff] %v12032_v42   ;;  %v8696_v31 = vmax.f32 %v8606_v5, 0.0  ;;  %v8266_v17 = vmax.f32 %v8232_v10, 0.0  ;;  %v8609_v58 = vadd.f32 %v16605_v43, %v8608_v3  ;;  %v8297_v29 = vmul.f32 %v16621_v11, %v8265_v32 }
 0x89b   : > { %v8699_v15 = vmax.f32 %v8617_v48, 0.0  ;;  %v8264_v53 = vmax.f32 %v8224_v9, 0.0  ;;  %v8730_v57 = vmul.f32 %v16621_v11, %v8698_v45  ;;  %v8295_v28 = vmul.f32 %v16621_v11, %v8263_v51 }
 0x89c   : > { %v8298_v4 = vmul.f32 %v16621_v11, %v8266_v17  ;;  %v8697_v27 = vmax.f32 %v8609_v58, 0.0  ;;  %v8728_v22 = vmul.f32 %v16621_v11, %v8696_v31 }
 0x89d   : > { %v8731_v62 = vmul.f32 %v16621_v11, %v8699_v15  ;;  %v8296_v24 = vmul.f32 %v16621_v11, %v8264_v53  ;;  %v12826_v19 = vpop.f32.mrb[176].mxu1 }
 0x89e   : > { %v12007_v16 = vpack.c.bf16 %v8298_v4, %v8297_v29  ;;  %v8729_v56 = vmul.f32 %v16621_v11, %v8697_v27  ;;  %v12802_v1 = vpop.f32.mrb[192].mxu0  ;;  %v9015_v46 = vadd.f32 %v16605_v43, %v12826_v19  ;;  %v9006_v21 = vpop.f32.mrb[177].mxu1 }
 0x89f   : > { %v12047_v55 = vpack.c.bf16 %v8731_v62, %v8730_v57  ;;  %v12002_v38 = vpack.c.bf16 %v8296_v24, %v8295_v28  ;;  %v8630_v14 = vadd.f32 %v16605_v43, %v12802_v1  ;;  %v8621_v13 = vpop.f32.mrb[193].mxu0  ;;  %v9007_v26 = vadd.f32 %v16605_v43, %v9006_v21  ;;  %v12827_v12 = vpop.f32.mrb[178].mxu1 }
 0x8a0   : > { %12391 = vst [vmem:[%s17254_s12 + $0x1f8] sm:$0xff] %v12007_v16   ;;  %v12042_v20 = vpack.c.bf16 %v8729_v56, %v8728_v22  ;;  %v9135_v8 = vmax.f32 %v9015_v46, 0.0  ;;  %v8622_v41 = vadd.f32 %v16605_v43, %v8621_v13  ;;  %v12803_v34 = vpop.f32.mrb[194].mxu0  ;;  %v9018_v18 = vadd.f32 %v16605_v43, %v12827_v12  ;;  %v9009_v61 = vpop.f32.mrb[179].mxu1 }
 0x8a1   : > { %12399 = vst [vmem:[%s17254_s12 + $0x238] sm:$0xff] %v12047_v55   ;;  %12390 = vst [vmem:[%s17254_s12 + $0x1f0] sm:$0xff] %v12002_v38   ;;  %v8702_v2 = vmax.f32 %v8630_v14, 0.0  ;;  %v9133_v52 = vmax.f32 %v9007_v26, 0.0  ;;  %v8633_v63 = vadd.f32 %v16605_v43, %v12803_v34  ;;  %v8624_v60 = vpop.f32.mrb[195].mxu0  ;;  %v9010_v39 = vadd.f32 %v16605_v43, %v9009_v61 }
 0x8a2   : > { %12398 = vst [vmem:[%s17254_s12 + $0x230] sm:$0xff] %v12042_v20   ;;  %v8700_v23 = vmax.f32 %v8622_v41, 0.0  ;;  %v9136_v36 = vmax.f32 %v9018_v18, 0.0  ;;  %v8625_v50 = vadd.f32 %v16605_v43, %v8624_v60  ;;  %v9167_v54 = vmul.f32 %v16621_v11, %v9135_v8 }
 0x8a3   : > { %v8703_v6 = vmax.f32 %v8633_v63, 0.0  ;;  %v9134_v35 = vmax.f32 %v9010_v39, 0.0  ;;  %v8734_v33 = vmul.f32 %v16621_v11, %v8702_v2  ;;  %v9165_v59 = vmul.f32 %v16621_v11, %v9133_v52 }
 0x8a4   : > { %v9168_v0 = vmul.f32 %v16621_v11, %v9136_v36  ;;  %v8701_v7 = vmax.f32 %v8625_v50, 0.0  ;;  %v8732_v30 = vmul.f32 %v16621_v11, %v8700_v23 }
 0x8a5   : > { %v8735_v47 = vmul.f32 %v16621_v11, %v8703_v6  ;;  %v9166_v25 = vmul.f32 %v16621_v11, %v9134_v35  ;;  %v12830_v44 = vpop.f32.mrb[180].mxu1 }
 0x8a6   : > { %v12097_v40 = vpack.c.bf16 %v9168_v0, %v9167_v54  ;;  %v8733_v42 = vmul.f32 %v16621_v11, %v8701_v7  ;;  %v12806_v32 = vpop.f32.mrb[196].mxu0  ;;  %v9031_v5 = vadd.f32 %v16605_v43, %v12830_v44  ;;  %v9022_v10 = vpop.f32.mrb[181].mxu1 }
 0x8a7   : > { %v12057_v49 = vpack.c.bf16 %v8735_v47, %v8734_v33  ;;  %v12092_v37 = vpack.c.bf16 %v9166_v25, %v9165_v59  ;;  %v8646_v45 = vadd.f32 %v16605_v43, %v12806_v32  ;;  %v8637_v51 = vpop.f32.mrb[197].mxu0  ;;  %v9023_v48 = vadd.f32 %v16605_v43, %v9022_v10  ;;  %v12831_v9 = vpop.f32.mrb[182].mxu1 }
 0x8a8   : > { %12409 = vst [vmem:[%s17254_s12 + $0x288] sm:$0xff] %v12097_v40   ;;  %v12052_v3 = vpack.c.bf16 %v8733_v42, %v8732_v30  ;;  %v9139_v31 = vmax.f32 %v9031_v5, 0.0  ;;  %v8638_v17 = vadd.f32 %v16605_v43, %v8637_v51  ;;  %v12807_v58 = vpop.f32.mrb[198].mxu0  ;;  %v9034_v15 = vadd.f32 %v16605_v43, %v12831_v9  ;;  %v9025_v53 = vpop.f32.mrb[183].mxu1 }
 0x8a9   : > { %12401 = vst [vmem:[%s17254_s12 + $0x248] sm:$0xff] %v12057_v49   ;;  %12408 = vst [vmem:[%s17254_s12 + $0x280] sm:$0xff] %v12092_v37   ;;  %v8706_v29 = vmax.f32 %v8646_v45, 0.0  ;;  %v9137_v4 = vmax.f32 %v9023_v48, 0.0  ;;  %v8649_v27 = vadd.f32 %v16605_v43, %v12807_v58  ;;  %v8640_v57 = vpop.f32.mrb[199].mxu0  ;;  %v9026_v28 = vadd.f32 %v16605_v43, %v9025_v53 }
 0x8aa   : > { %12400 = vst [vmem:[%s17254_s12 + $0x240] sm:$0xff] %v12052_v3   ;;  %v8704_v62 = vmax.f32 %v8638_v17, 0.0  ;;  %v9140_v24 = vmax.f32 %v9034_v15, 0.0  ;;  %v8641_v19 = vadd.f32 %v16605_v43, %v8640_v57  ;;  %v9171_v56 = vmul.f32 %v16621_v11, %v9139_v31 }
 0x8ab   : > { %v8707_v22 = vmax.f32 %v8649_v27, 0.0  ;;  %v9138_v16 = vmax.f32 %v9026_v28, 0.0  ;;  %v8738_v21 = vmul.f32 %v16621_v11, %v8706_v29  ;;  %v9169_v55 = vmul.f32 %v16621_v11, %v9137_v4 }
 0x8ac   : > { %v9172_v1 = vmul.f32 %v16621_v11, %v9140_v24  ;;  %v8705_v46 = vmax.f32 %v8641_v19, 0.0  ;;  %v8736_v26 = vmul.f32 %v16621_v11, %v8704_v62 }
 0x8ad   : > { %v8739_v38 = vmul.f32 %v16621_v11, %v8707_v22  ;;  %v9170_v14 = vmul.f32 %v16621_v11, %v9138_v16  ;;  %v12834_v13 = vpop.f32.mrb[184].mxu1 }
 0x8ae   : > { %v12107_v12 = vpack.c.bf16 %v9172_v1, %v9171_v56  ;;  %v8737_v20 = vmul.f32 %v16621_v11, %v8705_v46  ;;  %v12810_v8 = vpop.f32.mrb[200].mxu0  ;;  %v9047_v41 = vadd.f32 %v16605_v43, %v12834_v13  ;;  %v9038_v34 = vpop.f32.mrb[185].mxu1 }
 0x8af   : > { %v12067_v18 = vpack.c.bf16 %v8739_v38, %v8738_v21  ;;  %v12102_v61 = vpack.c.bf16 %v9170_v14, %v9169_v55  ;;  %v8662_v2 = vadd.f32 %v16605_v43, %v12810_v8  ;;  %v8653_v52 = vpop.f32.mrb[201].mxu0  ;;  %v9039_v63 = vadd.f32 %v16605_v43, %v9038_v34  ;;  %v12835_v60 = vpop.f32.mrb[186].mxu1 }
 0x8b0   : > { %12411 = vst [vmem:[%s17254_s12 + $0x298] sm:$0xff] %v12107_v12   ;;  %v12062_v39 = vpack.c.bf16 %v8737_v20, %v8736_v26  ;;  %v9143_v23 = vmax.f32 %v9047_v41, 0.0  ;;  %v8654_v36 = vadd.f32 %v16605_v43, %v8653_v52  ;;  %v12811_v50 = vpop.f32.mrb[202].mxu0  ;;  %v9050_v6 = vadd.f32 %v16605_v43, %v12835_v60  ;;  %v9041_v35 = vpop.f32.mrb[187].mxu1 }
 0x8b1   : > { %12403 = vst [vmem:[%s17254_s12 + $0x258] sm:$0xff] %v12067_v18   ;;  %12410 = vst [vmem:[%s17254_s12 + $0x290] sm:$0xff] %v12102_v61   ;;  %v8710_v54 = vmax.f32 %v8662_v2, 0.0  ;;  %v9141_v0 = vmax.f32 %v9039_v63, 0.0  ;;  %v8665_v7 = vadd.f32 %v16605_v43, %v12811_v50  ;;  %v8656_v33 = vpop.f32.mrb[203].mxu0  ;;  %v9042_v59 = vadd.f32 %v16605_v43, %v9041_v35 }
 0x8b2   : > { %12402 = vst [vmem:[%s17254_s12 + $0x250] sm:$0xff] %v12062_v39   ;;  %v8708_v47 = vmax.f32 %v8654_v36, 0.0  ;;  %v9144_v25 = vmax.f32 %v9050_v6, 0.0  ;;  %v8657_v44 = vadd.f32 %v16605_v43, %v8656_v33  ;;  %v9175_v42 = vmul.f32 %v16621_v11, %v9143_v23 }
 0x8b3   : > { %v8711_v30 = vmax.f32 %v8665_v7, 0.0  ;;  %v9142_v40 = vmax.f32 %v9042_v59, 0.0  ;;  %v8742_v10 = vmul.f32 %v16621_v11, %v8710_v54  ;;  %v9173_v49 = vmul.f32 %v16621_v11, %v9141_v0 }
 0x8b4   : > { %v9176_v32 = vmul.f32 %v16621_v11, %v9144_v25  ;;  %v8709_v5 = vmax.f32 %v8657_v44, 0.0  ;;  %v8740_v48 = vmul.f32 %v16621_v11, %v8708_v47 }
 0x8b5   : > { %v8743_v37 = vmul.f32 %v16621_v11, %v8711_v30  ;;  %v9174_v45 = vmul.f32 %v16621_v11, %v9142_v40  ;;  %v12838_v51 = vpop.f32.mrb[188].mxu1 }
 0x8b6   : > { %v12117_v9 = vpack.c.bf16 %v9176_v32, %v9175_v42  ;;  %v8741_v3 = vmul.f32 %v16621_v11, %v8709_v5  ;;  %v12814_v31 = vpop.f32.mrb[204].mxu0  ;;  %v9063_v17 = vadd.f32 %v16605_v43, %v12838_v51  ;;  %v9054_v58 = vpop.f32.mrb[189].mxu1 }
 0x8b7   : > { %v12077_v15 = vpack.c.bf16 %v8743_v37, %v8742_v10  ;;  %v12112_v53 = vpack.c.bf16 %v9174_v45, %v9173_v49  ;;  %v8678_v29 = vadd.f32 %v16605_v43, %v12814_v31  ;;  %v8669_v4 = vpop.f32.mrb[205].mxu0  ;;  %v9055_v27 = vadd.f32 %v16605_v43, %v9054_v58  ;;  %v12839_v57 = vpop.f32.mrb[190].mxu1 }
 0x8b8   : > { %12413 = vst [vmem:[%s17254_s12 + $0x2a8] sm:$0xff] %v12117_v9   ;;  %v12072_v28 = vpack.c.bf16 %v8741_v3, %v8740_v48  ;;  %v9147_v62 = vmax.f32 %v9063_v17, 0.0  ;;  %v8670_v24 = vadd.f32 %v16605_v43, %v8669_v4  ;;  %v12815_v19 = vpop.f32.mrb[206].mxu0  ;;  %v9066_v22 = vadd.f32 %v16605_v43, %v12839_v57  ;;  %v9057_v16 = vpop.f32.mrb[191].mxu1 }
 0x8b9   : > { %12405 = vst [vmem:[%s17254_s12 + $0x268] sm:$0xff] %v12077_v15   ;;  %12412 = vst [vmem:[%s17254_s12 + $0x2a0] sm:$0xff] %v12112_v53   ;;  %v8714_v56 = vmax.f32 %v8678_v29, 0.0  ;;  %v9145_v1 = vmax.f32 %v9055_v27, 0.0  ;;  %v8681_v46 = vadd.f32 %v16605_v43, %v12815_v19  ;;  %v8672_v21 = vpop.f32.mrb[207].mxu0  ;;  %v9058_v55 = vadd.f32 %v16605_v43, %v9057_v16 }
 0x8ba   : > { %12404 = vst [vmem:[%s17254_s12 + $0x260] sm:$0xff] %v12072_v28   ;;  %v8712_v38 = vmax.f32 %v8670_v24, 0.0  ;;  %v9148_v14 = vmax.f32 %v9066_v22, 0.0  ;;  %v8673_v13 = vadd.f32 %v16605_v43, %v8672_v21  ;;  %v9179_v20 = vmul.f32 %v16621_v11, %v9147_v62 }
 0x8bb   : > { %v8715_v26 = vmax.f32 %v8681_v46, 0.0  ;;  %v9146_v12 = vmax.f32 %v9058_v55, 0.0  ;;  %v8746_v34 = vmul.f32 %v16621_v11, %v8714_v56  ;;  %v9177_v18 = vmul.f32 %v16621_v11, %v9145_v1 }
 0x8bc   : > { %v9180_v8 = vmul.f32 %v16621_v11, %v9148_v14  ;;  %v8713_v41 = vmax.f32 %v8673_v13, 0.0  ;;  %v8744_v63 = vmul.f32 %v16621_v11, %v8712_v38 }
 0x8bd   : > { %v8747_v61 = vmul.f32 %v16621_v11, %v8715_v26  ;;  %v9178_v2 = vmul.f32 %v16621_v11, %v9146_v12  ;;  %v12842_v52 = vpop.f32.mrb[192].mxu1 }
 0x8be   : > { %v12127_v60 = vpack.c.bf16 %v9180_v8, %v9179_v20  ;;  %v8745_v39 = vmul.f32 %v16621_v11, %v8713_v41  ;;  %v9079_v23 = vadd.f32 %v16605_v43, %v12842_v52  ;;  %v12866_v36 = vpop.f32.mrb[208].mxu0  ;;  %v9070_v50 = vpop.f32.mrb[193].mxu1 }
 0x8bf   : > { %v12087_v6 = vpack.c.bf16 %v8747_v61, %v8746_v34  ;;  %v12122_v35 = vpack.c.bf16 %v9178_v2, %v9177_v18  ;;  %v9464_v54 = vadd.f32 %v16605_v43, %v12866_v36  ;;  %v9071_v0 = vadd.f32 %v16605_v43, %v9070_v50  ;;  %v9455_v7 = vpop.f32.mrb[209].mxu0  ;;  %v12843_v33 = vpop.f32.mrb[194].mxu1 }
 0x8c0   : > { %12415 = vst [vmem:[%s17254_s12 + $0x2b8] sm:$0xff] %v12127_v60   ;;  %v12082_v59 = vpack.c.bf16 %v8745_v39, %v8744_v63  ;;  %v9151_v47 = vmax.f32 %v9079_v23, 0.0  ;;  %v9456_v25 = vadd.f32 %v16605_v43, %v9455_v7  ;;  %v9082_v44 = vadd.f32 %v16605_v43, %v12843_v33  ;;  %v12867_v30 = vpop.f32.mrb[210].mxu0  ;;  %v9073_v40 = vpop.f32.mrb[195].mxu1 }
 0x8c1   : > { %12407 = vst [vmem:[%s17254_s12 + $0x278] sm:$0xff] %v12087_v6   ;;  %12414 = vst [vmem:[%s17254_s12 + $0x2b0] sm:$0xff] %v12122_v35   ;;  %v9584_v42 = vmax.f32 %v9464_v54, 0.0  ;;  %v9149_v32 = vmax.f32 %v9071_v0, 0.0  ;;  %v9467_v5 = vadd.f32 %v16605_v43, %v12867_v30  ;;  %v9074_v10 = vadd.f32 %v16605_v43, %v9073_v40  ;;  %v9458_v49 = vpop.f32.mrb[211].mxu0 }
 0x8c2   : > { %12406 = vst [vmem:[%s17254_s12 + $0x270] sm:$0xff] %v12082_v59   ;;  %v9582_v37 = vmax.f32 %v9456_v25, 0.0  ;;  %v9152_v45 = vmax.f32 %v9082_v44, 0.0  ;;  %v9459_v51 = vadd.f32 %v16605_v43, %v9458_v49  ;;  %v9183_v3 = vmul.f32 %v16621_v11, %v9151_v47 }
 0x8c3   : > { %v9585_v48 = vmax.f32 %v9467_v5, 0.0  ;;  %v9150_v9 = vmax.f32 %v9074_v10, 0.0  ;;  %v9616_v58 = vmul.f32 %v16621_v11, %v9584_v42  ;;  %v9181_v15 = vmul.f32 %v16621_v11, %v9149_v32 }
 0x8c4   : > { %v9184_v31 = vmul.f32 %v16621_v11, %v9152_v45  ;;  %v9583_v17 = vmax.f32 %v9459_v51, 0.0  ;;  %v9614_v27 = vmul.f32 %v16621_v11, %v9582_v37 }
 0x8c5   : > { %v9617_v53 = vmul.f32 %v16621_v11, %v9585_v48  ;;  %v9182_v29 = vmul.f32 %v16621_v11, %v9150_v9  ;;  %v12846_v4 = vpop.f32.mrb[196].mxu1 }
 0x8c6   : > { %v12137_v57 = vpack.c.bf16 %v9184_v31, %v9183_v3  ;;  %v9615_v28 = vmul.f32 %v16621_v11, %v9583_v17  ;;  %v9095_v62 = vadd.f32 %v16605_v43, %v12846_v4  ;;  %v12870_v24 = vpop.f32.mrb[212].mxu0  ;;  %v9086_v19 = vpop.f32.mrb[197].mxu1 }
 0x8c7   : > { %v12177_v22 = vpack.c.bf16 %v9617_v53, %v9616_v58  ;;  %v12132_v16 = vpack.c.bf16 %v9182_v29, %v9181_v15  ;;  %v9480_v56 = vadd.f32 %v16605_v43, %v12870_v24  ;;  %v9087_v1 = vadd.f32 %v16605_v43, %v9086_v19  ;;  %v9471_v46 = vpop.f32.mrb[213].mxu0  ;;  %v12847_v21 = vpop.f32.mrb[198].mxu1 }
 0x8c8   : > { %12417 = vst [vmem:[%s17254_s12 + $0x2c8] sm:$0xff] %v12137_v57   ;;  %v12172_v55 = vpack.c.bf16 %v9615_v28, %v9614_v27  ;;  %v9155_v38 = vmax.f32 %v9095_v62, 0.0  ;;  %v9472_v14 = vadd.f32 %v16605_v43, %v9471_v46  ;;  %v9098_v13 = vadd.f32 %v16605_v43, %v12847_v21  ;;  %v12871_v26 = vpop.f32.mrb[214].mxu0  ;;  %v9089_v12 = vpop.f32.mrb[199].mxu1 }
 0x8c9   : > { %12425 = vst [vmem:[%s17254_s12 + $0x308] sm:$0xff] %v12177_v22   ;;  %12416 = vst [vmem:[%s17254_s12 + $0x2c0] sm:$0xff] %v12132_v16   ;;  %v9588_v20 = vmax.f32 %v9480_v56, 0.0  ;;  %v9153_v8 = vmax.f32 %v9087_v1, 0.0  ;;  %v9483_v41 = vadd.f32 %v16605_v43, %v12871_v26  ;;  %v9090_v34 = vadd.f32 %v16605_v43, %v9089_v12  ;;  %v9474_v18 = vpop.f32.mrb[215].mxu0 }
 0x8ca   : > { %12424 = vst [vmem:[%s17254_s12 + $0x300] sm:$0xff] %v12172_v55   ;;  %v9586_v61 = vmax.f32 %v9472_v14, 0.0  ;;  %v9156_v2 = vmax.f32 %v9098_v13, 0.0  ;;  %v9475_v52 = vadd.f32 %v16605_v43, %v9474_v18  ;;  %v9187_v39 = vmul.f32 %v16621_v11, %v9155_v38 }
 0x8cb   : > { %v9589_v63 = vmax.f32 %v9483_v41, 0.0  ;;  %v9154_v60 = vmax.f32 %v9090_v34, 0.0  ;;  %v9620_v50 = vmul.f32 %v16621_v11, %v9588_v20  ;;  %v9185_v6 = vmul.f32 %v16621_v11, %v9153_v8 }
 0x8cc   : > { %v9188_v23 = vmul.f32 %v16621_v11, %v9156_v2  ;;  %v9587_v36 = vmax.f32 %v9475_v52, 0.0  ;;  %v9618_v7 = vmul.f32 %v16621_v11, %v9586_v61 }
 0x8cd   : > { %v9621_v35 = vmul.f32 %v16621_v11, %v9589_v63  ;;  %v9186_v54 = vmul.f32 %v16621_v11, %v9154_v60  ;;  %v12850_v0 = vpop.f32.mrb[200].mxu1 }
 0x8ce   : > { %v12147_v33 = vpack.c.bf16 %v9188_v23, %v9187_v39  ;;  %v9619_v59 = vmul.f32 %v16621_v11, %v9587_v36  ;;  %v9111_v47 = vadd.f32 %v16605_v43, %v12850_v0  ;;  %v12874_v25 = vpop.f32.mrb[216].mxu0  ;;  %v9102_v44 = vpop.f32.mrb[201].mxu1 }
 0x8cf   : > { %v12187_v30 = vpack.c.bf16 %v9621_v35, %v9620_v50  ;;  %v12142_v40 = vpack.c.bf16 %v9186_v54, %v9185_v6  ;;  %v9496_v42 = vadd.f32 %v16605_v43, %v12874_v25  ;;  %v9103_v32 = vadd.f32 %v16605_v43, %v9102_v44  ;;  %v9487_v5 = vpop.f32.mrb[217].mxu0  ;;  %v12851_v10 = vpop.f32.mrb[202].mxu1 }
 0x8d0   : > { %12419 = vst [vmem:[%s17254_s12 + $0x2d8] sm:$0xff] %v12147_v33   ;;  %v12182_v49 = vpack.c.bf16 %v9619_v59, %v9618_v7  ;;  %v9159_v37 = vmax.f32 %v9111_v47, 0.0  ;;  %v9488_v45 = vadd.f32 %v16605_v43, %v9487_v5  ;;  %v9114_v51 = vadd.f32 %v16605_v43, %v12851_v10  ;;  %v12875_v48 = vpop.f32.mrb[218].mxu0  ;;  %v9105_v9 = vpop.f32.mrb[203].mxu1 }
 0x8d1   : > { %12427 = vst [vmem:[%s17254_s12 + $0x318] sm:$0xff] %v12187_v30   ;;  %12418 = vst [vmem:[%s17254_s12 + $0x2d0] sm:$0xff] %v12142_v40   ;;  %v9592_v3 = vmax.f32 %v9496_v42, 0.0  ;;  %v9157_v31 = vmax.f32 %v9103_v32, 0.0  ;;  %v9499_v17 = vadd.f32 %v16605_v43, %v12875_v48  ;;  %v9106_v58 = vadd.f32 %v16605_v43, %v9105_v9  ;;  %v9490_v15 = vpop.f32.mrb[219].mxu0 }
 0x8d2   : > { %12426 = vst [vmem:[%s17254_s12 + $0x310] sm:$0xff] %v12182_v49   ;;  %v9590_v53 = vmax.f32 %v9488_v45, 0.0  ;;  %v9160_v29 = vmax.f32 %v9114_v51, 0.0  ;;  %v9491_v4 = vadd.f32 %v16605_v43, %v9490_v15  ;;  %v9191_v28 = vmul.f32 %v16621_v11, %v9159_v37 }
 0x8d3   : > { %v9593_v27 = vmax.f32 %v9499_v17, 0.0  ;;  %v9158_v57 = vmax.f32 %v9106_v58, 0.0  ;;  %v9624_v19 = vmul.f32 %v16621_v11, %v9592_v3  ;;  %v9189_v22 = vmul.f32 %v16621_v11, %v9157_v31 }
 0x8d4   : > { %v9192_v62 = vmul.f32 %v16621_v11, %v9160_v29  ;;  %v9591_v24 = vmax.f32 %v9491_v4, 0.0  ;;  %v9622_v46 = vmul.f32 %v16621_v11, %v9590_v53 }
 0x8d5   : > { %v9625_v16 = vmul.f32 %v16621_v11, %v9593_v27  ;;  %v9190_v56 = vmul.f32 %v16621_v11, %v9158_v57  ;;  %v12854_v1 = vpop.f32.mrb[204].mxu1 }
 0x8d6   : > { %v12157_v21 = vpack.c.bf16 %v9192_v62, %v9191_v28  ;;  %v9623_v55 = vmul.f32 %v16621_v11, %v9591_v24  ;;  %v9127_v38 = vadd.f32 %v16605_v43, %v12854_v1  ;;  %v12878_v14 = vpop.f32.mrb[220].mxu0  ;;  %v9118_v13 = vpop.f32.mrb[205].mxu1 }
 0x8d7   : > { %v12197_v26 = vpack.c.bf16 %v9625_v16, %v9624_v19  ;;  %v12152_v12 = vpack.c.bf16 %v9190_v56, %v9189_v22  ;;  %v9512_v20 = vadd.f32 %v16605_v43, %v12878_v14  ;;  %v9119_v8 = vadd.f32 %v16605_v43, %v9118_v13  ;;  %v9503_v41 = vpop.f32.mrb[221].mxu0  ;;  %v12855_v34 = vpop.f32.mrb[206].mxu1 }
 0x8d8   : > { %12421 = vst [vmem:[%s17254_s12 + $0x2e8] sm:$0xff] %v12157_v21   ;;  %v12192_v18 = vpack.c.bf16 %v9623_v55, %v9622_v46  ;;  %v9163_v61 = vmax.f32 %v9127_v38, 0.0  ;;  %v9504_v2 = vadd.f32 %v16605_v43, %v9503_v41  ;;  %v9130_v52 = vadd.f32 %v16605_v43, %v12855_v34  ;;  %v12879_v63 = vpop.f32.mrb[222].mxu0  ;;  %v9121_v60 = vpop.f32.mrb[207].mxu1 }
 0x8d9   : > { %12429 = vst [vmem:[%s17254_s12 + $0x328] sm:$0xff] %v12197_v26   ;;  %12420 = vst [vmem:[%s17254_s12 + $0x2e0] sm:$0xff] %v12152_v12   ;;  %v9596_v39 = vmax.f32 %v9512_v20, 0.0  ;;  %v9161_v23 = vmax.f32 %v9119_v8, 0.0  ;;  %v9515_v36 = vadd.f32 %v16605_v43, %v12879_v63  ;;  %v9122_v50 = vadd.f32 %v16605_v43, %v9121_v60  ;;  %v9506_v6 = vpop.f32.mrb[223].mxu0 }
 0x8da   : > { %12428 = vst [vmem:[%s17254_s12 + $0x320] sm:$0xff] %v12192_v18   ;;  %v9594_v35 = vmax.f32 %v9504_v2, 0.0  ;;  %v9164_v54 = vmax.f32 %v9130_v52, 0.0  ;;  %v9507_v0 = vadd.f32 %v16605_v43, %v9506_v6  ;;  %v9195_v59 = vmul.f32 %v16621_v11, %v9163_v61 }
 0x8db   : > { %v9597_v7 = vmax.f32 %v9515_v36, 0.0  ;;  %v9162_v33 = vmax.f32 %v9122_v50, 0.0  ;;  %v9628_v44 = vmul.f32 %v16621_v11, %v9596_v39  ;;  %v9193_v30 = vmul.f32 %v16621_v11, %v9161_v23 }
 0x8dc   : > { %v9196_v47 = vmul.f32 %v16621_v11, %v9164_v54  ;;  %v9595_v25 = vmax.f32 %v9507_v0, 0.0  ;;  %v9626_v5 = vmul.f32 %v16621_v11, %v9594_v35 }
 0x8dd   : > { %v9629_v40 = vmul.f32 %v16621_v11, %v9597_v7  ;;  %v9194_v42 = vmul.f32 %v16621_v11, %v9162_v33  ;;  %v12906_v32 = vpop.f32.mrb[208].mxu1 }
 0x8de   : > { %v12167_v10 = vpack.c.bf16 %v9196_v47, %v9195_v59  ;;  %v9627_v49 = vmul.f32 %v16621_v11, %v9595_v25  ;;  %v12882_v37 = vpop.f32.mrb[224].mxu0  ;;  %v9913_v45 = vadd.f32 %v16605_v43, %v12906_v32  ;;  %v9904_v51 = vpop.f32.mrb[209].mxu1 }
 0x8df   : > { %v12207_v48 = vpack.c.bf16 %v9629_v40, %v9628_v44  ;;  %v12162_v9 = vpack.c.bf16 %v9194_v42, %v9193_v30  ;;  %v9528_v3 = vadd.f32 %v16605_v43, %v12882_v37  ;;  %v9519_v31 = vpop.f32.mrb[225].mxu0  ;;  %v9905_v17 = vadd.f32 %v16605_v43, %v9904_v51  ;;  %v12907_v58 = vpop.f32.mrb[210].mxu1 }
 0x8e0   : > { %12423 = vst [vmem:[%s17254_s12 + $0x2f8] sm:$0xff] %v12167_v10   ;;  %v12202_v15 = vpack.c.bf16 %v9627_v49, %v9626_v5  ;;  %v10033_v53 = vmax.f32 %v9913_v45, 0.0  ;;  %v9520_v29 = vadd.f32 %v16605_v43, %v9519_v31  ;;  %v12883_v4 = vpop.f32.mrb[226].mxu0  ;;  %v9916_v27 = vadd.f32 %v16605_v43, %v12907_v58  ;;  %v9907_v57 = vpop.f32.mrb[211].mxu1 }
 0x8e1   : > { %12431 = vst [vmem:[%s17254_s12 + $0x338] sm:$0xff] %v12207_v48   ;;  %12422 = vst [vmem:[%s17254_s12 + $0x2f0] sm:$0xff] %v12162_v9   ;;  %v9600_v28 = vmax.f32 %v9528_v3, 0.0  ;;  %v10031_v62 = vmax.f32 %v9905_v17, 0.0  ;;  %v9531_v24 = vadd.f32 %v16605_v43, %v12883_v4  ;;  %v9522_v19 = vpop.f32.mrb[227].mxu0  ;;  %v9908_v22 = vadd.f32 %v16605_v43, %v9907_v57 }
 0x8e2   : > { %12430 = vst [vmem:[%s17254_s12 + $0x330] sm:$0xff] %v12202_v15   ;;  %v9598_v16 = vmax.f32 %v9520_v29, 0.0  ;;  %v10034_v56 = vmax.f32 %v9916_v27, 0.0  ;;  %v9523_v1 = vadd.f32 %v16605_v43, %v9522_v19  ;;  %v10065_v55 = vmul.f32 %v16621_v11, %v10033_v53 }
 0x8e3   : > { %v9601_v46 = vmax.f32 %v9531_v24, 0.0  ;;  %v10032_v21 = vmax.f32 %v9908_v22, 0.0  ;;  %v9632_v13 = vmul.f32 %v16621_v11, %v9600_v28  ;;  %v10063_v26 = vmul.f32 %v16621_v11, %v10031_v62 }
 0x8e4   : > { %v10066_v38 = vmul.f32 %v16621_v11, %v10034_v56  ;;  %v9599_v14 = vmax.f32 %v9523_v1, 0.0  ;;  %v9630_v41 = vmul.f32 %v16621_v11, %v9598_v16 }
 0x8e5   : > { %v9633_v12 = vmul.f32 %v16621_v11, %v9601_v46  ;;  %v10064_v20 = vmul.f32 %v16621_v11, %v10032_v21  ;;  %v12910_v8 = vpop.f32.mrb[212].mxu1 }
 0x8e6   : > { %v12257_v34 = vpack.c.bf16 %v10066_v38, %v10065_v55  ;;  %v9631_v18 = vmul.f32 %v16621_v11, %v9599_v14  ;;  %v12886_v61 = vpop.f32.mrb[228].mxu0  ;;  %v9929_v2 = vadd.f32 %v16605_v43, %v12910_v8  ;;  %v9920_v52 = vpop.f32.mrb[213].mxu1 }
 0x8e7   : > { %v12217_v63 = vpack.c.bf16 %v9633_v12, %v9632_v13  ;;  %v12252_v60 = vpack.c.bf16 %v10064_v20, %v10063_v26  ;;  %v9544_v39 = vadd.f32 %v16605_v43, %v12886_v61  ;;  %v9535_v23 = vpop.f32.mrb[229].mxu0  ;;  %v9921_v36 = vadd.f32 %v16605_v43, %v9920_v52  ;;  %v12911_v50 = vpop.f32.mrb[214].mxu1 }
 0x8e8   : > { %12441 = vst [vmem:[%s17254_s12 + $0x388] sm:$0xff] %v12257_v34   ;;  %v12212_v6 = vpack.c.bf16 %v9631_v18, %v9630_v41  ;;  %v10037_v35 = vmax.f32 %v9929_v2, 0.0  ;;  %v9536_v54 = vadd.f32 %v16605_v43, %v9535_v23  ;;  %v12887_v0 = vpop.f32.mrb[230].mxu0  ;;  %v9932_v7 = vadd.f32 %v16605_v43, %v12911_v50  ;;  %v9923_v33 = vpop.f32.mrb[215].mxu1 }
 0x8e9   : > { %12433 = vst [vmem:[%s17254_s12 + $0x348] sm:$0xff] %v12217_v63   ;;  %12440 = vst [vmem:[%s17254_s12 + $0x380] sm:$0xff] %v12252_v60   ;;  %v9604_v59 = vmax.f32 %v9544_v39, 0.0  ;;  %v10035_v47 = vmax.f32 %v9921_v36, 0.0  ;;  %v9547_v25 = vadd.f32 %v16605_v43, %v12887_v0  ;;  %v9538_v44 = vpop.f32.mrb[231].mxu0  ;;  %v9924_v30 = vadd.f32 %v16605_v43, %v9923_v33 }
 0x8ea   : > { %12432 = vst [vmem:[%s17254_s12 + $0x340] sm:$0xff] %v12212_v6   ;;  %v9602_v40 = vmax.f32 %v9536_v54, 0.0  ;;  %v10038_v42 = vmax.f32 %v9932_v7, 0.0  ;;  %v9539_v32 = vadd.f32 %v16605_v43, %v9538_v44  ;;  %v10069_v49 = vmul.f32 %v16621_v11, %v10037_v35 }
 0x8eb   : > { %v9605_v5 = vmax.f32 %v9547_v25, 0.0  ;;  %v10036_v10 = vmax.f32 %v9924_v30, 0.0  ;;  %v9636_v51 = vmul.f32 %v16621_v11, %v9604_v59  ;;  %v10067_v48 = vmul.f32 %v16621_v11, %v10035_v47  ;;  %v16968_v59 = vld [vmem:[#allocation20] ss:$0 sm:$0xff] }
 0x8ec   : > { %v10070_v37 = vmul.f32 %v16621_v11, %v10038_v42  ;;  %v9603_v45 = vmax.f32 %v9539_v32, 0.0  ;;  %v9634_v17 = vmul.f32 %v16621_v11, %v9602_v40 }
 0x8ed   : > { %v9637_v9 = vmul.f32 %v16621_v11, %v9605_v5  ;;  %v10068_v3 = vmul.f32 %v16621_v11, %v10036_v10  ;;  %v12914_v31 = vpop.f32.mrb[216].mxu1 }
 0x8ee   : > { %v12267_v58 = vpack.c.bf16 %v10070_v37, %v10069_v49  ;;  %v9635_v15 = vmul.f32 %v16621_v11, %v9603_v45  ;;  %v12890_v53 = vpop.f32.mrb[232].mxu0  ;;  %v9945_v29 = vadd.f32 %v16605_v43, %v12914_v31  ;;  %v9936_v4 = vpop.f32.mrb[217].mxu1 }
 0x8ef   : > { %v12227_v27 = vpack.c.bf16 %v9637_v9, %v9636_v51  ;;  %v12262_v57 = vpack.c.bf16 %v10068_v3, %v10067_v48  ;;  %v9560_v28 = vadd.f32 %v16605_v43, %v12890_v53  ;;  %v9551_v62 = vpop.f32.mrb[233].mxu0  ;;  %v9937_v24 = vadd.f32 %v16605_v43, %v9936_v4  ;;  %v12915_v19 = vpop.f32.mrb[218].mxu1 }
 0x8f0   : > { %12443 = vst [vmem:[%s17254_s12 + $0x398] sm:$0xff] %v12267_v58   ;;  %v12222_v22 = vpack.c.bf16 %v9635_v15, %v9634_v17  ;;  %v10041_v16 = vmax.f32 %v9945_v29, 0.0  ;;  %v9552_v56 = vadd.f32 %v16605_v43, %v9551_v62  ;;  %v12891_v1 = vpop.f32.mrb[234].mxu0  ;;  %v9948_v46 = vadd.f32 %v16605_v43, %v12915_v19  ;;  %v9939_v21 = vpop.f32.mrb[219].mxu1  ;;  %v16989_v58 = vld [vmem:[#allocation22] ss:$0 sm:$0xff] }
 0x8f1   : > { %12435 = vst [vmem:[%s17254_s12 + $0x358] sm:$0xff] %v12227_v27   ;;  %12442 = vst [vmem:[%s17254_s12 + $0x390] sm:$0xff] %v12262_v57   ;;  %v9608_v55 = vmax.f32 %v9560_v28, 0.0  ;;  %v10039_v38 = vmax.f32 %v9937_v24, 0.0  ;;  %v9563_v14 = vadd.f32 %v16605_v43, %v12891_v1  ;;  %v9554_v13 = vpop.f32.mrb[235].mxu0  ;;  %v9940_v26 = vadd.f32 %v16605_v43, %v9939_v21 }
 0x8f2   : > { %12434 = vst [vmem:[%s17254_s12 + $0x350] sm:$0xff] %v12222_v22   ;;  %v9606_v12 = vmax.f32 %v9552_v56, 0.0  ;;  %v10042_v20 = vmax.f32 %v9948_v46, 0.0  ;;  %v9555_v8 = vadd.f32 %v16605_v43, %v9554_v13  ;;  %v10073_v18 = vmul.f32 %v16621_v11, %v10041_v16 }
 0x8f3   : > { %v9609_v41 = vmax.f32 %v9563_v14, 0.0  ;;  %v10040_v34 = vmax.f32 %v9940_v26, 0.0  ;;  %v9640_v52 = vmul.f32 %v16621_v11, %v9608_v55  ;;  %v10071_v63 = vmul.f32 %v16621_v11, %v10039_v38 }
 0x8f4   : > { %v10074_v61 = vmul.f32 %v16621_v11, %v10042_v20  ;;  %v9607_v2 = vmax.f32 %v9555_v8, 0.0  ;;  %v9638_v36 = vmul.f32 %v16621_v11, %v9606_v12 }
 0x8f5   : > { %v9641_v60 = vmul.f32 %v16621_v11, %v9609_v41  ;;  %v10072_v39 = vmul.f32 %v16621_v11, %v10040_v34  ;;  %v12918_v23 = vpop.f32.mrb[220].mxu1 }
 0x8f6   : > { %v12277_v50 = vpack.c.bf16 %v10074_v61, %v10073_v18  ;;  %v9639_v6 = vmul.f32 %v16621_v11, %v9607_v2  ;;  %v12894_v35 = vpop.f32.mrb[236].mxu0  ;;  %v9961_v54 = vadd.f32 %v16605_v43, %v12918_v23  ;;  %v9952_v0 = vpop.f32.mrb[221].mxu1 }
 0x8f7   : > { %v12237_v7 = vpack.c.bf16 %v9641_v60, %v9640_v52  ;;  %v12272_v33 = vpack.c.bf16 %v10072_v39, %v10071_v63  ;;  %v9576_v47 = vadd.f32 %v16968_v59, %v12894_v35  ;;  %v9567_v25 = vpop.f32.mrb[237].mxu0  ;;  %v9953_v44 = vadd.f32 %v16968_v59, %v9952_v0  ;;  %v12919_v30 = vpop.f32.mrb[222].mxu1 }
 0x8f8   : > { %12445 = vst [vmem:[%s17254_s12 + $0x3a8] sm:$0xff] %v12277_v50   ;;  %v12232_v40 = vpack.c.bf16 %v9639_v6, %v9638_v36  ;;  %v10045_v11 = vmax.f32 %v9961_v54, 0.0  ;;  %v9568_v42 = vadd.f32 %v16968_v59, %v9567_v25  ;;  %v12895_v43 = vpop.f32.mrb[238].mxu0  ;;  %v9964_v32 = vadd.f32 %v16968_v59, %v12919_v30  ;;  %v9955_v5 = vpop.f32.mrb[223].mxu1 }
 0x8f9   : > { %12437 = vst [vmem:[%s17254_s12 + $0x368] sm:$0xff] %v12237_v7   ;;  %12444 = vst [vmem:[%s17254_s12 + $0x3a0] sm:$0xff] %v12272_v33   ;;  %v9612_v10 = vmax.f32 %v9576_v47, 0.0  ;;  %v10043_v49 = vmax.f32 %v9953_v44, 0.0  ;;  %v9579_v37 = vadd.f32 %v16968_v59, %v12895_v43  ;;  %v9570_v45 = vpop.f32.mrb[239].mxu0  ;;  %v9956_v51 = vadd.f32 %v16968_v59, %v9955_v5 }
 0x8fa   : > { %12436 = vst [vmem:[%s17254_s12 + $0x360] sm:$0xff] %v12232_v40   ;;  %v9610_v48 = vmax.f32 %v9568_v42, 0.0  ;;  %v10046_v9 = vmax.f32 %v9964_v32, 0.0  ;;  %v9571_v3 = vadd.f32 %v16968_v59, %v9570_v45  ;;  %v10077_v15 = vmul.f32 %v16989_v58, %v10045_v11 }
 0x8fb   : > { %v9613_v31 = vmax.f32 %v9579_v37, 0.0  ;;  %v10044_v17 = vmax.f32 %v9956_v51, 0.0  ;;  %v9644_v4 = vmul.f32 %v16989_v58, %v9612_v10  ;;  %v10075_v27 = vmul.f32 %v16989_v58, %v10043_v49 }
 0x8fc   : > { %v10078_v53 = vmul.f32 %v16989_v58, %v10046_v9  ;;  %v9611_v29 = vmax.f32 %v9571_v3, 0.0  ;;  %v9642_v24 = vmul.f32 %v16989_v58, %v9610_v48 }
 0x8fd   : > { %v9645_v57 = vmul.f32 %v16989_v58, %v9613_v31  ;;  %v10076_v28 = vmul.f32 %v16989_v58, %v10044_v17  ;;  %v12922_v62 = vpop.f32.mrb[224].mxu1 }
 0x8fe   : > { %v12287_v19 = vpack.c.bf16 %v10078_v53, %v10077_v15  ;;  %v9643_v22 = vmul.f32 %v16989_v58, %v9611_v29  ;;  %v9977_v16 = vadd.f32 %v16968_v59, %v12922_v62  ;;  %v9968_v56 = vpop.f32.mrb[225].mxu1 }
 0x8ff   : > { %v12247_v1 = vpack.c.bf16 %v9645_v57, %v9644_v4  ;;  %v12282_v46 = vpack.c.bf16 %v10076_v28, %v10075_v27  ;;  %v9969_v21 = vadd.f32 %v16968_v59, %v9968_v56  ;;  %v12923_v55 = vpop.f32.mrb[226].mxu1 }
 0x900   : > { %12447 = vst [vmem:[%s17254_s12 + $0x3b8] sm:$0xff] %v12287_v19   ;;  %v12242_v38 = vpack.c.bf16 %v9643_v22, %v9642_v24  ;;  %v10049_v14 = vmax.f32 %v9977_v16, 0.0  ;;  %v9980_v13 = vadd.f32 %v16968_v59, %v12923_v55  ;;  %v9971_v26 = vpop.f32.mrb[227].mxu1 }
 0x901   : > { %12439 = vst [vmem:[%s17254_s12 + $0x378] sm:$0xff] %v12247_v1   ;;  %12446 = vst [vmem:[%s17254_s12 + $0x3b0] sm:$0xff] %v12282_v46   ;;  %v10047_v12 = vmax.f32 %v9969_v21, 0.0  ;;  %v9972_v20 = vadd.f32 %v16968_v59, %v9971_v26 }
 0x902   : > { %12438 = vst [vmem:[%s17254_s12 + $0x370] sm:$0xff] %v12242_v38   ;;  %v10050_v8 = vmax.f32 %v9980_v13, 0.0  ;;  %v10081_v34 = vmul.f32 %v16989_v58, %v10049_v14 }
 0x903   : > { %v10048_v41 = vmax.f32 %v9972_v20, 0.0  ;;  %v10079_v61 = vmul.f32 %v16989_v58, %v10047_v12 }
 0x904   : > { %v10082_v18 = vmul.f32 %v16989_v58, %v10050_v8 }
 0x905   : > { %v10080_v2 = vmul.f32 %v16989_v58, %v10048_v41  ;;  %v12926_v52 = vpop.f32.mrb[228].mxu1 }
 0x906   : > { %v12297_v63 = vpack.c.bf16 %v10082_v18, %v10081_v34  ;;  %v9993_v60 = vadd.f32 %v16968_v59, %v12926_v52  ;;  %v9984_v39 = vpop.f32.mrb[229].mxu1 }
 0x907   : > { %v12292_v23 = vpack.c.bf16 %v10080_v2, %v10079_v61  ;;  %v9985_v36 = vadd.f32 %v16968_v59, %v9984_v39  ;;  %v12927_v50 = vpop.f32.mrb[230].mxu1 }
 0x908   : > { %12449 = vst [vmem:[%s17254_s12 + $0x3c8] sm:$0xff] %v12297_v63   ;;  %v10053_v6 = vmax.f32 %v9993_v60, 0.0  ;;  %v9996_v35 = vadd.f32 %v16968_v59, %v12927_v50  ;;  %v9987_v54 = vpop.f32.mrb[231].mxu1 }
 0x909   : > { %12448 = vst [vmem:[%s17254_s12 + $0x3c0] sm:$0xff] %v12292_v23   ;;  %v10051_v0 = vmax.f32 %v9985_v36, 0.0  ;;  %v9988_v7 = vadd.f32 %v16968_v59, %v9987_v54 }
 0x90a   : > { %v10054_v33 = vmax.f32 %v9996_v35, 0.0  ;;  %v10085_v25 = vmul.f32 %v16989_v58, %v10053_v6 }
 0x90b   : > { %v10052_v47 = vmax.f32 %v9988_v7, 0.0  ;;  %v10083_v30 = vmul.f32 %v16989_v58, %v10051_v0 }
 0x90c   : > { %v10086_v44 = vmul.f32 %v16989_v58, %v10054_v33 }
 0x90d   : > { %v10084_v40 = vmul.f32 %v16989_v58, %v10052_v47  ;;  %v12930_v11 = vpop.f32.mrb[232].mxu1 }
 0x90e   : > { %v12307_v42 = vpack.c.bf16 %v10086_v44, %v10085_v25  ;;  %v10009_v43 = vadd.f32 %v16968_v59, %v12930_v11  ;;  %v10000_v32 = vpop.f32.mrb[233].mxu1 }
 0x90f   : > { %v12302_v5 = vpack.c.bf16 %v10084_v40, %v10083_v30  ;;  %v10001_v10 = vadd.f32 %v16968_v59, %v10000_v32  ;;  %v12931_v49 = vpop.f32.mrb[234].mxu1 }
 0x910   : > { %12451 = vst [vmem:[%s17254_s12 + $0x3d8] sm:$0xff] %v12307_v42   ;;  %v10057_v37 = vmax.f32 %v10009_v43, 0.0  ;;  %v10012_v45 = vadd.f32 %v16968_v59, %v12931_v49  ;;  %v10003_v51 = vpop.f32.mrb[235].mxu1 }
 0x911   : > { %12450 = vst [vmem:[%s17254_s12 + $0x3d0] sm:$0xff] %v12302_v5   ;;  %v10055_v48 = vmax.f32 %v10001_v10, 0.0  ;;  %v10004_v9 = vadd.f32 %v16968_v59, %v10003_v51 }
 0x912   : > { %v10058_v3 = vmax.f32 %v10012_v45, 0.0  ;;  %v10089_v17 = vmul.f32 %v16989_v58, %v10057_v37 }
 0x913   : > { %v10056_v31 = vmax.f32 %v10004_v9, 0.0  ;;  %v10087_v53 = vmul.f32 %v16989_v58, %v10055_v48 }
 0x914   : > { %v10090_v15 = vmul.f32 %v16989_v58, %v10058_v3 }
 0x915   : > { %v10088_v29 = vmul.f32 %v16989_v58, %v10056_v31  ;;  %v12934_v4 = vpop.f32.mrb[236].mxu1 }
 0x916   : > { %v12317_v27 = vpack.c.bf16 %v10090_v15, %v10089_v17  ;;  %v10025_v57 = vadd.f32 %v16968_v59, %v12934_v4  ;;  %v10016_v28 = vpop.f32.mrb[237].mxu1 }
 0x917   : > { %v12312_v62 = vpack.c.bf16 %v10088_v29, %v10087_v53  ;;  %v10017_v24 = vadd.f32 %v16968_v59, %v10016_v28  ;;  %v12935_v19 = vpop.f32.mrb[238].mxu1 }
 0x918   : > { %12453 = vst [vmem:[%s17254_s12 + $0x3e8] sm:$0xff] %v12317_v27   ;;  %v10061_v22 = vmax.f32 %v10025_v57, 0.0  ;;  %v10028_v16 = vadd.f32 %v16968_v59, %v12935_v19  ;;  %v10019_v56 = vpop.f32.mrb[239].mxu1 }
 0x919   : > { %12452 = vst [vmem:[%s17254_s12 + $0x3e0] sm:$0xff] %v12312_v62   ;;  %v10059_v1 = vmax.f32 %v10017_v24, 0.0  ;;  %v10020_v46 = vadd.f32 %v16968_v59, %v10019_v56 }
 0x91a   : > { %v10062_v21 = vmax.f32 %v10028_v16, 0.0  ;;  %v10093_v38 = vmul.f32 %v16989_v58, %v10061_v22 }
 0x91b   : > { %v10060_v55 = vmax.f32 %v10020_v46, 0.0  ;;  %v10091_v13 = vmul.f32 %v16989_v58, %v10059_v1 }
 0x91c   : > { %v10094_v14 = vmul.f32 %v16989_v58, %v10062_v21 }
 0x91d   : > { %v10092_v26 = vmul.f32 %v16989_v58, %v10060_v55 }
 0x91e   : > { %v12327_v12 = vpack.c.bf16 %v10094_v14, %v10093_v38 }
 0x91f   : > { %v12322_v20 = vpack.c.bf16 %v10092_v26, %v10091_v13 }
 0x920   : > { %12455 = vst [vmem:[%s17254_s12 + $0x3f8] sm:$0xff] %v12327_v12  }
 0x921   : > { %12454 = vst [vmem:[%s17254_s12 + $0x3f0] sm:$0xff] %v12322_v20  }
 0x922 PF: > { %p29_p3 = scmp.ge.s32.totalorder %s14392_s25, 6   ;;  %s17256_s21 = smov %s14064_s22 }
 0x923   : > { %s17257_s22 = smov %s14068_s23  ;;  %s17258_s23 = smov %s14403_s14 }
 0x924   : > { %s17259_s24 = smov %s14392_s25  ;;  %31 = sbr.rel (!%p29_p3) target bundleno = 18 (0x12), region = 158 }
 0x92b   :  { %10266 = vsyncpa [#allocation7], 1 }
 0x92c   :  { %10268 = vsyncpa [#allocation7 + $0x1], 1 }
 0x92d   :  { %10269 = vsyncpa [#allocation9], 1 }
 0x92e   :  { %10271 = vsyncpa [#allocation9 + $0x1], 1 }
 0x92f   :  { %10272 = vsyncpa [#allocation12], 1 }
 0x930   :  { %10273 = vsyncpa [#allocation15], 1 }
 0x931   :  { %10274 = vsyncpa [#allocation18], 1 }
 0x932   :  { %10275 = vsyncpa [#allocation21], 1 }

</bundles_post_ra>
